<compile_context>
chip_gen: v7x
topology: tpu7x:2x2x1
jax: 0.10.0
libtpu: 0.0.40
codegen_flags: <defaults>
</compile_context>

<pallas_src>
import functools
import math

import jax
import jax.numpy as jnp
from jax.experimental import pallas as pl
from jax.experimental.pallas import tpu as pltpu


# -----------------------------------------------------------------------------
# In-kernel helpers (trace-time Python, all shapes static)
# -----------------------------------------------------------------------------
def _fold_groups(v, groups, C, op):
    """Pairwise-fold `groups` contiguous C-lane blocks of v (rows, groups*C)
    down to a single (rows, C) block using `op` (log depth)."""
    g = groups
    while g > 1:
        half = g // 2
        hl = half * C
        lo = op(v[:, :hl], v[:, hl:2 * hl])
        if g % 2 == 1:  # odd tail block -> fold into block 0
            tail = op(lo[:, :C], v[:, 2 * hl:2 * hl + C])
            lo = jnp.concatenate([tail, lo[:, C:]], axis=1) if half > 1 else tail
        v = lo
        g = half
    return v


def _group_max(v, C):
    """Log-fold so that lane w*C of every contiguous C-lane group holds the max
    over that group (other lanes hold don't-care values).  C must be a power of
    two; the circular shift never wraps into the selected base lanes."""
    m = v
    sh = C // 2
    while sh >= 1:
        m = jnp.maximum(m, jnp.concatenate([m[:, sh:], m[:, :sh]], axis=1))
        sh //= 2
    return m


# -----------------------------------------------------------------------------
# Fused kernel: B images per grid step, everything stays in registers/VMEM.
# -----------------------------------------------------------------------------
def _cbam_fused_kernel(x_ref, dww_ref, bns_ref, bnb_ref, w1_ref, w2t_ref,
                       meanw_ref, selw_ref, tsp_ref, esp_ref, o_ref,
                       *, H, W, C, K, SK, B):
    f32 = jnp.float32
    P, SP = K // 2, SK // 2
    WC = W * C
    Hp = H + 2 * P

    # small weights / constants hoisted out of the per-image loop
    bns = bns_ref[...]                                   # (1, WC)
    bnb = bnb_ref[...]                                   # (1, WC)
    w1 = w1_ref[...]                                     # (C, Cr)
    w2t = w2t_ref[...]                                   # (Cr, WC)
    dwr = [dww_ref[t:t + 1, :] for t in range(K * K)]    # K*K x (1, WC)
    zrow = jnp.zeros((P, WC), f32)
    zcol = jnp.zeros((Hp, P * C), f32)
    zsp = jnp.zeros((SP, 2 * W), f32)

    for b in range(B):                                   # unrolled, B is static
        # ---- stage 1: depthwise KxK conv (stride 1, pad P) + folded BN ------
        xb = x_ref[b]                                    # (H, WC) aligned load
        xh = jnp.concatenate([zrow, xb, zrow], axis=0)   # (Hp, WC) H zero-pad
        acc = jnp.zeros((H, WC), f32)
        for kw in range(K):                              # kw outer: 1 lane shift per kw
            d = (kw - P) * C
            if d == 0:
                slab = xh
            elif d < 0:
                slab = jnp.concatenate([zcol, xh[:, :WC + d]], axis=1)
            else:
                slab = jnp.concatenate([xh[:, d:], zcol], axis=1)
            for kh in range(K):                          # kh inner: sublane slices
                acc = acc + slab[kh:kh + H, :] * dwr[kh * K + kw]
        y = acc * bns + bnb                              # (H, WC)

        # ---- stage 2: channel attention --------------------------------------
        rsum = jnp.sum(y, axis=0, keepdims=True)         # (1, WC)
        rmax = jnp.max(y, axis=0, keepdims=True)         # (1, WC)
        csum = _fold_groups(rsum, W, C, jnp.add)         # (1, C)
        cmax = _fold_groups(rmax, W, C, jnp.maximum)     # (1, C)
        pool = jnp.concatenate(
            [csum * (1.0 / float(H * W)), cmax], axis=0)            # (2, C)
        h1 = jnp.dot(pool, w1, preferred_element_type=f32)           # (2, Cr)
        h1 = jnp.where(h1 >= 0, h1, 0.1 * h1)                        # LeakyReLU(0.1)
        hsum = h1[0:1, :] + h1[1:2, :]                               # fc2 is linear
        logits = jnp.dot(hsum, w2t, preferred_element_type=f32)      # (1, WC)
        catt = 1.0 / (1.0 + jnp.exp(-logits))
        y2 = y * catt                                                # (H, WC)

        # ---- stage 3: spatial attention ---------------------------------------
        # channel-mean map via MXU; channel-max map via log-fold + selection matmul
        mean_map = jnp.dot(y2, meanw_ref[...], preferred_element_type=f32)  # (H, W)
        if C & (C - 1) == 0:
            gm = _group_max(y2, C)
            max_map = jnp.dot(gm, selw_ref[...], preferred_element_type=f32)  # (H, W)
        else:  # fallback for non-power-of-two C: per-w cross-lane reductions
            cols = [jnp.max(y2[:, w * C:(w + 1) * C], axis=1, keepdims=True)
                    for w in range(W)]
            max_map = jnp.concatenate(cols, axis=1)

        mm = jnp.concatenate([mean_map, max_map], axis=1)            # (H, 2W)
        mm_pad = jnp.concatenate([zsp, mm, zsp], axis=0)             # (H+2SP, 2W)
        # SKxSK conv over [mean|max] as ONE fused Toeplitz matmul on the MXU
        stacked = jnp.concatenate(
            [mm_pad[kh:kh + H, :] for kh in range(SK)], axis=1)      # (H, SK*2W)
        satt = jnp.dot(stacked, tsp_ref[...], preferred_element_type=f32)   # (H, W)
        satt = 1.0 / (1.0 + jnp.exp(-satt))
        # broadcast (H, W) -> lane-dense (H, WC) with a 0/1 selection matmul
        satt_d = jnp.dot(satt, esp_ref[...], preferred_element_type=f32)    # (H, WC)

        o_ref[b] = y2 * satt_d                                       # aligned store


# -----------------------------------------------------------------------------
# Wrapper-side weight preprocessing
# -----------------------------------------------------------------------------
def _spatial_toeplitz(sa_w, W, SK):
    """Fold the W-direction zero padding of the SKxSK spatial conv into a bank
    of Toeplitz matrices.  Returns (SK, 2W, W):
      out[kh, m*W + w_in, w_out] = sa_w[m, kh, w_in - w_out + SK//2]
    (zero outside the kernel support)."""
    SP = SK // 2
    w_in = jnp.arange(W)[:, None]
    w_out = jnp.arange(W)[None, :]
    kw = w_in - w_out + SP                                 # (W, W)
    valid = ((kw >= 0) & (kw < SK)).astype(jnp.float32)
    kw = jnp.clip(kw, 0, SK - 1)
    t = sa_w[:, :, kw] * valid[None, None]                 # (2, SK, W, W)
    return jnp.concatenate([t[0], t[1]], axis=1)           # (SK, 2W, W)


def _images_per_step(N):
    """Largest power-of-two divisor of N up to 8, shrunk so the grid keeps >=2
    steps whenever possible (both TensorCores get work on megacore / v7x)."""
    b = math.gcd(N, 8)
    while b > 1 and N // b < 2:
        b //= 2
    return b


@functools.partial(jax.jit, static_argnames=("K", "SK"))
def cbam_forward_nhwc(x_nhwc, params, K=3, SK=7):
    """Transpose-free entry point: x is NHWC float, returns NHWC float32."""
    N, H, W, C = x_nhwc.shape
    WC = W * C
    Cr = params["ca_w1"].shape[1]
    B = _images_per_step(N)
    steps = N // B

    x = x_nhwc.astype(jnp.float32).reshape(N, H, WC)       # free reshape

    # weight preprocessing (host/XLA side, tiny, once per call)
    dww = jnp.tile(params["dw_w"], (1, W))                  # (K*K, WC)
    bns = jnp.tile(params["bn_scale"], (1, W))              # (1, WC)
    bnb = jnp.tile(params["bn_shift"], (1, W))              # (1, WC)
    w1 = params["ca_w1"]                                    # (C, Cr)
    w2t = jnp.tile(params["ca_w2"], (1, W))                 # (Cr, WC)
    esp = jnp.repeat(jnp.eye(W, dtype=jnp.float32), C, axis=1)        # (W, WC)
    meanw = esp.T / float(C)                                # (WC, W) channel mean
    selw = jnp.zeros((WC, W), jnp.float32).at[
        jnp.arange(W) * C, jnp.arange(W)].set(1.0)          # (WC, W) group-base pick
    tsp = _spatial_toeplitz(params["sa_w"], W, SK).reshape(SK * 2 * W, W)

    kern = functools.partial(_cbam_fused_kernel, H=H, W=W, C=C, K=K, SK=SK, B=B)
    # Per-step VMEM footprint is < 1 MiB (B*H*WC in + out, double buffered,
    # plus ~0.2 MiB of weights), so the default scoped-VMEM limit is plenty
    # on v5e/v6e/v7x; no vmem_limit_bytes override needed at these block sizes.
    out = pl.pallas_call(
        kern,
        out_shape=jax.ShapeDtypeStruct((N, H, WC), jnp.float32),
        grid=(steps,),
        in_specs=[
            pl.BlockSpec((B, H, WC), lambda n: (n, 0, 0)),       # x (B images/step)
            pl.BlockSpec((K * K, WC), lambda n: (0, 0)),         # depthwise weights
            pl.BlockSpec((1, WC), lambda n: (0, 0)),             # bn scale
            pl.BlockSpec((1, WC), lambda n: (0, 0)),             # bn shift
            pl.BlockSpec((C, Cr), lambda n: (0, 0)),             # fc1
            pl.BlockSpec((Cr, WC), lambda n: (0, 0)),            # fc2 (W-tiled)
            pl.BlockSpec((WC, W), lambda n: (0, 0)),             # channel-mean matmul
            pl.BlockSpec((WC, W), lambda n: (0, 0)),             # group-max selection
            pl.BlockSpec((SK * 2 * W, W), lambda n: (0, 0)),     # fused spatial Toeplitz
            pl.BlockSpec((W, WC), lambda n: (0, 0)),             # (H,W)->(H,WC) broadcast
        ],
        out_specs=pl.BlockSpec((B, H, WC), lambda n: (n, 0, 0)),
        compiler_params=pltpu.CompilerParams(
            dimension_semantics=("parallel",)),
    )(x, dww, bns, bnb, w1, w2t, meanw, selw, tsp, esp)

    return out.reshape(N, H, W, C)


@functools.partial(jax.jit, static_argnames=("K", "SK"))
def cbam_forward(x_nchw, params, K=3, SK=7):
    """PyTorch-parity wrapper (NCHW in / NCHW out).  In a model that keeps
    activations NHWC use cbam_forward_nhwc directly and skip both HBM
    transposes."""
    x = jnp.transpose(x_nchw, (0, 2, 3, 1))
    y = cbam_forward_nhwc(x, params, K=K, SK=SK)
    return jnp.transpose(y, (0, 3, 1, 2))


# -----------------------------------------------------------------------------
# Deterministic parameter construction (synthetic, no checkpoint)
# -----------------------------------------------------------------------------
def init_params(key, C, ratio=16, K=3, SK=7):
    Cr = max(C // ratio, 1)
    ks = jax.random.split(key, 8)
    dw_w = jax.random.normal(ks[0], (K * K, C), jnp.float32) * (1.0 / K)
    gamma = 1.0 + 0.1 * jax.random.normal(ks[1], (C,), jnp.float32)
    beta = 0.1 * jax.random.normal(ks[2], (C,), jnp.float32)
    r_mean = 0.1 * jax.random.normal(ks[3], (C,), jnp.float32)
    r_var = jnp.abs(jax.random.normal(ks[4], (C,), jnp.float32)) + 0.5
    inv_std = 1.0 / jnp.sqrt(r_var + 1e-5)
    bn_scale = (gamma * inv_std).reshape(1, C)
    bn_shift = (beta - r_mean * gamma * inv_std).reshape(1, C)
    # fc1 (Cr, C, 1, 1) stored transposed -> (C, Cr); fc2 (C, Cr, 1, 1) -> (Cr, C)
    ca_w1 = jax.random.normal(ks[5], (C, Cr), jnp.float32) * (1.0 / jnp.sqrt(C))
    ca_w2 = jax.random.normal(ks[6], (Cr, C), jnp.float32) * (1.0 / jnp.sqrt(Cr))
    # spatial conv weight (1, 2, SK, SK) -> (2, SK, SK); [0]=mean map, [1]=max map
    sa_w = jax.random.normal(ks[7], (2, SK, SK), jnp.float32) * (1.0 / SK)
    return dict(dw_w=dw_w, bn_scale=bn_scale, bn_shift=bn_shift,
                ca_w1=ca_w1, ca_w2=ca_w2, sa_w=sa_w)


# -----------------------------------------------------------------------------
# Pure-JAX reference (same math, no Pallas) for a correctness check
# -----------------------------------------------------------------------------
@functools.partial(jax.jit, static_argnames=("K", "SK"))
def reference(x_nchw, params, K=3, SK=7):
    N, C, H, W = x_nchw.shape
    P, SP = K // 2, SK // 2
    x = jnp.transpose(x_nchw, (0, 2, 3, 1)).astype(jnp.float32)
    xp = jnp.pad(x, ((0, 0), (P, P), (P, P), (0, 0)))
    y = jnp.zeros((N, H, W, C), jnp.float32)
    for kh in range(K):
        for kw in range(K):
            y = y + xp[:, kh:kh + H, kw:kw + W, :] * \
                params["dw_w"][kh * K + kw][None, None, None, :]
    y = y * params["bn_scale"].reshape(1, 1, 1, C) + params["bn_shift"].reshape(1, 1, 1, C)

    avg = jnp.mean(y, axis=(1, 2))
    mx = jnp.max(y, axis=(1, 2))

    def mlp(p):
        h = p @ params["ca_w1"]
        h = jnp.where(h >= 0, h, 0.1 * h)
        return h @ params["ca_w2"]

    catt = 1.0 / (1.0 + jnp.exp(-(mlp(avg) + mlp(mx))))
    y2 = y * catt[:, None, None, :]

    amap = jnp.mean(y2, axis=3)
    mmap = jnp.max(y2, axis=3)
    ap = jnp.pad(amap, ((0, 0), (SP, SP), (SP, SP)))
    mp = jnp.pad(mmap, ((0, 0), (SP, SP), (SP, SP)))
    sw = params["sa_w"]
    att = jnp.zeros((N, H, W), jnp.float32)
    for kh in range(SK):
        for kw in range(SK):
            att = att + ap[:, kh:kh + H, kw:kw + W] * sw[0, kh, kw]
            att = att + mp[:, kh:kh + H, kw:kw + W] * sw[1, kh, kw]
    att = 1.0 / (1.0 + jnp.exp(-att))
    out = y2 * att[:, :, :, None]
    return jnp.transpose(out, (0, 3, 1, 2))


if __name__ == "__main__":
    # C must be >= ratio (fc1 hidden = C // 16 >= 1); N=8 exercises the batched
    # grid (B=4 images per step, 2 grid steps -> both TCs busy on megacore).
    N, C, H, W = 8, 32, 16, 16
    key = jax.random.PRNGKey(0)
    kp, kx = jax.random.split(key)
    params = init_params(kp, C, ratio=16, K=3, SK=7)
    x = jax.random.normal(kx, (N, C, H, W), jnp.float32)

    out = cbam_forward(x, params)
    out = jax.block_until_ready(out)

    ref = reference(x, params)
    assert out.shape == (N, C, H, W)
    err = float(jnp.max(jnp.abs(out - ref)))
    assert err < 2e-3, f"max abs error too large: {err}"
    print("KERNEL_OK")
</pallas_src>

<mosaic_0001>
module attributes {stable_mosaic.version = 11 : i64} {
  func.func @_cbam_fused_kernel(%arg0: i32, %arg1: memref<4x16x512xf32, #tpu.memory_space<vmem>>, %arg2: memref<9x512xf32, #tpu.memory_space<vmem>>, %arg3: memref<1x512xf32, #tpu.memory_space<vmem>>, %arg4: memref<1x512xf32, #tpu.memory_space<vmem>>, %arg5: memref<32x2xf32, #tpu.memory_space<vmem>>, %arg6: memref<2x512xf32, #tpu.memory_space<vmem>>, %arg7: memref<512x16xf32, #tpu.memory_space<vmem>>, %arg8: memref<512x16xf32, #tpu.memory_space<vmem>>, %arg9: memref<224x16xf32, #tpu.memory_space<vmem>>, %arg10: memref<16x512xf32, #tpu.memory_space<vmem>>, %arg11: memref<4x16x512xf32, #tpu.memory_space<vmem>>) attributes {dimension_semantics = [#tpu.dimension_semantics<parallel>], iteration_bounds = array<i64: 2>, scalar_prefetch = 0 : i64, scratch_operands = 0 : i64, tpu.core_type = #tpu.core_type<tc>, window_params = [{transform_indices = @transform_0, window_bounds = array<i64: 4, 16, 512>}, {pipeline_mode = #tpu.pipeline_mode<synchronous>, transform_indices = @transform_1, window_bounds = array<i64: 9, 512>}, {pipeline_mode = #tpu.pipeline_mode<synchronous>, transform_indices = @transform_2, window_bounds = array<i64: 1, 512>}, {pipeline_mode = #tpu.pipeline_mode<synchronous>, transform_indices = @transform_3, window_bounds = array<i64: 1, 512>}, {pipeline_mode = #tpu.pipeline_mode<synchronous>, transform_indices = @transform_4, window_bounds = array<i64: 32, 2>}, {pipeline_mode = #tpu.pipeline_mode<synchronous>, transform_indices = @transform_5, window_bounds = array<i64: 2, 512>}, {pipeline_mode = #tpu.pipeline_mode<synchronous>, transform_indices = @transform_6, window_bounds = array<i64: 512, 16>}, {pipeline_mode = #tpu.pipeline_mode<synchronous>, transform_indices = @transform_7, window_bounds = array<i64: 512, 16>}, {pipeline_mode = #tpu.pipeline_mode<synchronous>, transform_indices = @transform_8, window_bounds = array<i64: 224, 16>}, {pipeline_mode = #tpu.pipeline_mode<synchronous>, transform_indices = @transform_9, window_bounds = array<i64: 16, 512>}, {transform_indices = @transform_10, window_bounds = array<i64: 4, 16, 512>}]} {
    %c0 = arith.constant 0 : index
    %c0_0 = arith.constant 0 : index
    %0 = vector.load %arg3[%c0, %c0_0] : memref<1x512xf32, #tpu.memory_space<vmem>>, vector<1x512xf32>
    %c0_1 = arith.constant 0 : index
    %c0_2 = arith.constant 0 : index
    %1 = vector.load %arg4[%c0_1, %c0_2] : memref<1x512xf32, #tpu.memory_space<vmem>>, vector<1x512xf32>
    %c0_3 = arith.constant 0 : index
    %c0_4 = arith.constant 0 : index
    %2 = vector.load %arg5[%c0_3, %c0_4] : memref<32x2xf32, #tpu.memory_space<vmem>>, vector<32x2xf32>
    %c0_5 = arith.constant 0 : index
    %c0_6 = arith.constant 0 : index
    %3 = vector.load %arg6[%c0_5, %c0_6] : memref<2x512xf32, #tpu.memory_space<vmem>>, vector<2x512xf32>
    %c0_7 = arith.constant 0 : index
    %c0_8 = arith.constant 0 : index
    %4 = vector.load %arg2[%c0_7, %c0_8] : memref<9x512xf32, #tpu.memory_space<vmem>>, vector<1x512xf32>
    %c1 = arith.constant 1 : index
    %c0_9 = arith.constant 0 : index
    %5 = vector.load %arg2[%c1, %c0_9] : memref<9x512xf32, #tpu.memory_space<vmem>>, vector<1x512xf32>
    %c2 = arith.constant 2 : index
    %c0_10 = arith.constant 0 : index
    %6 = vector.load %arg2[%c2, %c0_10] : memref<9x512xf32, #tpu.memory_space<vmem>>, vector<1x512xf32>
    %c3 = arith.constant 3 : index
    %c0_11 = arith.constant 0 : index
    %7 = vector.load %arg2[%c3, %c0_11] : memref<9x512xf32, #tpu.memory_space<vmem>>, vector<1x512xf32>
    %c4 = arith.constant 4 : index
    %c0_12 = arith.constant 0 : index
    %8 = vector.load %arg2[%c4, %c0_12] : memref<9x512xf32, #tpu.memory_space<vmem>>, vector<1x512xf32>
    %c5 = arith.constant 5 : index
    %c0_13 = arith.constant 0 : index
    %9 = vector.load %arg2[%c5, %c0_13] : memref<9x512xf32, #tpu.memory_space<vmem>>, vector<1x512xf32>
    %c6 = arith.constant 6 : index
    %c0_14 = arith.constant 0 : index
    %10 = vector.load %arg2[%c6, %c0_14] : memref<9x512xf32, #tpu.memory_space<vmem>>, vector<1x512xf32>
    %c7 = arith.constant 7 : index
    %c0_15 = arith.constant 0 : index
    %11 = vector.load %arg2[%c7, %c0_15] : memref<9x512xf32, #tpu.memory_space<vmem>>, vector<1x512xf32>
    %c8 = arith.constant 8 : index
    %c0_16 = arith.constant 0 : index
    %12 = vector.load %arg2[%c8, %c0_16] : memref<9x512xf32, #tpu.memory_space<vmem>>, vector<1x512xf32>
    %cst = arith.constant 0.000000e+00 : f32
    %13 = vector.broadcast %cst : f32 to vector<1x512xf32>
    %cst_17 = arith.constant 0.000000e+00 : f32
    %14 = vector.broadcast %cst_17 : f32 to vector<18x32xf32>
    %cst_18 = arith.constant 0.000000e+00 : f32
    %15 = vector.broadcast %cst_18 : f32 to vector<3x32xf32>
    %c0_19 = arith.constant 0 : index
    %c0_20 = arith.constant 0 : index
    %c0_21 = arith.constant 0 : index
    %16 = vector.load %arg1[%c0_19, %c0_20, %c0_21] : memref<4x16x512xf32, #tpu.memory_space<vmem>>, vector<1x16x512xf32>
    %17 = vector.shape_cast %16 : vector<1x16x512xf32> to vector<16x512xf32>
    %18 = tpu.concatenate %13, %17, %13 in 0 : vector<1x512xf32>, vector<16x512xf32>, vector<1x512xf32> -> vector<18x512xf32>
    %cst_22 = arith.constant 0.000000e+00 : f32
    %19 = vector.broadcast %cst_22 : f32 to vector<16x512xf32>
    %20 = vector.extract_strided_slice %18 {offsets = [0, 0], sizes = [18, 480], strides = [1, 1]} : vector<18x512xf32> to vector<18x480xf32>
    %21 = tpu.concatenate %14, %20 in 1 : vector<18x32xf32>, vector<18x480xf32> -> vector<18x512xf32>
    %22 = vector.extract_strided_slice %21 {offsets = [0, 0], sizes = [16, 512], strides = [1, 1]} : vector<18x512xf32> to vector<16x512xf32>
    %23 = vector.broadcast %4 : vector<1x512xf32> to vector<16x512xf32>
    %24 = arith.mulf %22, %23 : vector<16x512xf32>
    %25 = arith.addf %19, %24 : vector<16x512xf32>
    %26 = vector.extract_strided_slice %21 {offsets = [1, 0], sizes = [16, 512], strides = [1, 1]} : vector<18x512xf32> to vector<16x512xf32>
    %27 = vector.broadcast %7 : vector<1x512xf32> to vector<16x512xf32>
    %28 = arith.mulf %26, %27 : vector<16x512xf32>
    %29 = arith.addf %25, %28 : vector<16x512xf32>
    %30 = vector.extract_strided_slice %21 {offsets = [2, 0], sizes = [16, 512], strides = [1, 1]} : vector<18x512xf32> to vector<16x512xf32>
    %31 = vector.broadcast %10 : vector<1x512xf32> to vector<16x512xf32>
    %32 = arith.mulf %30, %31 : vector<16x512xf32>
    %33 = arith.addf %29, %32 : vector<16x512xf32>
    %34 = vector.extract_strided_slice %18 {offsets = [0, 0], sizes = [16, 512], strides = [1, 1]} : vector<18x512xf32> to vector<16x512xf32>
    %35 = vector.broadcast %5 : vector<1x512xf32> to vector<16x512xf32>
    %36 = arith.mulf %34, %35 : vector<16x512xf32>
    %37 = arith.addf %33, %36 : vector<16x512xf32>
    %38 = vector.extract_strided_slice %18 {offsets = [1, 0], sizes = [16, 512], strides = [1, 1]} : vector<18x512xf32> to vector<16x512xf32>
    %39 = vector.broadcast %8 : vector<1x512xf32> to vector<16x512xf32>
    %40 = arith.mulf %38, %39 : vector<16x512xf32>
    %41 = arith.addf %37, %40 : vector<16x512xf32>
    %42 = vector.extract_strided_slice %18 {offsets = [2, 0], sizes = [16, 512], strides = [1, 1]} : vector<18x512xf32> to vector<16x512xf32>
    %43 = vector.broadcast %11 : vector<1x512xf32> to vector<16x512xf32>
    %44 = arith.mulf %42, %43 : vector<16x512xf32>
    %45 = arith.addf %41, %44 : vector<16x512xf32>
    %46 = vector.extract_strided_slice %18 {offsets = [0, 32], sizes = [18, 480], strides = [1, 1]} : vector<18x512xf32> to vector<18x480xf32>
    %47 = tpu.concatenate %46, %14 in 1 : vector<18x480xf32>, vector<18x32xf32> -> vector<18x512xf32>
    %48 = vector.extract_strided_slice %47 {offsets = [0, 0], sizes = [16, 512], strides = [1, 1]} : vector<18x512xf32> to vector<16x512xf32>
    %49 = vector.broadcast %6 : vector<1x512xf32> to vector<16x512xf32>
    %50 = arith.mulf %48, %49 : vector<16x512xf32>
    %51 = arith.addf %45, %50 : vector<16x512xf32>
    %52 = vector.extract_strided_slice %47 {offsets = [1, 0], sizes = [16, 512], strides = [1, 1]} : vector<18x512xf32> to vector<16x512xf32>
    %53 = vector.broadcast %9 : vector<1x512xf32> to vector<16x512xf32>
    %54 = arith.mulf %52, %53 : vector<16x512xf32>
    %55 = arith.addf %51, %54 : vector<16x512xf32>
    %56 = vector.extract_strided_slice %47 {offsets = [2, 0], sizes = [16, 512], strides = [1, 1]} : vector<18x512xf32> to vector<16x512xf32>
    %57 = vector.broadcast %12 : vector<1x512xf32> to vector<16x512xf32>
    %58 = arith.mulf %56, %57 : vector<16x512xf32>
    %59 = arith.addf %55, %58 : vector<16x512xf32>
    %60 = vector.broadcast %0 : vector<1x512xf32> to vector<16x512xf32>
    %61 = arith.mulf %59, %60 : vector<16x512xf32>
    %62 = vector.broadcast %1 : vector<1x512xf32> to vector<16x512xf32>
    %63 = arith.addf %61, %62 : vector<16x512xf32>
    %cst_23 = arith.constant dense<0.000000e+00> : vector<512xf32>
    %64 = vector.multi_reduction <add>, %63, %cst_23 [0] : vector<16x512xf32> to vector<512xf32>
    %65 = vector.shape_cast %64 : vector<512xf32> to vector<1x512xf32>
    %cst_24 = arith.constant dense<0xFF800000> : vector<512xf32>
    %66 = vector.multi_reduction <maximumf>, %63, %cst_24 [0] : vector<16x512xf32> to vector<512xf32>
    %67 = vector.shape_cast %66 : vector<512xf32> to vector<1x512xf32>
    %68 = vector.extract_strided_slice %65 {offsets = [0, 0], sizes = [1, 256], strides = [1, 1]} : vector<1x512xf32> to vector<1x256xf32>
    %69 = vector.extract_strided_slice %65 {offsets = [0, 256], sizes = [1, 256], strides = [1, 1]} : vector<1x512xf32> to vector<1x256xf32>
    %70 = arith.addf %68, %69 : vector<1x256xf32>
    %71 = vector.extract_strided_slice %70 {offsets = [0, 0], sizes = [1, 128], strides = [1, 1]} : vector<1x256xf32> to vector<1x128xf32>
    %72 = vector.extract_strided_slice %70 {offsets = [0, 128], sizes = [1, 128], strides = [1, 1]} : vector<1x256xf32> to vector<1x128xf32>
    %73 = arith.addf %71, %72 : vector<1x128xf32>
    %74 = vector.extract_strided_slice %73 {offsets = [0, 0], sizes = [1, 64], strides = [1, 1]} : vector<1x128xf32> to vector<1x64xf32>
    %75 = vector.extract_strided_slice %73 {offsets = [0, 64], sizes = [1, 64], strides = [1, 1]} : vector<1x128xf32> to vector<1x64xf32>
    %76 = arith.addf %74, %75 : vector<1x64xf32>
    %77 = vector.extract_strided_slice %76 {offsets = [0, 0], sizes = [1, 32], strides = [1, 1]} : vector<1x64xf32> to vector<1x32xf32>
    %78 = vector.extract_strided_slice %76 {offsets = [0, 32], sizes = [1, 32], strides = [1, 1]} : vector<1x64xf32> to vector<1x32xf32>
    %79 = arith.addf %77, %78 : vector<1x32xf32>
    %80 = vector.extract_strided_slice %67 {offsets = [0, 0], sizes = [1, 256], strides = [1, 1]} : vector<1x512xf32> to vector<1x256xf32>
    %81 = vector.extract_strided_slice %67 {offsets = [0, 256], sizes = [1, 256], strides = [1, 1]} : vector<1x512xf32> to vector<1x256xf32>
    %82 = arith.maximumf %80, %81 : vector<1x256xf32>
    %83 = vector.extract_strided_slice %82 {offsets = [0, 0], sizes = [1, 128], strides = [1, 1]} : vector<1x256xf32> to vector<1x128xf32>
    %84 = vector.extract_strided_slice %82 {offsets = [0, 128], sizes = [1, 128], strides = [1, 1]} : vector<1x256xf32> to vector<1x128xf32>
    %85 = arith.maximumf %83, %84 : vector<1x128xf32>
    %86 = vector.extract_strided_slice %85 {offsets = [0, 0], sizes = [1, 64], strides = [1, 1]} : vector<1x128xf32> to vector<1x64xf32>
    %87 = vector.extract_strided_slice %85 {offsets = [0, 64], sizes = [1, 64], strides = [1, 1]} : vector<1x128xf32> to vector<1x64xf32>
    %88 = arith.maximumf %86, %87 : vector<1x64xf32>
    %89 = vector.extract_strided_slice %88 {offsets = [0, 0], sizes = [1, 32], strides = [1, 1]} : vector<1x64xf32> to vector<1x32xf32>
    %90 = vector.extract_strided_slice %88 {offsets = [0, 32], sizes = [1, 32], strides = [1, 1]} : vector<1x64xf32> to vector<1x32xf32>
    %91 = arith.maximumf %89, %90 : vector<1x32xf32>
    %cst_25 = arith.constant 3.906250e-03 : f32
    %92 = vector.broadcast %cst_25 : f32 to vector<1x32xf32>
    %93 = arith.mulf %79, %92 : vector<1x32xf32>
    %94 = tpu.concatenate %93, %91 in 0 : vector<1x32xf32>, vector<1x32xf32> -> vector<2x32xf32>
    %cst_26 = arith.constant dense<0.000000e+00> : vector<2x2xf32>
    %95 = tpu.matmul %94, %2, %cst_26 {dimension_numbers = #tpu.dot_dimension_numbers<[1], [0], [0], [1], [0, 0, 1, 1], [], []>} : vector<2x32xf32>, vector<32x2xf32>, vector<2x2xf32> -> vector<2x2xf32>
    %cst_27 = arith.constant 0.000000e+00 : f32
    %96 = vector.broadcast %cst_27 : f32 to vector<2x2xf32>
    %97 = arith.cmpf oge, %95, %96 : vector<2x2xf32>
    %cst_28 = arith.constant 1.000000e-01 : f32
    %98 = vector.broadcast %cst_28 : f32 to vector<2x2xf32>
    %99 = arith.mulf %98, %95 : vector<2x2xf32>
    %100 = arith.select %97, %95, %99 : vector<2x2xi1>, vector<2x2xf32>
    %101 = vector.extract_strided_slice %100 {offsets = [0, 0], sizes = [1, 2], strides = [1, 1]} : vector<2x2xf32> to vector<1x2xf32>
    %102 = vector.extract_strided_slice %100 {offsets = [1, 0], sizes = [1, 2], strides = [1, 1]} : vector<2x2xf32> to vector<1x2xf32>
    %103 = arith.addf %101, %102 : vector<1x2xf32>
    %cst_29 = arith.constant dense<0.000000e+00> : vector<1x512xf32>
    %104 = tpu.matmul %103, %3, %cst_29 {dimension_numbers = #tpu.dot_dimension_numbers<[1], [0], [0], [1], [0, 0, 1, 1], [], []>} : vector<1x2xf32>, vector<2x512xf32>, vector<1x512xf32> -> vector<1x512xf32>
    %cst_30 = arith.constant 0.000000e+00 : f32
    %105 = vector.broadcast %cst_30 : f32 to vector<1x512xf32>
    %106 = arith.subf %105, %104 : vector<1x512xf32>
    %107 = math.exp %106 : vector<1x512xf32>
    %cst_31 = arith.constant 1.000000e+00 : f32
    %108 = vector.broadcast %cst_31 : f32 to vector<1x512xf32>
    %109 = arith.addf %108, %107 : vector<1x512xf32>
    %cst_32 = arith.constant 1.000000e+00 : f32
    %110 = vector.broadcast %cst_32 : f32 to vector<1x512xf32>
    %111 = arith.divf %110, %109 : vector<1x512xf32>
    %112 = vector.broadcast %111 : vector<1x512xf32> to vector<16x512xf32>
    %113 = arith.mulf %63, %112 : vector<16x512xf32>
    %c0_33 = arith.constant 0 : index
    %c0_34 = arith.constant 0 : index
    %114 = vector.load %arg7[%c0_33, %c0_34] : memref<512x16xf32, #tpu.memory_space<vmem>>, vector<512x16xf32>
    %cst_35 = arith.constant dense<0.000000e+00> : vector<16x16xf32>
    %115 = tpu.matmul %113, %114, %cst_35 {dimension_numbers = #tpu.dot_dimension_numbers<[1], [0], [0], [1], [0, 0, 1, 1], [], []>} : vector<16x512xf32>, vector<512x16xf32>, vector<16x16xf32> -> vector<16x16xf32>
    %116 = vector.extract_strided_slice %113 {offsets = [0, 16], sizes = [16, 496], strides = [1, 1]} : vector<16x512xf32> to vector<16x496xf32>
    %117 = vector.extract_strided_slice %113 {offsets = [0, 0], sizes = [16, 16], strides = [1, 1]} : vector<16x512xf32> to vector<16x16xf32>
    %118 = tpu.concatenate %116, %117 in 1 : vector<16x496xf32>, vector<16x16xf32> -> vector<16x512xf32>
    %119 = arith.maximumf %113, %118 : vector<16x512xf32>
    %120 = vector.extract_strided_slice %119 {offsets = [0, 8], sizes = [16, 504], strides = [1, 1]} : vector<16x512xf32> to vector<16x504xf32>
    %121 = vector.extract_strided_slice %119 {offsets = [0, 0], sizes = [16, 8], strides = [1, 1]} : vector<16x512xf32> to vector<16x8xf32>
    %122 = tpu.concatenate %120, %121 in 1 : vector<16x504xf32>, vector<16x8xf32> -> vector<16x512xf32>
    %123 = arith.maximumf %119, %122 : vector<16x512xf32>
    %124 = vector.extract_strided_slice %123 {offsets = [0, 4], sizes = [16, 508], strides = [1, 1]} : vector<16x512xf32> to vector<16x508xf32>
    %125 = vector.extract_strided_slice %123 {offsets = [0, 0], sizes = [16, 4], strides = [1, 1]} : vector<16x512xf32> to vector<16x4xf32>
    %126 = tpu.concatenate %124, %125 in 1 : vector<16x508xf32>, vector<16x4xf32> -> vector<16x512xf32>
    %127 = arith.maximumf %123, %126 : vector<16x512xf32>
    %128 = vector.extract_strided_slice %127 {offsets = [0, 2], sizes = [16, 510], strides = [1, 1]} : vector<16x512xf32> to vector<16x510xf32>
    %129 = vector.extract_strided_slice %127 {offsets = [0, 0], sizes = [16, 2], strides = [1, 1]} : vector<16x512xf32> to vector<16x2xf32>
    %130 = tpu.concatenate %128, %129 in 1 : vector<16x510xf32>, vector<16x2xf32> -> vector<16x512xf32>
    %131 = arith.maximumf %127, %130 : vector<16x512xf32>
    %132 = vector.extract_strided_slice %131 {offsets = [0, 1], sizes = [16, 511], strides = [1, 1]} : vector<16x512xf32> to vector<16x511xf32>
    %133 = vector.extract_strided_slice %131 {offsets = [0, 0], sizes = [16, 1], strides = [1, 1]} : vector<16x512xf32> to vector<16x1xf32>
    %134 = tpu.concatenate %132, %133 in 1 : vector<16x511xf32>, vector<16x1xf32> -> vector<16x512xf32>
    %135 = arith.maximumf %131, %134 : vector<16x512xf32>
    %c0_36 = arith.constant 0 : index
    %c0_37 = arith.constant 0 : index
    %136 = vector.load %arg8[%c0_36, %c0_37] : memref<512x16xf32, #tpu.memory_space<vmem>>, vector<512x16xf32>
    %cst_38 = arith.constant dense<0.000000e+00> : vector<16x16xf32>
    %137 = tpu.matmul %135, %136, %cst_38 {dimension_numbers = #tpu.dot_dimension_numbers<[1], [0], [0], [1], [0, 0, 1, 1], [], []>} : vector<16x512xf32>, vector<512x16xf32>, vector<16x16xf32> -> vector<16x16xf32>
    %138 = tpu.concatenate %115, %137 in 1 : vector<16x16xf32>, vector<16x16xf32> -> vector<16x32xf32>
    %139 = tpu.concatenate %15, %138, %15 in 0 : vector<3x32xf32>, vector<16x32xf32>, vector<3x32xf32> -> vector<22x32xf32>
    %140 = vector.extract_strided_slice %139 {offsets = [0, 0], sizes = [16, 32], strides = [1, 1]} : vector<22x32xf32> to vector<16x32xf32>
    %141 = vector.extract_strided_slice %139 {offsets = [1, 0], sizes = [16, 32], strides = [1, 1]} : vector<22x32xf32> to vector<16x32xf32>
    %142 = vector.extract_strided_slice %139 {offsets = [2, 0], sizes = [16, 32], strides = [1, 1]} : vector<22x32xf32> to vector<16x32xf32>
    %143 = vector.extract_strided_slice %139 {offsets = [3, 0], sizes = [16, 32], strides = [1, 1]} : vector<22x32xf32> to vector<16x32xf32>
    %144 = vector.extract_strided_slice %139 {offsets = [4, 0], sizes = [16, 32], strides = [1, 1]} : vector<22x32xf32> to vector<16x32xf32>
    %145 = vector.extract_strided_slice %139 {offsets = [5, 0], sizes = [16, 32], strides = [1, 1]} : vector<22x32xf32> to vector<16x32xf32>
    %146 = vector.extract_strided_slice %139 {offsets = [6, 0], sizes = [16, 32], strides = [1, 1]} : vector<22x32xf32> to vector<16x32xf32>
    %147 = tpu.concatenate %140, %141, %142, %143, %144, %145, %146 in 1 : vector<16x32xf32>, vector<16x32xf32>, vector<16x32xf32>, vector<16x32xf32>, vector<16x32xf32>, vector<16x32xf32>, vector<16x32xf32> -> vector<16x224xf32>
    %c0_39 = arith.constant 0 : index
    %c0_40 = arith.constant 0 : index
    %148 = vector.load %arg9[%c0_39, %c0_40] : memref<224x16xf32, #tpu.memory_space<vmem>>, vector<224x16xf32>
    %cst_41 = arith.constant dense<0.000000e+00> : vector<16x16xf32>
    %149 = tpu.matmul %147, %148, %cst_41 {dimension_numbers = #tpu.dot_dimension_numbers<[1], [0], [0], [1], [0, 0, 1, 1], [], []>} : vector<16x224xf32>, vector<224x16xf32>, vector<16x16xf32> -> vector<16x16xf32>
    %cst_42 = arith.constant 0.000000e+00 : f32
    %150 = vector.broadcast %cst_42 : f32 to vector<16x16xf32>
    %151 = arith.subf %150, %149 : vector<16x16xf32>
    %152 = math.exp %151 : vector<16x16xf32>
    %cst_43 = arith.constant 1.000000e+00 : f32
    %153 = vector.broadcast %cst_43 : f32 to vector<16x16xf32>
    %154 = arith.addf %153, %152 : vector<16x16xf32>
    %cst_44 = arith.constant 1.000000e+00 : f32
    %155 = vector.broadcast %cst_44 : f32 to vector<16x16xf32>
    %156 = arith.divf %155, %154 : vector<16x16xf32>
    %c0_45 = arith.constant 0 : index
    %c0_46 = arith.constant 0 : index
    %157 = vector.load %arg10[%c0_45, %c0_46] : memref<16x512xf32, #tpu.memory_space<vmem>>, vector<16x512xf32>
    %cst_47 = arith.constant dense<0.000000e+00> : vector<16x512xf32>
    %158 = tpu.matmul %156, %157, %cst_47 {dimension_numbers = #tpu.dot_dimension_numbers<[1], [0], [0], [1], [0, 0, 1, 1], [], []>} : vector<16x16xf32>, vector<16x512xf32>, vector<16x512xf32> -> vector<16x512xf32>
    %159 = arith.mulf %113, %158 : vector<16x512xf32>
    %c0_48 = arith.constant 0 : index
    %c0_49 = arith.constant 0 : index
    %c0_50 = arith.constant 0 : index
    %160 = vector.load %arg11[%c0_48, %c0_49, %c0_50] : memref<4x16x512xf32, #tpu.memory_space<vmem>>, vector<1x16x512xf32>
    %161 = vector.shape_cast %160 : vector<1x16x512xf32> to vector<16x512xf32>
    %162 = vector.shape_cast %159 : vector<16x512xf32> to vector<1x16x512xf32>
    tpu.vector_store %arg11[%c0_48, %c0_49, %c0_50], %162 {strides = array<i32>} : memref<4x16x512xf32, #tpu.memory_space<vmem>>, vector<1x16x512xf32>,
    %c1_51 = arith.constant 1 : index
    %c0_52 = arith.constant 0 : index
    %c0_53 = arith.constant 0 : index
    %163 = vector.load %arg1[%c1_51, %c0_52, %c0_53] : memref<4x16x512xf32, #tpu.memory_space<vmem>>, vector<1x16x512xf32>
    %164 = vector.shape_cast %163 : vector<1x16x512xf32> to vector<16x512xf32>
    %165 = tpu.concatenate %13, %164, %13 in 0 : vector<1x512xf32>, vector<16x512xf32>, vector<1x512xf32> -> vector<18x512xf32>
    %cst_54 = arith.constant 0.000000e+00 : f32
    %166 = vector.broadcast %cst_54 : f32 to vector<16x512xf32>
    %167 = vector.extract_strided_slice %165 {offsets = [0, 0], sizes = [18, 480], strides = [1, 1]} : vector<18x512xf32> to vector<18x480xf32>
    %168 = tpu.concatenate %14, %167 in 1 : vector<18x32xf32>, vector<18x480xf32> -> vector<18x512xf32>
    %169 = vector.extract_strided_slice %168 {offsets = [0, 0], sizes = [16, 512], strides = [1, 1]} : vector<18x512xf32> to vector<16x512xf32>
    %170 = vector.broadcast %4 : vector<1x512xf32> to vector<16x512xf32>
    %171 = arith.mulf %169, %170 : vector<16x512xf32>
    %172 = arith.addf %166, %171 : vector<16x512xf32>
    %173 = vector.extract_strided_slice %168 {offsets = [1, 0], sizes = [16, 512], strides = [1, 1]} : vector<18x512xf32> to vector<16x512xf32>
    %174 = vector.broadcast %7 : vector<1x512xf32> to vector<16x512xf32>
    %175 = arith.mulf %173, %174 : vector<16x512xf32>
    %176 = arith.addf %172, %175 : vector<16x512xf32>
    %177 = vector.extract_strided_slice %168 {offsets = [2, 0], sizes = [16, 512], strides = [1, 1]} : vector<18x512xf32> to vector<16x512xf32>
    %178 = vector.broadcast %10 : vector<1x512xf32> to vector<16x512xf32>
    %179 = arith.mulf %177, %178 : vector<16x512xf32>
    %180 = arith.addf %176, %179 : vector<16x512xf32>
    %181 = vector.extract_strided_slice %165 {offsets = [0, 0], sizes = [16, 512], strides = [1, 1]} : vector<18x512xf32> to vector<16x512xf32>
    %182 = vector.broadcast %5 : vector<1x512xf32> to vector<16x512xf32>
    %183 = arith.mulf %181, %182 : vector<16x512xf32>
    %184 = arith.addf %180, %183 : vector<16x512xf32>
    %185 = vector.extract_strided_slice %165 {offsets = [1, 0], sizes = [16, 512], strides = [1, 1]} : vector<18x512xf32> to vector<16x512xf32>
    %186 = vector.broadcast %8 : vector<1x512xf32> to vector<16x512xf32>
    %187 = arith.mulf %185, %186 : vector<16x512xf32>
    %188 = arith.addf %184, %187 : vector<16x512xf32>
    %189 = vector.extract_strided_slice %165 {offsets = [2, 0], sizes = [16, 512], strides = [1, 1]} : vector<18x512xf32> to vector<16x512xf32>
    %190 = vector.broadcast %11 : vector<1x512xf32> to vector<16x512xf32>
    %191 = arith.mulf %189, %190 : vector<16x512xf32>
    %192 = arith.addf %188, %191 : vector<16x512xf32>
    %193 = vector.extract_strided_slice %165 {offsets = [0, 32], sizes = [18, 480], strides = [1, 1]} : vector<18x512xf32> to vector<18x480xf32>
    %194 = tpu.concatenate %193, %14 in 1 : vector<18x480xf32>, vector<18x32xf32> -> vector<18x512xf32>
    %195 = vector.extract_strided_slice %194 {offsets = [0, 0], sizes = [16, 512], strides = [1, 1]} : vector<18x512xf32> to vector<16x512xf32>
    %196 = vector.broadcast %6 : vector<1x512xf32> to vector<16x512xf32>
    %197 = arith.mulf %195, %196 : vector<16x512xf32>
    %198 = arith.addf %192, %197 : vector<16x512xf32>
    %199 = vector.extract_strided_slice %194 {offsets = [1, 0], sizes = [16, 512], strides = [1, 1]} : vector<18x512xf32> to vector<16x512xf32>
    %200 = vector.broadcast %9 : vector<1x512xf32> to vector<16x512xf32>
    %201 = arith.mulf %199, %200 : vector<16x512xf32>
    %202 = arith.addf %198, %201 : vector<16x512xf32>
    %203 = vector.extract_strided_slice %194 {offsets = [2, 0], sizes = [16, 512], strides = [1, 1]} : vector<18x512xf32> to vector<16x512xf32>
    %204 = vector.broadcast %12 : vector<1x512xf32> to vector<16x512xf32>
    %205 = arith.mulf %203, %204 : vector<16x512xf32>
    %206 = arith.addf %202, %205 : vector<16x512xf32>
    %207 = vector.broadcast %0 : vector<1x512xf32> to vector<16x512xf32>
    %208 = arith.mulf %206, %207 : vector<16x512xf32>
    %209 = vector.broadcast %1 : vector<1x512xf32> to vector<16x512xf32>
    %210 = arith.addf %208, %209 : vector<16x512xf32>
    %cst_55 = arith.constant dense<0.000000e+00> : vector<512xf32>
    %211 = vector.multi_reduction <add>, %210, %cst_55 [0] : vector<16x512xf32> to vector<512xf32>
    %212 = vector.shape_cast %211 : vector<512xf32> to vector<1x512xf32>
    %cst_56 = arith.constant dense<0xFF800000> : vector<512xf32>
    %213 = vector.multi_reduction <maximumf>, %210, %cst_56 [0] : vector<16x512xf32> to vector<512xf32>
    %214 = vector.shape_cast %213 : vector<512xf32> to vector<1x512xf32>
    %215 = vector.extract_strided_slice %212 {offsets = [0, 0], sizes = [1, 256], strides = [1, 1]} : vector<1x512xf32> to vector<1x256xf32>
    %216 = vector.extract_strided_slice %212 {offsets = [0, 256], sizes = [1, 256], strides = [1, 1]} : vector<1x512xf32> to vector<1x256xf32>
    %217 = arith.addf %215, %216 : vector<1x256xf32>
    %218 = vector.extract_strided_slice %217 {offsets = [0, 0], sizes = [1, 128], strides = [1, 1]} : vector<1x256xf32> to vector<1x128xf32>
    %219 = vector.extract_strided_slice %217 {offsets = [0, 128], sizes = [1, 128], strides = [1, 1]} : vector<1x256xf32> to vector<1x128xf32>
    %220 = arith.addf %218, %219 : vector<1x128xf32>
    %221 = vector.extract_strided_slice %220 {offsets = [0, 0], sizes = [1, 64], strides = [1, 1]} : vector<1x128xf32> to vector<1x64xf32>
    %222 = vector.extract_strided_slice %220 {offsets = [0, 64], sizes = [1, 64], strides = [1, 1]} : vector<1x128xf32> to vector<1x64xf32>
    %223 = arith.addf %221, %222 : vector<1x64xf32>
    %224 = vector.extract_strided_slice %223 {offsets = [0, 0], sizes = [1, 32], strides = [1, 1]} : vector<1x64xf32> to vector<1x32xf32>
    %225 = vector.extract_strided_slice %223 {offsets = [0, 32], sizes = [1, 32], strides = [1, 1]} : vector<1x64xf32> to vector<1x32xf32>
    %226 = arith.addf %224, %225 : vector<1x32xf32>
    %227 = vector.extract_strided_slice %214 {offsets = [0, 0], sizes = [1, 256], strides = [1, 1]} : vector<1x512xf32> to vector<1x256xf32>
    %228 = vector.extract_strided_slice %214 {offsets = [0, 256], sizes = [1, 256], strides = [1, 1]} : vector<1x512xf32> to vector<1x256xf32>
    %229 = arith.maximumf %227, %228 : vector<1x256xf32>
    %230 = vector.extract_strided_slice %229 {offsets = [0, 0], sizes = [1, 128], strides = [1, 1]} : vector<1x256xf32> to vector<1x128xf32>
    %231 = vector.extract_strided_slice %229 {offsets = [0, 128], sizes = [1, 128], strides = [1, 1]} : vector<1x256xf32> to vector<1x128xf32>
    %232 = arith.maximumf %230, %231 : vector<1x128xf32>
    %233 = vector.extract_strided_slice %232 {offsets = [0, 0], sizes = [1, 64], strides = [1, 1]} : vector<1x128xf32> to vector<1x64xf32>
    %234 = vector.extract_strided_slice %232 {offsets = [0, 64], sizes = [1, 64], strides = [1, 1]} : vector<1x128xf32> to vector<1x64xf32>
    %235 = arith.maximumf %233, %234 : vector<1x64xf32>
    %236 = vector.extract_strided_slice %235 {offsets = [0, 0], sizes = [1, 32], strides = [1, 1]} : vector<1x64xf32> to vector<1x32xf32>
    %237 = vector.extract_strided_slice %235 {offsets = [0, 32], sizes = [1, 32], strides = [1, 1]} : vector<1x64xf32> to vector<1x32xf32>
    %238 = arith.maximumf %236, %237 : vector<1x32xf32>
    %cst_57 = arith.constant 3.906250e-03 : f32
    %239 = vector.broadcast %cst_57 : f32 to vector<1x32xf32>
    %240 = arith.mulf %226, %239 : vector<1x32xf32>
    %241 = tpu.concatenate %240, %238 in 0 : vector<1x32xf32>, vector<1x32xf32> -> vector<2x32xf32>
    %cst_58 = arith.constant dense<0.000000e+00> : vector<2x2xf32>
    %242 = tpu.matmul %241, %2, %cst_58 {dimension_numbers = #tpu.dot_dimension_numbers<[1], [0], [0], [1], [0, 0, 1, 1], [], []>} : vector<2x32xf32>, vector<32x2xf32>, vector<2x2xf32> -> vector<2x2xf32>
    %cst_59 = arith.constant 0.000000e+00 : f32
    %243 = vector.broadcast %cst_59 : f32 to vector<2x2xf32>
    %244 = arith.cmpf oge, %242, %243 : vector<2x2xf32>
    %cst_60 = arith.constant 1.000000e-01 : f32
    %245 = vector.broadcast %cst_60 : f32 to vector<2x2xf32>
    %246 = arith.mulf %245, %242 : vector<2x2xf32>
    %247 = arith.select %244, %242, %246 : vector<2x2xi1>, vector<2x2xf32>
    %248 = vector.extract_strided_slice %247 {offsets = [0, 0], sizes = [1, 2], strides = [1, 1]} : vector<2x2xf32> to vector<1x2xf32>
    %249 = vector.extract_strided_slice %247 {offsets = [1, 0], sizes = [1, 2], strides = [1, 1]} : vector<2x2xf32> to vector<1x2xf32>
    %250 = arith.addf %248, %249 : vector<1x2xf32>
    %cst_61 = arith.constant dense<0.000000e+00> : vector<1x512xf32>
    %251 = tpu.matmul %250, %3, %cst_61 {dimension_numbers = #tpu.dot_dimension_numbers<[1], [0], [0], [1], [0, 0, 1, 1], [], []>} : vector<1x2xf32>, vector<2x512xf32>, vector<1x512xf32> -> vector<1x512xf32>
    %cst_62 = arith.constant 0.000000e+00 : f32
    %252 = vector.broadcast %cst_62 : f32 to vector<1x512xf32>
    %253 = arith.subf %252, %251 : vector<1x512xf32>
    %254 = math.exp %253 : vector<1x512xf32>
    %cst_63 = arith.constant 1.000000e+00 : f32
    %255 = vector.broadcast %cst_63 : f32 to vector<1x512xf32>
    %256 = arith.addf %255, %254 : vector<1x512xf32>
    %cst_64 = arith.constant 1.000000e+00 : f32
    %257 = vector.broadcast %cst_64 : f32 to vector<1x512xf32>
    %258 = arith.divf %257, %256 : vector<1x512xf32>
    %259 = vector.broadcast %258 : vector<1x512xf32> to vector<16x512xf32>
    %260 = arith.mulf %210, %259 : vector<16x512xf32>
    %c0_65 = arith.constant 0 : index
    %c0_66 = arith.constant 0 : index
    %261 = vector.load %arg7[%c0_65, %c0_66] : memref<512x16xf32, #tpu.memory_space<vmem>>, vector<512x16xf32>
    %cst_67 = arith.constant dense<0.000000e+00> : vector<16x16xf32>
    %262 = tpu.matmul %260, %261, %cst_67 {dimension_numbers = #tpu.dot_dimension_numbers<[1], [0], [0], [1], [0, 0, 1, 1], [], []>} : vector<16x512xf32>, vector<512x16xf32>, vector<16x16xf32> -> vector<16x16xf32>
    %263 = vector.extract_strided_slice %260 {offsets = [0, 16], sizes = [16, 496], strides = [1, 1]} : vector<16x512xf32> to vector<16x496xf32>
    %264 = vector.extract_strided_slice %260 {offsets = [0, 0], sizes = [16, 16], strides = [1, 1]} : vector<16x512xf32> to vector<16x16xf32>
    %265 = tpu.concatenate %263, %264 in 1 : vector<16x496xf32>, vector<16x16xf32> -> vector<16x512xf32>
    %266 = arith.maximumf %260, %265 : vector<16x512xf32>
    %267 = vector.extract_strided_slice %266 {offsets = [0, 8], sizes = [16, 504], strides = [1, 1]} : vector<16x512xf32> to vector<16x504xf32>
    %268 = vector.extract_strided_slice %266 {offsets = [0, 0], sizes = [16, 8], strides = [1, 1]} : vector<16x512xf32> to vector<16x8xf32>
    %269 = tpu.concatenate %267, %268 in 1 : vector<16x504xf32>, vector<16x8xf32> -> vector<16x512xf32>
    %270 = arith.maximumf %266, %269 : vector<16x512xf32>
    %271 = vector.extract_strided_slice %270 {offsets = [0, 4], sizes = [16, 508], strides = [1, 1]} : vector<16x512xf32> to vector<16x508xf32>
    %272 = vector.extract_strided_slice %270 {offsets = [0, 0], sizes = [16, 4], strides = [1, 1]} : vector<16x512xf32> to vector<16x4xf32>
    %273 = tpu.concatenate %271, %272 in 1 : vector<16x508xf32>, vector<16x4xf32> -> vector<16x512xf32>
    %274 = arith.maximumf %270, %273 : vector<16x512xf32>
    %275 = vector.extract_strided_slice %274 {offsets = [0, 2], sizes = [16, 510], strides = [1, 1]} : vector<16x512xf32> to vector<16x510xf32>
    %276 = vector.extract_strided_slice %274 {offsets = [0, 0], sizes = [16, 2], strides = [1, 1]} : vector<16x512xf32> to vector<16x2xf32>
    %277 = tpu.concatenate %275, %276 in 1 : vector<16x510xf32>, vector<16x2xf32> -> vector<16x512xf32>
    %278 = arith.maximumf %274, %277 : vector<16x512xf32>
    %279 = vector.extract_strided_slice %278 {offsets = [0, 1], sizes = [16, 511], strides = [1, 1]} : vector<16x512xf32> to vector<16x511xf32>
    %280 = vector.extract_strided_slice %278 {offsets = [0, 0], sizes = [16, 1], strides = [1, 1]} : vector<16x512xf32> to vector<16x1xf32>
    %281 = tpu.concatenate %279, %280 in 1 : vector<16x511xf32>, vector<16x1xf32> -> vector<16x512xf32>
    %282 = arith.maximumf %278, %281 : vector<16x512xf32>
    %c0_68 = arith.constant 0 : index
    %c0_69 = arith.constant 0 : index
    %283 = vector.load %arg8[%c0_68, %c0_69] : memref<512x16xf32, #tpu.memory_space<vmem>>, vector<512x16xf32>
    %cst_70 = arith.constant dense<0.000000e+00> : vector<16x16xf32>
    %284 = tpu.matmul %282, %283, %cst_70 {dimension_numbers = #tpu.dot_dimension_numbers<[1], [0], [0], [1], [0, 0, 1, 1], [], []>} : vector<16x512xf32>, vector<512x16xf32>, vector<16x16xf32> -> vector<16x16xf32>
    %285 = tpu.concatenate %262, %284 in 1 : vector<16x16xf32>, vector<16x16xf32> -> vector<16x32xf32>
    %286 = tpu.concatenate %15, %285, %15 in 0 : vector<3x32xf32>, vector<16x32xf32>, vector<3x32xf32> -> vector<22x32xf32>
    %287 = vector.extract_strided_slice %286 {offsets = [0, 0], sizes = [16, 32], strides = [1, 1]} : vector<22x32xf32> to vector<16x32xf32>
    %288 = vector.extract_strided_slice %286 {offsets = [1, 0], sizes = [16, 32], strides = [1, 1]} : vector<22x32xf32> to vector<16x32xf32>
    %289 = vector.extract_strided_slice %286 {offsets = [2, 0], sizes = [16, 32], strides = [1, 1]} : vector<22x32xf32> to vector<16x32xf32>
    %290 = vector.extract_strided_slice %286 {offsets = [3, 0], sizes = [16, 32], strides = [1, 1]} : vector<22x32xf32> to vector<16x32xf32>
    %291 = vector.extract_strided_slice %286 {offsets = [4, 0], sizes = [16, 32], strides = [1, 1]} : vector<22x32xf32> to vector<16x32xf32>
    %292 = vector.extract_strided_slice %286 {offsets = [5, 0], sizes = [16, 32], strides = [1, 1]} : vector<22x32xf32> to vector<16x32xf32>
    %293 = vector.extract_strided_slice %286 {offsets = [6, 0], sizes = [16, 32], strides = [1, 1]} : vector<22x32xf32> to vector<16x32xf32>
    %294 = tpu.concatenate %287, %288, %289, %290, %291, %292, %293 in 1 : vector<16x32xf32>, vector<16x32xf32>, vector<16x32xf32>, vector<16x32xf32>, vector<16x32xf32>, vector<16x32xf32>, vector<16x32xf32> -> vector<16x224xf32>
    %c0_71 = arith.constant 0 : index
    %c0_72 = arith.constant 0 : index
    %295 = vector.load %arg9[%c0_71, %c0_72] : memref<224x16xf32, #tpu.memory_space<vmem>>, vector<224x16xf32>
    %cst_73 = arith.constant dense<0.000000e+00> : vector<16x16xf32>
    %296 = tpu.matmul %294, %295, %cst_73 {dimension_numbers = #tpu.dot_dimension_numbers<[1], [0], [0], [1], [0, 0, 1, 1], [], []>} : vector<16x224xf32>, vector<224x16xf32>, vector<16x16xf32> -> vector<16x16xf32>
    %cst_74 = arith.constant 0.000000e+00 : f32
    %297 = vector.broadcast %cst_74 : f32 to vector<16x16xf32>
    %298 = arith.subf %297, %296 : vector<16x16xf32>
    %299 = math.exp %298 : vector<16x16xf32>
    %cst_75 = arith.constant 1.000000e+00 : f32
    %300 = vector.broadcast %cst_75 : f32 to vector<16x16xf32>
    %301 = arith.addf %300, %299 : vector<16x16xf32>
    %cst_76 = arith.constant 1.000000e+00 : f32
    %302 = vector.broadcast %cst_76 : f32 to vector<16x16xf32>
    %303 = arith.divf %302, %301 : vector<16x16xf32>
    %c0_77 = arith.constant 0 : index
    %c0_78 = arith.constant 0 : index
    %304 = vector.load %arg10[%c0_77, %c0_78] : memref<16x512xf32, #tpu.memory_space<vmem>>, vector<16x512xf32>
    %cst_79 = arith.constant dense<0.000000e+00> : vector<16x512xf32>
    %305 = tpu.matmul %303, %304, %cst_79 {dimension_numbers = #tpu.dot_dimension_numbers<[1], [0], [0], [1], [0, 0, 1, 1], [], []>} : vector<16x16xf32>, vector<16x512xf32>, vector<16x512xf32> -> vector<16x512xf32>
    %306 = arith.mulf %260, %305 : vector<16x512xf32>
    %c1_80 = arith.constant 1 : index
    %c0_81 = arith.constant 0 : index
    %c0_82 = arith.constant 0 : index
    %307 = vector.load %arg11[%c1_80, %c0_81, %c0_82] : memref<4x16x512xf32, #tpu.memory_space<vmem>>, vector<1x16x512xf32>
    %308 = vector.shape_cast %307 : vector<1x16x512xf32> to vector<16x512xf32>
    %309 = vector.shape_cast %306 : vector<16x512xf32> to vector<1x16x512xf32>
    tpu.vector_store %arg11[%c1_80, %c0_81, %c0_82], %309 {strides = array<i32>} : memref<4x16x512xf32, #tpu.memory_space<vmem>>, vector<1x16x512xf32>,
    %c2_83 = arith.constant 2 : index
    %c0_84 = arith.constant 0 : index
    %c0_85 = arith.constant 0 : index
    %310 = vector.load %arg1[%c2_83, %c0_84, %c0_85] : memref<4x16x512xf32, #tpu.memory_space<vmem>>, vector<1x16x512xf32>
    %311 = vector.shape_cast %310 : vector<1x16x512xf32> to vector<16x512xf32>
    %312 = tpu.concatenate %13, %311, %13 in 0 : vector<1x512xf32>, vector<16x512xf32>, vector<1x512xf32> -> vector<18x512xf32>
    %cst_86 = arith.constant 0.000000e+00 : f32
    %313 = vector.broadcast %cst_86 : f32 to vector<16x512xf32>
    %314 = vector.extract_strided_slice %312 {offsets = [0, 0], sizes = [18, 480], strides = [1, 1]} : vector<18x512xf32> to vector<18x480xf32>
    %315 = tpu.concatenate %14, %314 in 1 : vector<18x32xf32>, vector<18x480xf32> -> vector<18x512xf32>
    %316 = vector.extract_strided_slice %315 {offsets = [0, 0], sizes = [16, 512], strides = [1, 1]} : vector<18x512xf32> to vector<16x512xf32>
    %317 = vector.broadcast %4 : vector<1x512xf32> to vector<16x512xf32>
    %318 = arith.mulf %316, %317 : vector<16x512xf32>
    %319 = arith.addf %313, %318 : vector<16x512xf32>
    %320 = vector.extract_strided_slice %315 {offsets = [1, 0], sizes = [16, 512], strides = [1, 1]} : vector<18x512xf32> to vector<16x512xf32>
    %321 = vector.broadcast %7 : vector<1x512xf32> to vector<16x512xf32>
    %322 = arith.mulf %320, %321 : vector<16x512xf32>
    %323 = arith.addf %319, %322 : vector<16x512xf32>
    %324 = vector.extract_strided_slice %315 {offsets = [2, 0], sizes = [16, 512], strides = [1, 1]} : vector<18x512xf32> to vector<16x512xf32>
    %325 = vector.broadcast %10 : vector<1x512xf32> to vector<16x512xf32>
    %326 = arith.mulf %324, %325 : vector<16x512xf32>
    %327 = arith.addf %323, %326 : vector<16x512xf32>
    %328 = vector.extract_strided_slice %312 {offsets = [0, 0], sizes = [16, 512], strides = [1, 1]} : vector<18x512xf32> to vector<16x512xf32>
    %329 = vector.broadcast %5 : vector<1x512xf32> to vector<16x512xf32>
    %330 = arith.mulf %328, %329 : vector<16x512xf32>
    %331 = arith.addf %327, %330 : vector<16x512xf32>
    %332 = vector.extract_strided_slice %312 {offsets = [1, 0], sizes = [16, 512], strides = [1, 1]} : vector<18x512xf32> to vector<16x512xf32>
    %333 = vector.broadcast %8 : vector<1x512xf32> to vector<16x512xf32>
    %334 = arith.mulf %332, %333 : vector<16x512xf32>
    %335 = arith.addf %331, %334 : vector<16x512xf32>
    %336 = vector.extract_strided_slice %312 {offsets = [2, 0], sizes = [16, 512], strides = [1, 1]} : vector<18x512xf32> to vector<16x512xf32>
    %337 = vector.broadcast %11 : vector<1x512xf32> to vector<16x512xf32>
    %338 = arith.mulf %336, %337 : vector<16x512xf32>
    %339 = arith.addf %335, %338 : vector<16x512xf32>
    %340 = vector.extract_strided_slice %312 {offsets = [0, 32], sizes = [18, 480], strides = [1, 1]} : vector<18x512xf32> to vector<18x480xf32>
    %341 = tpu.concatenate %340, %14 in 1 : vector<18x480xf32>, vector<18x32xf32> -> vector<18x512xf32>
    %342 = vector.extract_strided_slice %341 {offsets = [0, 0], sizes = [16, 512], strides = [1, 1]} : vector<18x512xf32> to vector<16x512xf32>
    %343 = vector.broadcast %6 : vector<1x512xf32> to vector<16x512xf32>
    %344 = arith.mulf %342, %343 : vector<16x512xf32>
    %345 = arith.addf %339, %344 : vector<16x512xf32>
    %346 = vector.extract_strided_slice %341 {offsets = [1, 0], sizes = [16, 512], strides = [1, 1]} : vector<18x512xf32> to vector<16x512xf32>
    %347 = vector.broadcast %9 : vector<1x512xf32> to vector<16x512xf32>
    %348 = arith.mulf %346, %347 : vector<16x512xf32>
    %349 = arith.addf %345, %348 : vector<16x512xf32>
    %350 = vector.extract_strided_slice %341 {offsets = [2, 0], sizes = [16, 512], strides = [1, 1]} : vector<18x512xf32> to vector<16x512xf32>
    %351 = vector.broadcast %12 : vector<1x512xf32> to vector<16x512xf32>
    %352 = arith.mulf %350, %351 : vector<16x512xf32>
    %353 = arith.addf %349, %352 : vector<16x512xf32>
    %354 = vector.broadcast %0 : vector<1x512xf32> to vector<16x512xf32>
    %355 = arith.mulf %353, %354 : vector<16x512xf32>
    %356 = vector.broadcast %1 : vector<1x512xf32> to vector<16x512xf32>
    %357 = arith.addf %355, %356 : vector<16x512xf32>
    %cst_87 = arith.constant dense<0.000000e+00> : vector<512xf32>
    %358 = vector.multi_reduction <add>, %357, %cst_87 [0] : vector<16x512xf32> to vector<512xf32>
    %359 = vector.shape_cast %358 : vector<512xf32> to vector<1x512xf32>
    %cst_88 = arith.constant dense<0xFF800000> : vector<512xf32>
    %360 = vector.multi_reduction <maximumf>, %357, %cst_88 [0] : vector<16x512xf32> to vector<512xf32>
    %361 = vector.shape_cast %360 : vector<512xf32> to vector<1x512xf32>
    %362 = vector.extract_strided_slice %359 {offsets = [0, 0], sizes = [1, 256], strides = [1, 1]} : vector<1x512xf32> to vector<1x256xf32>
    %363 = vector.extract_strided_slice %359 {offsets = [0, 256], sizes = [1, 256], strides = [1, 1]} : vector<1x512xf32> to vector<1x256xf32>
    %364 = arith.addf %362, %363 : vector<1x256xf32>
    %365 = vector.extract_strided_slice %364 {offsets = [0, 0], sizes = [1, 128], strides = [1, 1]} : vector<1x256xf32> to vector<1x128xf32>
    %366 = vector.extract_strided_slice %364 {offsets = [0, 128], sizes = [1, 128], strides = [1, 1]} : vector<1x256xf32> to vector<1x128xf32>
    %367 = arith.addf %365, %366 : vector<1x128xf32>
    %368 = vector.extract_strided_slice %367 {offsets = [0, 0], sizes = [1, 64], strides = [1, 1]} : vector<1x128xf32> to vector<1x64xf32>
    %369 = vector.extract_strided_slice %367 {offsets = [0, 64], sizes = [1, 64], strides = [1, 1]} : vector<1x128xf32> to vector<1x64xf32>
    %370 = arith.addf %368, %369 : vector<1x64xf32>
    %371 = vector.extract_strided_slice %370 {offsets = [0, 0], sizes = [1, 32], strides = [1, 1]} : vector<1x64xf32> to vector<1x32xf32>
    %372 = vector.extract_strided_slice %370 {offsets = [0, 32], sizes = [1, 32], strides = [1, 1]} : vector<1x64xf32> to vector<1x32xf32>
    %373 = arith.addf %371, %372 : vector<1x32xf32>
    %374 = vector.extract_strided_slice %361 {offsets = [0, 0], sizes = [1, 256], strides = [1, 1]} : vector<1x512xf32> to vector<1x256xf32>
    %375 = vector.extract_strided_slice %361 {offsets = [0, 256], sizes = [1, 256], strides = [1, 1]} : vector<1x512xf32> to vector<1x256xf32>
    %376 = arith.maximumf %374, %375 : vector<1x256xf32>
    %377 = vector.extract_strided_slice %376 {offsets = [0, 0], sizes = [1, 128], strides = [1, 1]} : vector<1x256xf32> to vector<1x128xf32>
    %378 = vector.extract_strided_slice %376 {offsets = [0, 128], sizes = [1, 128], strides = [1, 1]} : vector<1x256xf32> to vector<1x128xf32>
    %379 = arith.maximumf %377, %378 : vector<1x128xf32>
    %380 = vector.extract_strided_slice %379 {offsets = [0, 0], sizes = [1, 64], strides = [1, 1]} : vector<1x128xf32> to vector<1x64xf32>
    %381 = vector.extract_strided_slice %379 {offsets = [0, 64], sizes = [1, 64], strides = [1, 1]} : vector<1x128xf32> to vector<1x64xf32>
    %382 = arith.maximumf %380, %381 : vector<1x64xf32>
    %383 = vector.extract_strided_slice %382 {offsets = [0, 0], sizes = [1, 32], strides = [1, 1]} : vector<1x64xf32> to vector<1x32xf32>
    %384 = vector.extract_strided_slice %382 {offsets = [0, 32], sizes = [1, 32], strides = [1, 1]} : vector<1x64xf32> to vector<1x32xf32>
    %385 = arith.maximumf %383, %384 : vector<1x32xf32>
    %cst_89 = arith.constant 3.906250e-03 : f32
    %386 = vector.broadcast %cst_89 : f32 to vector<1x32xf32>
    %387 = arith.mulf %373, %386 : vector<1x32xf32>
    %388 = tpu.concatenate %387, %385 in 0 : vector<1x32xf32>, vector<1x32xf32> -> vector<2x32xf32>
    %cst_90 = arith.constant dense<0.000000e+00> : vector<2x2xf32>
    %389 = tpu.matmul %388, %2, %cst_90 {dimension_numbers = #tpu.dot_dimension_numbers<[1], [0], [0], [1], [0, 0, 1, 1], [], []>} : vector<2x32xf32>, vector<32x2xf32>, vector<2x2xf32> -> vector<2x2xf32>
    %cst_91 = arith.constant 0.000000e+00 : f32
    %390 = vector.broadcast %cst_91 : f32 to vector<2x2xf32>
    %391 = arith.cmpf oge, %389, %390 : vector<2x2xf32>
    %cst_92 = arith.constant 1.000000e-01 : f32
    %392 = vector.broadcast %cst_92 : f32 to vector<2x2xf32>
    %393 = arith.mulf %392, %389 : vector<2x2xf32>
    %394 = arith.select %391, %389, %393 : vector<2x2xi1>, vector<2x2xf32>
    %395 = vector.extract_strided_slice %394 {offsets = [0, 0], sizes = [1, 2], strides = [1, 1]} : vector<2x2xf32> to vector<1x2xf32>
    %396 = vector.extract_strided_slice %394 {offsets = [1, 0], sizes = [1, 2], strides = [1, 1]} : vector<2x2xf32> to vector<1x2xf32>
    %397 = arith.addf %395, %396 : vector<1x2xf32>
    %cst_93 = arith.constant dense<0.000000e+00> : vector<1x512xf32>
    %398 = tpu.matmul %397, %3, %cst_93 {dimension_numbers = #tpu.dot_dimension_numbers<[1], [0], [0], [1], [0, 0, 1, 1], [], []>} : vector<1x2xf32>, vector<2x512xf32>, vector<1x512xf32> -> vector<1x512xf32>
    %cst_94 = arith.constant 0.000000e+00 : f32
    %399 = vector.broadcast %cst_94 : f32 to vector<1x512xf32>
    %400 = arith.subf %399, %398 : vector<1x512xf32>
    %401 = math.exp %400 : vector<1x512xf32>
    %cst_95 = arith.constant 1.000000e+00 : f32
    %402 = vector.broadcast %cst_95 : f32 to vector<1x512xf32>
    %403 = arith.addf %402, %401 : vector<1x512xf32>
    %cst_96 = arith.constant 1.000000e+00 : f32
    %404 = vector.broadcast %cst_96 : f32 to vector<1x512xf32>
    %405 = arith.divf %404, %403 : vector<1x512xf32>
    %406 = vector.broadcast %405 : vector<1x512xf32> to vector<16x512xf32>
    %407 = arith.mulf %357, %406 : vector<16x512xf32>
    %c0_97 = arith.constant 0 : index
    %c0_98 = arith.constant 0 : index
    %408 = vector.load %arg7[%c0_97, %c0_98] : memref<512x16xf32, #tpu.memory_space<vmem>>, vector<512x16xf32>
    %cst_99 = arith.constant dense<0.000000e+00> : vector<16x16xf32>
    %409 = tpu.matmul %407, %408, %cst_99 {dimension_numbers = #tpu.dot_dimension_numbers<[1], [0], [0], [1], [0, 0, 1, 1], [], []>} : vector<16x512xf32>, vector<512x16xf32>, vector<16x16xf32> -> vector<16x16xf32>
    %410 = vector.extract_strided_slice %407 {offsets = [0, 16], sizes = [16, 496], strides = [1, 1]} : vector<16x512xf32> to vector<16x496xf32>
    %411 = vector.extract_strided_slice %407 {offsets = [0, 0], sizes = [16, 16], strides = [1, 1]} : vector<16x512xf32> to vector<16x16xf32>
    %412 = tpu.concatenate %410, %411 in 1 : vector<16x496xf32>, vector<16x16xf32> -> vector<16x512xf32>
    %413 = arith.maximumf %407, %412 : vector<16x512xf32>
    %414 = vector.extract_strided_slice %413 {offsets = [0, 8], sizes = [16, 504], strides = [1, 1]} : vector<16x512xf32> to vector<16x504xf32>
    %415 = vector.extract_strided_slice %413 {offsets = [0, 0], sizes = [16, 8], strides = [1, 1]} : vector<16x512xf32> to vector<16x8xf32>
    %416 = tpu.concatenate %414, %415 in 1 : vector<16x504xf32>, vector<16x8xf32> -> vector<16x512xf32>
    %417 = arith.maximumf %413, %416 : vector<16x512xf32>
    %418 = vector.extract_strided_slice %417 {offsets = [0, 4], sizes = [16, 508], strides = [1, 1]} : vector<16x512xf32> to vector<16x508xf32>
    %419 = vector.extract_strided_slice %417 {offsets = [0, 0], sizes = [16, 4], strides = [1, 1]} : vector<16x512xf32> to vector<16x4xf32>
    %420 = tpu.concatenate %418, %419 in 1 : vector<16x508xf32>, vector<16x4xf32> -> vector<16x512xf32>
    %421 = arith.maximumf %417, %420 : vector<16x512xf32>
    %422 = vector.extract_strided_slice %421 {offsets = [0, 2], sizes = [16, 510], strides = [1, 1]} : vector<16x512xf32> to vector<16x510xf32>
    %423 = vector.extract_strided_slice %421 {offsets = [0, 0], sizes = [16, 2], strides = [1, 1]} : vector<16x512xf32> to vector<16x2xf32>
    %424 = tpu.concatenate %422, %423 in 1 : vector<16x510xf32>, vector<16x2xf32> -> vector<16x512xf32>
    %425 = arith.maximumf %421, %424 : vector<16x512xf32>
    %426 = vector.extract_strided_slice %425 {offsets = [0, 1], sizes = [16, 511], strides = [1, 1]} : vector<16x512xf32> to vector<16x511xf32>
    %427 = vector.extract_strided_slice %425 {offsets = [0, 0], sizes = [16, 1], strides = [1, 1]} : vector<16x512xf32> to vector<16x1xf32>
    %428 = tpu.concatenate %426, %427 in 1 : vector<16x511xf32>, vector<16x1xf32> -> vector<16x512xf32>
    %429 = arith.maximumf %425, %428 : vector<16x512xf32>
    %c0_100 = arith.constant 0 : index
    %c0_101 = arith.constant 0 : index
    %430 = vector.load %arg8[%c0_100, %c0_101] : memref<512x16xf32, #tpu.memory_space<vmem>>, vector<512x16xf32>
    %cst_102 = arith.constant dense<0.000000e+00> : vector<16x16xf32>
    %431 = tpu.matmul %429, %430, %cst_102 {dimension_numbers = #tpu.dot_dimension_numbers<[1], [0], [0], [1], [0, 0, 1, 1], [], []>} : vector<16x512xf32>, vector<512x16xf32>, vector<16x16xf32> -> vector<16x16xf32>
    %432 = tpu.concatenate %409, %431 in 1 : vector<16x16xf32>, vector<16x16xf32> -> vector<16x32xf32>
    %433 = tpu.concatenate %15, %432, %15 in 0 : vector<3x32xf32>, vector<16x32xf32>, vector<3x32xf32> -> vector<22x32xf32>
    %434 = vector.extract_strided_slice %433 {offsets = [0, 0], sizes = [16, 32], strides = [1, 1]} : vector<22x32xf32> to vector<16x32xf32>
    %435 = vector.extract_strided_slice %433 {offsets = [1, 0], sizes = [16, 32], strides = [1, 1]} : vector<22x32xf32> to vector<16x32xf32>
    %436 = vector.extract_strided_slice %433 {offsets = [2, 0], sizes = [16, 32], strides = [1, 1]} : vector<22x32xf32> to vector<16x32xf32>
    %437 = vector.extract_strided_slice %433 {offsets = [3, 0], sizes = [16, 32], strides = [1, 1]} : vector<22x32xf32> to vector<16x32xf32>
    %438 = vector.extract_strided_slice %433 {offsets = [4, 0], sizes = [16, 32], strides = [1, 1]} : vector<22x32xf32> to vector<16x32xf32>
    %439 = vector.extract_strided_slice %433 {offsets = [5, 0], sizes = [16, 32], strides = [1, 1]} : vector<22x32xf32> to vector<16x32xf32>
    %440 = vector.extract_strided_slice %433 {offsets = [6, 0], sizes = [16, 32], strides = [1, 1]} : vector<22x32xf32> to vector<16x32xf32>
    %441 = tpu.concatenate %434, %435, %436, %437, %438, %439, %440 in 1 : vector<16x32xf32>, vector<16x32xf32>, vector<16x32xf32>, vector<16x32xf32>, vector<16x32xf32>, vector<16x32xf32>, vector<16x32xf32> -> vector<16x224xf32>
    %c0_103 = arith.constant 0 : index
    %c0_104 = arith.constant 0 : index
    %442 = vector.load %arg9[%c0_103, %c0_104] : memref<224x16xf32, #tpu.memory_space<vmem>>, vector<224x16xf32>
    %cst_105 = arith.constant dense<0.000000e+00> : vector<16x16xf32>
    %443 = tpu.matmul %441, %442, %cst_105 {dimension_numbers = #tpu.dot_dimension_numbers<[1], [0], [0], [1], [0, 0, 1, 1], [], []>} : vector<16x224xf32>, vector<224x16xf32>, vector<16x16xf32> -> vector<16x16xf32>
    %cst_106 = arith.constant 0.000000e+00 : f32
    %444 = vector.broadcast %cst_106 : f32 to vector<16x16xf32>
    %445 = arith.subf %444, %443 : vector<16x16xf32>
    %446 = math.exp %445 : vector<16x16xf32>
    %cst_107 = arith.constant 1.000000e+00 : f32
    %447 = vector.broadcast %cst_107 : f32 to vector<16x16xf32>
    %448 = arith.addf %447, %446 : vector<16x16xf32>
    %cst_108 = arith.constant 1.000000e+00 : f32
    %449 = vector.broadcast %cst_108 : f32 to vector<16x16xf32>
    %450 = arith.divf %449, %448 : vector<16x16xf32>
    %c0_109 = arith.constant 0 : index
    %c0_110 = arith.constant 0 : index
    %451 = vector.load %arg10[%c0_109, %c0_110] : memref<16x512xf32, #tpu.memory_space<vmem>>, vector<16x512xf32>
    %cst_111 = arith.constant dense<0.000000e+00> : vector<16x512xf32>
    %452 = tpu.matmul %450, %451, %cst_111 {dimension_numbers = #tpu.dot_dimension_numbers<[1], [0], [0], [1], [0, 0, 1, 1], [], []>} : vector<16x16xf32>, vector<16x512xf32>, vector<16x512xf32> -> vector<16x512xf32>
    %453 = arith.mulf %407, %452 : vector<16x512xf32>
    %c2_112 = arith.constant 2 : index
    %c0_113 = arith.constant 0 : index
    %c0_114 = arith.constant 0 : index
    %454 = vector.load %arg11[%c2_112, %c0_113, %c0_114] : memref<4x16x512xf32, #tpu.memory_space<vmem>>, vector<1x16x512xf32>
    %455 = vector.shape_cast %454 : vector<1x16x512xf32> to vector<16x512xf32>
    %456 = vector.shape_cast %453 : vector<16x512xf32> to vector<1x16x512xf32>
    tpu.vector_store %arg11[%c2_112, %c0_113, %c0_114], %456 {strides = array<i32>} : memref<4x16x512xf32, #tpu.memory_space<vmem>>, vector<1x16x512xf32>,
    %c3_115 = arith.constant 3 : index
    %c0_116 = arith.constant 0 : index
    %c0_117 = arith.constant 0 : index
    %457 = vector.load %arg1[%c3_115, %c0_116, %c0_117] : memref<4x16x512xf32, #tpu.memory_space<vmem>>, vector<1x16x512xf32>
    %458 = vector.shape_cast %457 : vector<1x16x512xf32> to vector<16x512xf32>
    %459 = tpu.concatenate %13, %458, %13 in 0 : vector<1x512xf32>, vector<16x512xf32>, vector<1x512xf32> -> vector<18x512xf32>
    %cst_118 = arith.constant 0.000000e+00 : f32
    %460 = vector.broadcast %cst_118 : f32 to vector<16x512xf32>
    %461 = vector.extract_strided_slice %459 {offsets = [0, 0], sizes = [18, 480], strides = [1, 1]} : vector<18x512xf32> to vector<18x480xf32>
    %462 = tpu.concatenate %14, %461 in 1 : vector<18x32xf32>, vector<18x480xf32> -> vector<18x512xf32>
    %463 = vector.extract_strided_slice %462 {offsets = [0, 0], sizes = [16, 512], strides = [1, 1]} : vector<18x512xf32> to vector<16x512xf32>
    %464 = vector.broadcast %4 : vector<1x512xf32> to vector<16x512xf32>
    %465 = arith.mulf %463, %464 : vector<16x512xf32>
    %466 = arith.addf %460, %465 : vector<16x512xf32>
    %467 = vector.extract_strided_slice %462 {offsets = [1, 0], sizes = [16, 512], strides = [1, 1]} : vector<18x512xf32> to vector<16x512xf32>
    %468 = vector.broadcast %7 : vector<1x512xf32> to vector<16x512xf32>
    %469 = arith.mulf %467, %468 : vector<16x512xf32>
    %470 = arith.addf %466, %469 : vector<16x512xf32>
    %471 = vector.extract_strided_slice %462 {offsets = [2, 0], sizes = [16, 512], strides = [1, 1]} : vector<18x512xf32> to vector<16x512xf32>
    %472 = vector.broadcast %10 : vector<1x512xf32> to vector<16x512xf32>
    %473 = arith.mulf %471, %472 : vector<16x512xf32>
    %474 = arith.addf %470, %473 : vector<16x512xf32>
    %475 = vector.extract_strided_slice %459 {offsets = [0, 0], sizes = [16, 512], strides = [1, 1]} : vector<18x512xf32> to vector<16x512xf32>
    %476 = vector.broadcast %5 : vector<1x512xf32> to vector<16x512xf32>
    %477 = arith.mulf %475, %476 : vector<16x512xf32>
    %478 = arith.addf %474, %477 : vector<16x512xf32>
    %479 = vector.extract_strided_slice %459 {offsets = [1, 0], sizes = [16, 512], strides = [1, 1]} : vector<18x512xf32> to vector<16x512xf32>
    %480 = vector.broadcast %8 : vector<1x512xf32> to vector<16x512xf32>
    %481 = arith.mulf %479, %480 : vector<16x512xf32>
    %482 = arith.addf %478, %481 : vector<16x512xf32>
    %483 = vector.extract_strided_slice %459 {offsets = [2, 0], sizes = [16, 512], strides = [1, 1]} : vector<18x512xf32> to vector<16x512xf32>
    %484 = vector.broadcast %11 : vector<1x512xf32> to vector<16x512xf32>
    %485 = arith.mulf %483, %484 : vector<16x512xf32>
    %486 = arith.addf %482, %485 : vector<16x512xf32>
    %487 = vector.extract_strided_slice %459 {offsets = [0, 32], sizes = [18, 480], strides = [1, 1]} : vector<18x512xf32> to vector<18x480xf32>
    %488 = tpu.concatenate %487, %14 in 1 : vector<18x480xf32>, vector<18x32xf32> -> vector<18x512xf32>
    %489 = vector.extract_strided_slice %488 {offsets = [0, 0], sizes = [16, 512], strides = [1, 1]} : vector<18x512xf32> to vector<16x512xf32>
    %490 = vector.broadcast %6 : vector<1x512xf32> to vector<16x512xf32>
    %491 = arith.mulf %489, %490 : vector<16x512xf32>
    %492 = arith.addf %486, %491 : vector<16x512xf32>
    %493 = vector.extract_strided_slice %488 {offsets = [1, 0], sizes = [16, 512], strides = [1, 1]} : vector<18x512xf32> to vector<16x512xf32>
    %494 = vector.broadcast %9 : vector<1x512xf32> to vector<16x512xf32>
    %495 = arith.mulf %493, %494 : vector<16x512xf32>
    %496 = arith.addf %492, %495 : vector<16x512xf32>
    %497 = vector.extract_strided_slice %488 {offsets = [2, 0], sizes = [16, 512], strides = [1, 1]} : vector<18x512xf32> to vector<16x512xf32>
    %498 = vector.broadcast %12 : vector<1x512xf32> to vector<16x512xf32>
    %499 = arith.mulf %497, %498 : vector<16x512xf32>
    %500 = arith.addf %496, %499 : vector<16x512xf32>
    %501 = vector.broadcast %0 : vector<1x512xf32> to vector<16x512xf32>
    %502 = arith.mulf %500, %501 : vector<16x512xf32>
    %503 = vector.broadcast %1 : vector<1x512xf32> to vector<16x512xf32>
    %504 = arith.addf %502, %503 : vector<16x512xf32>
    %cst_119 = arith.constant dense<0.000000e+00> : vector<512xf32>
    %505 = vector.multi_reduction <add>, %504, %cst_119 [0] : vector<16x512xf32> to vector<512xf32>
    %506 = vector.shape_cast %505 : vector<512xf32> to vector<1x512xf32>
    %cst_120 = arith.constant dense<0xFF800000> : vector<512xf32>
    %507 = vector.multi_reduction <maximumf>, %504, %cst_120 [0] : vector<16x512xf32> to vector<512xf32>
    %508 = vector.shape_cast %507 : vector<512xf32> to vector<1x512xf32>
    %509 = vector.extract_strided_slice %506 {offsets = [0, 0], sizes = [1, 256], strides = [1, 1]} : vector<1x512xf32> to vector<1x256xf32>
    %510 = vector.extract_strided_slice %506 {offsets = [0, 256], sizes = [1, 256], strides = [1, 1]} : vector<1x512xf32> to vector<1x256xf32>
    %511 = arith.addf %509, %510 : vector<1x256xf32>
    %512 = vector.extract_strided_slice %511 {offsets = [0, 0], sizes = [1, 128], strides = [1, 1]} : vector<1x256xf32> to vector<1x128xf32>
    %513 = vector.extract_strided_slice %511 {offsets = [0, 128], sizes = [1, 128], strides = [1, 1]} : vector<1x256xf32> to vector<1x128xf32>
    %514 = arith.addf %512, %513 : vector<1x128xf32>
    %515 = vector.extract_strided_slice %514 {offsets = [0, 0], sizes = [1, 64], strides = [1, 1]} : vector<1x128xf32> to vector<1x64xf32>
    %516 = vector.extract_strided_slice %514 {offsets = [0, 64], sizes = [1, 64], strides = [1, 1]} : vector<1x128xf32> to vector<1x64xf32>
    %517 = arith.addf %515, %516 : vector<1x64xf32>
    %518 = vector.extract_strided_slice %517 {offsets = [0, 0], sizes = [1, 32], strides = [1, 1]} : vector<1x64xf32> to vector<1x32xf32>
    %519 = vector.extract_strided_slice %517 {offsets = [0, 32], sizes = [1, 32], strides = [1, 1]} : vector<1x64xf32> to vector<1x32xf32>
    %520 = arith.addf %518, %519 : vector<1x32xf32>
    %521 = vector.extract_strided_slice %508 {offsets = [0, 0], sizes = [1, 256], strides = [1, 1]} : vector<1x512xf32> to vector<1x256xf32>
    %522 = vector.extract_strided_slice %508 {offsets = [0, 256], sizes = [1, 256], strides = [1, 1]} : vector<1x512xf32> to vector<1x256xf32>
    %523 = arith.maximumf %521, %522 : vector<1x256xf32>
    %524 = vector.extract_strided_slice %523 {offsets = [0, 0], sizes = [1, 128], strides = [1, 1]} : vector<1x256xf32> to vector<1x128xf32>
    %525 = vector.extract_strided_slice %523 {offsets = [0, 128], sizes = [1, 128], strides = [1, 1]} : vector<1x256xf32> to vector<1x128xf32>
    %526 = arith.maximumf %524, %525 : vector<1x128xf32>
    %527 = vector.extract_strided_slice %526 {offsets = [0, 0], sizes = [1, 64], strides = [1, 1]} : vector<1x128xf32> to vector<1x64xf32>
    %528 = vector.extract_strided_slice %526 {offsets = [0, 64], sizes = [1, 64], strides = [1, 1]} : vector<1x128xf32> to vector<1x64xf32>
    %529 = arith.maximumf %527, %528 : vector<1x64xf32>
    %530 = vector.extract_strided_slice %529 {offsets = [0, 0], sizes = [1, 32], strides = [1, 1]} : vector<1x64xf32> to vector<1x32xf32>
    %531 = vector.extract_strided_slice %529 {offsets = [0, 32], sizes = [1, 32], strides = [1, 1]} : vector<1x64xf32> to vector<1x32xf32>
    %532 = arith.maximumf %530, %531 : vector<1x32xf32>
    %cst_121 = arith.constant 3.906250e-03 : f32
    %533 = vector.broadcast %cst_121 : f32 to vector<1x32xf32>
    %534 = arith.mulf %520, %533 : vector<1x32xf32>
    %535 = tpu.concatenate %534, %532 in 0 : vector<1x32xf32>, vector<1x32xf32> -> vector<2x32xf32>
    %cst_122 = arith.constant dense<0.000000e+00> : vector<2x2xf32>
    %536 = tpu.matmul %535, %2, %cst_122 {dimension_numbers = #tpu.dot_dimension_numbers<[1], [0], [0], [1], [0, 0, 1, 1], [], []>} : vector<2x32xf32>, vector<32x2xf32>, vector<2x2xf32> -> vector<2x2xf32>
    %cst_123 = arith.constant 0.000000e+00 : f32
    %537 = vector.broadcast %cst_123 : f32 to vector<2x2xf32>
    %538 = arith.cmpf oge, %536, %537 : vector<2x2xf32>
    %cst_124 = arith.constant 1.000000e-01 : f32
    %539 = vector.broadcast %cst_124 : f32 to vector<2x2xf32>
    %540 = arith.mulf %539, %536 : vector<2x2xf32>
    %541 = arith.select %538, %536, %540 : vector<2x2xi1>, vector<2x2xf32>
    %542 = vector.extract_strided_slice %541 {offsets = [0, 0], sizes = [1, 2], strides = [1, 1]} : vector<2x2xf32> to vector<1x2xf32>
    %543 = vector.extract_strided_slice %541 {offsets = [1, 0], sizes = [1, 2], strides = [1, 1]} : vector<2x2xf32> to vector<1x2xf32>
    %544 = arith.addf %542, %543 : vector<1x2xf32>
    %cst_125 = arith.constant dense<0.000000e+00> : vector<1x512xf32>
    %545 = tpu.matmul %544, %3, %cst_125 {dimension_numbers = #tpu.dot_dimension_numbers<[1], [0], [0], [1], [0, 0, 1, 1], [], []>} : vector<1x2xf32>, vector<2x512xf32>, vector<1x512xf32> -> vector<1x512xf32>
    %cst_126 = arith.constant 0.000000e+00 : f32
    %546 = vector.broadcast %cst_126 : f32 to vector<1x512xf32>
    %547 = arith.subf %546, %545 : vector<1x512xf32>
    %548 = math.exp %547 : vector<1x512xf32>
    %cst_127 = arith.constant 1.000000e+00 : f32
    %549 = vector.broadcast %cst_127 : f32 to vector<1x512xf32>
    %550 = arith.addf %549, %548 : vector<1x512xf32>
    %cst_128 = arith.constant 1.000000e+00 : f32
    %551 = vector.broadcast %cst_128 : f32 to vector<1x512xf32>
    %552 = arith.divf %551, %550 : vector<1x512xf32>
    %553 = vector.broadcast %552 : vector<1x512xf32> to vector<16x512xf32>
    %554 = arith.mulf %504, %553 : vector<16x512xf32>
    %c0_129 = arith.constant 0 : index
    %c0_130 = arith.constant 0 : index
    %555 = vector.load %arg7[%c0_129, %c0_130] : memref<512x16xf32, #tpu.memory_space<vmem>>, vector<512x16xf32>
    %cst_131 = arith.constant dense<0.000000e+00> : vector<16x16xf32>
    %556 = tpu.matmul %554, %555, %cst_131 {dimension_numbers = #tpu.dot_dimension_numbers<[1], [0], [0], [1], [0, 0, 1, 1], [], []>} : vector<16x512xf32>, vector<512x16xf32>, vector<16x16xf32> -> vector<16x16xf32>
    %557 = vector.extract_strided_slice %554 {offsets = [0, 16], sizes = [16, 496], strides = [1, 1]} : vector<16x512xf32> to vector<16x496xf32>
    %558 = vector.extract_strided_slice %554 {offsets = [0, 0], sizes = [16, 16], strides = [1, 1]} : vector<16x512xf32> to vector<16x16xf32>
    %559 = tpu.concatenate %557, %558 in 1 : vector<16x496xf32>, vector<16x16xf32> -> vector<16x512xf32>
    %560 = arith.maximumf %554, %559 : vector<16x512xf32>
    %561 = vector.extract_strided_slice %560 {offsets = [0, 8], sizes = [16, 504], strides = [1, 1]} : vector<16x512xf32> to vector<16x504xf32>
    %562 = vector.extract_strided_slice %560 {offsets = [0, 0], sizes = [16, 8], strides = [1, 1]} : vector<16x512xf32> to vector<16x8xf32>
    %563 = tpu.concatenate %561, %562 in 1 : vector<16x504xf32>, vector<16x8xf32> -> vector<16x512xf32>
    %564 = arith.maximumf %560, %563 : vector<16x512xf32>
    %565 = vector.extract_strided_slice %564 {offsets = [0, 4], sizes = [16, 508], strides = [1, 1]} : vector<16x512xf32> to vector<16x508xf32>
    %566 = vector.extract_strided_slice %564 {offsets = [0, 0], sizes = [16, 4], strides = [1, 1]} : vector<16x512xf32> to vector<16x4xf32>
    %567 = tpu.concatenate %565, %566 in 1 : vector<16x508xf32>, vector<16x4xf32> -> vector<16x512xf32>
    %568 = arith.maximumf %564, %567 : vector<16x512xf32>
    %569 = vector.extract_strided_slice %568 {offsets = [0, 2], sizes = [16, 510], strides = [1, 1]} : vector<16x512xf32> to vector<16x510xf32>
    %570 = vector.extract_strided_slice %568 {offsets = [0, 0], sizes = [16, 2], strides = [1, 1]} : vector<16x512xf32> to vector<16x2xf32>
    %571 = tpu.concatenate %569, %570 in 1 : vector<16x510xf32>, vector<16x2xf32> -> vector<16x512xf32>
    %572 = arith.maximumf %568, %571 : vector<16x512xf32>
    %573 = vector.extract_strided_slice %572 {offsets = [0, 1], sizes = [16, 511], strides = [1, 1]} : vector<16x512xf32> to vector<16x511xf32>
    %574 = vector.extract_strided_slice %572 {offsets = [0, 0], sizes = [16, 1], strides = [1, 1]} : vector<16x512xf32> to vector<16x1xf32>
    %575 = tpu.concatenate %573, %574 in 1 : vector<16x511xf32>, vector<16x1xf32> -> vector<16x512xf32>
    %576 = arith.maximumf %572, %575 : vector<16x512xf32>
    %c0_132 = arith.constant 0 : index
    %c0_133 = arith.constant 0 : index
    %577 = vector.load %arg8[%c0_132, %c0_133] : memref<512x16xf32, #tpu.memory_space<vmem>>, vector<512x16xf32>
    %cst_134 = arith.constant dense<0.000000e+00> : vector<16x16xf32>
    %578 = tpu.matmul %576, %577, %cst_134 {dimension_numbers = #tpu.dot_dimension_numbers<[1], [0], [0], [1], [0, 0, 1, 1], [], []>} : vector<16x512xf32>, vector<512x16xf32>, vector<16x16xf32> -> vector<16x16xf32>
    %579 = tpu.concatenate %556, %578 in 1 : vector<16x16xf32>, vector<16x16xf32> -> vector<16x32xf32>
    %580 = tpu.concatenate %15, %579, %15 in 0 : vector<3x32xf32>, vector<16x32xf32>, vector<3x32xf32> -> vector<22x32xf32>
    %581 = vector.extract_strided_slice %580 {offsets = [0, 0], sizes = [16, 32], strides = [1, 1]} : vector<22x32xf32> to vector<16x32xf32>
    %582 = vector.extract_strided_slice %580 {offsets = [1, 0], sizes = [16, 32], strides = [1, 1]} : vector<22x32xf32> to vector<16x32xf32>
    %583 = vector.extract_strided_slice %580 {offsets = [2, 0], sizes = [16, 32], strides = [1, 1]} : vector<22x32xf32> to vector<16x32xf32>
    %584 = vector.extract_strided_slice %580 {offsets = [3, 0], sizes = [16, 32], strides = [1, 1]} : vector<22x32xf32> to vector<16x32xf32>
    %585 = vector.extract_strided_slice %580 {offsets = [4, 0], sizes = [16, 32], strides = [1, 1]} : vector<22x32xf32> to vector<16x32xf32>
    %586 = vector.extract_strided_slice %580 {offsets = [5, 0], sizes = [16, 32], strides = [1, 1]} : vector<22x32xf32> to vector<16x32xf32>
    %587 = vector.extract_strided_slice %580 {offsets = [6, 0], sizes = [16, 32], strides = [1, 1]} : vector<22x32xf32> to vector<16x32xf32>
    %588 = tpu.concatenate %581, %582, %583, %584, %585, %586, %587 in 1 : vector<16x32xf32>, vector<16x32xf32>, vector<16x32xf32>, vector<16x32xf32>, vector<16x32xf32>, vector<16x32xf32>, vector<16x32xf32> -> vector<16x224xf32>
    %c0_135 = arith.constant 0 : index
    %c0_136 = arith.constant 0 : index
    %589 = vector.load %arg9[%c0_135, %c0_136] : memref<224x16xf32, #tpu.memory_space<vmem>>, vector<224x16xf32>
    %cst_137 = arith.constant dense<0.000000e+00> : vector<16x16xf32>
    %590 = tpu.matmul %588, %589, %cst_137 {dimension_numbers = #tpu.dot_dimension_numbers<[1], [0], [0], [1], [0, 0, 1, 1], [], []>} : vector<16x224xf32>, vector<224x16xf32>, vector<16x16xf32> -> vector<16x16xf32>
    %cst_138 = arith.constant 0.000000e+00 : f32
    %591 = vector.broadcast %cst_138 : f32 to vector<16x16xf32>
    %592 = arith.subf %591, %590 : vector<16x16xf32>
    %593 = math.exp %592 : vector<16x16xf32>
    %cst_139 = arith.constant 1.000000e+00 : f32
    %594 = vector.broadcast %cst_139 : f32 to vector<16x16xf32>
    %595 = arith.addf %594, %593 : vector<16x16xf32>
    %cst_140 = arith.constant 1.000000e+00 : f32
    %596 = vector.broadcast %cst_140 : f32 to vector<16x16xf32>
    %597 = arith.divf %596, %595 : vector<16x16xf32>
    %c0_141 = arith.constant 0 : index
    %c0_142 = arith.constant 0 : index
    %598 = vector.load %arg10[%c0_141, %c0_142] : memref<16x512xf32, #tpu.memory_space<vmem>>, vector<16x512xf32>
    %cst_143 = arith.constant dense<0.000000e+00> : vector<16x512xf32>
    %599 = tpu.matmul %597, %598, %cst_143 {dimension_numbers = #tpu.dot_dimension_numbers<[1], [0], [0], [1], [0, 0, 1, 1], [], []>} : vector<16x16xf32>, vector<16x512xf32>, vector<16x512xf32> -> vector<16x512xf32>
    %600 = arith.mulf %554, %599 : vector<16x512xf32>
    %c3_144 = arith.constant 3 : index
    %c0_145 = arith.constant 0 : index
    %c0_146 = arith.constant 0 : index
    %601 = vector.load %arg11[%c3_144, %c0_145, %c0_146] : memref<4x16x512xf32, #tpu.memory_space<vmem>>, vector<1x16x512xf32>
    %602 = vector.shape_cast %601 : vector<1x16x512xf32> to vector<16x512xf32>
    %603 = vector.shape_cast %600 : vector<16x512xf32> to vector<1x16x512xf32>
    tpu.vector_store %arg11[%c3_144, %c0_145, %c0_146], %603 {strides = array<i32>} : memref<4x16x512xf32, #tpu.memory_space<vmem>>, vector<1x16x512xf32>,
    return
  }
  func.func @transform_0(%arg0: i32) -> (i32, i32, i32) {
    %c0_i32 = arith.constant 0 : i32
    %c0_i32_0 = arith.constant 0 : i32
    %c0_i32_1 = arith.constant 0 : i32
    return %arg0, %c0_i32, %c0_i32_0 : i32, i32, i32
  }
  func.func @transform_1(%arg0: i32) -> (i32, i32) {
    %c0_i32 = arith.constant 0 : i32
    %c0_i32_0 = arith.constant 0 : i32
    %c0_i32_1 = arith.constant 0 : i32
    return %c0_i32, %c0_i32_0 : i32, i32
  }
  func.func @transform_2(%arg0: i32) -> (i32, i32) {
    %c0_i32 = arith.constant 0 : i32
    %c0_i32_0 = arith.constant 0 : i32
    %c0_i32_1 = arith.constant 0 : i32
    return %c0_i32, %c0_i32_0 : i32, i32
  }
  func.func @transform_3(%arg0: i32) -> (i32, i32) {
    %c0_i32 = arith.constant 0 : i32
    %c0_i32_0 = arith.constant 0 : i32
    %c0_i32_1 = arith.constant 0 : i32
    return %c0_i32, %c0_i32_0 : i32, i32
  }
  func.func @transform_4(%arg0: i32) -> (i32, i32) {
    %c0_i32 = arith.constant 0 : i32
    %c0_i32_0 = arith.constant 0 : i32
    %c0_i32_1 = arith.constant 0 : i32
    return %c0_i32, %c0_i32_0 : i32, i32
  }
  func.func @transform_5(%arg0: i32) -> (i32, i32) {
    %c0_i32 = arith.constant 0 : i32
    %c0_i32_0 = arith.constant 0 : i32
    %c0_i32_1 = arith.constant 0 : i32
    return %c0_i32, %c0_i32_0 : i32, i32
  }
  func.func @transform_6(%arg0: i32) -> (i32, i32) {
    %c0_i32 = arith.constant 0 : i32
    %c0_i32_0 = arith.constant 0 : i32
    %c0_i32_1 = arith.constant 0 : i32
    return %c0_i32, %c0_i32_0 : i32, i32
  }
  func.func @transform_7(%arg0: i32) -> (i32, i32) {
    %c0_i32 = arith.constant 0 : i32
    %c0_i32_0 = arith.constant 0 : i32
    %c0_i32_1 = arith.constant 0 : i32
    return %c0_i32, %c0_i32_0 : i32, i32
  }
  func.func @transform_8(%arg0: i32) -> (i32, i32) {
    %c0_i32 = arith.constant 0 : i32
    %c0_i32_0 = arith.constant 0 : i32
    %c0_i32_1 = arith.constant 0 : i32
    return %c0_i32, %c0_i32_0 : i32, i32
  }
  func.func @transform_9(%arg0: i32) -> (i32, i32) {
    %c0_i32 = arith.constant 0 : i32
    %c0_i32_0 = arith.constant 0 : i32
    %c0_i32_1 = arith.constant 0 : i32
    return %c0_i32, %c0_i32_0 : i32, i32
  }
  func.func @transform_10(%arg0: i32) -> (i32, i32, i32) {
    %c0_i32 = arith.constant 0 : i32
    %c0_i32_0 = arith.constant 0 : i32
    %c0_i32_1 = arith.constant 0 : i32
    return %arg0, %c0_i32, %c0_i32_0 : i32, i32, i32
  }
}

</mosaic_0001>

<bundles_post_ra>
// kernel: tile.39
= control target key start
LH: loop header
LB: loop body
LE: loop exit
PB: predicated region body
PF: predicated region fallthrough
CT: control target
= control target key end

     0   :  { %s8_s6 = smov 3  ;;  %s11_s7 = smov 12  ;;  %vm13_vm0 = vcmask 1043458   ;;  %vm18_vm1 = vcmask 1045508   ;;  %vm23_vm2 = vcmask 1047558   ;;  %vm3_vm3 = vcmask 261120   ;;  %s207_s0 = inlined_call_operand.vmem [shape: f32[2,16,32], index: 0, kind: input, shape index: {}]   ;;  %s208_s1 = inlined_call_operand.vmem [shape: f32[2,512], index: 1, kind: output, shape index: {}]  }
   0x1   :  { %v116_v0 = vld [vmem:[%s207_s0 + $0x3] ss:$16 sm:%s8_s6]   ;;  %v117_v1 = vld [vmem:[%s207_s0 - $0x19] ss:$16 sm:%s11_s7]   ;;  %s16_s12 = smov 48  ;;  %s21_s13 = smov 192 }
   0x2   :  { %v14_v2 = vsel %vm13_vm0, %v117_v1, %v116_v0  ;;  %v118_v3 = vld [vmem:[%s207_s0 - $0x35] ss:$16 sm:%s16_s12]   ;;  %v119_v4 = vld [vmem:[%s207_s0 - $0x51] ss:$16 sm:%s21_s13]   ;;  %s36_s18 = smov 3  ;;  %s39_s21 = smov 12 }
   0x3   :  { %v19_v5 = vsel %vm18_vm1, %v118_v3, %v14_v2  ;;  %v120_v6 = vld [vmem:[%s207_s0 + $0x2] ss:$16 sm:%s36_s18]   ;;  %s44_s22 = smov 48  ;;  %v2_v7 = vld [vmem:[%s207_s0] ss:$4 sm:$0xff]   ;;  %s49_s29 = smov 192 }
   0x4   :  { %v24_v8 = vsel %vm23_vm2, %v119_v4, %v19_v5  ;;  %v121_v9 = vld [vmem:[%s207_s0 - $0x1a] ss:$16 sm:%s39_s21]   ;;  %v122_v10 = vld [vmem:[%s207_s0 - $0x36] ss:$16 sm:%s44_s22]   ;;  %s134_s30 = smov 96   ;;  %s64_s4 = smov 3 }
   0x5   :  { %25 = vrot.lane.b32.xlu0 %v24_v8, %s134_s30  ;;  %v42_v11 = vsel %vm13_vm0, %v121_v9, %v120_v6  ;;  %v123_v12 = vld [vmem:[%s207_s0 - $0x52] ss:$16 sm:%s49_s29]   ;;  %s67_s5 = smov 12  ;;  %s72_s10 = smov 48  ;;  %vm27_vm4 = vcmask 1048320   ;;  %vm55_vm5 = vcmask 785920  }
   0x6   :  { %v47_v13 = vsel %vm18_vm1, %v122_v10, %v42_v11  ;;  %v124_v14 = vld [vmem:[%s207_s0 + $0x1] ss:$16 sm:%s64_s4]   ;;  %v125_v15 = vld [vmem:[%s207_s0 - $0x1b] ss:$16 sm:%s67_s5]   ;;  %s77_s11 = smov 192  ;;  %s136_s16 = smov 32  }
   0x7   :  { %4 = vst.msk [vmem:[#allocation0] ss:$8 sm:$0xf] %vm3_vm3, %v2_v7   ;;  %6 = vst.msk [vmem:[#allocation0 - $0x1f] ss:$8 sm:$0xf0] %vm3_vm3, %v2_v7   ;;  %v52_v16 = vsel %vm23_vm2, %v123_v12, %v47_v13  ;;  %v70_v17 = vsel %vm13_vm0, %v125_v15, %v124_v14 }
   0x8   :  { %v126_v18 = vld [vmem:[%s207_s0 - $0x37] ss:$16 sm:%s72_s10]   ;;  %v127_v19 = vld [vmem:[%s207_s0 - $0x53] ss:$16 sm:%s77_s11]   ;;  %s135_s0 = smov 64   ;;  %vm83_vm6 = vcmask 523520  }
   0x9   :  { %v75_v20 = vsel %vm18_vm1, %v126_v18, %v70_v17  ;;  %53 = vrot.lane.b32.xlu0 %v52_v16, %s135_s0 }
   0xa   :  { %v80_v21 = vsel %vm23_vm2, %v127_v19, %v75_v20 }
   0xb   :  { %81 = vrot.lane.b32.xlu1 %v80_v21, %s136_s16 }
  0x77   :  { %v26_v22 = vpop.permute.xlu0 %25  }
  0x78   :  { %28 = vst.msk [vmem:[#allocation0] sm:$0x3] %vm27_vm4, %v26_v22   ;;  %30 = vst.msk [vmem:[#allocation0 + $0x6] sm:$0xc] %vm27_vm4, %v26_v22  }
  0x79   :  { %32 = vst.msk [vmem:[#allocation0 + $0xc] sm:$0x30] %vm27_vm4, %v26_v22   ;;  %34 = vst.msk [vmem:[#allocation0 + $0x12] sm:$0xc0] %vm27_vm4, %v26_v22  }
  0x7b   :  { %v54_v23 = vpop.permute.xlu0 %53  }
  0x7c   :  { %56 = vst.msk [vmem:[#allocation0] sm:$0x3] %vm55_vm5, %v54_v23   ;;  %58 = vst.msk [vmem:[#allocation0 + $0x6] sm:$0xc] %vm55_vm5, %v54_v23  }
  0x7d   :  { %60 = vst.msk [vmem:[#allocation0 + $0xc] sm:$0x30] %vm55_vm5, %v54_v23   ;;  %62 = vst.msk [vmem:[#allocation0 + $0x12] sm:$0xc0] %vm55_vm5, %v54_v23   ;;  %v82_v24 = vpop.permute.xlu1 %81  }
  0x7e   :  { %84 = vst.msk [vmem:[#allocation0] sm:$0x3] %vm83_vm6, %v82_v24   ;;  %86 = vst.msk [vmem:[#allocation0 + $0x6] sm:$0xc] %vm83_vm6, %v82_v24  }
  0x7f   :  { %88 = vst.msk [vmem:[#allocation0 + $0xc] sm:$0x30] %vm83_vm6, %v82_v24   ;;  %90 = vst.msk [vmem:[#allocation0 + $0x12] sm:$0xc0] %vm83_vm6, %v82_v24  }
  0x85   :  { %v94_v25 = vld [vmem:[#allocation0] sm:$0x3]  ;;  %v98_v26 = vld [vmem:[#allocation0 + $0x8] sm:$0x3] }
  0x86   :  { %v103_v27 = vld [vmem:[#allocation0 + $0x10] sm:$0x3]  ;;  %96 = vst [vmem:[%s208_s1] sm:$0x3] %v94_v25  ;;  %128 = vst [vmem:[%s208_s1 + $0x2] sm:$0x3] %v98_v26 }
  0x87   :  { %129 = vst [vmem:[%s208_s1 + $0x4] sm:$0x3] %v103_v27  ;;  %v109_v28 = vld [vmem:[#allocation0 + $0x18] sm:$0x3] }
  0x88   :  { %130 = vst [vmem:[%s208_s1 + $0x6] sm:$0x3] %v109_v28 }

// kernel: tile.24
= control target key start
LH: loop header
LB: loop body
LE: loop exit
PB: predicated region body
PF: predicated region fallthrough
CT: control target
= control target key end

     0   :  { %s34_s6 = smov 3  ;;  %s37_s7 = smov 12  ;;  %vm39_vm0 = vcmask 1043458   ;;  %vm44_vm1 = vcmask 1045508   ;;  %vm49_vm2 = vcmask 1047558   ;;  %vm110_vm3 = vcmask 1042433   ;;  %s847_s0 = inlined_call_operand.vmem [shape: f32[9,16,32], index: 0, kind: input, shape index: {}]   ;;  %s848_s1 = inlined_call_operand.vmem [shape: f32[9,512], index: 1, kind: output, shape index: {}]  }
   0x1   :  { %v390_v0 = vld [vmem:[%s847_s0 + $0x3] ss:$16 sm:%s34_s6]   ;;  %s42_s12 = smov 48  ;;  %s47_s13 = smov 192  ;;  %v406_v10 = vld [vmem:[%s847_s0 + $0x8b] sm:$0x1]  }
   0x2   :  { %v391_v1 = vld [vmem:[%s847_s0 + $0x3] ss:$16 sm:%s37_s7]   ;;  %s81_s18 = smov 3  ;;  %s84_s21 = smov 12  ;;  %vm115_vm4 = vcmask 1044483   ;;  %vm120_vm5 = vcmask 1046533  }
   0x3   :  { %v40_v2 = vsel %vm39_vm0, %v391_v1, %v390_v0  ;;  %v392_v3 = vld [vmem:[%s847_s0 + $0x3] ss:$16 sm:%s42_s12]   ;;  %v400_v6 = vld [vmem:[%s847_s0 + $0x87] ss:$-16 sm:%s81_s18]   ;;  %s89_s22 = smov 48  ;;  %s94_s27 = smov 192 }
   0x4   :  { %v393_v4 = vld [vmem:[%s847_s0 + $0x3] ss:$16 sm:%s47_s13]   ;;  %v45_v5 = vsel %vm44_vm1, %v392_v3, %v40_v2  ;;  %v401_v8 = vld [vmem:[%s847_s0 - $0x15] ss:$16 sm:%s84_s21]   ;;  %s56_s28 = smov 3  ;;  %s474_s2 = smov 96  }
   0x5   :  { %v50_v7 = vsel %vm49_vm2, %v393_v4, %v45_v5  ;;  %v402_v9 = vld [vmem:[%s847_s0 - $0x15] ss:$16 sm:%s89_s22]   ;;  %v87_v11 = vsel %vm39_vm0, %v401_v8, %v400_v6  ;;  %s59_s5 = smov 12  ;;  %s64_s6 = smov 48  ;;  %v410_v22 = vld [vmem:[%s847_s0 + $0x48] sm:$0x80]  }
   0x6   :  { %51 = vrot.lane.b32.xlu0 %v50_v7, %s474_s2  ;;  %v403_v12 = vld [vmem:[%s847_s0 - $0x15] ss:$16 sm:%s94_s27]   ;;  %v92_v13 = vsel %vm44_vm1, %v402_v9, %v87_v11  ;;  %s69_s11 = smov 192  ;;  %s108_s12 = smov 6  ;;  %vm124_vm6 = vcmask 1047559   ;;  %vm3_vm7 = vcmask 261120  }
   0x7   :  { %v394_v14 = vld [vmem:[%s847_s0 + $0x83] ss:$-124 sm:%s56_s28]   ;;  %v97_v16 = vsel %vm49_vm2, %v403_v12, %v92_v13  ;;  %s113_s17 = smov 24  ;;  %s118_s18 = smov 96  ;;  %v433_v48 = vld [vmem:[%s847_s0 + $0x8a] sm:$0x1]  }
   0x8   :  { %v395_v15 = vld [vmem:[%s847_s0 - $0x9] ss:$16 sm:%s59_s5]   ;;  %98 = vrot.lane.b32.xlu1 %v97_v16, %s474_s2  ;;  %s134_s23 = smov 3  ;;  %s137_s28 = smov 12  ;;  %v437_v53 = vld [vmem:[%s847_s0 + $0x47] sm:$0x80]  }
   0x9   :  { %v62_v17 = vsel %vm39_vm0, %v395_v15, %v394_v14  ;;  %v396_v18 = vld [vmem:[%s847_s0 - $0x9] ss:$16 sm:%s64_s6]   ;;  %v407_v21 = vld [vmem:[%s847_s0 + $0x5b] ss:$16 sm:%s108_s12]   ;;  %s149_s29 = smov 3  ;;  %s152_s4 = smov 12 }
   0xa   :  { %v397_v19 = vld [vmem:[%s847_s0 - $0x9] ss:$16 sm:%s69_s11]   ;;  %v67_v20 = vsel %vm44_vm1, %v396_v18, %v62_v17  ;;  %v111_v24 = vsel %vm110_vm3, %v407_v21, %v406_v10  ;;  %v408_v25 = vld [vmem:[%s847_s0 - $0x21] ss:$16 sm:%s113_s17]   ;;  %s157_s5 = smov 48  ;;  %s162_s10 = smov 192 }
   0xb   :  { %v72_v23 = vsel %vm49_vm2, %v397_v19, %v67_v20  ;;  %v409_v26 = vld [vmem:[%s847_s0 - $0x21] ss:$16 sm:%s118_s18]   ;;  %v116_v27 = vsel %vm115_vm4, %v408_v25, %v111_v24  ;;  %v417_v31 = vld [vmem:[%s847_s0 + $0x2] ss:$16 sm:%s149_s29]   ;;  %s171_s15 = smov 3  ;;  %s174_s16 = smov 12 }
   0xc   :  { %73 = vrot.lane.b32.xlu0 %v72_v23, %s474_s2  ;;  %v413_v28 = vld [vmem:[%s847_s0 + $0x8f] ss:$-48 sm:%s134_s23]   ;;  %v121_v29 = vsel %vm120_vm5, %v409_v26, %v116_v27  ;;  %s179_s19 = smov 48  ;;  %s184_s20 = smov 192  ;;  %v385_v62 = vld [vmem:[%s847_s0 + $0x60] ss:$4 sm:$0xff]  }
   0xd   :  { %v414_v30 = vld [vmem:[%s847_s0 + $0x4f] ss:$16 sm:%s137_s28]   ;;  %v125_v32 = vsel %vm124_vm6, %v410_v22, %v121_v29  ;;  %v418_v34 = vld [vmem:[%s847_s0 + $0x2] ss:$16 sm:%s152_s4]   ;;  %s196_s22 = smov 3  ;;  %s199_s23 = smov 12 }
   0xe   :  { %v140_v33 = vsel %vm39_vm0, %v414_v30, %v413_v28  ;;  %v419_v35 = vld [vmem:[%s847_s0 + $0x2] ss:$16 sm:%s157_s5]   ;;  %126 = vrot.lane.b32.xlu1 %v125_v32, %s474_s2  ;;  %v155_v36 = vsel %vm39_vm0, %v418_v34, %v417_v31  ;;  %s204_s28 = smov 48  ;;  %s209_s29 = smov 192  ;;  %v2_v8 = vld [vmem:[%s847_s0] ss:$4 sm:$0xff]  }
   0xf   :  { %v420_v37 = vld [vmem:[%s847_s0 + $0x2] ss:$16 sm:%s162_s10]   ;;  %v160_v38 = vsel %vm44_vm1, %v419_v35, %v155_v36  ;;  %v422_v41 = vld [vmem:[%s847_s0 - $0xa] ss:$16 sm:%s174_s16]   ;;  %s223_s6 = smov 6  ;;  %s475_s7 = smov 64  }
  0x10   :  { %141 = vrot.lane.b32.xlu0 %v140_v33, %s474_s2  ;;  %v421_v39 = vld [vmem:[%s847_s0 + $0x82] ss:$-124 sm:%s171_s15]   ;;  %v165_v40 = vsel %vm49_vm2, %v420_v37, %v160_v38  ;;  %s228_s12 = smov 24  ;;  %s233_s13 = smov 96  ;;  %v382_v11 = vld [vmem:[%s847_s0 + $0x40] ss:$4 sm:$0xff]  }
  0x11   :  { %v423_v42 = vld [vmem:[%s847_s0 - $0xa] ss:$16 sm:%s179_s19]   ;;  %v177_v43 = vsel %vm39_vm0, %v422_v41, %v421_v39  ;;  %v428_v47 = vld [vmem:[%s847_s0 - $0x16] ss:$16 sm:%s199_s23]   ;;  %s264_s23 = smov 3  ;;  %s277_s4 = smov 192 }
  0x12   :  { %v424_v44 = vld [vmem:[%s847_s0 - $0xa] ss:$16 sm:%s184_s20]   ;;  %166 = vrot.lane.b32.xlu1 %v165_v40, %s475_s7  ;;  %v182_v46 = vsel %vm44_vm1, %v423_v42, %v177_v43  ;;  %s249_s20 = smov 3  ;;  %387 = vst.msk [vmem:[%s848_s1 - $0x19] ss:$8 sm:$0xf0] %vm3_vm7, %v385_v62  }
  0x13   :  { %v427_v45 = vld [vmem:[%s847_s0 + $0x86] ss:$-16 sm:%s196_s22]   ;;  %v187_v49 = vsel %vm49_vm2, %v424_v44, %v182_v46  ;;  %v429_v51 = vld [vmem:[%s847_s0 - $0x16] ss:$16 sm:%s204_s28]   ;;  %s252_s22 = smov 12  ;;  %s267_s28 = smov 12 }
  0x14   :  { %v202_v50 = vsel %vm39_vm0, %v428_v47, %v427_v45  ;;  %v430_v52 = vld [vmem:[%s847_s0 - $0x16] ss:$16 sm:%s209_s29]   ;;  %188 = vrot.lane.b32.xlu0 %v187_v49, %s475_s7  ;;  %s272_s29 = smov 48  ;;  %386 = vst.msk [vmem:[%s848_s1 + $0x6] ss:$8 sm:$0xf] %vm3_vm7, %v385_v62  }
  0x15   :  { %v207_v54 = vsel %vm44_vm1, %v429_v51, %v202_v50  ;;  %v434_v55 = vld [vmem:[%s847_s0 + $0x5a] ss:$16 sm:%s223_s6]   ;;  %v435_v58 = vld [vmem:[%s847_s0 - $0x22] ss:$16 sm:%s228_s12]   ;;  %s286_s12 = smov 3  ;;  %s289_s2 = smov 12 }
  0x16   :  { %v212_v56 = vsel %vm49_vm2, %v430_v52, %v207_v54  ;;  %v226_v57 = vsel %vm110_vm3, %v434_v55, %v433_v48  ;;  %v436_v59 = vld [vmem:[%s847_s0 - $0x22] ss:$16 sm:%s233_s13]   ;;  %v444_v1 = vld [vmem:[%s847_s0 + $0x1] ss:$16 sm:%s264_s23]   ;;  %s294_s21 = smov 48  ;;  %s299_s24 = smov 192 }
  0x17   :  { %213 = vrot.lane.b32.xlu1 %v212_v56, %s475_s7  ;;  %v231_v60 = vsel %vm115_vm4, %v435_v58, %v226_v57  ;;  %v440_v61 = vld [vmem:[%s847_s0 + $0x8e] ss:$-48 sm:%s249_s20]   ;;  %s311_s25 = smov 3  ;;  %4 = vst.msk [vmem:[%s848_s1] ss:$8 sm:$0xf] %vm3_vm7, %v2_v8  }
  0x18   :  { %v236_v63 = vsel %vm120_vm5, %v436_v59, %v231_v60  ;;  %v441_v0 = vld [vmem:[%s847_s0 + $0x4e] ss:$16 sm:%s252_s22]   ;;  %v445_v4 = vld [vmem:[%s847_s0 + $0x1] ss:$16 sm:%s267_s28]   ;;  %s319_s13 = smov 48  ;;  %s324_s14 = smov 192 }
  0x19   :  { %v240_v2 = vsel %vm124_vm6, %v437_v53, %v236_v63  ;;  %v255_v3 = vsel %vm39_vm0, %v441_v0, %v440_v61  ;;  %v446_v5 = vld [vmem:[%s847_s0 + $0x1] ss:$16 sm:%s272_s29]   ;;  %v270_v6 = vsel %vm39_vm0, %v445_v4, %v444_v1  ;;  %s314_s29 = smov 12  ;;  %378 = vst.msk [vmem:[%s848_s1 - $0x1f] ss:$8 sm:$0xf0] %vm3_vm7, %v2_v8  }
  0x1a   :  { %241 = vrot.lane.b32.xlu0 %v240_v2, %s475_s7  ;;  %v447_v7 = vld [vmem:[%s847_s0 + $0x1] ss:$16 sm:%s277_s4]   ;;  %v275_v9 = vsel %vm44_vm1, %v446_v5, %v270_v6  ;;  %v460_v15 = vld [vmem:[%s847_s0 + $0x89] sm:$0x1]   ;;  %s476_s26 = smov 32   ;;  %s348_s28 = smov 96 }
  0x1b   :  { %256 = vrot.lane.b32.xlu1 %v255_v3, %s475_s7  ;;  %v448_v10 = vld [vmem:[%s847_s0 + $0x81] ss:$-124 sm:%s286_s12]   ;;  %v280_v12 = vsel %vm49_vm2, %v447_v7, %v275_v9  ;;  %383 = vst.msk [vmem:[%s848_s1 + $0x4] ss:$8 sm:$0xf] %vm3_vm7, %v382_v11   ;;  %s364_s10 = smov 3 }
  0x1c   :  { %v449_v13 = vld [vmem:[%s847_s0 - $0xb] ss:$16 sm:%s289_s2]   ;;  %384 = vst.msk [vmem:[%s848_s1 - $0x1b] ss:$8 sm:$0xf0] %vm3_vm7, %v382_v11   ;;  %s367_s15 = smov 12 }
  0x1d   :  { %v450_v14 = vld [vmem:[%s847_s0 - $0xb] ss:$16 sm:%s294_s21]   ;;  %v292_v16 = vsel %vm39_vm0, %v449_v13, %v448_v10  ;;  %v455_v20 = vld [vmem:[%s847_s0 - $0x17] ss:$16 sm:%s314_s29]   ;;  %vm53_vm8 = vcmask 1048320   ;;  %vm168_vm9 = vcmask 785920  }
  0x1e   :  { %v451_v17 = vld [vmem:[%s847_s0 - $0xb] ss:$16 sm:%s299_s24]   ;;  %s338_s24 = smov 6  ;;  %281 = vrot.lane.b32.xlu0 %v280_v12, %s476_s26  ;;  %v297_v19 = vsel %vm44_vm1, %v450_v14, %v292_v16  ;;  %v388_v21 = vld [vmem:[%s847_s0 + $0x80] ss:$4 sm:$0xf]  }
  0x1f   :  { %v454_v18 = vld [vmem:[%s847_s0 + $0x85] ss:$-16 sm:%s311_s25]   ;;  %s343_s25 = smov 24  ;;  %v302_v22 = vsel %vm49_vm2, %v451_v17, %v297_v19  ;;  %v456_v24 = vld [vmem:[%s847_s0 - $0x17] ss:$16 sm:%s319_s13]   ;;  %vm283_vm10 = vcmask 523520  }
  0x20   :  { %v317_v23 = vsel %vm39_vm0, %v455_v20, %v454_v18  ;;  %v457_v25 = vld [vmem:[%s847_s0 - $0x17] ss:$16 sm:%s324_s14]   ;;  %v464_v26 = vld [vmem:[%s847_s0 + $0x46] sm:$0x80]   ;;  %303 = vrot.lane.b32.xlu1 %v302_v22, %s476_s26 }
  0x21   :  { %389 = vst.msk [vmem:[%s848_s1 + $0x20] ss:$8 sm:$0xf] %vm3_vm7, %v388_v21   ;;  %v322_v27 = vsel %vm44_vm1, %v456_v24, %v317_v23  ;;  %v461_v28 = vld [vmem:[%s847_s0 + $0x59] ss:$16 sm:%s338_s24]  }
  0x22   :  { %v379_v29 = vld [vmem:[%s847_s0 + $0x20] ss:$4 sm:$0xff]   ;;  %v327_v30 = vsel %vm49_vm2, %v457_v25, %v322_v27  ;;  %v341_v31 = vsel %vm110_vm3, %v461_v28, %v460_v15  ;;  %v462_v32 = vld [vmem:[%s847_s0 - $0x23] ss:$16 sm:%s343_s25]  }
  0x23   :  { %v463_v33 = vld [vmem:[%s847_s0 - $0x23] ss:$16 sm:%s348_s28]   ;;  %380 = vst.msk [vmem:[%s848_s1 + $0x2] ss:$8 sm:$0xf] %vm3_vm7, %v379_v29   ;;  %328 = vrot.lane.b32.xlu0 %v327_v30, %s476_s26  ;;  %v346_v34 = vsel %vm115_vm4, %v462_v32, %v341_v31 }
  0x24   :  { %381 = vst.msk [vmem:[%s848_s1 - $0x1d] ss:$8 sm:$0xf0] %vm3_vm7, %v379_v29   ;;  %v467_v35 = vld [vmem:[%s847_s0 + $0x8d] ss:$-48 sm:%s364_s10]   ;;  %v351_v36 = vsel %vm120_vm5, %v463_v33, %v346_v34 }
  0x25   :  { %v468_v37 = vld [vmem:[%s847_s0 + $0x4d] ss:$16 sm:%s367_s15]   ;;  %v355_v38 = vsel %vm124_vm6, %v464_v26, %v351_v36 }
  0x26   :  { %v370_v39 = vsel %vm39_vm0, %v468_v37, %v467_v35  ;;  %356 = vrot.lane.b32.xlu1 %v355_v38, %s476_s26 }
  0x27   :  { %371 = vrot.lane.b32.xlu0 %v370_v39, %s476_s26 }
  0x78   :  { %v52_v40 = vpop.permute.xlu0 %51  }
  0x79   :  { %54 = vst.msk [vmem:[%s848_s1] sm:$0xff] %vm53_vm8, %v52_v40  }
  0x7a   :  { %v99_v41 = vpop.permute.xlu1 %98  }
  0x7b   :  { %404 = vst.msk [vmem:[%s848_s1 + $0x28] ss:$-25 sm:$0x3] %vm53_vm8, %v99_v41   ;;  %405 = vst.msk [vmem:[%s848_s1 + $0xe] sm:$0xfc] %vm53_vm8, %v99_v41  }
  0x7e   :  { %v74_v42 = vpop.permute.xlu0 %73  }
  0x7f   :  { %398 = vst.msk [vmem:[%s848_s1 + $0x20] ss:$-24 sm:$0x3] %vm53_vm8, %v74_v42   ;;  %399 = vst.msk [vmem:[%s848_s1 + $0x7] sm:$0xfc] %vm53_vm8, %v74_v42  }
  0x80   :  { %v127_v43 = vpop.permute.xlu1 %126  }
  0x81   :  { %411 = vst.msk [vmem:[%s848_s1 + $0x30] ss:$-26 sm:$0x3] %vm53_vm8, %v127_v43   ;;  %412 = vst.msk [vmem:[%s848_s1 + $0x15] sm:$0xfc] %vm53_vm8, %v127_v43  }
  0x82   :  { %v142_v44 = vpop.permute.xlu0 %141  }
  0x83   :  { %415 = vst.msk [vmem:[%s848_s1 + $0x38] ss:$-27 sm:$0x3] %vm53_vm8, %v142_v44   ;;  %416 = vst.msk [vmem:[%s848_s1 + $0x1c] sm:$0xc] %vm53_vm8, %v142_v44  }
  0x84   :  { %v167_v45 = vpop.permute.xlu1 %166  }
  0x85   :  { %169 = vst.msk [vmem:[%s848_s1] sm:$0xff] %vm168_vm9, %v167_v45  }
  0x86   :  { %v189_v46 = vpop.permute.xlu0 %188  }
  0x87   :  { %425 = vst.msk [vmem:[%s848_s1 + $0x20] ss:$-24 sm:$0x3] %vm168_vm9, %v189_v46   ;;  %426 = vst.msk [vmem:[%s848_s1 + $0x7] sm:$0xfc] %vm168_vm9, %v189_v46  }
  0x89   :  { %v214_v47 = vpop.permute.xlu1 %213  }
  0x8a   :  { %431 = vst.msk [vmem:[%s848_s1 + $0x28] ss:$-25 sm:$0x3] %vm168_vm9, %v214_v47   ;;  %432 = vst.msk [vmem:[%s848_s1 + $0xe] sm:$0xfc] %vm168_vm9, %v214_v47  }
  0x8c   :  { %v242_v48 = vpop.permute.xlu0 %241  }
  0x8d   :  { %438 = vst.msk [vmem:[%s848_s1 + $0x30] ss:$-26 sm:$0x3] %vm168_vm9, %v242_v48   ;;  %439 = vst.msk [vmem:[%s848_s1 + $0x15] sm:$0xfc] %vm168_vm9, %v242_v48   ;;  %v257_v49 = vpop.permute.xlu1 %256  }
  0x8e   :  { %442 = vst.msk [vmem:[%s848_s1 + $0x38] ss:$-27 sm:$0x3] %vm168_vm9, %v257_v49   ;;  %443 = vst.msk [vmem:[%s848_s1 + $0x1c] sm:$0xc] %vm168_vm9, %v257_v49  }
  0x90   :  { %v282_v50 = vpop.permute.xlu0 %281  }
  0x91   :  { %284 = vst.msk [vmem:[%s848_s1] sm:$0xff] %vm283_vm10, %v282_v50  }
  0x92   :  { %v304_v51 = vpop.permute.xlu1 %303  }
  0x93   :  { %452 = vst.msk [vmem:[%s848_s1 + $0x20] ss:$-24 sm:$0x3] %vm283_vm10, %v304_v51   ;;  %453 = vst.msk [vmem:[%s848_s1 + $0x7] sm:$0xfc] %vm283_vm10, %v304_v51  }
  0x95   :  { %v329_v52 = vpop.permute.xlu0 %328  }
  0x96   :  { %458 = vst.msk [vmem:[%s848_s1 + $0x28] ss:$-25 sm:$0x3] %vm283_vm10, %v329_v52   ;;  %459 = vst.msk [vmem:[%s848_s1 + $0xe] sm:$0xfc] %vm283_vm10, %v329_v52  }
  0x98   :  { %v357_v53 = vpop.permute.xlu1 %356  }
  0x99   :  { %465 = vst.msk [vmem:[%s848_s1 + $0x30] ss:$-26 sm:$0x3] %vm283_vm10, %v357_v53   ;;  %466 = vst.msk [vmem:[%s848_s1 + $0x15] sm:$0xfc] %vm283_vm10, %v357_v53   ;;  %v372_v54 = vpop.permute.xlu0 %371  }
  0x9a   :  { %469 = vst.msk [vmem:[%s848_s1 + $0x38] ss:$-27 sm:$0x3] %vm283_vm10, %v372_v54   ;;  %470 = vst.msk [vmem:[%s848_s1 + $0x1c] sm:$0xc] %vm283_vm10, %v372_v54  }

// kernel: cbam_forward_nhwc.1
= control target key start
LH: loop header
LB: loop body
LE: loop exit
PB: predicated region body
PF: predicated region fallthrough
CT: control target
= control target key end

     0   :  { %s10947_s13 = smov 0   ;;  %s16312_s0 = inlined_call_operand.vmem [shape: f32[8,16,512], index: 0, kind: input, shape index: {}]   ;;  %s16313_s1 = inlined_call_operand.vmem [shape: f32[9,512], index: 1, kind: input, shape index: {}]   ;;  %s16314_s2 = inlined_call_operand.vmem [shape: f32[1,512], index: 2, kind: input, shape index: {}]   ;;  %s16315_s3 = inlined_call_operand.vmem [shape: f32[1,512], index: 3, kind: input, shape index: {}]   ;;  %s16316_s4 = inlined_call_operand.vmem [shape: f32[32,2], index: 4, kind: input, shape index: {}]   ;;  %s16317_s5 = inlined_call_operand.vmem [shape: f32[2,512], index: 5, kind: input, shape index: {}]   ;;  %s16318_s6 = inlined_call_operand.vmem [shape: f32[512,16], index: 6, kind: input, shape index: {}]   ;;  %s16319_s7 = inlined_call_operand.vmem [shape: f32[512,16], index: 7, kind: input, shape index: {}]   ;;  %s16320_s8 = inlined_call_operand.vmem [shape: f32[224,16], index: 8, kind: input, shape index: {}]   ;;  %s16321_s9 = inlined_call_operand.vmem [shape: f32[16,512], index: 9, kind: input, shape index: {}]   ;;  %s16322_s10 = inlined_call_operand.vmem [shape: f32[8,16,512], index: 10, kind: output, shape index: {}]  }
   0x1   :  { %16538 = sst [smem:[#allocation65_spill]] %s16312_s0 }
   0x2   :  { %16539 = sst [smem:[#allocation66_spill]] %s16313_s1 }
   0x3 LB: > { %s8782_s14 = sadd.s32 4294967295, %s10877_s13   ;;  %p8786_p0 = scmp.ge.s32.totalorder %s10877_s13, 1  ;;  %s10877_s13 = sphi %s10947_s13, %s20_s13  }
   0x4   : > { %p314_p1 = scmp.lt.s32.totalorder %s10877_s13, 3 }
   0x6   : > { %p315_p2 = pnand %p8786_p0, %p314_p1 }
   0x8   : > { %318 = sbr.rel (%p315_p2) target bundleno = 8138 (0x1fca), region = 60 }
   0xf   : > { %s8787_s15 = sshll.u32 %s8782_s14, 2  ;;  %v499_v0 = vlaneseq  ;;  %s16540_s0 = sld [smem:[#allocation65_spill]]  ;;  %vm408_vm0 = vcmask 1040384   ;;  %vm580_vm1 = vcmask 1046528   ;;  %vm662_vm2 = vcmask 1045504  }
  0x10   : > { %p355_p3 = scmp.lt.s32.totalorder %s8787_s15, 7  ;;  %s16542_s1 = sld [smem:[#allocation66_spill]]  ;;  %vm473_vm3 = vcmask 261120   ;;  %vm922_vm4 = vcmask 785408   ;;  %vm16452_vm5 = vmmov 0   ;;  %vm1393_vm6 = vcmask 1041408  }
  0x11   : > { %v10969_v8 = vshrl.u32 %v499_v0, 7  ;;  %s16507_s24 = smov 32   ;;  %s16459_s25 = smov 96   ;;  %vm1389_vm8 = vcmask 15360   ;;  %vm16518_vm9 = vcmask 916480   ;;  %vm16517_vm10 = vcmask 982016  }
  0x12   : > { %s17005_s15 = smov (!%p355_p3, %s8787_s15), 7  ;;  %s16461_s17 = smov 64   ;;  %vm16516_vm11 = vcmask 1014784   ;;  %vm16464_vm12 = vcmask 1031168   ;;  %vm16463_vm13 = vcmask 1039360   ;;  %vm2283_vm14 = vcmask 130048  }
  0x13   : > { %s8903_s16 = sshll.u32 %s17005_s15, 6  ;;  %16541 = vst [vmem:[#allocation2_spill] sm:$0xff] %v10969_v8  ;;  %v10985_v15 = vsub.s32 2, %v10969_v8  ;;  %v10998_v18 = vsub.s32 1, %v10969_v8  ;;  %v11001_v20 = vsub.s32 0, %v10969_v8  ;;  %v11019_v28 = vsub.s32 3, %v10969_v8 }
  0x14   : > { %s16457_s23 = smov 112   ;;  %s16394_s26 = smov 120   ;;  %vm16397_vm15 = vcmask 1042432  }
  0x15   : > { %s10963_s19 = scalar_lea.vmem %s16540_s0, %s8903_s16  ;;  %16543 = vst [vmem:[#allocation3_spill] sm:$0xff] %v11001_v20  ;;  %s16390_s27 = smov 124  }
  0x16   : > { %v394_v1 = vld [vmem:[%s10963_s19 + $0x10] sm:$0xff]  ;;  %v392_v2 = vld [vmem:[%s10963_s19] sm:$0xff]  ;;  %v395_v3 = vld [vmem:[%s10963_s19 + $0x18] sm:$0xff]  ;;  %s16392_s28 = smov 126   ;;  %s16514_s14 = smov 127  }
  0x17   : > { %v411_v4 = vrot.slane %v394_v1, 7  ;;  %v409_v5 = vrot.slane %v392_v2, 7  ;;  %v412_v6 = vrot.slane %v395_v3, 7  ;;  %v393_v7 = vld [vmem:[%s10963_s19 + $0x8] sm:$0xff]  ;;  %v396_v23 = vld [vmem:[%s10963_s19 + $0x20] sm:$0xff]  ;;  %v399_v24 = vld [vmem:[%s10963_s19 + $0x38] sm:$0xff]  ;;  %s12952_s22 = scalar_lea.vmem %s16322_s10, %s8903_s16 }
  0x18   : > { %v410_v9 = vrot.slane %v393_v7, 7  ;;  %v397_v10 = vld [vmem:[%s10963_s19 + $0x28] sm:$0xff]  ;;  %v398_v25 = vld [vmem:[%s10963_s19 + $0x30] sm:$0xff]  ;;  %v413_v32 = vrot.slane %v396_v23, 7  ;;  %v419_v33 = vrot.slane %v399_v24, 7  ;;  %s16509_s18 = smov 16  }
  0x19   : > { %v8796_v11 = vld [vmem:[%s16542_s1 + $0x4] ss:$8 sm:$0xf]  ;;  %v10976_v12 = vsel %vm408_vm0, 0.0, %v411_v4  ;;  %v10979_v13 = vsel %vm408_vm0, 0.0, %v409_v5  ;;  %v10992_v16 = vsel %vm408_vm0, 0.0, %v412_v6 }
  0x1a   : > { %v8799_v14 = vld [vmem:[%s16542_s1 + $0x7] ss:$8 sm:$0xf]  ;;  %453 = vrot.lane.b32.xlu1 %v10976_v12, %s16507_s24  ;;  %449 = vrot.lane.b32.xlu0 %v10979_v13, %s16507_s24  ;;  %v10995_v17 = vsel %vm408_vm0, 0.0, %v410_v9  ;;  %v415_v19 = vrot.slane %v397_v10, 7  ;;  %v11004_v21 = vrot.slane %v8796_v11, %v10985_v15  ;;  %v11007_v22 = vrot.slane %v8796_v11, %v10998_v18  ;;  %s16741_s20 = smov 126  }
  0x1b   : > { %v11013_v26 = vrot.slane %v8796_v11, %v11001_v20  ;;  %v11016_v27 = vrot.slane %v8799_v14, %v11001_v20  ;;  %v11026_v29 = vrot.slane %v8799_v14, %v10985_v15  ;;  %v11032_v31 = vrot.slane %v8796_v11, %v11019_v28  ;;  %s16745_s12 = smov 64   ;;  %s16747_s21 = smov 96  }
  0x1c   : > { %16544 = vst [vmem:[#allocation4_spill] sm:$0xff] %v11004_v21  ;;  %16545 = vst [vmem:[#allocation5_spill] sm:$0xff] %v11007_v22  ;;  %v11029_v30 = vsel %vm408_vm0, %v410_v9, %v415_v19  ;;  %v417_v34 = vrot.slane %v398_v25, 7  ;;  %v11036_v35 = vmul.f32 %v11004_v21, %v10976_v12  ;;  %v11039_v36 = vrot.slane %v8799_v14, %v11019_v28  ;;  %s16843_s29 = smov 112   ;;  %s16854_s11 = smov 127  }
  0x1d   : > { %16546 = vst [vmem:[#allocation6_spill] sm:$0xff] %v11013_v26  ;;  %16547 = vst [vmem:[#allocation7_spill] sm:$0xff] %v11016_v27  ;;  %v11043_v37 = vmul.f32 %v11007_v22, %v11029_v30  ;;  %v11046_v38 = vsel %vm408_vm0, %v415_v19, 0.0  ;;  %v757_v39 = vmul.f32 %v11013_v26, %v10979_v13  ;;  %v838_v40 = vmul.f32 %v11016_v27, %v10979_v13 }
  0x1e   : > { %455 = vrot.lane.b32.xlu1 %v10992_v16, %s16507_s24  ;;  %451 = vrot.lane.b32.xlu0 %v10995_v17, %s16507_s24  ;;  %16548 = vst [vmem:[#allocation8_spill] sm:$0xff] %v11026_v29  ;;  %16549 = vst [vmem:[#allocation9_spill] sm:$0xff] %v11032_v31  ;;  %v11055_v41 = vsel %vm408_vm0, %v409_v5, %v413_v32  ;;  %v766_v42 = vmul.f32 %v11007_v22, %v11046_v38  ;;  %v787_v47 = vrot.slane %v11036_v35, 1 }
  0x1f   : > { %16550 = vst [vmem:[#allocation10_spill] sm:$0xff] %v11039_v36  ;;  %v11062_v43 = vsel %vm408_vm0, %v412_v6, %v419_v33  ;;  %v11066_v44 = vmul.f32 %v11026_v29, %v10976_v12  ;;  %v11069_v45 = vrot.slane %v8799_v14, %v10998_v18  ;;  %v11072_v46 = vsel %vm408_vm0, %v411_v4, %v417_v34 }
  0x20   : > { %v760_v48 = vmul.f32 %v11032_v31, %v10992_v16  ;;  %v785_v49 = vrot.slane %v11043_v37, 1  ;;  %v795_v50 = vrot.slane %v766_v42, 1  ;;  %v781_v51 = vrot.slane %v757_v39, 1 }
  0x21   : > { %16551 = vst [vmem:[#allocation11_spill] sm:$0xff] %v11069_v45  ;;  %v862_v52 = vrot.slane %v838_v40, 2  ;;  %v841_v53 = vmul.f32 %v11039_v36, %v10992_v16  ;;  %v764_v54 = vmul.f32 %v11032_v31, %v11062_v43  ;;  %v761_v55 = vmul.f32 %v11013_v26, %v11055_v41 }
  0x22   : > { %459 = vrot.lane.b32.xlu1 %v11029_v30, %s16507_s24  ;;  %457 = vrot.lane.b32.xlu0 %v11055_v41, %s16507_s24  ;;  %v842_v56 = vmul.f32 %v11016_v27, %v11055_v41  ;;  %v11091_v57 = vsel %vm580_vm1, %v785_v49, %v795_v50  ;;  %v11094_v58 = vsel %vm408_vm0, %v419_v33, 0.0  ;;  %v845_v59 = vmul.f32 %v11039_v36, %v11062_v43 }
  0x23   : > { %16552 = vst [vmem:[#allocation12_spill] sm:$0xff] %v11091_v57  ;;  %v763_v60 = vmul.f32 %v11004_v21, %v11072_v46  ;;  %v437_v61 = vsel %vm408_vm0, %v413_v32, 0.0  ;;  %v768_v62 = vmul.f32 %v11032_v31, %v11094_v58  ;;  %v758_v63 = vmul.f32 %v11007_v22, %v10995_v17 }
  0x24   : > { %v839_v0 = vmul.f32 %v11069_v45, %v10995_v17  ;;  %v843_v1 = vmul.f32 %v11069_v45, %v11029_v30  ;;  %v439_v2 = vsel %vm408_vm0, %v417_v34, 0.0  ;;  %v791_v3 = vrot.slane %v764_v54, 1 }
  0x25   : > { %v844_v4 = vmul.f32 %v11026_v29, %v11072_v46  ;;  %v799_v5 = vrot.slane %v768_v62, 1  ;;  %v767_v6 = vmul.f32 %v11004_v21, %v439_v2  ;;  %v790_v7 = vrot.slane %v760_v48, 1 }
  0x26   : > { %463 = vrot.lane.b32.xlu1 %v11062_v43, %s16507_s24  ;;  %461 = vrot.lane.b32.xlu0 %v11072_v46, %s16507_s24  ;;  %v871_v9 = vrot.slane %v841_v53, 2  ;;  %v782_v10 = vrot.slane %v761_v55, 1  ;;  %v863_v11 = vrot.slane %v842_v56, 2  ;;  %v872_v14 = vrot.slane %v845_v59, 2 }
  0x27   : > { %v788_v19 = vrot.slane %v763_v60, 1  ;;  %v11117_v23 = vsel %vm580_vm1, %v791_v3, %v799_v5  ;;  %v797_v24 = vrot.slane %v767_v6, 1  ;;  %v868_v25 = vrot.slane %v11066_v44, 2  ;;  %v8793_v6 = vld [vmem:[%s16542_s1 + $0x1] ss:$8 sm:$0xf] }
  0x28   : > { %16553 = vst [vmem:[#allocation13_spill] sm:$0xff] %v11117_v23  ;;  %v784_v32 = vrot.slane %v758_v63, 1  ;;  %v865_v33 = vrot.slane %v839_v0, 2  ;;  %v765_v34 = vmul.f32 %v11013_v26, %v437_v61  ;;  %v866_v35 = vrot.slane %v843_v1, 2 }
  0x29   : > { %v869_v37 = vrot.slane %v844_v4, 2  ;;  %v846_v39 = vmul.f32 %v11016_v27, %v437_v61  ;;  %v11125_v40 = vsel %vm580_vm1, %v788_v19, %v797_v24  ;;  %v847_v42 = vmul.f32 %v11069_v45, %v11046_v38 }
  0x2a   : > { %467 = vrot.lane.b32.xlu1 %v11046_v38, %s16507_s24  ;;  %465 = vrot.lane.b32.xlu0 %v437_v61, %s16507_s24  ;;  %16554 = vst [vmem:[#allocation14_spill] sm:$0xff] %v11125_v40  ;;  %v11131_v44 = vsel %vm580_vm1, %v781_v51, %v782_v10  ;;  %v11134_v48 = vsel %vm662_vm2, %v862_v52, %v863_v11  ;;  %v793_v54 = vrot.slane %v765_v34, 1 }
  0x2b   : > { %v11137_v50 = vsel %vm580_vm1, %v790_v7, %v791_v3  ;;  %v11140_v53 = vsel %vm662_vm2, %v871_v9, %v872_v14  ;;  %v11143_v55 = vsel %vm580_vm1, %v784_v32, %v785_v49  ;;  %v874_v56 = vrot.slane %v846_v39, 2 }
  0x2c   : > { %v11148_v51 = vsel %vm580_vm1, %v787_v47, %v788_v19  ;;  %v11151_v52 = vsel %vm662_vm2, %v865_v33, %v866_v35  ;;  %v11154_v59 = vsel %vm662_vm2, %v868_v25, %v869_v37  ;;  %v876_v60 = vrot.slane %v847_v42, 2  ;;  %v8797_v33 = vld [vmem:[%s16542_s1 + $0x5] ss:$8 sm:$0xf] }
  0x2d   : > { %16555 = vst [vmem:[#allocation15_spill] sm:$0xff] %v11148_v51  ;;  %16556 = vst [vmem:[#allocation16_spill] sm:$0xff] %v11151_v52  ;;  %v849_v49 = vmul.f32 %v11039_v36, %v11094_v58  ;;  %v848_v62 = vmul.f32 %v11026_v29, %v439_v2  ;;  %v11162_v63 = vsel %vm580_vm1, %v782_v10, %v793_v54  ;;  %v8800_v42 = vld [vmem:[%s16542_s1 + $0x20] ss:$8 sm:$0xf] }
  0x2e   : > { %471 = vrot.lane.b32.xlu1 %v11094_v58, %s16507_s24  ;;  %469 = vrot.lane.b32.xlu0 %v439_v2, %s16507_s24  ;;  %16557 = vst [vmem:[#allocation17_spill] sm:$0xff] %v11154_v59  ;;  %16558 = vst [vmem:[#allocation18_spill] sm:$0xff] %v11162_v63  ;;  %v11167_v47 = vsel %vm662_vm2, %v863_v11, %v874_v56  ;;  %v11172_v3 = vsel %vm662_vm2, %v866_v35, %v876_v60  ;;  %v369_v29 = vld [vmem:[%s16315_s3] sm:$0xf] }
  0x2f   : > { %16559 = vst [vmem:[#allocation19_spill] sm:$0xff] %v11167_v47  ;;  %v880_v0 = vrot.slane %v849_v49, 2  ;;  %v878_v1 = vrot.slane %v848_v62, 2  ;;  %16560 = vst [vmem:[#allocation20_spill] sm:$0xff] %v11172_v3  ;;  %v11198_v7 = vrot.slane %v8793_v6, %v10985_v15  ;;  %v11201_v9 = vrot.slane %v8793_v6, %v11001_v20 }
  0x30   : > { %v11204_v10 = vrot.slane %v8793_v6, %v11019_v28  ;;  %v11327_v27 = vrot.slane %v8797_v33, %v10998_v18  ;;  %v11330_v26 = vrot.slane %v8797_v33, %v10985_v15  ;;  %v11337_v22 = vrot.slane %v8800_v42, %v10998_v18 }
  0x31   : > { %v11179_v4 = vsel %vm662_vm2, %v872_v14, %v880_v0  ;;  %v11182_v5 = vsel %vm662_vm2, %v869_v37, %v878_v1  ;;  %16563 = vst [vmem:[#allocation23_spill] sm:$0xff] %v11198_v7  ;;  %16564 = vst [vmem:[#allocation24_spill] sm:$0xff] %v11201_v9  ;;  %v11220_v11 = vmul.f32 %v11198_v7, %v10976_v12 }
  0x32   : > { %900 = vrot.lane.b32.xlu1 %v10995_v17, %s16459_s25  ;;  %898 = vrot.lane.b32.xlu0 %v10979_v13, %s16459_s25  ;;  %16561 = vst [vmem:[#allocation21_spill] sm:$0xff] %v11179_v4  ;;  %16562 = vst [vmem:[#allocation22_spill] sm:$0xff] %v11182_v5  ;;  %v11224_v14 = vmul.f32 %v11201_v9, %v10979_v13  ;;  %v11228_v19 = vmul.f32 %v11204_v10, %v10992_v16 }
  0x33   : > { %16565 = vst [vmem:[#allocation25_spill] sm:$0xff] %v11204_v10  ;;  %v11251_v32 = vmul.f32 %v11198_v7, %v11072_v46  ;;  %v11309_v7 = vrot.slane %v8797_v33, %v11019_v28  ;;  %16580 = vst [vmem:[#allocation40_spill] sm:$0xff] %v11327_v27  ;;  %v11340_v8 = vrot.slane %v8800_v42, %v10985_v15 }
  0x34   : > { %16581 = vst [vmem:[#allocation41_spill] sm:$0xff] %v11330_v26  ;;  %16582 = vst [vmem:[#allocation42_spill] sm:$0xff] %v11337_v22  ;;  %v11347_v3 = vrot.slane %v369_v29, %v11001_v20  ;;  %v11355_v40 = vrot.slane %v369_v29, %v11019_v28 }
  0x35   : > { %16570 = vst [vmem:[#allocation30_spill] sm:$0xff] %v11251_v32  ;;  %16583 = vst [vmem:[#allocation43_spill] sm:$0xff] %v11340_v8 }
  0x36   : > { %904 = vrot.lane.b32.xlu1 %v10992_v16, %s16459_s25  ;;  %902 = vrot.lane.b32.xlu0 %v10976_v12, %s16459_s25  ;;  %v11240_v12 = vmul.f32 %v11201_v9, %v11055_v41  ;;  %v11247_v16 = vmul.f32 %v11204_v10, %v11062_v43  ;;  %v11312_v10 = vrot.slane %v8800_v42, %v11019_v28 }
  0x37   : > { %16585 = vst [vmem:[#allocation45_spill] sm:$0xff] %v11347_v3  ;;  %16587 = vst [vmem:[#allocation47_spill] sm:$0xff] %v11355_v40  ;;  %v11368_v3 = vrot.slane %v369_v29, %v10985_v15 }
  0x38   : > { %16567 = vst [vmem:[#allocation27_spill] sm:$0xff] %v11240_v12  ;;  %16569 = vst [vmem:[#allocation29_spill] sm:$0xff] %v11247_v16 }
  0x39   : > { %16577 = vst [vmem:[#allocation37_spill] sm:$0xff] %v11312_v10  ;;  %16591 = vst [vmem:[#allocation51_spill] sm:$0xff] %v11368_v3 }
  0x3a   : > { %908 = vrot.lane.b32.xlu1 %v11029_v30, %s16459_s25  ;;  %906 = vrot.lane.b32.xlu0 %v11055_v41, %s16459_s25  ;;  %v8794_v41 = vld [vmem:[%s16542_s1 + $0x2] ss:$8 sm:$0xf] }
  0x3b   : > { %v11297_v1 = vrot.slane %v8794_v41, %v11001_v20  ;;  %v11321_v36 = vrot.slane %v8794_v41, %v10998_v18  ;;  %v11324_v31 = vrot.slane %v8794_v41, %v10985_v15 }
  0x3d   : > { %16578 = vst [vmem:[#allocation38_spill] sm:$0xff] %v11321_v36  ;;  %16579 = vst [vmem:[#allocation39_spill] sm:$0xff] %v11324_v31 }
  0x3e   : > { %912 = vrot.lane.b32.xlu1 %v11062_v43, %s16459_s25  ;;  %910 = vrot.lane.b32.xlu0 %v11072_v46, %s16459_s25 }
  0x42   : > { %916 = vrot.lane.b32.xlu1 %v11046_v38, %s16459_s25  ;;  %914 = vrot.lane.b32.xlu0 %v437_v61, %s16459_s25  ;;  %v11207_v38 = vrot.slane %v8793_v6, %v10998_v18  ;;  %v8795_v61 = vld [vmem:[%s16542_s1 + $0x3] ss:$8 sm:$0xf]  ;;  %v11300_v6 = vrot.slane %v8797_v33, %v11001_v20 }
  0x43   : > { %v11269_v46 = vrot.slane %v8795_v61, %v11019_v28  ;;  %v11284_v56 = vrot.slane %v8795_v61, %v10998_v18  ;;  %v11287_v60 = vrot.slane %v8795_v61, %v10985_v15 }
  0x44   : > { %16566 = vst [vmem:[#allocation26_spill] sm:$0xff] %v11207_v38  ;;  %v11232_v24 = vmul.f32 %v11207_v38, %v10995_v17  ;;  %v11236_v25 = vmul.f32 %v11207_v38, %v11029_v30  ;;  %v11254_v17 = vrot.slane %v8795_v61, %v11001_v20  ;;  %v11306_v61 = vrot.slane %v8794_v41, %v11019_v28 }
  0x45   : > { %16574 = vst [vmem:[#allocation34_spill] sm:$0xff] %v11284_v56 }
  0x46   : > { %920 = vrot.lane.b32.xlu1 %v11094_v58, %s16459_s25  ;;  %918 = vrot.lane.b32.xlu0 %v439_v2, %s16459_s25  ;;  %v375_v58 = vld [vmem:[%s16542_s1] ss:$8 sm:$0xf]  ;;  %v8798_v2 = vld [vmem:[%s16542_s1 + $0x6] ss:$8 sm:$0xf] }
  0x47   : > { %v11243_v13 = vrot.slane %v375_v58, %v11001_v20  ;;  %16571 = vst [vmem:[#allocation31_spill] sm:$0xff] %v11254_v17  ;;  %v11257_v30 = vrot.slane %v8798_v2, %v11001_v20  ;;  %v11266_v35 = vrot.slane %v375_v58, %v11019_v28  ;;  %v11272_v37 = vrot.slane %v8798_v2, %v11019_v28 }
  0x48   : > { %v11275_v39 = vrot.slane %v375_v58, %v10998_v18  ;;  %v11281_v54 = vrot.slane %v375_v58, %v10985_v15  ;;  %v11290_v49 = vrot.slane %v8798_v2, %v10998_v18  ;;  %v11294_v0 = vrot.slane %v8798_v2, %v10985_v15  ;;  %16576 = vst [vmem:[#allocation36_spill] sm:$0xff] %v11306_v61  ;;  %v368_v2 = vld [vmem:[%s16314_s2] sm:$0xf] }
  0x49   : > { %16568 = vst [vmem:[#allocation28_spill] sm:$0xff] %v11243_v13  ;;  %v11303_v58 = vrot.slane %v8800_v42, %v11001_v20  ;;  %v11344_v5 = vrot.slane %v368_v2, %v11001_v20  ;;  %v11350_v33 = vrot.slane %v368_v2, %v11019_v28  ;;  %v11358_v42 = vrot.slane %v368_v2, %v10998_v18 }
  0x4a   : > { %16572 = vst [vmem:[#allocation32_spill] sm:$0xff] %v11275_v39  ;;  %16573 = vst [vmem:[#allocation33_spill] sm:$0xff] %v11281_v54  ;;  %v11365_v20 = vrot.slane %v369_v29, %v10998_v18 }
  0x4b   : > { %16575 = vst [vmem:[#allocation35_spill] sm:$0xff] %v11290_v49  ;;  %16584 = vst [vmem:[#allocation44_spill] sm:$0xff] %v11344_v5  ;;  %v11362_v5 = vrot.slane %v368_v2, %v10985_v15 }
  0x4c   : > { %16586 = vst [vmem:[#allocation46_spill] sm:$0xff] %v11350_v33  ;;  %16588 = vst [vmem:[#allocation48_spill] sm:$0xff] %v11358_v42 }
  0x4d   : > { %16589 = vst [vmem:[#allocation49_spill] sm:$0xff] %v11362_v5  ;;  %16590 = vst [vmem:[#allocation50_spill] sm:$0xff] %v11365_v20 }
  0x8c   : > { %v454_v43 = vpop.permute.xlu1 %453  ;;  %v450_v34 = vpop.permute.xlu0 %449 }
  0x8d   : > { %v495_v62 = vsel %vm473_vm3, 0.0, %v450_v34 }
  0x8e   : > { %v556_v38 = vmul.f32 %v11254_v17, %v495_v62  ;;  %v11334_v45 = vmul.f32 %v11257_v30, %v495_v62 }
  0x90   : > { %v456_v9 = vpop.permute.xlu1 %455  ;;  %v452_v21 = vpop.permute.xlu0 %451 }
  0x91   : > { %v476_v41 = vsel %vm473_vm3, %v454_v43, %v456_v9  ;;  %v474_v4 = vsel %vm473_vm3, %v450_v34, %v452_v21  ;;  %v475_v47 = vsel %vm473_vm3, %v452_v21, %v454_v43  ;;  %v519_v9 = vmul.f32 %v11243_v13, %v495_v62 }
  0x92   : > { %v581_v34 = vrot.slane %v556_v38, 1  ;;  %v663_v21 = vrot.slane %v11334_v45, 2  ;;  %v559_v28 = vmul.f32 %v11269_v46, %v476_v41  ;;  %v11373_v43 = vmul.f32 %v11272_v37, %v476_v41 }
  0x93   : > { %v557_v62 = vmul.f32 %v11284_v56, %v474_v4  ;;  %v558_v2 = vmul.f32 %v11287_v60, %v475_v47  ;;  %v639_v15 = vmul.f32 %v11290_v49, %v474_v4  ;;  %v11381_v29 = vmul.f32 %v11294_v0, %v475_v47 }
  0x94   : > { %v460_v57 = vpop.permute.xlu1 %459  ;;  %v458_v42 = vpop.permute.xlu0 %457  ;;  %v522_v3 = vmul.f32 %v11266_v35, %v476_v41  ;;  %v520_v20 = vmul.f32 %v11275_v39, %v474_v4  ;;  %v521_v40 = vmul.f32 %v11281_v54, %v475_v47  ;;  %v590_v8 = vrot.slane %v559_v28, 1 }
  0x95   : > { %v477_v5 = vsel %vm473_vm3, %v458_v42, %v460_v57  ;;  %v496_v18 = vsel %vm473_vm3, 0.0, %v458_v42  ;;  %v672_v31 = vrot.slane %v11373_v43, 2  ;;  %v584_v12 = vrot.slane %v557_v62, 1 }
  0x96   : > { %v560_v45 = vmul.f32 %v11254_v17, %v496_v18  ;;  %v11385_v38 = vmul.f32 %v11284_v56, %v477_v5  ;;  %v11391_v33 = vmul.f32 %v11257_v30, %v496_v18  ;;  %v11395_v22 = vmul.f32 %v11290_v49, %v477_v5 }
  0x97   : > { %v587_v47 = vrot.slane %v558_v2, 1  ;;  %v666_v27 = vrot.slane %v639_v15, 2  ;;  %v669_v59 = vrot.slane %v11381_v29, 2 }
  0x98   : > { %v464_v42 = vpop.permute.xlu1 %463  ;;  %v582_v23 = vrot.slane %v560_v45, 1  ;;  %v585_v63 = vrot.slane %v11385_v38, 1  ;;  %v462_v26 = vpop.permute.xlu0 %461  ;;  %v523_v45 = vmul.f32 %v11243_v13, %v496_v18  ;;  %v524_v38 = vmul.f32 %v11275_v39, %v477_v5 }
  0x99   : > { %v478_v41 = vsel %vm473_vm3, %v460_v57, %v462_v26  ;;  %v479_v4 = vsel %vm473_vm3, %v462_v26, %v464_v42  ;;  %v664_v16 = vrot.slane %v11391_v33, 2  ;;  %v667_v62 = vrot.slane %v11395_v22, 2 }
  0x9a   : > { %v583_v28 = vsel %vm580_vm1, %v581_v34, %v582_v23  ;;  %v586_v32 = vsel %vm580_vm1, %v584_v12, %v585_v63  ;;  %v562_v57 = vmul.f32 %v11287_v60, %v478_v41  ;;  %v563_v26 = vmul.f32 %v11269_v46, %v479_v4 }
  0x9b   : > { %v11410_v2 = vmul.f32 %v11294_v0, %v478_v41  ;;  %v609_v34 = vadd.f32 %v583_v28, %v519_v9  ;;  %v525_v18 = vmul.f32 %v11281_v54, %v478_v41  ;;  %v610_v29 = vadd.f32 %v586_v32, %v520_v20 }
  0x9c   : > { %v468_v43 = vpop.permute.xlu1 %467  ;;  %v466_v15 = vpop.permute.xlu0 %465  ;;  %v588_v33 = vrot.slane %v562_v57, 1  ;;  %v591_v42 = vrot.slane %v563_v26, 1  ;;  %v11416_v22 = vmul.f32 %v11272_v37, %v479_v4  ;;  %v665_v39 = vsel %vm662_vm2, %v663_v21, %v664_v16 }
  0x9d   : > { %v480_v5 = vsel %vm473_vm3, %v466_v15, %v468_v43  ;;  %v497_v12 = vsel %vm473_vm3, 0.0, %v466_v15  ;;  %v670_v13 = vrot.slane %v11410_v2, 2  ;;  %v668_v26 = vsel %vm662_vm2, %v666_v27, %v667_v62 }
  0x9e   : > { %v564_v36 = vmul.f32 %v11254_v17, %v497_v12  ;;  %v565_v9 = vmul.f32 %v11284_v56, %v480_v5  ;;  %v589_v28 = vsel %vm580_vm1, %v587_v47, %v588_v33  ;;  %v592_v15 = vsel %vm580_vm1, %v590_v8, %v591_v42 }
  0x9f   : > { %v646_v20 = vmul.f32 %v11257_v30, %v497_v12  ;;  %v647_v32 = vmul.f32 %v11290_v49, %v480_v5  ;;  %v691_v54 = vadd.f32 %v665_v39, %v609_v34  ;;  %v611_v2 = vadd.f32 %v589_v28, %v521_v40 }
  0xa0   : > { %v472_v41 = vpop.permute.xlu1 %471  ;;  %v470_v57 = vpop.permute.xlu0 %469  ;;  %v593_v21 = vrot.slane %v564_v36, 1  ;;  %v595_v52 = vrot.slane %v565_v9, 1  ;;  %v673_v17 = vrot.slane %v11416_v22, 2  ;;  %v692_v47 = vadd.f32 %v668_v26, %v610_v29 }
  0xa1   : > { %v481_v56 = vsel %vm473_vm3, %v468_v43, %v470_v57  ;;  %v482_v51 = vsel %vm473_vm3, %v470_v57, %v472_v41  ;;  %v526_v8 = vmul.f32 %v11266_v35, %v479_v4  ;;  %v612_v61 = vadd.f32 %v592_v15, %v522_v3 }
  0xa2   : > { %v594_v12 = vsel %vm580_vm1, %v582_v23, %v593_v21  ;;  %v671_v49 = vsel %vm662_vm2, %v669_v59, %v670_v13  ;;  %v596_v27 = vsel %vm580_vm1, %v585_v63, %v595_v52  ;;  %v675_v36 = vrot.slane %v646_v20, 2 }
  0xa3   : > { %v677_v39 = vrot.slane %v647_v32, 2  ;;  %v566_v34 = vmul.f32 %v11287_v60, %v481_v56  ;;  %v567_v43 = vmul.f32 %v11269_v46, %v482_v51  ;;  %v648_v22 = vmul.f32 %v11294_v0, %v481_v56 }
  0xa4   : > { %v901_v5 = vpop.permute.xlu1 %900  ;;  %v899_v40 = vpop.permute.xlu0 %898  ;;  %v649_v29 = vmul.f32 %v11272_v37, %v482_v51  ;;  %v674_v3 = vsel %vm662_vm2, %v672_v31, %v673_v17  ;;  %v693_v4 = vadd.f32 %v671_v49, %v611_v2  ;;  %v613_v23 = vadd.f32 %v594_v12, %v523_v45 }
  0xa5   : > { %v728_v9 = vadd.f32 %v11224_v14, %v691_v54  ;;  %v694_v59 = vadd.f32 %v674_v3, %v612_v61  ;;  %v614_v41 = vadd.f32 %v596_v27, %v524_v38  ;;  %v597_v52 = vrot.slane %v566_v34, 1  ;;  %v16594_v3 = vld [vmem:[#allocation16_spill] sm:$0xff] }
  0xa6   : > { %v599_v63 = vrot.slane %v567_v43, 1  ;;  %v676_v15 = vsel %vm662_vm2, %v664_v16, %v675_v36  ;;  %v679_v20 = vrot.slane %v648_v22, 2  ;;  %v681_v32 = vrot.slane %v649_v29, 2  ;;  %v16593_v22 = vld [vmem:[#allocation15_spill] sm:$0xff] }
  0xa7   : > { %v809_v57 = vadd.f32 %v11131_v44, %v728_v9  ;;  %v678_v56 = vsel %vm662_vm2, %v667_v62, %v677_v39  ;;  %v598_v51 = vsel %vm580_vm1, %v588_v33, %v597_v52  ;;  %v923_v49 = vsel %vm922_vm4, %v899_v40, %v901_v5  ;;  %v16592_v39 = vld [vmem:[#allocation36_spill] sm:$0xff]  ;;  %v16595_v9 = vld [vmem:[#allocation38_spill] sm:$0xff] }
  0xa8   : > { %v905_v28 = vpop.permute.xlu1 %904  ;;  %v600_v31 = vsel %vm580_vm1, %v591_v42, %v599_v63  ;;  %v903_v14 = vpop.permute.xlu0 %902  ;;  %v695_v54 = vadd.f32 %v676_v15, %v613_v23  ;;  %v615_v61 = vadd.f32 %v598_v51, %v525_v18  ;;  %v696_v26 = vadd.f32 %v678_v56, %v614_v41  ;;  %v16596_v41 = vld [vmem:[#allocation29_spill] sm:$0xff]  ;;  %v16600_v51 = vld [vmem:[#allocation27_spill] sm:$0xff] }
  0xa9   : > { %v616_v45 = vadd.f32 %v600_v31, %v526_v8  ;;  %v890_v38 = vadd.f32 %v11134_v48, %v809_v57  ;;  %v731_v16 = vadd.f32 %v11228_v19, %v694_v59  ;;  %v944_v21 = vsel %vm922_vm4, %v905_v28, 0.0  ;;  %v16598_v15 = vld [vmem:[#allocation17_spill] sm:$0xff]  ;;  %v16599_v57 = vld [vmem:[#allocation40_spill] sm:$0xff] }
  0xaa   : > { %v729_v44 = vadd.f32 %v11232_v24, %v692_v47  ;;  %v680_v62 = vsel %vm662_vm2, %v670_v13, %v679_v20  ;;  %v682_v33 = vsel %vm662_vm2, %v673_v17, %v681_v32  ;;  %v968_v42 = vmul.f32 %v11297_v1, %v923_v49 }
  0xab   : > { %v1005_v2 = vmul.f32 %v11300_v6, %v923_v49  ;;  %v697_v12 = vadd.f32 %v680_v62, %v615_v61  ;;  %v698_v18 = vadd.f32 %v682_v33, %v616_v45  ;;  %v11455_v8 = vmul.f32 %v11303_v58, %v923_v49  ;;  %v16601_v45 = vld [vmem:[#allocation39_spill] sm:$0xff] }
  0xac   : > { %v812_v48 = vadd.f32 %v11137_v50, %v731_v16  ;;  %v909_v19 = vpop.permute.xlu1 %908  ;;  %v11459_v27 = vmul.f32 %v11309_v7, %v944_v21  ;;  %v11462_v24 = vmul.f32 %v11312_v10, %v944_v21  ;;  %v730_v13 = vadd.f32 %v11220_v11, %v693_v4  ;;  %v907_v50 = vpop.permute.xlu0 %906  ;;  %v16603_v16 = vld [vmem:[#allocation42_spill] sm:$0xff] }
  0xad   : > { %v810_v17 = vadd.f32 %v11143_v55, %v729_v44  ;;  %v733_v47 = vadd.f32 %v11236_v25, %v696_v26  ;;  %v971_v40 = vmul.f32 %v16592_v39, %v944_v21  ;;  %v924_v34 = vsel %vm922_vm4, %v901_v5, %v903_v14  ;;  %v16604_v44 = vld [vmem:[#allocation18_spill] sm:$0xff] }
  0xae   : > { %v893_v36 = vadd.f32 %v11140_v53, %v812_v48  ;;  %v1029_v43 = vrot.slane %v1005_v2, 1  ;;  %v811_v29 = vadd.f32 %v16593_v22, %v730_v13  ;;  %v969_v59 = vmul.f32 %v16595_v9, %v924_v34  ;;  %v16597_v53 = vld [vmem:[#allocation30_spill] sm:$0xff]  ;;  %v16610_v22 = vld [vmem:[#allocation21_spill] sm:$0xff] }
  0xaf   : > { %v891_v23 = vadd.f32 %v16594_v3, %v810_v17  ;;  %v735_v11 = vadd.f32 %v16596_v41, %v698_v18  ;;  %v976_v4 = vadd.f32 %v968_v42, %v890_v38  ;;  %v1110_v55 = vrot.slane %v11455_v8, 2  ;;  %v16606_v18 = vld [vmem:[#allocation43_spill] sm:$0xff]  ;;  %v16608_v13 = vld [vmem:[#allocation14_spill] sm:$0xff] }
  0xb0   : > { %v925_v25 = vsel %vm922_vm4, %v903_v14, %v905_v28  ;;  %v734_v52 = vadd.f32 %v16597_v53, %v697_v12  ;;  %v1038_v63 = vrot.slane %v11459_v27, 1  ;;  %v1119_v5 = vrot.slane %v11462_v24, 2  ;;  %v913_v61 = vpop.permute.xlu1 %912  ;;  %v16602_v28 = vld [vmem:[#allocation41_spill] sm:$0xff]  ;;  %v911_v12 = vpop.permute.xlu0 %910  ;;  %v16607_v27 = vld [vmem:[#allocation12_spill] sm:$0xff] }
  0xb1   : > { %v892_v20 = vadd.f32 %v16598_v15, %v811_v29  ;;  %v979_v32 = vadd.f32 %v971_v40, %v893_v36  ;;  %v1006_v56 = vmul.f32 %v16599_v57, %v924_v34  ;;  %v732_v31 = vadd.f32 %v16600_v51, %v695_v54  ;;  %v16605_v54 = vld [vmem:[#allocation13_spill] sm:$0xff]  ;;  %v16609_v40 = vld [vmem:[#allocation19_spill] sm:$0xff] }
  0xb2   : > { %v926_v49 = vsel %vm922_vm4, %v907_v50, %v909_v19  ;;  %v970_v38 = vmul.f32 %v16601_v45, %v925_v25  ;;  %v977_v26 = vadd.f32 %v969_v59, %v891_v23  ;;  %v1007_v14 = vmul.f32 %v16602_v28, %v925_v25  ;;  %v16611_v59 = vld [vmem:[#allocation20_spill] sm:$0xff] }
  0xb3   : > { %v11486_v21 = vmul.f32 %v16603_v16, %v924_v34  ;;  %v813_v62 = vadd.f32 %v16604_v44, %v732_v31  ;;  %v11490_v33 = vmul.f32 %v11300_v6, %v926_v49  ;;  %v11493_v42 = vmul.f32 %v11303_v58, %v926_v49 }
  0xb4   : > { %v816_v2 = vadd.f32 %v16605_v54, %v735_v11  ;;  %v11497_v8 = vmul.f32 %v16606_v18, %v925_v25  ;;  %v945_v48 = vsel %vm922_vm4, %v913_v61, 0.0  ;;  %v814_v24 = vadd.f32 %v16607_v27, %v733_v47 }
  0xb5   : > { %v815_v17 = vadd.f32 %v16608_v13, %v734_v52  ;;  %v1032_v36 = vrot.slane %v1006_v56, 1  ;;  %v894_v34 = vadd.f32 %v16609_v40, %v813_v62  ;;  %v1030_v50 = vrot.slane %v11490_v33, 1  ;;  %v16612_v52 = vld [vmem:[#allocation22_spill] sm:$0xff]  ;;  %v917_v56 = vpop.permute.xlu1 %916 }
  0xb6   : > { %v897_v29 = vadd.f32 %v16610_v22, %v816_v2  ;;  %v11506_v3 = vmul.f32 %v11309_v7, %v945_v48  ;;  %v11509_v23 = vmul.f32 %v11312_v10, %v945_v48  ;;  %v895_v41 = vadd.f32 %v16611_v59, %v814_v24 }
  0xb7   : > { %v927_v11 = vsel %vm922_vm4, %v909_v19, %v911_v12  ;;  %v1035_v47 = vrot.slane %v1007_v14, 1  ;;  %v1031_v25 = vsel %vm580_vm1, %v1029_v43, %v1030_v50  ;;  %v1111_v53 = vrot.slane %v11493_v42, 2  ;;  %v915_v14 = vpop.permute.xlu0 %914 }
  0xb8   : > { %v11516_v15 = vadd.f32 %v16612_v52, %v815_v17  ;;  %v978_v51 = vadd.f32 %v970_v38, %v892_v20  ;;  %v1057_v31 = vadd.f32 %v1031_v25, %v976_v4  ;;  %v1039_v44 = vrot.slane %v11506_v3, 1  ;;  %v16613_v25 = vld [vmem:[#allocation44_spill] sm:$0xff] }
  0xb9   : > { %v1120_v62 = vrot.slane %v11509_v23, 2  ;;  %v1113_v33 = vrot.slane %v11486_v21, 2  ;;  %v928_v54 = vsel %vm922_vm4, %v911_v12, %v913_v61  ;;  %v11523_v19 = vmul.f32 %v16599_v57, %v927_v11 }
  0xba   : > { %v11526_v43 = vmul.f32 %v16603_v16, %v927_v11  ;;  %v1116_v42 = vrot.slane %v11497_v8, 2  ;;  %v972_v20 = vmul.f32 %v11297_v1, %v926_v49  ;;  %v975_v4 = vmul.f32 %v16592_v39, %v945_v48 }
  0xbb   : > { %v1040_v38 = vsel %vm580_vm1, %v1038_v63, %v1039_v44  ;;  %v1112_v2 = vsel %vm662_vm2, %v1110_v55, %v1111_v53  ;;  %v1011_v61 = vmul.f32 %v16602_v28, %v928_v54  ;;  %v1033_v12 = vrot.slane %v11523_v19, 1 }
  0xbc   : > { %v1060_v21 = vadd.f32 %v1040_v38, %v979_v32  ;;  %v1138_v27 = vadd.f32 %v1112_v2, %v1057_v31  ;;  %v1121_v24 = vsel %vm662_vm2, %v1119_v5, %v1120_v62  ;;  %v973_v13 = vmul.f32 %v16595_v9, %v927_v11  ;;  %v921_v32 = vpop.permute.xlu1 %920 }
  0xbd   : > { %v11538_v8 = vmul.f32 %v16606_v18, %v928_v54  ;;  %v1034_v49 = vsel %vm580_vm1, %v1032_v36, %v1033_v12  ;;  %v1036_v48 = vrot.slane %v1011_v61, 1  ;;  %v1114_v63 = vrot.slane %v11526_v43, 2  ;;  %v919_v36 = vpop.permute.xlu0 %918 }
  0xbe   : > { %v929_v55 = vsel %vm922_vm4, %v915_v14, %v917_v56  ;;  %v980_v17 = vadd.f32 %v972_v20, %v894_v34  ;;  %v983_v40 = vadd.f32 %v975_v4, %v897_v29  ;;  %v1141_v22 = vadd.f32 %v1121_v24, %v1060_v21 }
  0xbf   : > { %v974_v3 = vmul.f32 %v16601_v45, %v928_v54  ;;  %v1037_v5 = vsel %vm580_vm1, %v1035_v47, %v1036_v48  ;;  %v1117_v23 = vrot.slane %v11538_v8, 2  ;;  %v1013_v59 = vmul.f32 %v11300_v6, %v929_v55  ;;  %v16614_v47 = vld [vmem:[#allocation46_spill] sm:$0xff] }
  0xc0   : > { %v1094_v11 = vmul.f32 %v11303_v58, %v929_v55  ;;  %v1167_v52 = vmul.f32 %v16613_v25, %v1138_v27  ;;  %v981_v31 = vadd.f32 %v973_v13, %v895_v41  ;;  %v1058_v19 = vadd.f32 %v1034_v49, %v977_v26 }
  0xc1   : > { %v946_v43 = vsel %vm922_vm4, %v921_v32, 0.0  ;;  %v1115_v34 = vsel %vm662_vm2, %v1113_v33, %v1114_v63  ;;  %v1041_v29 = vrot.slane %v1013_v59, 1  ;;  %v1170_v20 = vmul.f32 %v16614_v47, %v1141_v22 }
  0xc2   : > { %v1122_v14 = vrot.slane %v1094_v11, 2  ;;  %v1016_v54 = vmul.f32 %v11309_v7, %v946_v43  ;;  %v1059_v4 = vadd.f32 %v1037_v5, %v978_v51  ;;  %v1097_v38 = vmul.f32 %v11312_v10, %v946_v43  ;;  %v16616_v43 = vld [vmem:[#allocation47_spill] sm:$0xff] }
  0xc3   : > { %v930_v2 = vsel %vm922_vm4, %v917_v56, %v919_v36  ;;  %v1118_v21 = vsel %vm662_vm2, %v1116_v42, %v1117_v23  ;;  %v1042_v41 = vsel %vm580_vm1, %v1030_v50, %v1041_v29  ;;  %v931_v61 = vsel %vm922_vm4, %v919_v36, %v921_v32 }
  0xc4   : > { %v1047_v26 = vrot.slane %v1016_v54, 1  ;;  %v1139_v27 = vadd.f32 %v1115_v34, %v1058_v19  ;;  %v1061_v33 = vadd.f32 %v1042_v41, %v980_v17  ;;  %v1123_v24 = vsel %vm662_vm2, %v1111_v53, %v1122_v14  ;;  %v16615_v53 = vld [vmem:[#allocation45_spill] sm:$0xff] }
  0xc5   : > { %v1128_v13 = vrot.slane %v1097_v38, 2  ;;  %v1014_v51 = vmul.f32 %v16599_v57, %v930_v2  ;;  %v1015_v49 = vmul.f32 %v16602_v28, %v931_v61  ;;  %v1095_v56 = vmul.f32 %v16603_v16, %v930_v2  ;;  %v16617_v38 = vld [vmem:[#allocation48_spill] sm:$0xff] }
  0xc6   : > { %v1048_v8 = vsel %vm580_vm1, %v1039_v44, %v1047_v26  ;;  %v1140_v55 = vadd.f32 %v1118_v21, %v1059_v4  ;;  %v1142_v42 = vadd.f32 %v1123_v24, %v1061_v33  ;;  %v1096_v17 = vmul.f32 %v16606_v18, %v931_v61  ;;  %v16650_v18 = vld [vmem:[#allocation23_spill] sm:$0xff] }
  0xc7   : > { %v1064_v22 = vadd.f32 %v1048_v8, %v983_v40  ;;  %v1129_v50 = vsel %vm662_vm2, %v1120_v62, %v1128_v13  ;;  %v1043_v5 = vrot.slane %v1014_v51, 1  ;;  %v1045_v32 = vrot.slane %v1015_v49, 1  ;;  %v16620_v13 = vld [vmem:[#allocation51_spill] sm:$0xff] }
  0xc8   : > { %v1124_v59 = vrot.slane %v1095_v56, 2  ;;  %v11566_v11 = vadd.f32 %v16615_v53, %v1167_v52  ;;  %v982_v44 = vadd.f32 %v974_v3, %v11516_v15  ;;  %v1171_v36 = vmul.f32 %v16613_v25, %v1142_v42  ;;  %v16618_v3 = vld [vmem:[#allocation49_spill] sm:$0xff] }
  0xc9   : > { %v1145_v19 = vadd.f32 %v1129_v50, %v1064_v22  ;;  %v11571_v34 = vadd.f32 %v16616_v43, %v1170_v20  ;;  %v1044_v40 = vsel %vm580_vm1, %v1033_v12, %v1043_v5  ;;  %v1046_v62 = vsel %vm580_vm1, %v1036_v48, %v1045_v32 }
  0xca   : > { %v1126_v29 = vrot.slane %v1096_v17, 2  ;;  %v11576_v14 = vadd.f32 %v16615_v53, %v1171_v36  ;;  %v1062_v52 = vadd.f32 %v1044_v40, %v981_v31  ;;  %v1063_v4 = vadd.f32 %v1046_v62, %v982_v44 }
  0xcb   : > { %v1174_v54 = vmul.f32 %v16614_v47, %v1145_v19  ;;  %v1168_v15 = vmul.f32 %v16617_v38, %v1139_v27  ;;  %v1169_v2 = vmul.f32 %v16618_v3, %v1140_v55  ;;  %v1125_v21 = vsel %vm662_vm2, %v1114_v63, %v1124_v59  ;;  %v16649_v47 = vld [vmem:[#allocation25_spill] sm:$0xff] }
  0xcc   : > { %v1127_v20 = vsel %vm662_vm2, %v1117_v23, %v1126_v29  ;;  %v1143_v48 = vadd.f32 %v1125_v21, %v1062_v52  ;;  %v1232_v26 = vmax.f32 %v11566_v11, %v11576_v14  ;;  %v1204_v31 = vadd.f32 %v11576_v14, %v11566_v11  ;;  %v16619_v23 = vld [vmem:[#allocation50_spill] sm:$0xff] }
  0xcd   : > { %v11584_v12 = vadd.f32 %v16616_v43, %v1174_v54  ;;  %v1144_v41 = vadd.f32 %v1127_v20, %v1063_v4  ;;  %v11595_v24 = vadd.f32 %v16619_v23, %v1168_v15  ;;  %v11598_v8 = vadd.f32 %v16620_v13, %v1169_v2 }
  0xce   : > { %v1172_v61 = vmul.f32 %v16617_v38, %v1143_v48  ;;  %v1233_v33 = vrot.slane %v1232_v26, 4  ;;  %v1205_v51 = vrot.slane %v1204_v31, 4  ;;  %v16648_v38 = vld [vmem:[#allocation8_spill] sm:$0xff] }
  0xcf   : > { %v1173_v27 = vmul.f32 %v16618_v3, %v1144_v41  ;;  %v1253_v63 = vmax.f32 %v11571_v34, %v11584_v12  ;;  %v1225_v49 = vadd.f32 %v11584_v12, %v11571_v34 }
  0xd0   : > { %v11603_v56 = vadd.f32 %v16619_v23, %v1172_v61  ;;  %v1234_v42 = vmax.f32 %v1232_v26, %v1233_v33  ;;  %v1206_v50 = vadd.f32 %v1205_v51, %v1204_v31 }
  0xd1   : > { %v11606_v55 = vadd.f32 %v16620_v13, %v1173_v27  ;;  %v1254_v22 = vrot.slane %v1253_v63, 4  ;;  %v1226_v5 = vrot.slane %v1225_v49, 4 }
  0xd2   : > { %v1235_v32 = vrot.slane %v1234_v42, 2  ;;  %v1239_v17 = vmax.f32 %v11595_v24, %v11603_v56  ;;  %v1207_v36 = vrot.slane %v1206_v50, 2  ;;  %v1211_v19 = vadd.f32 %v11603_v56, %v11595_v24 }
  0xd3   : > { %v1246_v59 = vmax.f32 %v11598_v8, %v11606_v55  ;;  %v1255_v44 = vmax.f32 %v1253_v63, %v1254_v22  ;;  %v1218_v40 = vadd.f32 %v11606_v55, %v11598_v8  ;;  %v1227_v62 = vadd.f32 %v1226_v5, %v1225_v49 }
  0xd4   : > { %v1240_v29 = vrot.slane %v1239_v17, 4  ;;  %v1212_v4 = vrot.slane %v1211_v19, 4  ;;  %v1236_v21 = vmax.f32 %v1234_v42, %v1235_v32  ;;  %v1208_v26 = vadd.f32 %v1207_v36, %v1206_v50  ;;  %v370_v42 = vld [vmem:[%s16316_s4] sm:$0xff]  ;;  %v371_v50 = vld [vmem:[%s16316_s4 + $0x8] sm:$0xff] }
  0xd5   : > { %v1247_v54 = vrot.slane %v1246_v59, 4  ;;  %v1256_v52 = vrot.slane %v1255_v44, 2  ;;  %v1219_v15 = vrot.slane %v1218_v40, 4  ;;  %v1228_v2 = vrot.slane %v1227_v62, 2 }
  0xd6   : > { %v1241_v20 = vmax.f32 %v1239_v17, %v1240_v29  ;;  %v1213_v31 = vadd.f32 %v1212_v4, %v1211_v19  ;;  %v1237_v5 = vrot.slane %v1236_v21, 1  ;;  %v1209_v32 = vrot.slane %v1208_v26, 1 }
  0xd7   : > { %v1248_v48 = vmax.f32 %v1246_v59, %v1247_v54  ;;  %v1257_v41 = vmax.f32 %v1255_v44, %v1256_v52  ;;  %v1220_v61 = vadd.f32 %v1219_v15, %v1218_v40  ;;  %v1229_v27 = vadd.f32 %v1228_v2, %v1227_v62 }
  0xd8   : > { %v1242_v33 = vrot.slane %v1241_v20, 2  ;;  %v1214_v22 = vrot.slane %v1213_v31, 2  ;;  %v16382_v44 = vmov 0.0|0.0   ;;  %v11623_v36 = vpack.c.bf16 %v371_v50, %v370_v42 }
  0xd9   : > { %v1249_v63 = vrot.slane %v1248_v48, 2  ;;  %v1258_v51 = vrot.slane %v1257_v41, 1  ;;  %v1221_v13 = vrot.slane %v1220_v61, 2  ;;  %v1230_v49 = vrot.slane %v1229_v27, 1  ;;  %9577 = vmatprep.subr.bf16.mxu1 %v16382_v44 }
  0xda   : > { %v1243_v23 = vmax.f32 %v1241_v20, %v1242_v33  ;;  %v1215_v17 = vadd.f32 %v1214_v22, %v1213_v31  ;;  %16621 = vst [vmem:[#allocation15_spill] sm:$0xff] %v11623_v36  ;;  %9579 = vmatpush3.bf16.msra.mxu1 %v11623_v36  ;;  %v1238_v4 = vmax.f32 %v1236_v21, %v1237_v5 }
  0xdb   : > { %v1250_v3 = vmax.f32 %v1248_v48, %v1249_v63  ;;  %v1222_v59 = vadd.f32 %v1221_v13, %v1220_v61  ;;  %v1259_v62 = vmax.f32 %v1257_v41, %v1258_v51  ;;  %v1231_v52 = vadd.f32 %v1230_v49, %v1229_v27  ;;  %9580 = vmatprep.subr.bf16.mxu1 %v16382_v44 }
  0xdc   : > { %v1244_v19 = vrot.slane %v1243_v23, 1  ;;  %v1216_v29 = vrot.slane %v1215_v17, 1  ;;  %v1210_v20 = vadd.f32 %v1209_v32, %v1208_v26  ;;  %v16380_v41 = vmov 0.0  }
  0xdd   : > { %v1251_v40 = vrot.slane %v1250_v3, 1  ;;  %v1223_v54 = vrot.slane %v1222_v59, 1  ;;  %9541 = vmatprep.mubr.msk.f32.mxu1 %vm16452_vm5, %v16380_v41 }
  0xde   : > { %v1245_v15 = vmax.f32 %v1243_v23, %v1244_v19  ;;  %v1217_v13 = vadd.f32 %v1216_v29, %v1215_v17  ;;  %v373_v23 = vld [vmem:[%s16316_s4 + $0x18] sm:$0xff] }
  0xdf   : > { %v1252_v2 = vmax.f32 %v1250_v3, %v1251_v40  ;;  %v1224_v48 = vadd.f32 %v1223_v54, %v1222_v59  ;;  %v372_v3 = vld [vmem:[%s16316_s4 + $0x10] sm:$0xff] }
  0xe0   : > { %v1274_v61 = vmax.f32 %v1245_v15, %v1259_v62  ;;  %v1261_v63 = vadd.f32 %v1231_v52, %v1217_v13  ;;  %v11635_v21 = vpack.c.bf16 %v373_v23, %v372_v3  ;;  %v10885_v62 = vmov 1983009808   ;;  %v16623_v52 = vld [vmem:[#allocation2_spill] sm:$0xff] }
  0xe1   : > { %v1273_v31 = vmax.f32 %v1238_v4, %v1252_v2  ;;  %v1260_v33 = vadd.f32 %v1224_v48, %v1210_v20  ;;  %v1374_v29 = vunpack.c.l.s4 %v10885_v62  ;;  %v374_v15 = vld [vmem:[%s16317_s5] sm:$0xff]  ;;  %v1595_v62 = vld [vmem:[%s16318_s6 + $0x18] sm:$0xff] }
  0xe2   : > { %16622 = vst [vmem:[#allocation16_spill] sm:$0xff] %v11635_v21  ;;  %9582 = vmatpush3.bf16.msra.mxu1 %v11635_v21  ;;  %v1372_v13 = vcombine.high %v374_v15, %v374_v15  ;;  %v1608_v23 = vld [vmem:[%s16318_s6 + $0x80] sm:$0xff] }
  0xe3   : > { %v1275_v22 = vmax.f32 %v1273_v31, %v1274_v61  ;;  %v1262_v42 = vadd.f32 %v1261_v63, %v1260_v33  ;;  %v1375_v54 = vunpack.c.0.s8 %v1374_v29 }
  0xe5   : > { %1277 = vrot.lane.b32.xlu1 %v1275_v22, %s16461_s17  ;;  %1264 = vrot.lane.b32.xlu0 %v1262_v42, %s16461_s17  ;;  %v1378_v4 = vsub.s32 %v1375_v54, %v16623_v52  ;;  %v1624_v52 = vld [vmem:[%s16318_s6 + $0x100] sm:$0xff] }
  0xe7   : > { %v11649_v2 = vrot.slane %v374_v15, %v1378_v4  ;;  %v11657_v48 = vrot.slane %v1372_v13, %v1378_v4  ;;  %v1625_v4 = vld [vmem:[%s16318_s6 + $0x108] sm:$0xff]  ;;  %v1612_v13 = vld [vmem:[%s16318_s6 + $0xa0] sm:$0xff] }
  0xe8   : > { %v9617_v15 = vpack.c.bf16 %v1625_v4, %v1624_v52  ;;  %v1629_v52 = vld [vmem:[%s16318_s6 + $0x128] sm:$0xff] }
  0xe9   : > { %16624 = vst [vmem:[#allocation29_spill] sm:$0xff] %v11649_v2  ;;  %v11653_v20 = vcombine.high %v11649_v2, %v11649_v2  ;;  %16626 = vst [vmem:[#allocation17_spill] sm:$0xff] %v11657_v48  ;;  %v11663_v31 = vcombine.high %v11657_v48, %v11657_v48 }
  0xeb   : > { %16625 = vst [vmem:[#allocation30_spill] sm:$0xff] %v11653_v20  ;;  %8802 = vmatprep.subr.msk.mxu1 %vm1393_vm6, %v11653_v20  ;;  %16627 = vst [vmem:[#allocation27_spill] sm:$0xff] %v11663_v31 }
 0x157   : > { %v1278_v26 = vpop.permute.xlu1 %1277  ;;  %v1265_v51 = vpop.permute.xlu0 %1264 }
 0x158   : > { %v1280_v27 = vmax.f32 %v1275_v22, %v1278_v26  ;;  %v1267_v49 = vadd.f32 %v1265_v51, %v1262_v42  ;;  %v1609_v26 = vld [vmem:[%s16318_s6 + $0x88] sm:$0xff]  ;;  %v1592_v51 = vld [vmem:[%s16318_s6] sm:$0xff] }
 0x15a   : > { %1282 = vrot.lane.b32.xlu1 %v1280_v27, %s16459_s25  ;;  %1269 = vrot.lane.b32.xlu0 %v1267_v49, %s16459_s25 }
 0x1cc   : > { %v1283_v5 = vpop.permute.xlu1 %1282  ;;  %v1270_v32 = vpop.permute.xlu0 %1269 }
 0x1cd   : > { %v1285_v50 = vmax.f32 %v1280_v27, %v1283_v5  ;;  %v1272_v17 = vadd.f32 %v1270_v32, %v1267_v49  ;;  %v9583_v27 = vpack.c.bf16 %v1609_v26, %v1608_v23  ;;  %v1593_v49 = vld [vmem:[%s16318_s6 + $0x8] sm:$0xff]  ;;  %v1611_v32 = vld [vmem:[%s16318_s6 + $0x98] sm:$0xff] }
 0x1ce   : > { %v9585_v5 = vpack.c.bf16 %v1593_v49, %v1592_v51  ;;  %v1627_v51 = vld [vmem:[%s16318_s6 + $0x118] sm:$0xff] }
 0x1cf   : > { %v1288_v59 = vrot.slane %v1285_v50, 7  ;;  %v1286_v19 = vmul.f32 0.00390625, %v1272_v17  ;;  %v1610_v50 = vld [vmem:[%s16318_s6 + $0x90] sm:$0xff]  ;;  %v1640_v17 = vld [vmem:[%s16318_s6 + $0x180] sm:$0xff] }
 0x1d1   : > { %v1290_v40 = vsel %vm408_vm0, %v1286_v19, %v1288_v59  ;;  %v9587_v59 = vpack.c.bf16 %v1611_v32, %v1610_v50  ;;  %v1641_v19 = vld [vmem:[%s16318_s6 + $0x188] sm:$0xff]  ;;  %v1615_v50 = vld [vmem:[%s16318_s6 + $0xb8] sm:$0xff]  ;;  %v1644_v32 = vld [vmem:[%s16318_s6 + $0x1a0] sm:$0xff] }
 0x1d2   : > { %9542 = vmatmul.mubr.msk.f32.vlgmr.msra.gmra.mrb[0].mxu1 %vm473_vm3, %v1290_v40  ;;  %v1594_v40 = vld [vmem:[%s16318_s6 + $0x10] sm:$0xff]  ;;  %v9615_v29 = vpack.c.bf16 %v1641_v19, %v1640_v17 }
 0x1d3   : > { %1466 = vmatprep.mubr.f32.mxu1 %v16380_v41  ;;  %8803 = vmatpush1.msk.msra.mxu1 %vm1393_vm6, %v11649_v2  ;;  %v9589_v54 = vpack.c.bf16 %v1595_v62, %v1594_v40  ;;  %v1598_v19 = vld [vmem:[%s16318_s6 + $0x30] sm:$0xff]  ;;  %v1599_v40 = vld [vmem:[%s16318_s6 + $0x38] sm:$0xff] }
 0x1d4   : > { %8805 = vmatprep.subr.msk.mxu1 %vm1393_vm6, %v11663_v31  ;;  %9616 = vmatprep.subr.bf16.mxu0 %v9615_v29  ;;  %v9597_v29 = vpack.c.bf16 %v1599_v40, %v1598_v19  ;;  %v1603_v19 = vld [vmem:[%s16318_s6 + $0x58] sm:$0xff]  ;;  %v16646_v31 = vld [vmem:[#allocation4_spill] sm:$0xff] }
 0x1d5   : > { %9618 = vmatpush3.bf16.msra.mxu0 %v9617_v15  ;;  %v1616_v15 = vld [vmem:[%s16318_s6 + $0xc0] sm:$0xff] }
 0x2a5   : > { %v1360_v61 = vpop.f32.mrb[0].mxu1 }
 0x2a6   : > { %vm1364_vm7 = vcmp.ge.f32.partialorder %v1360_v61, 0.0  ;;  %v1365_v33 = vmul.f32 0.1, %v1360_v61  ;;  %v9543_v63 = vpop.f32.mrb[1].mxu1 }
 0x2a8   : > { %v1366_v22 = vsel %vm1364_vm7, %v1360_v61, %v1365_v33  ;;  %v1613_v61 = vld [vmem:[%s16318_s6 + $0xa8] sm:$0xff]  ;;  %v1642_v33 = vld [vmem:[%s16318_s6 + $0x190] sm:$0xff]  ;;  %vm16396_vm7 = vcmask 1044480  }
 0x2a9   : > { %v1368_v42 = vrot.slane %v1366_v22, 1  ;;  %v9591_v63 = vpack.c.bf16 %v1613_v61, %v1612_v13  ;;  %v1617_v13 = vld [vmem:[%s16318_s6 + $0xc8] sm:$0xff]  ;;  %v1646_v61 = vld [vmem:[%s16318_s6 + $0x1b0] sm:$0xff] }
 0x2ab   : > { %v1370_v3 = vadd.f32 %v1368_v42, %v1366_v22  ;;  %v1643_v22 = vld [vmem:[%s16318_s6 + $0x198] sm:$0xff]  ;;  %v1596_v42 = vld [vmem:[%s16318_s6 + $0x20] sm:$0xff] }
 0x2ac   : > { %v9619_v23 = vpack.c.bf16 %v1643_v22, %v1642_v33  ;;  %v9599_v33 = vpack.c.bf16 %v1617_v13, %v1616_v15  ;;  %v1600_v22 = vld [vmem:[%s16318_s6 + $0x40] sm:$0xff]  ;;  %v1621_v15 = vld [vmem:[%s16318_s6 + $0xe8] sm:$0xff]  ;;  %v1650_v13 = vld [vmem:[%s16318_s6 + $0x1d0] sm:$0xff] }
 0x2ad   : > { %8804 = vmatmul.mubr.msk.f32.vlgmr.msra.gmra.mrb[2].mxu1 %vm1389_vm8, %v1370_v3 }
 0x2ae   : > { %8806 = vmatpush1.msk.msra.mxu1 %vm1393_vm6, %v11657_v48  ;;  %1537 = vmatprep.mubr.f32.mxu1 %v16380_v41 }
 0x2af   : > { %9584 = vmatprep.subr.bf16.mxu1 %v9583_v27  ;;  %v1626_v27 = vld [vmem:[%s16318_s6 + $0x110] sm:$0xff]  ;;  %9620 = vmatprep.subr.bf16.mxu0 %v9619_v23 }
 0x2b0   : > { %v9621_v49 = vpack.c.bf16 %v1627_v51, %v1626_v27  ;;  %v1631_v27 = vld [vmem:[%s16318_s6 + $0x138] sm:$0xff] }
 0x2b1   : > { %8807 = vmatmul.mubr.msk.f32.vlgmr.msra.gmra.mrb[4].mxu1 %vm1389_vm8, %v1370_v3  ;;  %v1597_v3 = vld [vmem:[%s16318_s6 + $0x28] sm:$0xff] }
 0x2b2   : > { %9586 = vmatpush3.bf16.msra.mxu1 %v9585_v5  ;;  %v9593_v26 = vpack.c.bf16 %v1597_v3, %v1596_v42  ;;  %v1614_v5 = vld [vmem:[%s16318_s6 + $0xb0] sm:$0xff]  ;;  %9622 = vmatpush3.bf16.msra.mxu0 %v9621_v49  ;;  %v1601_v42 = vld [vmem:[%s16318_s6 + $0x48] sm:$0xff] }
 0x2b3   : > { %9588 = vmatprep.subr.bf16.mxu1 %v9587_v59  ;;  %v9595_v17 = vpack.c.bf16 %v1615_v50, %v1614_v5  ;;  %v1645_v59 = vld [vmem:[%s16318_s6 + $0x1a8] sm:$0xff]  ;;  %v9601_v23 = vpack.c.bf16 %v1601_v42, %v1600_v22  ;;  %v1618_v49 = vld [vmem:[%s16318_s6 + $0xd0] sm:$0xff]  ;;  %v1619_v5 = vld [vmem:[%s16318_s6 + $0xd8] sm:$0xff] }
 0x2b4   : > { %v9623_v62 = vpack.c.bf16 %v1645_v59, %v1644_v32  ;;  %v1648_v50 = vld [vmem:[%s16318_s6 + $0x1c0] sm:$0xff]  ;;  %v9603_v32 = vpack.c.bf16 %v1619_v5, %v1618_v49  ;;  %v1602_v59 = vld [vmem:[%s16318_s6 + $0x50] sm:$0xff]  ;;  %v1605_v42 = vld [vmem:[%s16318_s6 + $0x68] sm:$0xff] }
 0x2b5   : > { %v1604_v22 = vld [vmem:[%s16318_s6 + $0x60] sm:$0xff] }
 0x2b6   : > { %9590 = vmatpush3.bf16.msra.mxu1 %v9589_v54  ;;  %v1628_v54 = vld [vmem:[%s16318_s6 + $0x120] sm:$0xff]  ;;  %9624 = vmatprep.subr.bf16.mxu0 %v9623_v62  ;;  %v9605_v62 = vpack.c.bf16 %v1603_v19, %v1602_v59  ;;  %v1607_v19 = vld [vmem:[%s16318_s6 + $0x78] sm:$0xff] }
 0x2b7   : > { %9592 = vmatprep.subr.bf16.mxu1 %v9591_v63  ;;  %v9625_v4 = vpack.c.bf16 %v1629_v52, %v1628_v54  ;;  %v1647_v63 = vld [vmem:[%s16318_s6 + $0x1b8] sm:$0xff]  ;;  %v1633_v54 = vld [vmem:[%s16318_s6 + $0x148] sm:$0xff]  ;;  %v1620_v52 = vld [vmem:[%s16318_s6 + $0xe0] sm:$0xff] }
 0x2b8   : > { %v9627_v3 = vpack.c.bf16 %v1647_v63, %v1646_v61  ;;  %v1651_v61 = vld [vmem:[%s16318_s6 + $0x1d8] sm:$0xff] }
 0x2b9   : > { %9626 = vmatpush3.bf16.msra.mxu0 %v9625_v4  ;;  %v9635_v63 = vpack.c.bf16 %v1651_v61, %v1650_v13  ;;  %v1638_v13 = vld [vmem:[%s16318_s6 + $0x170] sm:$0xff]  ;;  %v1639_v61 = vld [vmem:[%s16318_s6 + $0x178] sm:$0xff] }
 0x2ba   : > { %9594 = vmatpush3.bf16.msra.mxu1 %v9593_v26  ;;  %v1630_v26 = vld [vmem:[%s16318_s6 + $0x130] sm:$0xff]  ;;  %9628 = vmatprep.subr.bf16.mxu0 %v9627_v3 }
 0x2bb   : > { %9596 = vmatprep.subr.bf16.mxu1 %v9595_v17  ;;  %v9629_v51 = vpack.c.bf16 %v1631_v27, %v1630_v26  ;;  %v1649_v17 = vld [vmem:[%s16318_s6 + $0x1c8] sm:$0xff]  ;;  %v1634_v3 = vld [vmem:[%s16318_s6 + $0x150] sm:$0xff]  ;;  %v1635_v26 = vld [vmem:[%s16318_s6 + $0x158] sm:$0xff] }
 0x2bc   : > { %v9631_v40 = vpack.c.bf16 %v1649_v17, %v1648_v50  ;;  %v1622_v27 = vld [vmem:[%s16318_s6 + $0xf0] sm:$0xff]  ;;  %v9637_v49 = vpack.c.bf16 %v1635_v26, %v1634_v3  ;;  %v1652_v50 = vld [vmem:[%s16318_s6 + $0x1e0] sm:$0xff] }
 0x2bd   : > { %9630 = vmatpush3.bf16.msra.mxu0 %v9629_v51  ;;  %v1623_v51 = vld [vmem:[%s16318_s6 + $0xf8] sm:$0xff]  ;;  %v1606_v17 = vld [vmem:[%s16318_s6 + $0x70] sm:$0xff] }
 0x2be   : > { %9598 = vmatpush3.bf16.msra.mxu1 %v9597_v29  ;;  %v1632_v29 = vld [vmem:[%s16318_s6 + $0x140] sm:$0xff]  ;;  %9632 = vmatprep.subr.bf16.mxu0 %v9631_v40  ;;  %v9611_v5 = vpack.c.bf16 %v1623_v51, %v1622_v27 }
 0x2bf   : > { %9600 = vmatprep.subr.bf16.mxu1 %v9599_v33  ;;  %v9633_v4 = vpack.c.bf16 %v1633_v54, %v1632_v29  ;;  %v9607_v33 = vpack.c.bf16 %v1621_v15, %v1620_v52  ;;  %v1636_v40 = vld [vmem:[%s16318_s6 + $0x160] sm:$0xff]  ;;  %v9613_v29 = vpack.c.bf16 %v1607_v19, %v1606_v17  ;;  %v1654_v52 = vld [vmem:[%s16318_s6 + $0x1f0] sm:$0xff] }
 0x2c1   : > { %9634 = vmatpush3.bf16.msra.mxu0 %v9633_v4  ;;  %v1655_v4 = vld [vmem:[%s16318_s6 + $0x1f8] sm:$0xff] }
 0x2c2   : > { %9602 = vmatpush3.bf16.msra.mxu1 %v9601_v23  ;;  %v9609_v23 = vpack.c.bf16 %v1605_v42, %v1604_v22  ;;  %9636 = vmatprep.subr.bf16.mxu0 %v9635_v63  ;;  %v9643_v15 = vpack.c.bf16 %v1655_v4, %v1654_v52 }
 0x2c3   : > { %9604 = vmatprep.subr.bf16.mxu1 %v9603_v32  ;;  %v1653_v32 = vld [vmem:[%s16318_s6 + $0x1e8] sm:$0xff] }
 0x2c4   : > { %v9639_v59 = vpack.c.bf16 %v1653_v32, %v1652_v50 }
 0x2c5   : > { %9638 = vmatpush3.bf16.msra.mxu0 %v9637_v49 }
 0x2c6   : > { %9606 = vmatpush3.bf16.msra.mxu1 %v9605_v62  ;;  %v1637_v62 = vld [vmem:[%s16318_s6 + $0x168] sm:$0xff]  ;;  %9640 = vmatprep.subr.bf16.mxu0 %v9639_v59 }
 0x2c7   : > { %9608 = vmatprep.subr.bf16.mxu1 %v9607_v33  ;;  %v9641_v54 = vpack.c.bf16 %v1637_v62, %v1636_v40  ;;  %v9645_v33 = vpack.c.bf16 %v1639_v61, %v1638_v13  ;;  %v16628_v13 = vld [vmem:[#allocation3_spill] sm:$0xff] }
 0x2c9   : > { %9642 = vmatpush3.bf16.msra.mxu0 %v9641_v54 }
 0x2ca   : > { %9610 = vmatpush3.bf16.msra.mxu1 %v9609_v23  ;;  %9644 = vmatprep.subr.bf16.mxu0 %v9643_v15 }
 0x2cb   : > { %9612 = vmatprep.subr.bf16.mxu1 %v9611_v5 }
 0x2cd   : > { %9646 = vmatpush3.bf16.msra.mxu0 %v9645_v33 }
 0x2ce   : > { %9614 = vmatpush3.bf16.msra.mxu1 %v9613_v29 }
 0x380   : > { %v1468_v63 = vpop.f32.mrb[2].mxu1 }
 0x381   : > { %v1544_v22 = vsub.f32 0.0, %v1468_v63  ;;  %v1470_v42 = vpop.f32.mrb[3].mxu1 }
 0x382   : > { %v1545_v3 = vsub.f32 0.0, %v1470_v42 }
 0x383   : > { %v1548_v23 = vmul.f32 1.442695, %v1544_v22 }
 0x384   : > { %v1550_v26 = vmul.f32 1.442695, %v1545_v3  ;;  %v1539_v27 = vpop.f32.mrb[4].mxu1 }
 0x385   : > { %10775 = vpow2.f32 %v1548_v23  ;;  %v1546_v51 = vsub.f32 0.0, %v1539_v27  ;;  %v1541_v49 = vpop.f32.mrb[5].mxu1 }
 0x386   : > { %10777 = vpow2.f32 %v1550_v26  ;;  %v1547_v5 = vsub.f32 0.0, %v1541_v49 }
 0x387   : > { %v1552_v50 = vmul.f32 1.442695, %v1546_v51 }
 0x388   : > { %v1554_v32 = vmul.f32 1.442695, %v1547_v5 }
 0x389   : > { %10779 = vpow2.f32 %v1552_v50 }
 0x38a   : > { %10781 = vpow2.f32 %v1554_v32 }
 0x38f   : > { %v10776_v17 = vpop.eup %10775 }
 0x390   : > { %v10778_v59 = vpop.eup %10777  ;;  %v1556_v19 = vadd.f32 1.0, %v10776_v17 }
 0x391   : > { %v1557_v40 = vadd.f32 1.0, %v10778_v59 }
 0x392   : > { %10783 = vrcp.f32 %v1556_v19 }
 0x393   : > { %v10780_v62 = vpop.eup %10779  ;;  %10785 = vrcp.f32 %v1557_v40 }
 0x394   : > { %v10782_v29 = vpop.eup %10781  ;;  %v1558_v54 = vadd.f32 1.0, %v10780_v62 }
 0x395   : > { %v1559_v52 = vadd.f32 1.0, %v10782_v29 }
 0x396   : > { %10787 = vrcp.f32 %v1558_v54 }
 0x397   : > { %10789 = vrcp.f32 %v1559_v52 }
 0x39c   : > { %v10784_v4 = vpop.eup %10783 }
 0x39d   : > { %v10786_v15 = vpop.eup %10785  ;;  %v1571_v61 = vrot.slane %v10784_v4, %v16628_v13 }
 0x39e   : > { %v1575_v33 = vrot.slane %v10786_v15, %v16628_v13 }
 0x39f   : > { %v11867_v63 = vmul.f32 %v1571_v61, %v11566_v11  ;;  %v11881_v11 = vmul.f32 %v1571_v61, %v11576_v14 }
 0x3a0   : > { %v10788_v22 = vpop.eup %10787  ;;  %v11870_v42 = vmul.f32 %v1575_v33, %v11595_v24  ;;  %v11877_v27 = vmul.f32 %v1575_v33, %v11603_v56 }
 0x3a1   : > { %16629 = vst [vmem:[#allocation18_spill] sm:$0xff] %v11867_v63  ;;  %v10790_v3 = vpop.eup %10789  ;;  %v1579_v23 = vrot.slane %v10788_v22, %v16628_v13  ;;  %16632 = vst [vmem:[#allocation14_spill] sm:$0xff] %v11881_v11 }
 0x3a2   : > { %16630 = vst [vmem:[#allocation13_spill] sm:$0xff] %v11870_v42  ;;  %1720 = vmatprep.mubr.f32.mxu1 %v11870_v42  ;;  %v10334_v26 = vpack.i.bf16 %v11870_v42, %v11867_v63  ;;  %16631 = vst [vmem:[#allocation12_spill] sm:$0xff] %v11877_v27  ;;  %v1583_v51 = vrot.slane %v10790_v3, %v16628_v13  ;;  %v10339_v56 = vpack.i.bf16 %v11877_v27, %v11881_v11 }
 0x3a3   : > { %1721 = vmatmul.mubr.f32.vlgmr.msra.gmra.mrb[6].mxu1 %v11867_v63  ;;  %v11885_v24 = vmul.f32 %v1579_v23, %v11598_v8  ;;  %v11901_v8 = vmul.f32 %v1579_v23, %v11606_v55 }
 0x3a4   : > { %10335 = vrot.lane.b32.xlu0 %v10334_v26, %s16457_s23  ;;  %1725 = vmatprep.mubr.f32.mxu1 %v11877_v27  ;;  %v11890_v49 = vmul.f32 %v1583_v51, %v11571_v34  ;;  %v11898_v5 = vmul.f32 %v1583_v51, %v11584_v12 }
 0x3a5   : > { %16633 = vst [vmem:[#allocation19_spill] sm:$0xff] %v11885_v24  ;;  %16636 = vst [vmem:[#allocation22_spill] sm:$0xff] %v11901_v8 }
 0x3a6   : > { %16634 = vst [vmem:[#allocation21_spill] sm:$0xff] %v11890_v49  ;;  %1795 = vmatprep.mubr.f32.mxu0 %v11890_v49  ;;  %v10344_v14 = vpack.i.bf16 %v11890_v49, %v11885_v24  ;;  %16635 = vst [vmem:[#allocation20_spill] sm:$0xff] %v11898_v5  ;;  %v10349_v34 = vpack.i.bf16 %v11898_v5, %v11901_v8 }
 0x3a7   : > { %1726 = vmatmul.mubr.f32.gmra.mrb[8].mxu1 %v11881_v11  ;;  %1796 = vmatmul.mubr.f32.vlgmr.msra.gmra.mrb[0].mxu0 %v11885_v24 }
 0x3a8   : > { %10340 = vrot.lane.b32.xlu0 %v10339_v56, %s16457_s23  ;;  %10345 = vrot.lane.b32.xlu1 %v10344_v14, %s16457_s23 }
 0x3a9   : > { %1800 = vmatprep.mubr.f32.mxu0 %v11898_v5 }
 0x3ab   : > { %1801 = vmatmul.mubr.f32.gmra.mrb[2].mxu0 %v11901_v8 }
 0x3ac   : > { %10350 = vrot.lane.b32.xlu1 %v10349_v34, %s16457_s23 }
 0x416   : > { %v10336_v12 = vpop.permute.xlu0 %10335 }
 0x417   : > { %v10338_v55 = vunpack.i.h.bf16 %v10336_v12  ;;  %v10337_v50 = vunpack.i.l.bf16 %v10336_v12 }
 0x419   : > { %v1831_v59 = vsel %vm16518_vm9, %v10337_v50, %v10338_v55 }
 0x41a   : > { %v10341_v32 = vpop.permute.xlu0 %10340  ;;  %v10346_v17 = vpop.permute.xlu1 %10345  ;;  %v1849_v15 = vmax.f32 %v11867_v63, %v1831_v59 }
 0x41b   : > { %v10343_v19 = vunpack.i.h.bf16 %v10341_v32  ;;  %v10342_v40 = vunpack.i.l.bf16 %v10341_v32  ;;  %v10348_v62 = vunpack.i.h.bf16 %v10346_v17  ;;  %v10347_v29 = vunpack.i.l.bf16 %v10346_v17 }
 0x41d   : > { %v1833_v54 = vsel %vm16518_vm9, %v10347_v29, %v10348_v62  ;;  %v1847_v52 = vsel %vm16518_vm9, %v10348_v62, %v10337_v50  ;;  %v1832_v4 = vsel %vm16518_vm9, %v10338_v55, %v10347_v29  ;;  %v1834_v23 = vsel %vm16518_vm9, %v10342_v40, %v10343_v19 }
 0x41e   : > { %v10351_v61 = vpop.permute.xlu1 %10350  ;;  %v1851_v33 = vmax.f32 %v11885_v24, %v1833_v54  ;;  %v1852_v22 = vmax.f32 %v11890_v49, %v1847_v52  ;;  %v1850_v3 = vmax.f32 %v11870_v42, %v1832_v4  ;;  %v1853_v50 = vmax.f32 %v11881_v11, %v1834_v23 }
 0x41f   : > { %v10353_v26 = vunpack.i.h.bf16 %v10351_v61  ;;  %v10352_v51 = vunpack.i.l.bf16 %v10351_v61 }
 0x420   : > { %v10364_v56 = vpack.i.bf16 %v1852_v22, %v1851_v33  ;;  %v10354_v14 = vpack.i.bf16 %v1850_v3, %v1849_v15 }
 0x421   : > { %v1836_v34 = vsel %vm16518_vm9, %v10352_v51, %v10353_v26  ;;  %v1848_v12 = vsel %vm16518_vm9, %v10353_v26, %v10342_v40  ;;  %v1835_v55 = vsel %vm16518_vm9, %v10343_v19, %v10352_v51 }
 0x422   : > { %10365 = vrot.lane.b32.xlu1 %v10364_v56, %s16394_s26  ;;  %10355 = vrot.lane.b32.xlu0 %v10354_v14, %s16394_s26  ;;  %v1855_v32 = vmax.f32 %v11901_v8, %v1836_v34  ;;  %v1856_v17 = vmax.f32 %v11898_v5, %v1848_v12  ;;  %v1854_v59 = vmax.f32 %v11877_v27, %v1835_v55  ;;  %v16644_v27 = vld [vmem:[#allocation9_spill] sm:$0xff] }
 0x424   : > { %v10369_v62 = vpack.i.bf16 %v1856_v17, %v1855_v32  ;;  %v10359_v29 = vpack.i.bf16 %v1854_v59, %v1853_v50 }
 0x426   : > { %10370 = vrot.lane.b32.xlu1 %v10369_v62, %s16394_s26  ;;  %10360 = vrot.lane.b32.xlu0 %v10359_v29, %s16394_s26  ;;  %s16739_s26 = smov 120  }
 0x476   : > { %v8942_v19 = vpop.f32.mrb[6].mxu1 }
 0x477   : > { %v8943_v40 = vpop.f32.mrb[7].mxu1 }
 0x478   : > { %v8944_v54 = vadd.f32 %v8943_v40, %v8942_v19 }
 0x47a   : > { %v8945_v52 = vpop.f32.mrb[8].mxu1  ;;  %v8980_v4 = vpop.f32.mrb[0].mxu0 }
 0x47b   : > { %v8946_v61 = vpop.f32.mrb[9].mxu1  ;;  %v8981_v23 = vpop.f32.mrb[1].mxu0 }
 0x47c   : > { %v8947_v26 = vadd.f32 %v8946_v61, %v8945_v52  ;;  %v8982_v51 = vadd.f32 %v8981_v23, %v8980_v4 }
 0x47e   : > { %v11932_v56 = vadd.f32 %v8982_v51, %v8944_v54  ;;  %v8983_v14 = vpop.f32.mrb[2].mxu0 }
 0x47f   : > { %v8984_v34 = vpop.f32.mrb[3].mxu0 }
 0x480   : > { %v8985_v12 = vadd.f32 %v8984_v34, %v8983_v14 }
 0x482   : > { %v11934_v55 = vadd.f32 %v8985_v12, %v8947_v26 }
 0x494   : > { %v10366_v41 = vpop.permute.xlu1 %10365  ;;  %v10356_v62 = vpop.permute.xlu0 %10355 }
 0x495   : > { %v10368_v29 = vunpack.i.h.bf16 %v10366_v41  ;;  %v10367_v44 = vunpack.i.l.bf16 %v10366_v41  ;;  %v10358_v13 = vunpack.i.h.bf16 %v10356_v62  ;;  %v10357_v19 = vunpack.i.l.bf16 %v10356_v62 }
 0x497   : > { %v1884_v40 = vsel %vm16517_vm10, %v10367_v44, %v10368_v29  ;;  %v1898_v48 = vsel %vm16517_vm10, %v10368_v29, %v10357_v19  ;;  %v1882_v52 = vsel %vm16517_vm10, %v10357_v19, %v10358_v13  ;;  %v1883_v54 = vsel %vm16517_vm10, %v10358_v13, %v10367_v44 }
 0x498   : > { %v10371_v4 = vpop.permute.xlu1 %10370  ;;  %v10361_v61 = vpop.permute.xlu0 %10360  ;;  %v1902_v23 = vmax.f32 %v1851_v33, %v1884_v40  ;;  %v1903_v26 = vmax.f32 %v1852_v22, %v1898_v48  ;;  %v1900_v51 = vmax.f32 %v1849_v15, %v1882_v52  ;;  %v1901_v14 = vmax.f32 %v1850_v3, %v1883_v54 }
 0x499   : > { %v10373_v34 = vunpack.i.h.bf16 %v10371_v4  ;;  %v10372_v12 = vunpack.i.l.bf16 %v10371_v4  ;;  %v10363_v5 = vunpack.i.h.bf16 %v10361_v61  ;;  %v10362_v41 = vunpack.i.l.bf16 %v10361_v61 }
 0x49a   : > { %v10379_v8 = vpack.i.bf16 %v1903_v26, %v1902_v23  ;;  %v10374_v62 = vpack.i.bf16 %v1901_v14, %v1900_v51 }
 0x49b   : > { %v1887_v49 = vsel %vm16517_vm10, %v10372_v12, %v10373_v34  ;;  %v1899_v29 = vsel %vm16517_vm10, %v10373_v34, %v10362_v41  ;;  %v1885_v19 = vsel %vm16517_vm10, %v10362_v41, %v10363_v5  ;;  %v1886_v44 = vsel %vm16517_vm10, %v10363_v5, %v10372_v12 }
 0x49c   : > { %10380 = vrot.lane.b32.xlu1 %v10379_v8, %s16390_s27  ;;  %10375 = vrot.lane.b32.xlu0 %v10374_v62, %s16390_s27  ;;  %v1906_v48 = vmax.f32 %v1855_v32, %v1887_v49  ;;  %v1907_v13 = vmax.f32 %v1856_v17, %v1899_v29  ;;  %v1904_v15 = vmax.f32 %v1853_v50, %v1885_v19 }
 0x49d   : > { %v1905_v33 = vmax.f32 %v1854_v59, %v1886_v44 }
 0x49e   : > { %v10389_v22 = vpack.i.bf16 %v1907_v13, %v1906_v48 }
 0x49f   : > { %v10384_v3 = vpack.i.bf16 %v1905_v33, %v1904_v15 }
 0x4a0   : > { %10390 = vrot.lane.b32.xlu1 %v10389_v22, %s16390_s27 }
 0x4a1   : > { %10385 = vrot.lane.b32.xlu0 %v10384_v3, %s16390_s27 }
 0x50e   : > { %v10381_v40 = vpop.permute.xlu1 %10380  ;;  %v10376_v52 = vpop.permute.xlu0 %10375 }
 0x50f   : > { %v10383_v54 = vunpack.i.h.bf16 %v10381_v40  ;;  %v10382_v5 = vunpack.i.l.bf16 %v10381_v40  ;;  %v10378_v4 = vunpack.i.h.bf16 %v10376_v52  ;;  %v10377_v61 = vunpack.i.l.bf16 %v10376_v52  ;;  %v2077_v52 = vld [vmem:[%s16319_s7 + $0x80] sm:$0xff] }
 0x511   : > { %v1935_v8 = vsel %vm16516_vm11, %v10382_v5, %v10383_v54  ;;  %v1949_v49 = vsel %vm16516_vm11, %v10383_v54, %v10377_v61  ;;  %v1933_v50 = vsel %vm16516_vm11, %v10377_v61, %v10378_v4  ;;  %v1934_v32 = vsel %vm16516_vm11, %v10378_v4, %v10382_v5  ;;  %v2078_v54 = vld [vmem:[%s16319_s7 + $0x88] sm:$0xff] }
 0x512   : > { %v10391_v17 = vpop.permute.xlu1 %10390  ;;  %v11952_v59 = vmax.f32 %v1902_v23, %v1935_v8  ;;  %v11954_v34 = vmax.f32 %v1903_v26, %v1949_v49  ;;  %v11956_v12 = vmax.f32 %v1900_v51, %v1933_v50  ;;  %v11958_v41 = vmax.f32 %v1901_v14, %v1934_v32  ;;  %v2110_v49 = vld [vmem:[%s16319_s7 + $0x188] sm:$0xff]  ;;  %v2061_v50 = vld [vmem:[%s16319_s7] sm:$0xff] }
 0x513   : > { %v10393_v62 = vunpack.i.h.bf16 %v10391_v17  ;;  %v10392_v29 = vunpack.i.l.bf16 %v10391_v17  ;;  %v10386_v19 = vpop.permute.xlu0 %10385  ;;  %v9647_v8 = vpack.c.bf16 %v2078_v54, %v2077_v52  ;;  %v2093_v17 = vld [vmem:[%s16319_s7 + $0x100] sm:$0xff]  ;;  %v2064_v52 = vld [vmem:[%s16319_s7 + $0x18] sm:$0xff] }
 0x514   : > { %v10388_v44 = vunpack.i.h.bf16 %v10386_v19  ;;  %v10387_v22 = vunpack.i.l.bf16 %v10386_v19  ;;  %v10399_v3 = vpack.i.bf16 %v11954_v34, %v11952_v59  ;;  %v10394_v40 = vpack.i.bf16 %v11958_v41, %v11956_v12 }
 0x515   : > { %v1938_v23 = vsel %vm16516_vm11, %v10392_v29, %v10393_v62  ;;  %9648 = vmatprep.subr.bf16.mxu1 %v9647_v8  ;;  %v2095_v8 = vld [vmem:[%s16319_s7 + $0x110] sm:$0xff] }
 0x516   : > { %10400 = vrot.lane.b32.xlu1 %v10399_v3, %s16392_s28  ;;  %10395 = vrot.lane.b32.xlu0 %v10394_v40, %s16392_s28  ;;  %v1950_v26 = vsel %vm16516_vm11, %v10393_v62, %v10387_v22  ;;  %v11968_v51 = vmax.f32 %v1906_v48, %v1938_v23  ;;  %v1936_v14 = vsel %vm16516_vm11, %v10387_v22, %v10388_v44  ;;  %v2109_v48 = vld [vmem:[%s16319_s7 + $0x180] sm:$0xff]  ;;  %v2094_v62 = vld [vmem:[%s16319_s7 + $0x108] sm:$0xff] }
 0x517   : > { %v11977_v5 = vmax.f32 %v1907_v13, %v1950_v26  ;;  %v1937_v4 = vsel %vm16516_vm11, %v10388_v44, %v10392_v29  ;;  %v11980_v61 = vmax.f32 %v1904_v15, %v1936_v14  ;;  %v9679_v13 = vpack.c.bf16 %v2110_v49, %v2109_v48  ;;  %v2062_v15 = vld [vmem:[%s16319_s7 + $0x8] sm:$0xff]  ;;  %v2079_v44 = vld [vmem:[%s16319_s7 + $0x90] sm:$0xff]  ;;  %v2080_v22 = vld [vmem:[%s16319_s7 + $0x98] sm:$0xff] }
 0x518   : > { %v11991_v32 = vmax.f32 %v1905_v33, %v1937_v4  ;;  %v9649_v19 = vpack.c.bf16 %v2062_v15, %v2061_v50  ;;  %v9681_v33 = vpack.c.bf16 %v2094_v62, %v2093_v17  ;;  %v2111_v3 = vld [vmem:[%s16319_s7 + $0x190] sm:$0xff]  ;;  %v9651_v23 = vpack.c.bf16 %v2080_v22, %v2079_v44  ;;  %v2112_v26 = vld [vmem:[%s16319_s7 + $0x198] sm:$0xff]  ;;  %v2081_v49 = vld [vmem:[%s16319_s7 + $0xa0] sm:$0xff] }
 0x519   : > { %v10409_v29 = vpack.i.bf16 %v11977_v5, %v11968_v51  ;;  %9680 = vmatprep.subr.bf16.mxu0 %v9679_v13  ;;  %v2063_v14 = vld [vmem:[%s16319_s7 + $0x10] sm:$0xff]  ;;  %v9683_v54 = vpack.c.bf16 %v2112_v26, %v2111_v3  ;;  %v2096_v48 = vld [vmem:[%s16319_s7 + $0x118] sm:$0xff]  ;;  %v2082_v13 = vld [vmem:[%s16319_s7 + $0xa8] sm:$0xff] }
 0x51a   : > { %v10404_v40 = vpack.i.bf16 %v11991_v32, %v11980_v61  ;;  %9650 = vmatpush3.bf16.msra.mxu1 %v9649_v19  ;;  %v9653_v4 = vpack.c.bf16 %v2064_v52, %v2063_v14  ;;  %9682 = vmatpush3.bf16.msra.mxu0 %v9681_v33  ;;  %v9685_v50 = vpack.c.bf16 %v2096_v48, %v2095_v8  ;;  %v2113_v15 = vld [vmem:[%s16319_s7 + $0x1a0] sm:$0xff]  ;;  %v2114_v17 = vld [vmem:[%s16319_s7 + $0x1a8] sm:$0xff]  ;;  %v2083_v3 = vld [vmem:[%s16319_s7 + $0xb0] sm:$0xff] }
 0x51b   : > { %10410 = vrot.lane.b32.xlu1 %v10409_v29, %s16392_s28  ;;  %9652 = vmatprep.subr.bf16.mxu1 %v9651_v23  ;;  %v9655_v62 = vpack.c.bf16 %v2082_v13, %v2081_v49  ;;  %v9687_v29 = vpack.c.bf16 %v2114_v17, %v2113_v15  ;;  %v2065_v19 = vld [vmem:[%s16319_s7 + $0x20] sm:$0xff]  ;;  %v2066_v33 = vld [vmem:[%s16319_s7 + $0x28] sm:$0xff]  ;;  %v2115_v26 = vld [vmem:[%s16319_s7 + $0x1b0] sm:$0xff] }
 0x51c   : > { %10405 = vrot.lane.b32.xlu0 %v10404_v40, %s16392_s28  ;;  %9684 = vmatprep.subr.bf16.mxu0 %v9683_v54  ;;  %v2097_v44 = vld [vmem:[%s16319_s7 + $0x120] sm:$0xff]  ;;  %v2098_v22 = vld [vmem:[%s16319_s7 + $0x128] sm:$0xff]  ;;  %v2084_v40 = vld [vmem:[%s16319_s7 + $0xb8] sm:$0xff]  ;;  %v9657_v23 = vpack.c.bf16 %v2066_v33, %v2065_v19  ;;  %s16740_s28 = smov 124  }
 0x51d   : > { %v2116_v14 = vld [vmem:[%s16319_s7 + $0x1b8] sm:$0xff]  ;;  %v9689_v52 = vpack.c.bf16 %v2098_v22, %v2097_v44  ;;  %v9659_v54 = vpack.c.bf16 %v2084_v40, %v2083_v3  ;;  %v2067_v8 = vld [vmem:[%s16319_s7 + $0x30] sm:$0xff]  ;;  %v2085_v13 = vld [vmem:[%s16319_s7 + $0xc0] sm:$0xff] }
 0x51e   : > { %9654 = vmatpush3.bf16.msra.mxu1 %v9653_v4  ;;  %9686 = vmatpush3.bf16.msra.mxu0 %v9685_v50  ;;  %v2068_v4 = vld [vmem:[%s16319_s7 + $0x38] sm:$0xff]  ;;  %v2099_v48 = vld [vmem:[%s16319_s7 + $0x130] sm:$0xff]  ;;  %v9691_v49 = vpack.c.bf16 %v2116_v14, %v2115_v26  ;;  %v2086_v15 = vld [vmem:[%s16319_s7 + $0xc8] sm:$0xff] }
 0x51f   : > { %9656 = vmatprep.subr.bf16.mxu1 %v9655_v62  ;;  %9688 = vmatprep.subr.bf16.mxu0 %v9687_v29  ;;  %v2100_v50 = vld [vmem:[%s16319_s7 + $0x138] sm:$0xff]  ;;  %v2117_v17 = vld [vmem:[%s16319_s7 + $0x1c0] sm:$0xff]  ;;  %v2118_v62 = vld [vmem:[%s16319_s7 + $0x1c8] sm:$0xff]  ;;  %v9661_v29 = vpack.c.bf16 %v2068_v4, %v2067_v8  ;;  %v9663_v33 = vpack.c.bf16 %v2086_v15, %v2085_v13 }
 0x520   : > { %v9693_v19 = vpack.c.bf16 %v2100_v50, %v2099_v48  ;;  %v2069_v44 = vld [vmem:[%s16319_s7 + $0x40] sm:$0xff]  ;;  %v2070_v22 = vld [vmem:[%s16319_s7 + $0x48] sm:$0xff]  ;;  %v9695_v40 = vpack.c.bf16 %v2118_v62, %v2117_v17  ;;  %v2087_v26 = vld [vmem:[%s16319_s7 + $0xd0] sm:$0xff] }
 0x521   : > { %v2101_v3 = vld [vmem:[%s16319_s7 + $0x140] sm:$0xff]  ;;  %v2088_v14 = vld [vmem:[%s16319_s7 + $0xd8] sm:$0xff]  ;;  %v9665_v8 = vpack.c.bf16 %v2070_v22, %v2069_v44  ;;  %v2103_v13 = vld [vmem:[%s16319_s7 + $0x150] sm:$0xff] }
 0x522   : > { %9658 = vmatpush3.bf16.msra.mxu1 %v9657_v23  ;;  %9690 = vmatpush3.bf16.msra.mxu0 %v9689_v52  ;;  %v2102_v23 = vld [vmem:[%s16319_s7 + $0x148] sm:$0xff]  ;;  %v2119_v52 = vld [vmem:[%s16319_s7 + $0x1d0] sm:$0xff]  ;;  %v9667_v48 = vpack.c.bf16 %v2088_v14, %v2087_v26  ;;  %v2072_v50 = vld [vmem:[%s16319_s7 + $0x58] sm:$0xff] }
 0x523   : > { %9660 = vmatprep.subr.bf16.mxu1 %v9659_v54  ;;  %9692 = vmatprep.subr.bf16.mxu0 %v9691_v49  ;;  %v2120_v54 = vld [vmem:[%s16319_s7 + $0x1d8] sm:$0xff]  ;;  %v9697_v4 = vpack.c.bf16 %v2102_v23, %v2101_v3  ;;  %v2071_v49 = vld [vmem:[%s16319_s7 + $0x50] sm:$0xff]  ;;  %v2089_v62 = vld [vmem:[%s16319_s7 + $0xe0] sm:$0xff] }
 0x524   : > { %v9699_v15 = vpack.c.bf16 %v2120_v54, %v2119_v52  ;;  %v2104_v17 = vld [vmem:[%s16319_s7 + $0x158] sm:$0xff]  ;;  %v9669_v44 = vpack.c.bf16 %v2072_v50, %v2071_v49  ;;  %v2074_v23 = vld [vmem:[%s16319_s7 + $0x68] sm:$0xff]  ;;  %v2105_v52 = vld [vmem:[%s16319_s7 + $0x160] sm:$0xff] }
 0x525   : > { %v9701_v22 = vpack.c.bf16 %v2104_v17, %v2103_v13  ;;  %v2106_v54 = vld [vmem:[%s16319_s7 + $0x168] sm:$0xff]  ;;  %v2123_v49 = vld [vmem:[%s16319_s7 + $0x1f0] sm:$0xff]  ;;  %v2124_v13 = vld [vmem:[%s16319_s7 + $0x1f8] sm:$0xff] }
 0x526   : > { %9662 = vmatpush3.bf16.msra.mxu1 %v9661_v29  ;;  %9694 = vmatpush3.bf16.msra.mxu0 %v9693_v19  ;;  %v2090_v29 = vld [vmem:[%s16319_s7 + $0xe8] sm:$0xff]  ;;  %v2121_v19 = vld [vmem:[%s16319_s7 + $0x1e0] sm:$0xff]  ;;  %v2076_v17 = vld [vmem:[%s16319_s7 + $0x78] sm:$0xff] }
 0x527   : > { %9664 = vmatprep.subr.bf16.mxu1 %v9663_v33  ;;  %9696 = vmatprep.subr.bf16.mxu0 %v9695_v40  ;;  %v2122_v33 = vld [vmem:[%s16319_s7 + $0x1e8] sm:$0xff]  ;;  %v9671_v3 = vpack.c.bf16 %v2090_v29, %v2089_v62  ;;  %v2073_v40 = vld [vmem:[%s16319_s7 + $0x60] sm:$0xff]  ;;  %v9707_v62 = vpack.c.bf16 %v2124_v13, %v2123_v49 }
 0x528   : > { %v9703_v26 = vpack.c.bf16 %v2122_v33, %v2121_v19  ;;  %v9673_v14 = vpack.c.bf16 %v2074_v23, %v2073_v40  ;;  %v2107_v19 = vld [vmem:[%s16319_s7 + $0x170] sm:$0xff]  ;;  %v2108_v33 = vld [vmem:[%s16319_s7 + $0x178] sm:$0xff] }
 0x52a   : > { %9666 = vmatpush3.bf16.msra.mxu1 %v9665_v8  ;;  %9698 = vmatpush3.bf16.msra.mxu0 %v9697_v4  ;;  %v9705_v8 = vpack.c.bf16 %v2106_v54, %v2105_v52  ;;  %v2091_v4 = vld [vmem:[%s16319_s7 + $0xf0] sm:$0xff]  ;;  %v16637_v52 = vmov 0.0|0.0  }
 0x52b   : > { %9668 = vmatprep.subr.bf16.mxu1 %v9667_v48  ;;  %9700 = vmatprep.subr.bf16.mxu0 %v9699_v15  ;;  %v2092_v48 = vld [vmem:[%s16319_s7 + $0xf8] sm:$0xff]  ;;  %v2075_v15 = vld [vmem:[%s16319_s7 + $0x70] sm:$0xff] }
 0x52c   : > { %v9675_v50 = vpack.c.bf16 %v2092_v48, %v2091_v4  ;;  %v9677_v29 = vpack.c.bf16 %v2076_v17, %v2075_v15 }
 0x52e   : > { %9670 = vmatpush3.bf16.msra.mxu1 %v9669_v44  ;;  %9702 = vmatpush3.bf16.msra.mxu0 %v9701_v22  ;;  %v9709_v44 = vpack.c.bf16 %v2108_v33, %v2107_v19 }
 0x52f   : > { %9672 = vmatprep.subr.bf16.mxu1 %v9671_v3  ;;  %9704 = vmatprep.subr.bf16.mxu0 %v9703_v26 }
 0x532   : > { %9674 = vmatpush3.bf16.msra.mxu1 %v9673_v14  ;;  %9706 = vmatpush3.bf16.msra.mxu0 %v9705_v8 }
 0x533   : > { %9676 = vmatprep.subr.bf16.mxu1 %v9675_v50  ;;  %9708 = vmatprep.subr.bf16.mxu0 %v9707_v62 }
 0x536   : > { %9678 = vmatpush3.bf16.msra.mxu1 %v9677_v29  ;;  %9710 = vmatpush3.bf16.msra.mxu0 %v9709_v44 }
 0x537   : > { %9711 = vmatprep.subr.bf16.mxu1 %v16637_v52 }
 0x588   : > { %v10401_v22 = vpop.permute.xlu1 %10400  ;;  %v10396_v3 = vpop.permute.xlu0 %10395 }
 0x589   : > { %v10403_v40 = vunpack.i.h.bf16 %v10401_v22  ;;  %v10402_v23 = vunpack.i.l.bf16 %v10401_v22  ;;  %v10398_v26 = vunpack.i.h.bf16 %v10396_v3  ;;  %v10397_v14 = vunpack.i.l.bf16 %v10396_v3 }
 0x58b   : > { %v1986_v54 = vsel %vm16464_vm12, %v10402_v23, %v10403_v40  ;;  %v2000_v8 = vsel %vm16464_vm12, %v10403_v40, %v10397_v14  ;;  %v1984_v4 = vsel %vm16464_vm12, %v10397_v14, %v10398_v26  ;;  %v1985_v48 = vsel %vm16464_vm12, %v10398_v26, %v10402_v23 }
 0x58c   : > { %v2004_v49 = vmax.f32 %v11952_v59, %v1986_v54  ;;  %v2005_v50 = vmax.f32 %v11954_v34, %v2000_v8  ;;  %v2002_v13 = vmax.f32 %v11956_v12, %v1984_v4  ;;  %v2003_v15 = vmax.f32 %v11958_v41, %v1985_v48 }
 0x58d   : > { %v10411_v17 = vpop.permute.xlu1 %10410 }
 0x58e   : > { %v10413_v62 = vunpack.i.h.bf16 %v10411_v17  ;;  %v10412_v29 = vunpack.i.l.bf16 %v10411_v17  ;;  %v10406_v19 = vpop.permute.xlu0 %10405  ;;  %v10419_v33 = vpack.i.bf16 %v2005_v50, %v2004_v49  ;;  %v10414_v44 = vpack.i.bf16 %v2003_v15, %v2002_v13 }
 0x58f   : > { %v10408_v22 = vunpack.i.h.bf16 %v10406_v19  ;;  %v10407_v3 = vunpack.i.l.bf16 %v10406_v19 }
 0x590   : > { %10420 = vrot.lane.b32.xlu1 %v10419_v33, %s16514_s14  ;;  %10415 = vrot.lane.b32.xlu0 %v10414_v44, %s16514_s14  ;;  %v1989_v59 = vsel %vm16464_vm12, %v10412_v29, %v10413_v62 }
 0x591   : > { %v2001_v34 = vsel %vm16464_vm12, %v10413_v62, %v10407_v3  ;;  %v2008_v12 = vmax.f32 %v11968_v51, %v1989_v59  ;;  %v1987_v41 = vsel %vm16464_vm12, %v10407_v3, %v10408_v22  ;;  %v1988_v40 = vsel %vm16464_vm12, %v10408_v22, %v10412_v29 }
 0x592   : > { %v2009_v23 = vmax.f32 %v11977_v5, %v2001_v34  ;;  %v2006_v26 = vmax.f32 %v11980_v61, %v1987_v41  ;;  %v2007_v14 = vmax.f32 %v11991_v32, %v1988_v40 }
 0x594   : > { %v10429_v54 = vpack.i.bf16 %v2009_v23, %v2008_v12  ;;  %v10424_v8 = vpack.i.bf16 %v2007_v14, %v2006_v26 }
 0x596   : > { %10430 = vrot.lane.b32.xlu1 %v10429_v54, %s16514_s14  ;;  %10425 = vrot.lane.b32.xlu0 %v10424_v8, %s16514_s14 }
 0x602   : > { %v10421_v4 = vpop.permute.xlu1 %10420  ;;  %v10416_v48 = vpop.permute.xlu0 %10415 }
 0x603   : > { %v10423_v51 = vunpack.i.h.bf16 %v10421_v4  ;;  %v10422_v17 = vunpack.i.l.bf16 %v10421_v4  ;;  %v10418_v62 = vunpack.i.h.bf16 %v10416_v48  ;;  %v10417_v19 = vunpack.i.l.bf16 %v10416_v48 }
 0x605   : > { %v2037_v29 = vsel %vm16463_vm13, %v10422_v17, %v10423_v51  ;;  %v2035_v5 = vsel %vm16463_vm13, %v10417_v19, %v10418_v62  ;;  %v2036_v61 = vsel %vm16463_vm13, %v10418_v62, %v10422_v17  ;;  %v2051_v32 = vsel %vm16463_vm13, %v10423_v51, %v10417_v19 }
 0x606   : > { %v2055_v33 = vmax.f32 %v2004_v49, %v2037_v29  ;;  %v2053_v44 = vmax.f32 %v2002_v13, %v2035_v5  ;;  %v2054_v22 = vmax.f32 %v2003_v15, %v2036_v61  ;;  %v2056_v3 = vmax.f32 %v2005_v50, %v2051_v32 }
 0x607   : > { %v16638_v62 = vmov 0.0  }
 0x608   : > { %v10431_v59 = vpop.permute.xlu1 %10430  ;;  %v10426_v34 = vpop.permute.xlu0 %10425  ;;  %2189 = vmatprep.mubr.f32.mxu1 %v2054_v22  ;;  %2264 = vmatprep.mubr.f32.mxu0 %v2056_v3 }
 0x609   : > { %v10433_v41 = vunpack.i.h.bf16 %v10431_v59  ;;  %v10432_v40 = vunpack.i.l.bf16 %v10431_v59  ;;  %v10428_v54 = vunpack.i.h.bf16 %v10426_v34  ;;  %v10427_v8 = vunpack.i.l.bf16 %v10426_v34  ;;  %2190 = vmatmul.mubr.f32.vlgmr.msra.gmra.mrb[10].mxu1 %v2053_v44  ;;  %2265 = vmatmul.mubr.f32.vlgmr.msra.gmra.mrb[4].mxu0 %v2055_v33  ;;  %v2374_v34 = vld [vmem:[%s16320_s8] sm:$0xff] }
 0x60b   : > { %v2039_v4 = vsel %vm16463_vm13, %v10428_v54, %v10432_v40  ;;  %v2052_v48 = vsel %vm16463_vm13, %v10433_v41, %v10427_v8  ;;  %v2038_v51 = vsel %vm16463_vm13, %v10427_v8, %v10428_v54  ;;  %v2040_v49 = vsel %vm16463_vm13, %v10432_v40, %v10433_v41  ;;  %v2375_v41 = vld [vmem:[%s16320_s8 + $0x8] sm:$0xff]  ;;  %v2376_v40 = vld [vmem:[%s16320_s8 + $0x10] sm:$0xff]  ;;  %v2377_v8 = vld [vmem:[%s16320_s8 + $0x18] sm:$0xff] }
 0x60c   : > { %v2058_v13 = vmax.f32 %v2007_v14, %v2039_v4  ;;  %v2060_v50 = vmax.f32 %v2009_v23, %v2052_v48  ;;  %v2057_v15 = vmax.f32 %v2006_v26, %v2038_v51  ;;  %v2059_v17 = vmax.f32 %v2008_v12, %v2040_v49  ;;  %v2378_v48 = vld [vmem:[%s16320_s8 + $0x20] sm:$0xff]  ;;  %v2379_v51 = vld [vmem:[%s16320_s8 + $0x28] sm:$0xff] }
 0x60d   : > { %v9712_v54 = vpack.c.bf16 %v2375_v41, %v2374_v34  ;;  %v9715_v4 = vpack.c.bf16 %v2377_v8, %v2376_v40  ;;  %v9718_v49 = vpack.c.bf16 %v2379_v51, %v2378_v48  ;;  %v2392_v34 = vld [vmem:[%s16320_s8 + $0x90] sm:$0xff]  ;;  %v2393_v41 = vld [vmem:[%s16320_s8 + $0x98] sm:$0xff]  ;;  %v2395_v8 = vld [vmem:[%s16320_s8 + $0xa8] sm:$0xff] }
 0x60e   : > { %2194 = vmatprep.mubr.f32.mxu1 %v2058_v13  ;;  %2269 = vmatprep.mubr.f32.mxu0 %v2060_v50  ;;  %v2380_v13 = vld [vmem:[%s16320_s8 + $0x30] sm:$0xff]  ;;  %v2381_v50 = vld [vmem:[%s16320_s8 + $0x38] sm:$0xff]  ;;  %v9739_v40 = vpack.c.bf16 %v2393_v41, %v2392_v34 }
 0x60f   : > { %2195 = vmatmul.mubr.f32.gmra.mrb[12].mxu1 %v2057_v15  ;;  %2270 = vmatmul.mubr.f32.gmra.mrb[6].mxu0 %v2059_v17  ;;  %v9721_v15 = vpack.c.bf16 %v2381_v50, %v2380_v13  ;;  %v2382_v17 = vld [vmem:[%s16320_s8 + $0x40] sm:$0xff]  ;;  %v2397_v13 = vld [vmem:[%s16320_s8 + $0xb8] sm:$0xff] }
 0x610   : > { %2573 = vmatprep.mubr.f32.mxu0 %v16638_v62  ;;  %9713 = vmatpush1.bf16.msra.mxu1 %v9712_v54  ;;  %v2394_v54 = vld [vmem:[%s16320_s8 + $0xa0] sm:$0xff] }
 0x611   : > { %9714 = vmatprep.subr.bf16.mxu1 %v16637_v52 }
 0x614   : > { %9716 = vmatpush1.bf16.msra.mxu1 %v9715_v4  ;;  %v9742_v4 = vpack.c.bf16 %v2395_v8, %v2394_v54 }
 0x615   : > { %9717 = vmatprep.subr.bf16.mxu1 %v16637_v52 }
 0x618   : > { %9719 = vmatpush1.bf16.msra.mxu1 %v9718_v49  ;;  %v2396_v49 = vld [vmem:[%s16320_s8 + $0xb0] sm:$0xff] }
 0x619   : > { %9720 = vmatprep.subr.bf16.mxu1 %v16637_v52  ;;  %v9745_v50 = vpack.c.bf16 %v2397_v13, %v2396_v49 }
 0x61c   : > { %9722 = vmatpush1.bf16.msra.mxu1 %v9721_v15 }
 0x61d   : > { %9723 = vmatprep.subr.bf16.mxu1 %v16637_v52 }
 0x6dc   : > { %v9018_v19 = vpop.f32.mrb[10].mxu1  ;;  %v9056_v29 = vpop.f32.mrb[4].mxu0 }
 0x6dd   : > { %v9019_v5 = vpop.f32.mrb[11].mxu1  ;;  %v9057_v61 = vpop.f32.mrb[5].mxu0 }
 0x6de   : > { %v9020_v32 = vadd.f32 %v9019_v5, %v9018_v19  ;;  %v9058_v33 = vadd.f32 %v9057_v61, %v9056_v29  ;;  %v2383_v19 = vld [vmem:[%s16320_s8 + $0x48] sm:$0xff]  ;;  %v2384_v5 = vld [vmem:[%s16320_s8 + $0x50] sm:$0xff]  ;;  %v2385_v61 = vld [vmem:[%s16320_s8 + $0x58] sm:$0xff] }
 0x6df   : > { %v9724_v29 = vpack.c.bf16 %v2383_v19, %v2382_v17  ;;  %v2398_v17 = vld [vmem:[%s16320_s8 + $0xc0] sm:$0xff] }
 0x6e0   : > { %v2267_v44 = vadd.f32 %v9058_v33, %v9020_v32  ;;  %v9727_v32 = vpack.c.bf16 %v2385_v61, %v2384_v5  ;;  %v2386_v33 = vld [vmem:[%s16320_s8 + $0x60] sm:$0xff] }
 0x6e1   : > { %9725 = vmatpush1.bf16.msra.mxu1 %v9724_v29 }
 0x6e2   : > { %v9021_v22 = vpop.f32.mrb[12].mxu1  ;;  %v9059_v3 = vpop.f32.mrb[6].mxu0  ;;  %2277 = vrot.lane.b32.xlu0 %v2267_v44, %s16509_s18  ;;  %9726 = vmatprep.subr.bf16.mxu1 %v16637_v52  ;;  %v2387_v44 = vld [vmem:[%s16320_s8 + $0x68] sm:$0xff] }
 0x6e3   : > { %v9022_v23 = vpop.f32.mrb[13].mxu1  ;;  %v9060_v12 = vpop.f32.mrb[7].mxu0 }
 0x6e4   : > { %v9023_v26 = vadd.f32 %v9022_v23, %v9021_v22  ;;  %v9061_v14 = vadd.f32 %v9060_v12, %v9059_v3  ;;  %v9730_v22 = vpack.c.bf16 %v2387_v44, %v2386_v33  ;;  %v2388_v3 = vld [vmem:[%s16320_s8 + $0x70] sm:$0xff]  ;;  %v2389_v23 = vld [vmem:[%s16320_s8 + $0x78] sm:$0xff] }
 0x6e5   : > { %9728 = vmatpush1.bf16.msra.mxu1 %v9727_v32  ;;  %v9733_v12 = vpack.c.bf16 %v2389_v23, %v2388_v3  ;;  %v2400_v33 = vld [vmem:[%s16320_s8 + $0xd0] sm:$0xff]  ;;  %v2401_v44 = vld [vmem:[%s16320_s8 + $0xd8] sm:$0xff] }
 0x6e6   : > { %v2272_v59 = vadd.f32 %v9061_v14, %v9023_v26  ;;  %9729 = vmatprep.subr.bf16.mxu1 %v16637_v52  ;;  %v2390_v26 = vld [vmem:[%s16320_s8 + $0x80] sm:$0xff]  ;;  %v2391_v14 = vld [vmem:[%s16320_s8 + $0x88] sm:$0xff]  ;;  %v9751_v23 = vpack.c.bf16 %v2401_v44, %v2400_v33 }
 0x6e7   : > { %v8814_v44 = vld [vmem:[%s10963_s19 + $0x40] sm:$0xff] }
 0x6e8   : > { %2279 = vrot.lane.b32.xlu1 %v2272_v59, %s16509_s18  ;;  %v9736_v59 = vpack.c.bf16 %v2391_v14, %v2390_v26 }
 0x6e9   : > { %9731 = vmatpush1.bf16.msra.mxu1 %v9730_v22 }
 0x6ea   : > { %9732 = vmatprep.subr.bf16.mxu1 %v16637_v52 }
 0x6ed   : > { %9734 = vmatpush1.bf16.msra.mxu1 %v9733_v12 }
 0x6ee   : > { %9735 = vmatprep.subr.bf16.mxu1 %v16637_v52 }
 0x6f1   : > { %9737 = vmatpush1.bf16.msra.mxu1 %v9736_v59 }
 0x6f2   : > { %9738 = vmatprep.subr.bf16.mxu1 %v16637_v52 }
 0x6f5   : > { %9740 = vmatpush1.bf16.msra.mxu1 %v9739_v40 }
 0x6f6   : > { %9741 = vmatprep.subr.bf16.mxu1 %v16637_v52 }
 0x6f9   : > { %9743 = vmatpush1.bf16.msra.mxu1 %v9742_v4 }
 0x6fa   : > { %9744 = vmatprep.subr.bf16.mxu1 %v16637_v52 }
 0x6fd   : > { %9746 = vmatpush1.bf16.msra.mxu1 %v9745_v50 }
 0x6fe   : > { %9747 = vmatprep.subr.bf16.mxu1 %v16637_v52 }
 0x754   : > { %v2278_v48 = vpop.permute.xlu0 %2277 }
 0x755   : > { %v2284_v51 = vsel %vm2283_vm14, %v11932_v56, %v2278_v48  ;;  %v2399_v56 = vld [vmem:[%s16320_s8 + $0xc8] sm:$0xff] }
 0x756   : > { %v2289_v15 = vrot.slane %v2284_v51, 5  ;;  %v9748_v29 = vpack.c.bf16 %v2399_v56, %v2398_v17 }
 0x758   : > { %v12301_v5 = vsel %vm16397_vm15, 0.0, %v2289_v15  ;;  %9749 = vmatpush1.bf16.msra.mxu1 %v9748_v29  ;;  %v8815_v29 = vld [vmem:[%s10963_s19 + $0x48] sm:$0xff] }
 0x759   : > { %9750 = vmatprep.subr.bf16.mxu1 %v16637_v52  ;;  %v2299_v26 = vrot.slane %v12301_v5, 1  ;;  %v2310_v34 = vrot.slane %v12301_v5, 2  ;;  %v2352_v49 = vrot.slane %v12301_v5, 6  ;;  %v16647_v52 = vld [vmem:[#allocation24_spill] sm:$0xff] }
 0x75a   : > { %v2280_v19 = vpop.permute.xlu1 %2279 }
 0x75b   : > { %v2285_v61 = vsel %vm2283_vm14, %v11934_v55, %v2280_v19  ;;  %v2341_v55 = vrot.slane %v12301_v5, 5 }
 0x75c   : > { %v2290_v32 = vrot.slane %v2285_v61, 5  ;;  %9752 = vmatpush1.bf16.msra.mxu1 %v9751_v23 }
 0x75e   : > { %v12313_v22 = vsel %vm16397_vm15, %v2289_v15, %v2290_v32  ;;  %v12316_v3 = vsel %vm16397_vm15, %v2290_v32, 0.0  ;;  %v2322_v32 = vrot.slane %v12301_v5, 3 }
 0x75f   : > { %v2342_v12 = vrot.slane %v12313_v22, 5  ;;  %v2300_v14 = vrot.slane %v12313_v22, 1  ;;  %v2302_v59 = vrot.slane %v12316_v3, 1  ;;  %v2311_v41 = vrot.slane %v12313_v22, 2 }
 0x760   : > { %v2313_v40 = vrot.slane %v12316_v3, 2  ;;  %v2353_v48 = vrot.slane %v12313_v22, 6  ;;  %v2344_v17 = vrot.slane %v12316_v3, 5  ;;  %v2323_v19 = vrot.slane %v12313_v22, 3 }
 0x761   : > { %v2343_v54 = vsel %vm16397_vm15, %v2341_v55, %v2342_v12  ;;  %v2301_v8 = vsel %vm580_vm1, %v2299_v26, %v2300_v14  ;;  %v2303_v4 = vsel %vm580_vm1, %v2300_v14, %v2302_v59  ;;  %v2312_v13 = vsel %vm662_vm2, %v2310_v34, %v2311_v41  ;;  %v8817_v14 = vld [vmem:[%s10963_s19 + $0x58] sm:$0xff]  ;;  %v8816_v34 = vld [vmem:[%s10963_s19 + $0x50] sm:$0xff] }
 0x762   : > { %2346 = vrot.lane.b32.xlu1 %v2343_v54, %s16507_s24  ;;  %v10434_v51 = vpack.i.bf16 %v2303_v4, %v2301_v8  ;;  %v2314_v50 = vsel %vm662_vm2, %v2311_v41, %v2313_v40  ;;  %v2354_v15 = vsel %vm1393_vm6, %v2352_v49, %v2353_v48  ;;  %v2345_v61 = vsel %vm16397_vm15, %v2342_v12, %v2344_v17  ;;  %v8819_v8 = vld [vmem:[%s10963_s19 + $0x68] sm:$0xff]  ;;  %v8818_v49 = vld [vmem:[%s10963_s19 + $0x60] sm:$0xff] }
 0x763   : > { %v10439_v56 = vpack.i.bf16 %v2314_v50, %v2312_v13  ;;  %v2325_v33 = vrot.slane %v12316_v3, 3  ;;  %v2324_v55 = vsel %vm16396_vm7, %v2322_v32, %v2323_v19  ;;  %v2355_v23 = vrot.slane %v12316_v3, 6 }
 0x764   : > { %10435 = vrot.lane.b32.xlu0 %v10434_v51, %s16507_s24  ;;  %v2697_v26 = vrot.slane %v8815_v29, 7  ;;  %v2696_v12 = vrot.slane %v8814_v44, 7  ;;  %v2699_v54 = vrot.slane %v8817_v14, 7  ;;  %v2698_v51 = vrot.slane %v8816_v34, 7 }
 0x765   : > { %v2326_v59 = vsel %vm16396_vm7, %v2323_v19, %v2325_v33  ;;  %v2356_v41 = vsel %vm1393_vm6, %v2353_v48, %v2355_v23  ;;  %v2702_v50 = vrot.slane %v8819_v8, 7  ;;  %v8821_v48 = vld [vmem:[%s10963_s19 + $0x78] sm:$0xff]  ;;  %v2700_v17 = vrot.slane %v8818_v49, 7  ;;  %v16641_v49 = vld [vmem:[#allocation26_spill] sm:$0xff] }
 0x766   : > { %2357 = vrot.lane.b32.xlu1 %v2354_v15, %s16461_s17  ;;  %v2721_v40 = vsel %vm408_vm0, 0.0, %v2697_v26  ;;  %v12358_v4 = vsel %vm408_vm0, 0.0, %v2696_v12  ;;  %v12363_v13 = vsel %vm408_vm0, 0.0, %v2699_v54  ;;  %v12369_v15 = vsel %vm408_vm0, 0.0, %v2698_v51 }
 0x767   : > { %v12375_v19 = vsel %vm408_vm0, %v2697_v26, %v2702_v50  ;;  %v2706_v29 = vrot.slane %v8821_v48, 7  ;;  %v12400_v23 = vsel %vm408_vm0, %v2700_v17, 0.0  ;;  %v2335_v34 = vrot.slane %v12313_v22, 4  ;;  %v16642_v48 = vld [vmem:[#allocation6_spill] sm:$0xff] }
 0x768   : > { %10440 = vrot.lane.b32.xlu0 %v10439_v56, %s16461_s17  ;;  %v8820_v56 = vld [vmem:[%s10963_s19 + $0x70] sm:$0xff]  ;;  %vm2333_vm7 = vcmask 1043456   ;;  %vm2365_vm15 = vcmask 523264   ;;  %v12461_v11 = vmul.f32 %v12363_v13, %v16644_v27  ;;  %v12470_v2 = vmul.f32 %v12369_v15, %v16646_v31 }
 0x769   : > { %v2704_v32 = vrot.slane %v8820_v56, 7  ;;  %v12385_v33 = vsel %vm408_vm0, %v2699_v54, %v2706_v29  ;;  %v12405_v26 = vsel %vm408_vm0, %v2706_v29, 0.0  ;;  %v16640_v54 = vld [vmem:[#allocation11_spill] sm:$0xff]  ;;  %v12476_v62 = vmul.f32 %v12358_v4, %v16647_v52 }
 0x76a   : > { %2348 = vrot.lane.b32.xlu1 %v2345_v61, %s16507_s24  ;;  %v12380_v61 = vsel %vm408_vm0, %v2696_v12, %v2700_v17  ;;  %v12444_v8 = vmul.f32 %v2721_v40, %v16640_v54  ;;  %v12452_v17 = vmul.f32 %v12358_v4, %v16642_v48  ;;  %v12486_v25 = vmul.f32 %v12363_v13, %v16649_v47 }
 0x76b   : > { %v12390_v44 = vsel %vm408_vm0, %v2698_v51, %v2704_v32  ;;  %v12410_v14 = vsel %vm408_vm0, %v2704_v32, 0.0  ;;  %v2334_v51 = vrot.slane %v12301_v5, 4  ;;  %v16643_v32 = vld [vmem:[#allocation7_spill] sm:$0xff]  ;;  %v12506_v16 = vmul.f32 %v12369_v15, %v16650_v18 }
 0x76c   : > { %2327 = vrot.lane.b32.xlu0 %v2324_v55, %s16459_s25  ;;  %v12395_v55 = vsel %vm408_vm0, %v2702_v50, 0.0  ;;  %v12448_v50 = vmul.f32 %v2721_v40, %v16641_v49  ;;  %v12457_v24 = vmul.f32 %v12358_v4, %v16643_v32  ;;  %v2337_v57 = vrot.slane %v12316_v3, 4 }
 0x76d   : > { %v2336_v42 = vsel %vm2333_vm7, %v2334_v51, %v2335_v34  ;;  %v12480_v51 = vmul.f32 %v12369_v15, %v16648_v38  ;;  %v12522_v28 = vmul.f32 %v12380_v61, %v16647_v52 }
 0x76e   : > { %2329 = vrot.lane.b32.xlu1 %v2326_v59, %s16459_s25  ;;  %v16639_v59 = vld [vmem:[#allocation5_spill] sm:$0xff] }
 0x76f   : > { %v12440_v12 = vmul.f32 %v2721_v40, %v16639_v59  ;;  %16651 = vst [vmem:[#allocation2_spill] sm:$0xff] %v12522_v28 }
 0x770   : > { %2359 = vrot.lane.b32.xlu0 %v2356_v41, %s16461_s17 }
 0x772   : > { %2738 = vrot.lane.b32.xlu1 %v2721_v40, %s16507_s24 }
 0x774   : > { %2736 = vrot.lane.b32.xlu0 %v12358_v4, %s16507_s24 }
 0x776   : > { %2742 = vrot.lane.b32.xlu1 %v12363_v13, %s16507_s24 }
 0x778   : > { %2740 = vrot.lane.b32.xlu0 %v12369_v15, %s16507_s24 }
 0x77a   : > { %2746 = vrot.lane.b32.xlu1 %v12375_v19, %s16507_s24 }
 0x77c   : > { %2744 = vrot.lane.b32.xlu0 %v12380_v61, %s16507_s24 }
 0x77e   : > { %2750 = vrot.lane.b32.xlu1 %v12385_v33, %s16507_s24 }
 0x780   : > { %2748 = vrot.lane.b32.xlu0 %v12390_v44, %s16507_s24 }
 0x782   : > { %2754 = vrot.lane.b32.xlu1 %v12395_v55, %s16507_s24 }
 0x784   : > { %2752 = vrot.lane.b32.xlu0 %v12400_v23, %s16507_s24 }
 0x786   : > { %2758 = vrot.lane.b32.xlu1 %v12405_v26, %s16507_s24 }
 0x788   : > { %2756 = vrot.lane.b32.xlu0 %v12410_v14, %s16507_s24 }
 0x78a   : > { %3058 = vrot.lane.b32.xlu1 %v2721_v40, %s16459_s25  ;;  %v16645_v40 = vld [vmem:[#allocation10_spill] sm:$0xff] }
 0x78b   : > { %v12466_v63 = vmul.f32 %v12363_v13, %v16645_v40 }
 0x78c   : > { %3056 = vrot.lane.b32.xlu0 %v12358_v4, %s16459_s25  ;;  %v12494_v4 = vmul.f32 %v12375_v19, %v16640_v54 }
 0x78e   : > { %3062 = vrot.lane.b32.xlu1 %v12363_v13, %s16459_s25 }
 0x790   : > { %3060 = vrot.lane.b32.xlu0 %v12369_v15, %s16459_s25 }
 0x792   : > { %3066 = vrot.lane.b32.xlu1 %v12375_v19, %s16459_s25 }
 0x794   : > { %3064 = vrot.lane.b32.xlu0 %v12380_v61, %s16459_s25 }
 0x796   : > { %3070 = vrot.lane.b32.xlu1 %v12385_v33, %s16459_s25 }
 0x798   : > { %3068 = vrot.lane.b32.xlu0 %v12390_v44, %s16459_s25 }
 0x79a   : > { %3074 = vrot.lane.b32.xlu1 %v12395_v55, %s16459_s25 }
 0x79c   : > { %3072 = vrot.lane.b32.xlu0 %v12400_v23, %s16459_s25 }
 0x79e   : > { %3078 = vrot.lane.b32.xlu1 %v12405_v26, %s16459_s25 }
 0x7a0   : > { %3076 = vrot.lane.b32.xlu0 %v12410_v14, %s16459_s25 }
 0x7d4   : > { %v2347_v41 = vpop.permute.xlu1 %2346 }
 0x7d5   : > { %v2370_v29 = vsel %vm473_vm3, %v2336_v42, %v2347_v41  ;;  %v12490_v42 = vmul.f32 %v12375_v19, %v16639_v59 }
 0x7d6   : > { %v10436_v56 = vpop.permute.xlu0 %10435 }
 0x7d7   : > { %v10437_v20 = vunpack.i.l.bf16 %v10436_v56  ;;  %v2964_v9 = vrot.slane %v12490_v42, 1  ;;  %v10438_v10 = vunpack.i.h.bf16 %v10436_v56  ;;  %v12532_v42 = vmul.f32 %v12385_v33, %v16649_v47 }
 0x7d8   : > { %v2358_v21 = vpop.permute.xlu1 %2357  ;;  %v2945_v56 = vmul.f32 %v12395_v55, %v16639_v59  ;;  %v3005_v47 = vmul.f32 %v12395_v55, %v16640_v54  ;;  %v3007_v55 = vmul.f32 %v12405_v26, %v16645_v40 }
 0x7d9   : > { %v2372_v43 = vsel %vm2365_vm15, %v2370_v29, %v2358_v21  ;;  %v12501_v29 = vmul.f32 %v12380_v61, %v16642_v48  ;;  %v12514_v21 = vmul.f32 %v12375_v19, %v16641_v49  ;;  %v12527_v19 = vmul.f32 %v12380_v61, %v16643_v32  ;;  %16652 = vst [vmem:[#allocation52_spill] sm:$0xff] %v12532_v42 }
 0x7da   : > { %8808 = vmatprep.mubr.msk.f32.mxu1 %vm922_vm4, %v2372_v43  ;;  %v10441_v41 = vpop.permute.xlu0 %10440  ;;  %v2363_v43 = vsel %vm473_vm3, %v12301_v5, %v10437_v20  ;;  %v3003_v61 = vmul.f32 %v12385_v33, %v16645_v40  ;;  %v3002_v5 = vmul.f32 %v12390_v44, %v16648_v38  ;;  %v2974_v49 = vrot.slane %v2945_v56, 1 }
 0x7db   : > { %v10442_v13 = vunpack.i.l.bf16 %v10441_v41  ;;  %v10443_v36 = vunpack.i.h.bf16 %v10441_v41  ;;  %v2946_v41 = vmul.f32 %v12410_v14, %v16646_v31 }
 0x7dc   : > { %v2349_v45 = vpop.permute.xlu1 %2348 }
 0x7dd   : > { %v2366_v53 = vsel %vm2365_vm15, %v2363_v43, %v10442_v13  ;;  %v2943_v13 = vmul.f32 %v12385_v33, %v16644_v27  ;;  %v2947_v43 = vmul.f32 %v12405_v26, %v16644_v27  ;;  %v2364_v33 = vsel %vm473_vm3, %v12313_v22, %v10438_v10 }
 0x7de   : > { %v2328_v20 = vpop.permute.xlu0 %2327  ;;  %v2944_v27 = vmul.f32 %v12400_v23, %v16642_v48  ;;  %v3021_v22 = vrot.slane %v12527_v19, 2  ;;  %v2976_v48 = vrot.slane %v2946_v41, 1  ;;  %v3027_v26 = vrot.slane %v3002_v5, 2 }
 0x7df   : > { %v2368_v3 = vsel %vm922_vm4, %v2366_v53, %v2328_v20  ;;  %v2942_v53 = vmul.f32 %v12390_v44, %v16646_v31  ;;  %v2338_v20 = vsel %vm2333_vm7, %v2335_v34, %v2337_v57  ;;  %v3004_v31 = vmul.f32 %v12400_v23, %v16643_v32 }
 0x7e0   : > { %v2330_v15 = vpop.permute.xlu1 %2329  ;;  %2473 = vmatmul.mubr.f32.vlgmr.msra.gmra.mrb[14].mxu1 %v2368_v3  ;;  %v2371_v52 = vsel %vm473_vm3, %v2338_v20, %v2349_v45  ;;  %v2367_v34 = vsel %vm2365_vm15, %v2364_v33, %v10443_v36  ;;  %v2978_v59 = vrot.slane %v2947_v43, 1  ;;  %v2970_v20 = vrot.slane %v2943_v13, 1 }
 0x7e1   : > { %v2369_v10 = vsel %vm922_vm4, %v2367_v34, %v2330_v15  ;;  %v3006_v23 = vmul.f32 %v12410_v14, %v16648_v38  ;;  %v12569_v36 = vmul.f32 %v12390_v44, %v16650_v18  ;;  %v2967_v56 = vrot.slane %v2942_v53, 1  ;;  %v16660_v53 = vld [vmem:[#allocation31_spill] sm:$0xff] }
 0x7e2   : > { %v2360_v3 = vpop.permute.xlu0 %2359  ;;  %v2972_v33 = vrot.slane %v2944_v27, 1  ;;  %v12573_v19 = vsel %vm580_vm1, %v2964_v9, %v2974_v49  ;;  %v12576_v13 = vsel %vm580_vm1, %v2970_v20, %v2978_v59  ;;  %v3038_v14 = vrot.slane %v3007_v55, 2 }
 0x7e3   : > { %v2373_v57 = vsel %vm2365_vm15, %v2371_v52, %v2360_v3  ;;  %v3030_v52 = vrot.slane %v3003_v61, 2  ;;  %16653 = vst [vmem:[#allocation53_spill] sm:$0xff] %v12569_v36  ;;  %v3034_v3 = vrot.slane %v3005_v47, 2  ;;  %16654 = vst [vmem:[#allocation54_spill] sm:$0xff] %v12573_v19  ;;  %v12580_v44 = vsel %vm580_vm1, %v2967_v56, %v2976_v48 }
 0x7e4   : > { %v2739_v45 = vpop.permute.xlu1 %2738  ;;  %8809 = vmatprep.mubr.msk.f32.mxu1 %vm922_vm4, %v2373_v57  ;;  %v3032_v57 = vrot.slane %v3004_v31, 2  ;;  %16655 = vst [vmem:[#allocation55_spill] sm:$0xff] %v12576_v13  ;;  %16656 = vst [vmem:[#allocation56_spill] sm:$0xff] %v12580_v44  ;;  %v3036_v5 = vrot.slane %v3006_v23, 2  ;;  %v16657_v47 = vrot.slane %v12501_v29, 1  ;;  %v16658_v31 = vrot.slane %v12452_v17, 1 }
 0x7e5   : > { %2478 = vmatmul.mubr.f32.gmra.mrb[16].mxu1 %v2369_v10  ;;  %v16659_v49 = vrot.slane %v12457_v24, 2  ;;  %v16661_v10 = vrot.slane %v12461_v11, 1  ;;  %v16662_v23 = vrot.slane %v12466_v63, 2  ;;  %v16667_v11 = vrot.slane %v12494_v4, 2 }
 0x7e6   : > { %v2737_v43 = vpop.permute.xlu0 %2736  ;;  %v12587_v27 = vsel %vm580_vm1, %v16658_v31, %v16657_v47  ;;  %v16664_v47 = vld [vmem:[#allocation34_spill] sm:$0xff]  ;;  %v12651_v4 = vsel %vm662_vm2, %v3027_v26, %v3036_v5 }
 0x7e7   : > { %v2781_v15 = vsel %vm473_vm3, 0.0, %v2737_v43  ;;  %v2760_v61 = vsel %vm473_vm3, %v2737_v43, %v2739_v45  ;;  %v12592_v59 = vsel %vm662_vm2, %v16659_v49, %v3021_v22  ;;  %v12598_v48 = vsel %vm580_vm1, %v16661_v10, %v2970_v20  ;;  %16681 = vst [vmem:[#allocation64_spill] sm:$0xff] %v12651_v4 }
 0x7e8   : > { %v2743_v41 = vpop.permute.xlu1 %2742  ;;  %v2800_v34 = vmul.f32 %v2781_v15, %v16660_v53  ;;  %v12603_v17 = vsel %vm662_vm2, %v16662_v23, %v3030_v52  ;;  %v16663_v43 = vrot.slane %v12440_v12, 1  ;;  %v2801_v31 = vmul.f32 %v2760_v61, %v16664_v47 }
 0x7e9   : > { %v16665_v49 = vrot.slane %v12470_v2, 1  ;;  %v16668_v20 = vrot.slane %v12444_v8, 2  ;;  %v16670_v10 = vrot.slane %v12480_v51, 2  ;;  %v16672_v2 = vrot.slane %v12501_v29, 1  ;;  %v16679_v29 = vld [vmem:[#allocation28_spill] sm:$0xff] }
 0x7ea   : > { %v2741_v55 = vpop.permute.xlu0 %2740  ;;  %v12608_v24 = vsel %vm580_vm1, %v16663_v43, %v2964_v9  ;;  %v12635_v43 = vsel %vm662_vm2, %v3021_v22, %v3032_v57  ;;  %v16675_v8 = vmov %v16667_v11  ;;  %v2860_v51 = vmul.f32 %v2781_v15, %v11257_v30 }
 0x7eb   : > { %v12614_v18 = vsel %vm580_vm1, %v16665_v49, %v2967_v56  ;;  %v12621_v63 = vsel %vm662_vm2, %v16668_v20, %v16667_v11  ;;  %v12626_v12 = vsel %vm662_vm2, %v16670_v10, %v3027_v26  ;;  %v2761_v9 = vsel %vm473_vm3, %v2739_v45, %v2741_v55  ;;  %16674 = vst [vmem:[#allocation61_spill] sm:$0xff] %v12635_v43  ;;  %v16677_v11 = vld [vmem:[#allocation35_spill] sm:$0xff] }
 0x7ec   : > { %16666 = vst [vmem:[#allocation57_spill] sm:$0xff] %v12614_v18  ;;  %16669 = vst [vmem:[#allocation58_spill] sm:$0xff] %v12621_v63  ;;  %v2747_v23 = vpop.permute.xlu1 %2746  ;;  %v12632_v56 = vsel %vm580_vm1, %v16672_v2, %v2972_v33  ;;  %v12640_v49 = vsel %vm662_vm2, %v16675_v8, %v3034_v3  ;;  %v2861_v20 = vmul.f32 %v2760_v61, %v16677_v11  ;;  %v16680_v2 = vld [vmem:[#allocation32_spill] sm:$0xff]  ;;  %v2824_v22 = vrot.slane %v2800_v34, 1 }
 0x7ed   : > { %16671 = vst [vmem:[#allocation59_spill] sm:$0xff] %v12626_v12  ;;  %16673 = vst [vmem:[#allocation60_spill] sm:$0xff] %v12632_v56  ;;  %v2762_v45 = vsel %vm473_vm3, %v2741_v55, %v2743_v41  ;;  %v12646_v10 = vsel %vm662_vm2, %v3030_v52, %v3038_v14  ;;  %v2784_v33 = vmul.f32 %v2781_v15, %v16679_v29  ;;  %v2827_v3 = vrot.slane %v2801_v31, 1  ;;  %v16682_v31 = vld [vmem:[#allocation33_spill] sm:$0xff] }
 0x7ee   : > { %16676 = vst [vmem:[#allocation62_spill] sm:$0xff] %v12640_v49  ;;  %16678 = vst [vmem:[#allocation63_spill] sm:$0xff] %v12646_v10  ;;  %v2785_v38 = vmul.f32 %v2760_v61, %v16680_v2  ;;  %v2745_v57 = vpop.permute.xlu0 %2744  ;;  %v2802_v8 = vmul.f32 %v2761_v9, %v11287_v60  ;;  %v2803_v41 = vmul.f32 %v2762_v45, %v11269_v46  ;;  %v2884_v34 = vrot.slane %v2860_v51, 2 }
 0x7ef   : > { %v2763_v40 = vsel %vm473_vm3, %v2745_v57, %v2747_v23  ;;  %v2782_v32 = vsel %vm473_vm3, 0.0, %v2745_v57  ;;  %v12658_v52 = vmul.f32 %v2761_v9, %v11294_v0  ;;  %v2887_v26 = vrot.slane %v2861_v20, 2 }
 0x7f0   : > { %v2804_v15 = vmul.f32 %v2782_v32, %v16660_v53  ;;  %v2805_v14 = vmul.f32 %v2763_v40, %v16664_v47  ;;  %v2751_v61 = vpop.permute.xlu1 %2750  ;;  %v2863_v5 = vmul.f32 %v2762_v45, %v11272_v37  ;;  %v12664_v55 = vmul.f32 %v2782_v32, %v11257_v30 }
 0x7f1   : > { %v2786_v54 = vmul.f32 %v2761_v9, %v16682_v31  ;;  %v12668_v49 = vmul.f32 %v2763_v40, %v16677_v11  ;;  %v2787_v43 = vmul.f32 %v2762_v45, %v11266_v35  ;;  %v2830_v44 = vrot.slane %v2802_v8, 1 }
 0x7f2   : > { %v2825_v57 = vrot.slane %v2804_v15, 1  ;;  %v2828_v4 = vrot.slane %v2805_v14, 1  ;;  %v2749_v10 = vpop.permute.xlu0 %2748  ;;  %v2833_v20 = vrot.slane %v2803_v41, 1  ;;  %v16442_v9 = vrot.slane %v12664_v55, 2 }
 0x7f3   : > { %v2764_v19 = vsel %vm473_vm3, %v2747_v23, %v2749_v10  ;;  %v12673_v51 = vsel %vm473_vm3, %v2749_v10, %v2751_v61  ;;  %v2893_v14 = vrot.slane %v2863_v5, 2  ;;  %v2788_v12 = vmul.f32 %v2782_v32, %v16679_v29 }
 0x7f4   : > { %v2826_v56 = vsel %vm580_vm1, %v2824_v22, %v2825_v57  ;;  %v2755_v15 = vpop.permute.xlu1 %2754  ;;  %v2789_v28 = vmul.f32 %v2763_v40, %v16680_v2  ;;  %v2829_v45 = vsel %vm580_vm1, %v2827_v3, %v2828_v4  ;;  %v2888_v23 = vrot.slane %v12668_v49, 2 }
 0x7f5   : > { %v2806_v10 = vmul.f32 %v2764_v19, %v11287_v60  ;;  %v2807_v8 = vmul.f32 %v12673_v51, %v11269_v46  ;;  %v12687_v22 = vmul.f32 %v12673_v51, %v11272_v37  ;;  %v2852_v61 = vadd.f32 %v2826_v56, %v2784_v33 }
 0x7f6   : > { %v2753_v41 = vpop.permute.xlu0 %2752  ;;  %v2790_v5 = vmul.f32 %v2764_v19, %v16682_v31  ;;  %v2853_v3 = vadd.f32 %v2829_v45, %v2785_v38  ;;  %v2886_v49 = vsel %vm662_vm2, %v2884_v34, %v16442_v9  ;;  %v2866_v63 = vmul.f32 %v2764_v19, %v11294_v0 }
 0x7f7   : > { %v2766_v32 = vsel %vm473_vm3, %v2753_v41, %v2755_v15  ;;  %v2783_v40 = vsel %vm473_vm3, 0.0, %v2753_v41  ;;  %v2831_v13 = vrot.slane %v2806_v10, 1  ;;  %v2834_v2 = vrot.slane %v2807_v8, 1 }
 0x7f8   : > { %v2759_v29 = vpop.permute.xlu1 %2758  ;;  %v2808_v42 = vmul.f32 %v2783_v40, %v16660_v53  ;;  %v2809_v56 = vmul.f32 %v2766_v32, %v16664_v47  ;;  %v2869_v33 = vmul.f32 %v2766_v32, %v16677_v11  ;;  %v2889_v31 = vsel %vm662_vm2, %v2887_v26, %v2888_v23 }
 0x7f9   : > { %v2835_v41 = vsel %vm580_vm1, %v2833_v20, %v2834_v2  ;;  %v2894_v38 = vrot.slane %v12687_v22, 2  ;;  %v2868_v45 = vmul.f32 %v2783_v40, %v11257_v30  ;;  %v2912_v10 = vadd.f32 %v2886_v49, %v2852_v61 }
 0x7fa   : > { %v2757_v34 = vpop.permute.xlu0 %2756  ;;  %v2832_v8 = vsel %vm580_vm1, %v2830_v44, %v2831_v13  ;;  %v2836_v9 = vrot.slane %v2808_v42, 1  ;;  %v2838_v19 = vrot.slane %v2809_v56, 1  ;;  %v2855_v36 = vadd.f32 %v2835_v41, %v2787_v43 }
 0x7fb   : > { %v2898_v53 = vrot.slane %v2869_v33, 2  ;;  %v2767_v47 = vsel %vm473_vm3, %v2755_v15, %v2757_v34  ;;  %v2768_v32 = vsel %vm473_vm3, %v2757_v34, %v2759_v29  ;;  %v2913_v26 = vadd.f32 %v2889_v31, %v2853_v3 }
 0x7fc   : > { %v3059_v11 = vpop.permute.xlu1 %3058  ;;  %v2891_v18 = vrot.slane %v2866_v63, 2  ;;  %v2837_v20 = vsel %vm580_vm1, %v2825_v57, %v2836_v9  ;;  %v2839_v22 = vsel %vm580_vm1, %v2828_v4, %v2838_v19  ;;  %v2854_v40 = vadd.f32 %v2832_v8, %v2786_v54 }
 0x7fd   : > { %v2895_v61 = vsel %vm662_vm2, %v2893_v14, %v2894_v38  ;;  %v2857_v49 = vadd.f32 %v2839_v22, %v2789_v28  ;;  %v2896_v44 = vrot.slane %v2868_v45, 2  ;;  %v2810_v43 = vmul.f32 %v2767_v47, %v11287_v60 }
 0x7fe   : > { %v3057_v42 = vpop.permute.xlu0 %3056  ;;  %v2811_v56 = vmul.f32 %v2768_v32, %v11269_v46  ;;  %v2870_v15 = vmul.f32 %v2767_v47, %v11294_v0  ;;  %v2871_v29 = vmul.f32 %v2768_v32, %v11272_v37  ;;  %v2915_v31 = vadd.f32 %v2895_v61, %v2855_v36 }
 0x7ff   : > { %v2856_v63 = vadd.f32 %v2837_v20, %v2788_v12  ;;  %v2899_v57 = vsel %vm662_vm2, %v2888_v23, %v2898_v53  ;;  %v2928_v4 = vadd.f32 %v12476_v62, %v2912_v10  ;;  %v2840_v9 = vrot.slane %v2810_v43, 1  ;;  %v16685_v43 = vld [vmem:[#allocation37_spill] sm:$0xff] }
 0x800   : > { %v2917_v54 = vadd.f32 %v2899_v57, %v2857_v49  ;;  %v2842_v14 = vrot.slane %v2811_v56, 1  ;;  %v3080_v28 = vsel %vm922_vm4, %v3057_v42, %v3059_v11  ;;  %v3063_v3 = vpop.permute.xlu1 %3062  ;;  %v2791_v33 = vmul.f32 %v12673_v51, %v11266_v35  ;;  %v16687_v57 = vld [vmem:[#allocation38_spill] sm:$0xff] }
 0x801   : > { %v16683_v41 = vrot.slane %v12658_v52, 2  ;;  %v2900_v45 = vrot.slane %v2870_v15, 2  ;;  %v2902_v36 = vrot.slane %v2871_v29, 2  ;;  %v2841_v53 = vsel %vm580_vm1, %v2831_v13, %v2840_v9  ;;  %v16686_v29 = vld [vmem:[#allocation57_spill] sm:$0xff] }
 0x802   : > { %v2843_v62 = vsel %vm580_vm1, %v2834_v2, %v2842_v14  ;;  %v2988_v23 = vadd.f32 %v12587_v27, %v2928_v4  ;;  %v3061_v34 = vpop.permute.xlu0 %3060  ;;  %v16684_v10 = vrot.slane %v12664_v55, 2  ;;  %v2858_v19 = vadd.f32 %v2841_v53, %v2790_v5  ;;  %v16688_v4 = vld [vmem:[#allocation53_spill] sm:$0xff]  ;;  %v16689_v14 = vld [vmem:[#allocation40_spill] sm:$0xff] }
 0x803   : > { %v2892_v47 = vsel %vm662_vm2, %v16683_v41, %v2891_v18  ;;  %v2859_v51 = vadd.f32 %v2843_v62, %v2791_v33  ;;  %v12728_v52 = vmul.f32 %v3080_v28, %v11300_v6  ;;  %v2933_v20 = vadd.f32 %v12514_v21, %v2917_v54  ;;  %v16690_v33 = vld [vmem:[#allocation52_spill] sm:$0xff] }
 0x804   : > { %v2914_v12 = vadd.f32 %v2892_v47, %v2854_v40  ;;  %v2897_v8 = vsel %vm662_vm2, %v16684_v10, %v2896_v44  ;;  %v2931_v22 = vadd.f32 %v12486_v25, %v2915_v31  ;;  %v2929_v13 = vadd.f32 %v12448_v50, %v2913_v26  ;;  %v3067_v44 = vpop.permute.xlu1 %3066  ;;  %v16691_v47 = vld [vmem:[#allocation58_spill] sm:$0xff] }
 0x805   : > { %v2916_v32 = vadd.f32 %v2897_v8, %v2856_v63  ;;  %v2901_v2 = vsel %vm662_vm2, %v2891_v18, %v2900_v45  ;;  %v2903_v27 = vsel %vm662_vm2, %v2894_v38, %v2902_v36  ;;  %v3104_v55 = vmul.f32 %v3080_v28, %v11297_v1  ;;  %v16692_v45 = vld [vmem:[#allocation39_spill] sm:$0xff] }
 0x806   : > { %v3101_v40 = vsel %vm922_vm4, %v3063_v3, 0.0  ;;  %v2918_v5 = vadd.f32 %v2901_v2, %v2858_v19  ;;  %v3048_v61 = vadd.f32 %v12592_v59, %v2988_v23  ;;  %v12739_v49 = vmul.f32 %v3080_v28, %v11303_v58  ;;  %v3065_v15 = vpop.permute.xlu0 %3064  ;;  %v16695_v23 = vld [vmem:[#allocation2_spill] sm:$0xff] }
 0x807   : > { %v2991_v21 = vadd.f32 %v12598_v48, %v2931_v22  ;;  %v2919_v25 = vadd.f32 %v2903_v27, %v2859_v51  ;;  %v3144_v50 = vrot.slane %v12728_v52, 1  ;;  %v2930_v18 = vadd.f32 %v12506_v16, %v2914_v12  ;;  %v16696_v52 = vld [vmem:[#allocation59_spill] sm:$0xff] }
 0x808   : > { %v2989_v38 = vadd.f32 %v12608_v24, %v2929_v13  ;;  %v3107_v26 = vmul.f32 %v3101_v40, %v16592_v39  ;;  %v3123_v42 = vmul.f32 %v3101_v40, %v11309_v7  ;;  %v12748_v56 = vmul.f32 %v3101_v40, %v16685_v43  ;;  %v3071_v8 = vpop.permute.xlu1 %3070  ;;  %v16697_v27 = vld [vmem:[#allocation43_spill] sm:$0xff] }
 0x809   : > { %v3081_v59 = vsel %vm922_vm4, %v3059_v11, %v3061_v34  ;;  %v3051_v48 = vadd.f32 %v12603_v17, %v2991_v21  ;;  %v2990_v31 = vadd.f32 %v16686_v29, %v2930_v18  ;;  %v3082_v63 = vsel %vm922_vm4, %v3061_v34, %v3063_v3  ;;  %v16693_v17 = vld [vmem:[#allocation41_spill] sm:$0xff]  ;;  %v16694_v3 = vld [vmem:[#allocation42_spill] sm:$0xff]  ;;  %v16698_v21 = vld [vmem:[#allocation60_spill] sm:$0xff] }
 0x80a   : > { %v3105_v16 = vmul.f32 %v3081_v59, %v16687_v57  ;;  %v2934_v24 = vadd.f32 %v16688_v4, %v2918_v5  ;;  %v3112_v54 = vadd.f32 %v3104_v55, %v3048_v61  ;;  %v3204_v9 = vrot.slane %v12739_v49, 2  ;;  %v16700_v29 = vld [vmem:[#allocation54_spill] sm:$0xff] }
 0x80b   : > { %v3121_v28 = vmul.f32 %v3081_v59, %v16689_v14  ;;  %v2935_v41 = vadd.f32 %v16690_v33, %v2919_v25  ;;  %v3049_v11 = vadd.f32 %v16691_v47, %v2989_v38  ;;  %v3106_v36 = vmul.f32 %v3082_v63, %v16692_v45  ;;  %v16701_v33 = vld [vmem:[#allocation56_spill] sm:$0xff] }
 0x80c   : > { %v12762_v12 = vmul.f32 %v3082_v63, %v16693_v17  ;;  %v3153_v53 = vrot.slane %v3123_v42, 1  ;;  %v12765_v62 = vmul.f32 %v3081_v59, %v16694_v3  ;;  %v2932_v34 = vadd.f32 %v16695_v23, %v2916_v32  ;;  %v3069_v32 = vpop.permute.xlu0 %3068 }
 0x80d   : > { %v3083_v10 = vsel %vm922_vm4, %v3065_v15, %v3067_v44  ;;  %v3115_v19 = vadd.f32 %v3107_v26, %v3051_v48  ;;  %v3213_v51 = vrot.slane %v12748_v56, 2  ;;  %v3050_v22 = vadd.f32 %v16696_v52, %v2990_v31  ;;  %v16699_v56 = vld [vmem:[#allocation55_spill] sm:$0xff] }
 0x80e   : > { %v3113_v13 = vadd.f32 %v3105_v16, %v3049_v11  ;;  %v3147_v2 = vrot.slane %v3121_v28, 1  ;;  %v12772_v55 = vmul.f32 %v3082_v63, %v16697_v27  ;;  %v12775_v40 = vmul.f32 %v3083_v10, %v11300_v6  ;;  %v3075_v11 = vpop.permute.xlu1 %3074 }
 0x80f   : > { %v12778_v5 = vmul.f32 %v3083_v10, %v11303_v58  ;;  %v3114_v61 = vadd.f32 %v3106_v36, %v3050_v22  ;;  %v3150_v49 = vrot.slane %v12762_v12, 1  ;;  %v2992_v25 = vadd.f32 %v16698_v21, %v2932_v34  ;;  %v16703_v34 = vld [vmem:[#allocation63_spill] sm:$0xff] }
 0x810   : > { %v3102_v18 = vsel %vm922_vm4, %v3071_v8, 0.0  ;;  %v3207_v38 = vrot.slane %v12765_v62, 2  ;;  %v3108_v26 = vmul.f32 %v3083_v10, %v11297_v1  ;;  %v3145_v42 = vrot.slane %v12775_v40, 1  ;;  %v3073_v52 = vpop.permute.xlu0 %3072 }
 0x811   : > { %v2995_v59 = vadd.f32 %v16699_v56, %v2935_v41  ;;  %v12788_v15 = vmul.f32 %v3102_v18, %v11309_v7  ;;  %v12791_v48 = vmul.f32 %v3102_v18, %v16685_v43  ;;  %v2993_v31 = vadd.f32 %v16700_v29, %v2933_v20  ;;  %v16702_v41 = vld [vmem:[#allocation61_spill] sm:$0xff] }
 0x812   : > { %v3084_v63 = vsel %vm922_vm4, %v3067_v44, %v3069_v32  ;;  %v3210_v16 = vrot.slane %v12772_v55, 2  ;;  %v3146_v4 = vsel %vm580_vm1, %v3144_v50, %v3145_v42  ;;  %v3205_v28 = vrot.slane %v12778_v5, 2  ;;  %v16704_v55 = vld [vmem:[#allocation62_spill] sm:$0xff] }
 0x813   : > { %v2994_v47 = vadd.f32 %v16701_v33, %v2934_v24  ;;  %v3052_v36 = vadd.f32 %v16702_v41, %v2992_v25  ;;  %v3172_v12 = vadd.f32 %v3146_v4, %v3112_v54  ;;  %v3154_v62 = vrot.slane %v12788_v15, 1 }
 0x814   : > { %v3214_v23 = vrot.slane %v12791_v48, 2  ;;  %v3055_v20 = vadd.f32 %v16703_v34, %v2995_v59  ;;  %v3085_v44 = vsel %vm922_vm4, %v3069_v32, %v3071_v8  ;;  %v12805_v10 = vmul.f32 %v3084_v63, %v16689_v14 }
 0x815   : > { %v12808_v50 = vmul.f32 %v3084_v63, %v16694_v3  ;;  %v3116_v24 = vadd.f32 %v3108_v26, %v3052_v36  ;;  %v3111_v22 = vmul.f32 %v3102_v18, %v16592_v39  ;;  %v3155_v54 = vsel %vm580_vm1, %v3153_v53, %v3154_v62  ;;  %v3077_v36 = vpop.permute.xlu0 %3076 }
 0x816   : > { %v3053_v40 = vadd.f32 %v16704_v55, %v2993_v31  ;;  %v3206_v5 = vsel %vm662_vm2, %v3204_v9, %v3205_v28  ;;  %v3175_v21 = vadd.f32 %v3155_v54, %v3115_v19  ;;  %v3126_v25 = vmul.f32 %v3085_v44, %v16693_v17  ;;  %v3079_v19 = vpop.permute.xlu1 %3078  ;;  %v16705_v31 = vld [vmem:[#allocation64_spill] sm:$0xff] }
 0x817   : > { %v3148_v8 = vrot.slane %v12805_v10, 1  ;;  %v3232_v32 = vadd.f32 %v3206_v5, %v3172_v12  ;;  %v3215_v56 = vsel %vm662_vm2, %v3213_v51, %v3214_v23  ;;  %v3109_v59 = vmul.f32 %v3084_v63, %v16687_v57  ;;  %v16706_v12 = vld [vmem:[#allocation44_spill] sm:$0xff] }
 0x818   : > { %v12819_v26 = vmul.f32 %v3085_v44, %v16697_v27  ;;  %v3151_v53 = vrot.slane %v3126_v25, 1  ;;  %v3208_v15 = vrot.slane %v12808_v50, 2  ;;  %v3086_v9 = vsel %vm922_vm4, %v3073_v52, %v3075_v11 }
 0x819   : > { %v3149_v18 = vsel %vm580_vm1, %v3147_v2, %v3148_v8  ;;  %v3119_v48 = vadd.f32 %v3111_v22, %v3055_v20  ;;  %v3235_v29 = vadd.f32 %v3215_v56, %v3175_v21  ;;  %v3054_v4 = vadd.f32 %v16705_v31, %v2994_v47 }
 0x81a   : > { %v3110_v33 = vmul.f32 %v3085_v44, %v16692_v45  ;;  %v3152_v51 = vsel %vm580_vm1, %v3150_v49, %v3151_v53  ;;  %v3211_v63 = vrot.slane %v12819_v26, 2  ;;  %v3128_v41 = vmul.f32 %v3086_v9, %v11300_v6  ;;  %v16707_v49 = vld [vmem:[#allocation46_spill] sm:$0xff] }
 0x81b   : > { %v3188_v2 = vmul.f32 %v3086_v9, %v11303_v58  ;;  %v3240_v34 = vmul.f32 %v3232_v32, %v16706_v12  ;;  %v3117_v10 = vadd.f32 %v3109_v59, %v3053_v40  ;;  %v3173_v50 = vadd.f32 %v3149_v18, %v3113_v13 }
 0x81c   : > { %v3103_v20 = vsel %vm922_vm4, %v3079_v19, 0.0  ;;  %v3209_v52 = vsel %vm662_vm2, %v3207_v38, %v3208_v15  ;;  %v3156_v47 = vrot.slane %v3128_v41, 1  ;;  %v3243_v54 = vmul.f32 %v3235_v29, %v16707_v49 }
 0x81d   : > { %v3216_v22 = vrot.slane %v3188_v2, 2  ;;  %v3131_v44 = vmul.f32 %v3103_v20, %v11309_v7  ;;  %v3174_v55 = vadd.f32 %v3152_v51, %v3114_v61  ;;  %v3191_v5 = vmul.f32 %v3103_v20, %v16685_v43  ;;  %v16709_v20 = vld [vmem:[#allocation47_spill] sm:$0xff] }
 0x81e   : > { %v3087_v21 = vsel %vm922_vm4, %v3075_v11, %v3077_v36  ;;  %v3212_v25 = vsel %vm662_vm2, %v3210_v16, %v3211_v63  ;;  %v3157_v40 = vsel %vm580_vm1, %v3145_v42, %v3156_v47  ;;  %v3088_v32 = vsel %vm922_vm4, %v3077_v36, %v3079_v19 }
 0x81f   : > { %v3162_v13 = vrot.slane %v3131_v44, 1  ;;  %v3233_v56 = vadd.f32 %v3209_v52, %v3173_v50  ;;  %v3176_v38 = vadd.f32 %v3157_v40, %v3116_v24  ;;  %v3217_v59 = vsel %vm662_vm2, %v3205_v28, %v3216_v22  ;;  %v16708_v28 = vld [vmem:[#allocation45_spill] sm:$0xff] }
 0x820   : > { %v3222_v26 = vrot.slane %v3191_v5, 2  ;;  %v3129_v61 = vmul.f32 %v3087_v21, %v16689_v14  ;;  %v3130_v9 = vmul.f32 %v3088_v32, %v16693_v17  ;;  %v3189_v11 = vmul.f32 %v3087_v21, %v16694_v3  ;;  %v16710_v5 = vld [vmem:[#allocation48_spill] sm:$0xff] }
 0x821   : > { %v3163_v18 = vsel %vm580_vm1, %v3154_v62, %v3162_v13  ;;  %v3234_v29 = vadd.f32 %v3212_v25, %v3174_v55  ;;  %v3236_v16 = vadd.f32 %v3217_v59, %v3176_v38  ;;  %v3190_v24 = vmul.f32 %v3088_v32, %v16697_v27  ;;  %v16760_v27 = vld [vmem:[#allocation23_spill] sm:$0xff] }
 0x822   : > { %v3179_v31 = vadd.f32 %v3163_v18, %v3119_v48  ;;  %v3223_v42 = vsel %vm662_vm2, %v3214_v23, %v3222_v26  ;;  %v3158_v51 = vrot.slane %v3129_v61, 1  ;;  %v3160_v19 = vrot.slane %v3130_v9, 1  ;;  %v16713_v26 = vld [vmem:[#allocation51_spill] sm:$0xff] }
 0x823   : > { %v3218_v41 = vrot.slane %v3189_v11, 2  ;;  %v12848_v2 = vadd.f32 %v3240_v34, %v16708_v28  ;;  %v3118_v62 = vadd.f32 %v3110_v33, %v3054_v4  ;;  %v3244_v36 = vmul.f32 %v3236_v16, %v16706_v12  ;;  %v16711_v33 = vld [vmem:[#allocation49_spill] sm:$0xff] }
 0x824   : > { %v3239_v50 = vadd.f32 %v3223_v42, %v3179_v31  ;;  %v12852_v52 = vadd.f32 %v3243_v54, %v16709_v20  ;;  %v3159_v47 = vsel %vm580_vm1, %v3148_v8, %v3158_v51  ;;  %v3161_v48 = vsel %vm580_vm1, %v3151_v53, %v3160_v19 }
 0x825   : > { %v3220_v23 = vrot.slane %v3190_v24, 2  ;;  %v12857_v22 = vadd.f32 %v3244_v36, %v16708_v28  ;;  %v3177_v55 = vadd.f32 %v3159_v47, %v3117_v10  ;;  %v3178_v34 = vadd.f32 %v3161_v48, %v3118_v62 }
 0x826   : > { %v3247_v44 = vmul.f32 %v3239_v50, %v16707_v49  ;;  %v3241_v4 = vmul.f32 %v3233_v56, %v16710_v5  ;;  %v3242_v21 = vmul.f32 %v3234_v29, %v16711_v33  ;;  %v3219_v25 = vsel %vm662_vm2, %v3208_v15, %v3218_v41 }
 0x827   : > { %v3221_v54 = vsel %vm662_vm2, %v3211_v63, %v3220_v23  ;;  %v3237_v53 = vadd.f32 %v3219_v25, %v3177_v55  ;;  %v3284_v13 = vmax.f32 %v12848_v2, %v12857_v22  ;;  %v3256_v10 = vadd.f32 %v12857_v22, %v12848_v2  ;;  %v16712_v63 = vld [vmem:[#allocation50_spill] sm:$0xff] }
 0x828   : > { %v12865_v8 = vadd.f32 %v3247_v44, %v16709_v20  ;;  %v3238_v40 = vadd.f32 %v3221_v54, %v3178_v34  ;;  %v12876_v59 = vadd.f32 %v3241_v4, %v16712_v63  ;;  %v12879_v18 = vadd.f32 %v3242_v21, %v16713_v26 }
 0x829   : > { %v3245_v32 = vmul.f32 %v3237_v53, %v16710_v5  ;;  %v3285_v38 = vrot.slane %v3284_v13, 4  ;;  %v3257_v61 = vrot.slane %v3256_v10, 4 }
 0x82a   : > { %v3246_v56 = vmul.f32 %v3238_v40, %v16711_v33  ;;  %v3305_v15 = vmax.f32 %v12852_v52, %v12865_v8  ;;  %v3277_v9 = vadd.f32 %v12865_v8, %v12852_v52 }
 0x82b   : > { %v12884_v11 = vadd.f32 %v3245_v32, %v16712_v63  ;;  %v3286_v16 = vmax.f32 %v3284_v13, %v3285_v38  ;;  %v3258_v42 = vadd.f32 %v3257_v61, %v3256_v10 }
 0x82c   : > { %v12887_v29 = vadd.f32 %v3246_v56, %v16713_v26  ;;  %v3306_v31 = vrot.slane %v3305_v15, 4  ;;  %v3278_v51 = vrot.slane %v3277_v9, 4 }
 0x82d   : > { %v3287_v19 = vrot.slane %v3286_v16, 2  ;;  %v3291_v24 = vmax.f32 %v12876_v59, %v12884_v11  ;;  %v3259_v36 = vrot.slane %v3258_v42, 2  ;;  %v3263_v50 = vadd.f32 %v12884_v11, %v12876_v59 }
 0x82e   : > { %v3298_v41 = vmax.f32 %v12879_v18, %v12887_v29  ;;  %v3307_v62 = vmax.f32 %v3305_v15, %v3306_v31  ;;  %v3270_v47 = vadd.f32 %v12887_v29, %v12879_v18  ;;  %v3279_v48 = vadd.f32 %v3278_v51, %v3277_v9 }
 0x82f   : > { %v3292_v23 = vrot.slane %v3291_v24, 4  ;;  %v3264_v34 = vrot.slane %v3263_v50, 4  ;;  %v3288_v25 = vmax.f32 %v3286_v16, %v3287_v19  ;;  %v3260_v13 = vadd.f32 %v3259_v36, %v3258_v42 }
 0x830   : > { %v3299_v44 = vrot.slane %v3298_v41, 4  ;;  %v3308_v55 = vrot.slane %v3307_v62, 2  ;;  %v3271_v4 = vrot.slane %v3270_v47, 4  ;;  %v3280_v21 = vrot.slane %v3279_v48, 2 }
 0x831   : > { %v3293_v54 = vmax.f32 %v3291_v24, %v3292_v23  ;;  %v3265_v10 = vadd.f32 %v3264_v34, %v3263_v50  ;;  %v3289_v26 = vrot.slane %v3288_v25, 1  ;;  %v3261_v33 = vrot.slane %v3260_v13, 1 }
 0x832   : > { %v3300_v53 = vmax.f32 %v3298_v41, %v3299_v44  ;;  %v3309_v40 = vmax.f32 %v3307_v62, %v3308_v55  ;;  %v3272_v32 = vadd.f32 %v3271_v4, %v3270_v47  ;;  %v3281_v56 = vadd.f32 %v3280_v21, %v3279_v48 }
 0x833   : > { %v3294_v38 = vrot.slane %v3293_v54, 2  ;;  %v3266_v61 = vrot.slane %v3265_v10, 2  ;;  %v3290_v42 = vmax.f32 %v3288_v25, %v3289_v26  ;;  %v3262_v47 = vadd.f32 %v3261_v33, %v3260_v13  ;;  %v2496_v26 = vld [vmem:[%s16321_s9 + $0x8] sm:$0xff]  ;;  %v2499_v33 = vld [vmem:[%s16321_s9 + $0x20] sm:$0xff]  ;;  %v2498_v25 = vld [vmem:[%s16321_s9 + $0x18] sm:$0xff] }
 0x834   : > { %v3301_v15 = vrot.slane %v3300_v53, 2  ;;  %v3273_v31 = vrot.slane %v3272_v32, 2  ;;  %v3310_v63 = vrot.slane %v3309_v40, 1  ;;  %v3282_v28 = vrot.slane %v3281_v56, 1 }
 0x835   : > { %v3295_v9 = vmax.f32 %v3293_v54, %v3294_v38  ;;  %v3267_v5 = vadd.f32 %v3266_v61, %v3265_v10 }
 0x836   : > { %v3302_v51 = vmax.f32 %v3300_v53, %v3301_v15  ;;  %v3274_v20 = vadd.f32 %v3273_v31, %v3272_v32  ;;  %v3311_v50 = vmax.f32 %v3309_v40, %v3310_v63  ;;  %v3283_v44 = vadd.f32 %v3282_v28, %v3281_v56  ;;  %v2495_v28 = vld [vmem:[%s16321_s9] sm:$0xff]  ;;  %v2502_v40 = vld [vmem:[%s16321_s9 + $0x38] sm:$0xff] }
 0x837   : > { %v3296_v16 = vrot.slane %v3295_v9, 1  ;;  %v3268_v24 = vrot.slane %v3267_v5, 1  ;;  %v9755_v63 = vpack.c.bf16 %v2499_v33, %v2495_v28  ;;  %v9757_v13 = vpack.c.bf16 %v2502_v40, %v2498_v25  ;;  %v16719_v25 = vld [vmem:[#allocation29_spill] sm:$0xff]  ;;  %v16720_v40 = vld [vmem:[#allocation27_spill] sm:$0xff] }
 0x838   : > { %v3303_v19 = vrot.slane %v3302_v51, 1  ;;  %v3275_v41 = vrot.slane %v3274_v20, 1 }
 0x839   : > { %v3297_v62 = vmax.f32 %v3295_v9, %v3296_v16  ;;  %v3269_v48 = vadd.f32 %v3268_v24, %v3267_v5  ;;  %v2500_v5 = vld [vmem:[%s16321_s9 + $0x28] sm:$0xff] }
 0x83a   : > { %v3304_v36 = vmax.f32 %v3302_v51, %v3303_v19  ;;  %v3276_v23 = vadd.f32 %v3275_v41, %v3274_v20  ;;  %v9753_v20 = vpack.c.bf16 %v2500_v5, %v2496_v26 }
 0x83b   : > { %v3326_v34 = vmax.f32 %v3297_v62, %v3311_v50  ;;  %v3313_v21 = vadd.f32 %v3283_v44, %v3269_v48  ;;  %v2497_v50 = vld [vmem:[%s16321_s9 + $0x10] sm:$0xff]  ;;  %v16714_v44 = vmov 0.0  }
 0x83c   : > { %v3325_v55 = vmax.f32 %v3290_v42, %v3304_v36  ;;  %v3312_v4 = vadd.f32 %v3276_v23, %v3262_v47  ;;  %9754 = vmatprep.subr.bf16.mxu0 %v9753_v20  ;;  %v2501_v47 = vld [vmem:[%s16321_s9 + $0x30] sm:$0xff] }
 0x83d   : > { %9756 = vmatpush1.bf16.msra.mxu0 %v9755_v63  ;;  %v9759_v48 = vpack.c.bf16 %v2501_v47, %v2497_v50 }
 0x83e   : > { %v3327_v54 = vmax.f32 %v3325_v55, %v3326_v34  ;;  %v3314_v53 = vadd.f32 %v3313_v21, %v3312_v4  ;;  %9758 = vmatprep.subr.bf16.mxu0 %v9757_v13  ;;  %v16715_v55 = vmov 0.0|0.0   ;;  %v16716_v4 = vld [vmem:[#allocation15_spill] sm:$0xff]  ;;  %v16717_v21 = vld [vmem:[#allocation16_spill] sm:$0xff] }
 0x840   : > { %3329 = vrot.lane.b32.xlu1 %v3327_v54, %s16461_s17  ;;  %3316 = vrot.lane.b32.xlu0 %v3314_v53, %s16461_s17  ;;  %s16862_s17 = smov 16  }
 0x8b2   : > { %v3330_v10 = vpop.permute.xlu1 %3329  ;;  %v3317_v56 = vpop.permute.xlu0 %3316 }
 0x8b3   : > { %v3332_v32 = vmax.f32 %v3327_v54, %v3330_v10  ;;  %v2474_v38 = vpop.f32.mrb[14].mxu1  ;;  %v3319_v15 = vadd.f32 %v3317_v56, %v3314_v53  ;;  %v16718_v54 = vld [vmem:[#allocation30_spill] sm:$0xff] }
 0x8b4   : > { %v2483_v61 = vsub.f32 0.0, %v2474_v38  ;;  %v2476_v31 = vpop.f32.mrb[15].mxu1  ;;  %v16721_v10 = vld [vmem:[#allocation18_spill] sm:$0xff]  ;;  %v16722_v38 = vld [vmem:[#allocation13_spill] sm:$0xff] }
 0x8b5   : > { %3334 = vrot.lane.b32.xlu1 %v3332_v32, %s16459_s25  ;;  %3321 = vrot.lane.b32.xlu0 %v3319_v15, %s16459_s25  ;;  %v16723_v31 = vld [vmem:[#allocation14_spill] sm:$0xff]  ;;  %s16867_s25 = smov 32  }
 0x8b6   : > { %v2485_v9 = vmul.f32 1.442695, %v2483_v61 }
 0x8b8   : > { %10791 = vpow2.f32 %v2485_v9  ;;  %v2479_v51 = vpop.f32.mrb[16].mxu1 }
 0x8b9   : > { %v2484_v16 = vsub.f32 0.0, %v2479_v51  ;;  %v2481_v19 = vpop.f32.mrb[17].mxu1 }
 0x8bb   : > { %v2487_v24 = vmul.f32 1.442695, %v2484_v16  ;;  %v16724_v16 = vld [vmem:[#allocation12_spill] sm:$0xff] }
 0x8bd   : > { %10793 = vpow2.f32 %v2487_v24 }
 0x8c2   : > { %v10792_v41 = vpop.eup %10791 }
 0x8c3   : > { %v2489_v42 = vadd.f32 1.0, %v10792_v41  ;;  %v16725_v41 = vld [vmem:[#allocation19_spill] sm:$0xff] }
 0x8c5   : > { %10795 = vrcp.f32 %v2489_v42 }
 0x8c7   : > { %v10794_v62 = vpop.eup %10793 }
 0x8c8   : > { %v2490_v36 = vadd.f32 1.0, %v10794_v62 }
 0x8ca   : > { %10797 = vrcp.f32 %v2490_v36  ;;  %v16726_v36 = vld [vmem:[#allocation21_spill] sm:$0xff] }
 0x8cf   : > { %v10796_v23 = vpop.eup %10795 }
 0x8d0   : > { %8810 = vmatmul.mubr.msk.f32.vlgmr.msra.gmra.mrb[8].mxu0 %vm2283_vm14, %v10796_v23 }
 0x8d1   : > { %2579 = vmatprep.mubr.f32.mxu0 %v16714_v44  ;;  %9760 = vmatpush1.bf16.msra.mxu0 %v9759_v48  ;;  %v16727_v48 = vld [vmem:[#allocation22_spill] sm:$0xff] }
 0x8d2   : > { %9761 = vmatprep.subr.bf16.mxu0 %v16715_v55 }
 0x8d4   : > { %v10798_v34 = vpop.eup %10797 }
 0x8d5   : > { %8811 = vmatmul.mubr.msk.f32.gmra.mrb[10].mxu0 %vm2283_vm14, %v10798_v34 }
 0x8d6   : > { %2650 = vmatprep.mubr.f32.mxu0 %v16714_v44 }
 0x8d9   : > { %8812 = vmatmul.mubr.msk.f32.vlgmr.msra.gmra.mrb[12].mxu0 %vm2283_vm14, %v10796_v23 }
 0x8da   : > { %2656 = vmatprep.mubr.f32.mxu0 %v16714_v44  ;;  %9763 = vmatpush3.bf16.msra.mxu0 %v16716_v4 }
 0x8db   : > { %9764 = vmatprep.subr.bf16.mxu0 %v16715_v55 }
 0x8dd   : > { %8813 = vmatmul.mubr.msk.f32.gmra.mrb[14].mxu0 %vm2283_vm14, %v10798_v34 }
 0x8de   : > { %9766 = vmatpush3.bf16.msra.mxu0 %v16717_v21  ;;  %9552 = vmatprep.mubr.msk.f32.mxu0 %vm16452_vm5, %v16714_v44  ;;  %v16757_v21 = vld [vmem:[#allocation4_spill] sm:$0xff] }
 0x8df   : > { %8823 = vmatprep.subr.msk.mxu0 %vm1393_vm6, %v16718_v54 }
 0x927   : > { %v3335_v53 = vpop.permute.xlu1 %3334  ;;  %v3322_v5 = vpop.permute.xlu0 %3321 }
 0x928   : > { %v3337_v26 = vmax.f32 %v3332_v32, %v3335_v53  ;;  %v3324_v28 = vadd.f32 %v3322_v5, %v3319_v15  ;;  %v16728_v53 = vld [vmem:[#allocation20_spill] sm:$0xff] }
 0x92a   : > { %v3340_v20 = vrot.slane %v3337_v26, 7  ;;  %v3338_v33 = vmul.f32 0.00390625, %v3324_v28 }
 0x92c   : > { %v3342_v63 = vsel %vm408_vm0, %v3338_v33, %v3340_v20 }
 0x92d   : > { %9553 = vmatmul.mubr.msk.f32.vlgmr.msra.gmra.mrb[16].mxu0 %vm473_vm3, %v3342_v63 }
 0x92e   : > { %8824 = vmatpush1.msk.msra.mxu0 %vm1393_vm6, %v16719_v25  ;;  %3490 = vmatprep.mubr.f32.mxu0 %v16714_v44  ;;  %v16756_v25 = vld [vmem:[#allocation24_spill] sm:$0xff] }
 0x92f   : > { %8826 = vmatprep.subr.msk.mxu0 %vm1393_vm6, %v16720_v40 }
 0x9a3   : > { %v2575_v13 = vpop.f32.mrb[8].mxu0 }
 0x9a4   : > { %v2663_v32 = vmul.f32 %v2575_v13, %v16721_v10  ;;  %v2577_v56 = vpop.f32.mrb[9].mxu0  ;;  %v16729_v10 = vld [vmem:[#allocation17_spill] sm:$0xff] }
 0x9a5   : > { %v2664_v15 = vmul.f32 %v2577_v56, %v16722_v38  ;;  %v3633_v56 = vld [vmem:[%s16318_s6 + $0x88] sm:$0xff] }
 0x9a6   : > { %2671 = vst [vmem:[%s12952_s22] sm:$0xff] %v2663_v32  ;;  %v3632_v32 = vld [vmem:[%s16318_s6 + $0x80] sm:$0xff] }
 0x9a7   : > { %2672 = vst [vmem:[%s12952_s22 + $0x8] sm:$0xff] %v2664_v15  ;;  %v9767_v38 = vpack.c.bf16 %v3633_v56, %v3632_v32  ;;  %v3616_v15 = vld [vmem:[%s16318_s6] sm:$0xff]  ;;  %v3651_v32 = vld [vmem:[%s16318_s6 + $0x118] sm:$0xff] }
 0x9a8   : > { %v2581_v61 = vpop.f32.mrb[10].mxu0 }
 0x9a9   : > { %v2667_v9 = vmul.f32 %v2581_v61, %v16723_v31  ;;  %v2583_v51 = vpop.f32.mrb[11].mxu0  ;;  %v3617_v61 = vld [vmem:[%s16318_s6 + $0x8] sm:$0xff] }
 0x9aa   : > { %v2668_v19 = vmul.f32 %v2583_v51, %v16724_v16  ;;  %v9769_v31 = vpack.c.bf16 %v3617_v61, %v3616_v15  ;;  %v3635_v51 = vld [vmem:[%s16318_s6 + $0x98] sm:$0xff]  ;;  %v3664_v16 = vld [vmem:[%s16318_s6 + $0x180] sm:$0xff] }
 0x9ab   : > { %2675 = vst [vmem:[%s12952_s22 + $0x20] sm:$0xff] %v2667_v9  ;;  %v3634_v9 = vld [vmem:[%s16318_s6 + $0x90] sm:$0xff]  ;;  %v3639_v15 = vld [vmem:[%s16318_s6 + $0xb8] sm:$0xff]  ;;  %v3668_v61 = vld [vmem:[%s16318_s6 + $0x1a0] sm:$0xff] }
 0x9ac   : > { %2676 = vst [vmem:[%s12952_s22 + $0x28] sm:$0xff] %v2668_v19  ;;  %v2652_v24 = vpop.f32.mrb[12].mxu0  ;;  %v9771_v19 = vpack.c.bf16 %v3635_v51, %v3634_v9  ;;  %v3669_v9 = vld [vmem:[%s16318_s6 + $0x1a8] sm:$0xff]  ;;  %v3622_v51 = vld [vmem:[%s16318_s6 + $0x30] sm:$0xff] }
 0x9ad   : > { %v2665_v42 = vmul.f32 %v2652_v24, %v16725_v41  ;;  %v2654_v62 = vpop.f32.mrb[13].mxu0  ;;  %v3665_v24 = vld [vmem:[%s16318_s6 + $0x188] sm:$0xff]  ;;  %v3618_v41 = vld [vmem:[%s16318_s6 + $0x10] sm:$0xff] }
 0x9ae   : > { %v2666_v50 = vmul.f32 %v2654_v62, %v16726_v36  ;;  %v9799_v62 = vpack.c.bf16 %v3665_v24, %v3664_v16  ;;  %v3623_v16 = vld [vmem:[%s16318_s6 + $0x38] sm:$0xff] }
 0x9af   : > { %2673 = vst [vmem:[%s12952_s22 + $0x10] sm:$0xff] %v2665_v42  ;;  %v3619_v42 = vld [vmem:[%s16318_s6 + $0x18] sm:$0xff]  ;;  %v9781_v24 = vpack.c.bf16 %v3623_v16, %v3622_v51  ;;  %v3656_v51 = vld [vmem:[%s16318_s6 + $0x140] sm:$0xff]  ;;  %v3657_v16 = vld [vmem:[%s16318_s6 + $0x148] sm:$0xff] }
 0x9b0   : > { %2674 = vst [vmem:[%s12952_s22 + $0x18] sm:$0xff] %v2666_v50  ;;  %v2658_v47 = vpop.f32.mrb[14].mxu0  ;;  %v9773_v36 = vpack.c.bf16 %v3619_v42, %v3618_v41  ;;  %v3648_v50 = vld [vmem:[%s16318_s6 + $0x100] sm:$0xff]  ;;  %9800 = vmatprep.subr.bf16.mxu1 %v9799_v62  ;;  %v3653_v42 = vld [vmem:[%s16318_s6 + $0x128] sm:$0xff] }
 0x9b1   : > { %v2669_v23 = vmul.f32 %v2658_v47, %v16727_v48  ;;  %v2660_v34 = vpop.f32.mrb[15].mxu0  ;;  %v3649_v47 = vld [vmem:[%s16318_s6 + $0x108] sm:$0xff]  ;;  %v3652_v41 = vld [vmem:[%s16318_s6 + $0x120] sm:$0xff] }
 0x9b2   : > { %v2670_v26 = vmul.f32 %v2660_v34, %v16728_v53  ;;  %v9801_v48 = vpack.c.bf16 %v3649_v47, %v3648_v50  ;;  %v3637_v34 = vld [vmem:[%s16318_s6 + $0xa8] sm:$0xff]  ;;  %v3666_v53 = vld [vmem:[%s16318_s6 + $0x190] sm:$0xff]  ;;  %v9809_v62 = vpack.c.bf16 %v3653_v42, %v3652_v41 }
 0x9b3   : > { %2677 = vst [vmem:[%s12952_s22 + $0x30] sm:$0xff] %v2669_v23  ;;  %v3636_v23 = vld [vmem:[%s16318_s6 + $0xa0] sm:$0xff]  ;;  %v3641_v50 = vld [vmem:[%s16318_s6 + $0xc8] sm:$0xff]  ;;  %v3670_v47 = vld [vmem:[%s16318_s6 + $0x1b0] sm:$0xff] }
 0x9b4   : > { %2678 = vst [vmem:[%s12952_s22 + $0x38] sm:$0xff] %v2670_v26  ;;  %9802 = vmatpush3.bf16.msra.mxu1 %v9801_v48  ;;  %v9775_v26 = vpack.c.bf16 %v3637_v34, %v3636_v23  ;;  %v3671_v23 = vld [vmem:[%s16318_s6 + $0x1b8] sm:$0xff]  ;;  %v3624_v34 = vld [vmem:[%s16318_s6 + $0x40] sm:$0xff]  ;;  %v3645_v41 = vld [vmem:[%s16318_s6 + $0xe8] sm:$0xff] }
 0x9b5   : > { %v3674_v42 = vld [vmem:[%s16318_s6 + $0x1d0] sm:$0xff] }
 0xa00   : > { %v3412_v5 = vpop.f32.mrb[16].mxu0 }
 0xa01   : > { %vm3416_vm5 = vcmp.ge.f32.partialorder %v3412_v5, 0.0  ;;  %v3417_v28 = vmul.f32 0.1, %v3412_v5  ;;  %v9554_v20 = vpop.f32.mrb[17].mxu0 }
 0xa02   : > { %v3621_v20 = vld [vmem:[%s16318_s6 + $0x28] sm:$0xff] }
 0xa03   : > { %v3418_v33 = vsel %vm3416_vm5, %v3412_v5, %v3417_v28  ;;  %v3667_v5 = vld [vmem:[%s16318_s6 + $0x198] sm:$0xff]  ;;  %v3620_v28 = vld [vmem:[%s16318_s6 + $0x20] sm:$0xff]  ;;  %vm16742_vm5 = vcmask 1042432  }
 0xa04   : > { %v3420_v63 = vrot.slane %v3418_v33, 1 }
 0xa06   : > { %v3422_v13 = vadd.f32 %v3420_v63, %v3418_v33  ;;  %v9803_v33 = vpack.c.bf16 %v3667_v5, %v3666_v53  ;;  %v9777_v63 = vpack.c.bf16 %v3621_v20, %v3620_v28  ;;  %v3625_v53 = vld [vmem:[%s16318_s6 + $0x48] sm:$0xff]  ;;  %v3654_v28 = vld [vmem:[%s16318_s6 + $0x130] sm:$0xff]  ;;  %v3655_v20 = vld [vmem:[%s16318_s6 + $0x138] sm:$0xff] }
 0xa07   : > { %v9785_v5 = vpack.c.bf16 %v3625_v53, %v3624_v34  ;;  %v3659_v53 = vld [vmem:[%s16318_s6 + $0x158] sm:$0xff] }
 0xa08   : > { %8825 = vmatmul.mubr.msk.f32.vlgmr.msra.gmra.mrb[18].mxu0 %vm1389_vm8, %v3422_v13  ;;  %9804 = vmatprep.subr.bf16.mxu1 %v9803_v33  ;;  %v9813_v33 = vpack.c.bf16 %v3655_v20, %v3654_v28 }
 0xa09   : > { %8827 = vmatpush1.msk.msra.mxu0 %vm1393_vm6, %v16729_v10  ;;  %3561 = vmatprep.mubr.f32.mxu0 %v16714_v44 }
 0xa0a   : > { %9768 = vmatprep.subr.bf16.mxu0 %v9767_v38  ;;  %v3638_v38 = vld [vmem:[%s16318_s6 + $0xb0] sm:$0xff] }
 0xa0c   : > { %8828 = vmatmul.mubr.msk.f32.vlgmr.msra.gmra.mrb[20].mxu0 %vm1389_vm8, %v3422_v13  ;;  %v3650_v13 = vld [vmem:[%s16318_s6 + $0x110] sm:$0xff] }
 0xa0d   : > { %9770 = vmatpush3.bf16.msra.mxu0 %v9769_v31  ;;  %v9805_v56 = vpack.c.bf16 %v3651_v32, %v3650_v13  ;;  %v9779_v31 = vpack.c.bf16 %v3639_v15, %v3638_v38  ;;  %v3643_v13 = vld [vmem:[%s16318_s6 + $0xd8] sm:$0xff]  ;;  %v3672_v32 = vld [vmem:[%s16318_s6 + $0x1c0] sm:$0xff]  ;;  %v3673_v38 = vld [vmem:[%s16318_s6 + $0x1c8] sm:$0xff] }
 0xa0e   : > { %9772 = vmatprep.subr.bf16.mxu0 %v9771_v19  ;;  %v9807_v19 = vpack.c.bf16 %v3669_v9, %v3668_v61  ;;  %v3626_v15 = vld [vmem:[%s16318_s6 + $0x50] sm:$0xff]  ;;  %v3627_v61 = vld [vmem:[%s16318_s6 + $0x58] sm:$0xff] }
 0xa0f   : > { %9806 = vmatpush3.bf16.msra.mxu1 %v9805_v56  ;;  %v9789_v9 = vpack.c.bf16 %v3627_v61, %v3626_v15  ;;  %v3661_v15 = vld [vmem:[%s16318_s6 + $0x168] sm:$0xff] }
 0xa10   : > { %9808 = vmatprep.subr.bf16.mxu1 %v9807_v19  ;;  %v3644_v19 = vld [vmem:[%s16318_s6 + $0xe0] sm:$0xff] }
 0xa11   : > { %9774 = vmatpush3.bf16.msra.mxu0 %v9773_v36  ;;  %v3640_v36 = vld [vmem:[%s16318_s6 + $0xc0] sm:$0xff] }
 0xa12   : > { %9776 = vmatprep.subr.bf16.mxu0 %v9775_v26  ;;  %v9783_v48 = vpack.c.bf16 %v3641_v50, %v3640_v36  ;;  %v9811_v26 = vpack.c.bf16 %v3671_v23, %v3670_v47  ;;  %v9791_v36 = vpack.c.bf16 %v3645_v41, %v3644_v19  ;;  %v3628_v47 = vld [vmem:[%s16318_s6 + $0x60] sm:$0xff]  ;;  %v3658_v23 = vld [vmem:[%s16318_s6 + $0x150] sm:$0xff] }
 0xa13   : > { %9810 = vmatpush3.bf16.msra.mxu1 %v9809_v62  ;;  %v3675_v62 = vld [vmem:[%s16318_s6 + $0x1d8] sm:$0xff]  ;;  %v9821_v28 = vpack.c.bf16 %v3659_v53, %v3658_v23  ;;  %v3662_v19 = vld [vmem:[%s16318_s6 + $0x170] sm:$0xff] }
 0xa14   : > { %9812 = vmatprep.subr.bf16.mxu1 %v9811_v26  ;;  %v9819_v50 = vpack.c.bf16 %v3675_v62, %v3674_v42  ;;  %v3646_v26 = vld [vmem:[%s16318_s6 + $0xf0] sm:$0xff] }
 0xa15   : > { %9778 = vmatpush3.bf16.msra.mxu0 %v9777_v63  ;;  %v3642_v63 = vld [vmem:[%s16318_s6 + $0xd0] sm:$0xff] }
 0xa16   : > { %9780 = vmatprep.subr.bf16.mxu0 %v9779_v31  ;;  %v9787_v56 = vpack.c.bf16 %v3643_v13, %v3642_v63  ;;  %v9815_v31 = vpack.c.bf16 %v3673_v38, %v3672_v32  ;;  %v3677_v63 = vld [vmem:[%s16318_s6 + $0x1e8] sm:$0xff]  ;;  %v3630_v13 = vld [vmem:[%s16318_s6 + $0x70] sm:$0xff]  ;;  %v3660_v38 = vld [vmem:[%s16318_s6 + $0x160] sm:$0xff] }
 0xa17   : > { %9814 = vmatpush3.bf16.msra.mxu1 %v9813_v33  ;;  %v3676_v33 = vld [vmem:[%s16318_s6 + $0x1e0] sm:$0xff] }
 0xa18   : > { %9816 = vmatprep.subr.bf16.mxu1 %v9815_v31  ;;  %v9823_v32 = vpack.c.bf16 %v3677_v63, %v3676_v33  ;;  %v9825_v31 = vpack.c.bf16 %v3661_v15, %v3660_v38 }
 0xa19   : > { %9782 = vmatpush3.bf16.msra.mxu0 %v9781_v24  ;;  %v9817_v24 = vpack.c.bf16 %v3657_v16, %v3656_v51  ;;  %v3679_v51 = vld [vmem:[%s16318_s6 + $0x1f8] sm:$0xff] }
 0xa1a   : > { %9784 = vmatprep.subr.bf16.mxu0 %v9783_v48  ;;  %v3629_v48 = vld [vmem:[%s16318_s6 + $0x68] sm:$0xff] }
 0xa1b   : > { %9818 = vmatpush3.bf16.msra.mxu1 %v9817_v24  ;;  %v9793_v34 = vpack.c.bf16 %v3629_v48, %v3628_v47  ;;  %v3663_v24 = vld [vmem:[%s16318_s6 + $0x178] sm:$0xff] }
 0xa1c   : > { %9820 = vmatprep.subr.bf16.mxu1 %v9819_v50  ;;  %v9829_v41 = vpack.c.bf16 %v3663_v24, %v3662_v19 }
 0xa1d   : > { %9786 = vmatpush3.bf16.msra.mxu0 %v9785_v5  ;;  %v3647_v5 = vld [vmem:[%s16318_s6 + $0xf8] sm:$0xff] }
 0xa1e   : > { %9788 = vmatprep.subr.bf16.mxu0 %v9787_v56  ;;  %v9795_v20 = vpack.c.bf16 %v3647_v5, %v3646_v26  ;;  %v3631_v56 = vld [vmem:[%s16318_s6 + $0x78] sm:$0xff] }
 0xa1f   : > { %v9797_v61 = vpack.c.bf16 %v3631_v56, %v3630_v13  ;;  %9822 = vmatpush3.bf16.msra.mxu1 %v9821_v28 }
 0xa20   : > { %9824 = vmatprep.subr.bf16.mxu1 %v9823_v32 }
 0xa21   : > { %9790 = vmatpush3.bf16.msra.mxu0 %v9789_v9  ;;  %v3678_v9 = vld [vmem:[%s16318_s6 + $0x1f0] sm:$0xff] }
 0xa22   : > { %9792 = vmatprep.subr.bf16.mxu0 %v9791_v36  ;;  %v9827_v16 = vpack.c.bf16 %v3679_v51, %v3678_v9  ;;  %v16730_v9 = vld [vmem:[#allocation3_spill] sm:$0xff] }
 0xa23   : > { %9826 = vmatpush3.bf16.msra.mxu1 %v9825_v31 }
 0xa24   : > { %9828 = vmatprep.subr.bf16.mxu1 %v9827_v16 }
 0xa25   : > { %9794 = vmatpush3.bf16.msra.mxu0 %v9793_v34 }
 0xa26   : > { %9796 = vmatprep.subr.bf16.mxu0 %v9795_v20 }
 0xa27   : > { %9830 = vmatpush3.bf16.msra.mxu1 %v9829_v41 }
 0xa29   : > { %9798 = vmatpush3.bf16.msra.mxu0 %v9797_v61 }
 0xadb   : > { %v3492_v42 = vpop.f32.mrb[18].mxu0 }
 0xadc   : > { %v3568_v62 = vsub.f32 0.0, %v3492_v42  ;;  %v3494_v36 = vpop.f32.mrb[19].mxu0 }
 0xadd   : > { %v3569_v50 = vsub.f32 0.0, %v3494_v36 }
 0xade   : > { %v3572_v47 = vmul.f32 1.442695, %v3568_v62 }
 0xadf   : > { %v3574_v48 = vmul.f32 1.442695, %v3569_v50  ;;  %v3563_v23 = vpop.f32.mrb[20].mxu0 }
 0xae0   : > { %10799 = vpow2.f32 %v3572_v47  ;;  %v3570_v34 = vsub.f32 0.0, %v3563_v23  ;;  %v3565_v53 = vpop.f32.mrb[21].mxu0 }
 0xae1   : > { %10801 = vpow2.f32 %v3574_v48  ;;  %v3571_v26 = vsub.f32 0.0, %v3565_v53 }
 0xae2   : > { %v3576_v5 = vmul.f32 1.442695, %v3570_v34 }
 0xae3   : > { %v3578_v28 = vmul.f32 1.442695, %v3571_v26 }
 0xae4   : > { %10803 = vpow2.f32 %v3576_v5 }
 0xae5   : > { %10805 = vpow2.f32 %v3578_v28 }
 0xaea   : > { %v10800_v20 = vpop.eup %10799 }
 0xaeb   : > { %v10802_v33 = vpop.eup %10801  ;;  %v3580_v63 = vadd.f32 1.0, %v10800_v20 }
 0xaec   : > { %v3581_v13 = vadd.f32 1.0, %v10802_v33 }
 0xaed   : > { %10807 = vrcp.f32 %v3580_v63 }
 0xaee   : > { %v10804_v32 = vpop.eup %10803  ;;  %10809 = vrcp.f32 %v3581_v13 }
 0xaef   : > { %v10806_v56 = vpop.eup %10805  ;;  %v3582_v38 = vadd.f32 1.0, %v10804_v32 }
 0xaf0   : > { %v3583_v15 = vadd.f32 1.0, %v10806_v56 }
 0xaf1   : > { %10811 = vrcp.f32 %v3582_v38 }
 0xaf2   : > { %10813 = vrcp.f32 %v3583_v15 }
 0xaf7   : > { %v10808_v61 = vpop.eup %10807 }
 0xaf8   : > { %v10810_v31 = vpop.eup %10809  ;;  %v3595_v51 = vrot.slane %v10808_v61, %v16730_v9 }
 0xaf9   : > { %v3599_v16 = vrot.slane %v10810_v31, %v16730_v9 }
 0xafa   : > { %v13170_v19 = vmul.f32 %v3595_v51, %v12848_v2  ;;  %v13184_v2 = vmul.f32 %v3595_v51, %v12857_v22 }
 0xafb   : > { %v10812_v24 = vpop.eup %10811  ;;  %v13173_v41 = vmul.f32 %v3599_v16, %v12876_v59  ;;  %v13180_v50 = vmul.f32 %v3599_v16, %v12884_v11 }
 0xafc   : > { %16731 = vst [vmem:[#allocation57_spill] sm:$0xff] %v13170_v19  ;;  %v10814_v42 = vpop.eup %10813  ;;  %v3603_v62 = vrot.slane %v10812_v24, %v16730_v9  ;;  %16734 = vst [vmem:[#allocation58_spill] sm:$0xff] %v13184_v2 }
 0xafd   : > { %16732 = vst [vmem:[#allocation53_spill] sm:$0xff] %v13173_v41  ;;  %3744 = vmatprep.mubr.f32.mxu0 %v13173_v41  ;;  %v10444_v36 = vpack.i.bf16 %v13173_v41, %v13170_v19  ;;  %16733 = vst [vmem:[#allocation52_spill] sm:$0xff] %v13180_v50  ;;  %v3607_v47 = vrot.slane %v10814_v42, %v16730_v9  ;;  %v10449_v11 = vpack.i.bf16 %v13180_v50, %v13184_v2 }
 0xafe   : > { %3745 = vmatmul.mubr.f32.vlgmr.msra.gmra.mrb[22].mxu0 %v13170_v19  ;;  %v13188_v59 = vmul.f32 %v3603_v62, %v12879_v18  ;;  %v13204_v18 = vmul.f32 %v3603_v62, %v12887_v29 }
 0xaff   : > { %10445 = vrot.lane.b32.xlu0 %v10444_v36, %s16457_s23  ;;  %3749 = vmatprep.mubr.f32.mxu0 %v13180_v50  ;;  %v13193_v48 = vmul.f32 %v3607_v47, %v12852_v52  ;;  %v13201_v23 = vmul.f32 %v3607_v47, %v12865_v8 }
 0xb00   : > { %16735 = vst [vmem:[#allocation2_spill] sm:$0xff] %v13188_v59  ;;  %16738 = vst [vmem:[#allocation55_spill] sm:$0xff] %v13204_v18 }
 0xb01   : > { %16736 = vst [vmem:[#allocation59_spill] sm:$0xff] %v13193_v48  ;;  %3819 = vmatprep.mubr.f32.mxu1 %v13193_v48  ;;  %v10454_v22 = vpack.i.bf16 %v13193_v48, %v13188_v59  ;;  %16737 = vst [vmem:[#allocation60_spill] sm:$0xff] %v13201_v23  ;;  %v10459_v52 = vpack.i.bf16 %v13201_v23, %v13204_v18 }
 0xb02   : > { %3750 = vmatmul.mubr.f32.gmra.mrb[24].mxu0 %v13184_v2  ;;  %3820 = vmatmul.mubr.f32.vlgmr.msra.gmra.mrb[18].mxu1 %v13188_v59 }
 0xb03   : > { %10450 = vrot.lane.b32.xlu0 %v10449_v11, %s16457_s23  ;;  %10455 = vrot.lane.b32.xlu1 %v10454_v22, %s16457_s23 }
 0xb04   : > { %3824 = vmatprep.mubr.f32.mxu1 %v13201_v23 }
 0xb06   : > { %3825 = vmatmul.mubr.f32.gmra.mrb[20].mxu1 %v13204_v18 }
 0xb07   : > { %10460 = vrot.lane.b32.xlu1 %v10459_v52, %s16457_s23 }
 0xb71   : > { %v10446_v8 = vpop.permute.xlu0 %10445 }
 0xb72   : > { %v10448_v29 = vunpack.i.h.bf16 %v10446_v8  ;;  %v10447_v34 = vunpack.i.l.bf16 %v10446_v8 }
 0xb74   : > { %v3854_v5 = vsel %vm16518_vm9, %v10447_v34, %v10448_v29 }
 0xb75   : > { %v10451_v53 = vpop.permute.xlu0 %10450  ;;  %v10456_v26 = vpop.permute.xlu1 %10455  ;;  %v3872_v38 = vmax.f32 %v13170_v19, %v3854_v5 }
 0xb76   : > { %v10453_v28 = vunpack.i.h.bf16 %v10451_v53  ;;  %v10452_v20 = vunpack.i.l.bf16 %v10451_v53  ;;  %v10458_v33 = vunpack.i.h.bf16 %v10456_v26  ;;  %v10457_v63 = vunpack.i.l.bf16 %v10456_v26 }
 0xb78   : > { %v3856_v13 = vsel %vm16518_vm9, %v10457_v63, %v10458_v33  ;;  %v3870_v32 = vsel %vm16518_vm9, %v10458_v33, %v10447_v34  ;;  %v3855_v56 = vsel %vm16518_vm9, %v10448_v29, %v10457_v63  ;;  %v3857_v16 = vsel %vm16518_vm9, %v10452_v20, %v10453_v28 }
 0xb79   : > { %v10461_v15 = vpop.permute.xlu1 %10460  ;;  %v3874_v61 = vmax.f32 %v13188_v59, %v3856_v13  ;;  %v3875_v31 = vmax.f32 %v13193_v48, %v3870_v32  ;;  %v3873_v51 = vmax.f32 %v13173_v41, %v3855_v56  ;;  %v3876_v52 = vmax.f32 %v13184_v2, %v3857_v16 }
 0xb7a   : > { %v10463_v24 = vunpack.i.h.bf16 %v10461_v15  ;;  %v10462_v42 = vunpack.i.l.bf16 %v10461_v15 }
 0xb7b   : > { %v10474_v62 = vpack.i.bf16 %v3875_v31, %v3874_v61  ;;  %v10464_v36 = vpack.i.bf16 %v3873_v51, %v3872_v38 }
 0xb7c   : > { %v3859_v47 = vsel %vm16518_vm9, %v10462_v42, %v10463_v24  ;;  %v3871_v11 = vsel %vm16518_vm9, %v10463_v24, %v10452_v20  ;;  %v3858_v22 = vsel %vm16518_vm9, %v10453_v28, %v10462_v42 }
 0xb7d   : > { %10475 = vrot.lane.b32.xlu1 %v10474_v62, %s16739_s26  ;;  %10465 = vrot.lane.b32.xlu0 %v10464_v36, %s16739_s26  ;;  %v3878_v8 = vmax.f32 %v13204_v18, %v3859_v47  ;;  %v3879_v29 = vmax.f32 %v13201_v23, %v3871_v11  ;;  %v3877_v34 = vmax.f32 %v13180_v50, %v3858_v22  ;;  %v16755_v50 = vld [vmem:[#allocation10_spill] sm:$0xff] }
 0xb7f   : > { %v10479_v53 = vpack.i.bf16 %v3879_v29, %v3878_v8  ;;  %v10469_v26 = vpack.i.bf16 %v3877_v34, %v3876_v52 }
 0xb81   : > { %10480 = vrot.lane.b32.xlu1 %v10479_v53, %s16739_s26  ;;  %10470 = vrot.lane.b32.xlu0 %v10469_v26, %s16739_s26 }
 0xbd1   : > { %v9099_v5 = vpop.f32.mrb[22].mxu0 }
 0xbd2   : > { %v9100_v28 = vpop.f32.mrb[23].mxu0 }
 0xbd3   : > { %v9101_v20 = vadd.f32 %v9100_v28, %v9099_v5 }
 0xbd5   : > { %v9102_v33 = vpop.f32.mrb[24].mxu0  ;;  %v9137_v63 = vpop.f32.mrb[18].mxu1 }
 0xbd6   : > { %v9103_v13 = vpop.f32.mrb[25].mxu0  ;;  %v9138_v32 = vpop.f32.mrb[19].mxu1 }
 0xbd7   : > { %v9104_v56 = vadd.f32 %v9103_v13, %v9102_v33  ;;  %v9139_v15 = vadd.f32 %v9138_v32, %v9137_v63 }
 0xbd9   : > { %v13235_v16 = vadd.f32 %v9139_v15, %v9101_v20  ;;  %v9140_v24 = vpop.f32.mrb[20].mxu1 }
 0xbda   : > { %v9141_v42 = vpop.f32.mrb[21].mxu1 }
 0xbdb   : > { %v9142_v62 = vadd.f32 %v9141_v42, %v9140_v24 }
 0xbdd   : > { %v13237_v36 = vadd.f32 %v9142_v62, %v9104_v56 }
 0xbef   : > { %v10476_v47 = vpop.permute.xlu1 %10475  ;;  %v10466_v11 = vpop.permute.xlu0 %10465 }
 0xbf0   : > { %v10478_v22 = vunpack.i.h.bf16 %v10476_v47  ;;  %v10477_v53 = vunpack.i.l.bf16 %v10476_v47  ;;  %v10468_v26 = vunpack.i.h.bf16 %v10466_v11  ;;  %v10467_v9 = vunpack.i.l.bf16 %v10466_v11 }
 0xbf2   : > { %v3906_v5 = vsel %vm16517_vm10, %v10477_v53, %v10478_v22  ;;  %v3920_v28 = vsel %vm16517_vm10, %v10478_v22, %v10467_v9  ;;  %v3904_v33 = vsel %vm16517_vm10, %v10467_v9, %v10468_v26  ;;  %v3905_v20 = vsel %vm16517_vm10, %v10468_v26, %v10477_v53 }
 0xbf3   : > { %v10481_v63 = vpop.permute.xlu1 %10480  ;;  %v10471_v13 = vpop.permute.xlu0 %10470  ;;  %v3924_v32 = vmax.f32 %v3874_v61, %v3906_v5  ;;  %v3925_v15 = vmax.f32 %v3875_v31, %v3920_v28  ;;  %v3922_v56 = vmax.f32 %v3872_v38, %v3904_v33  ;;  %v3923_v24 = vmax.f32 %v3873_v51, %v3905_v20 }
 0xbf4   : > { %v10483_v42 = vunpack.i.h.bf16 %v10481_v63  ;;  %v10482_v62 = vunpack.i.l.bf16 %v10481_v63  ;;  %v10473_v10 = vunpack.i.h.bf16 %v10471_v13  ;;  %v10472_v47 = vunpack.i.l.bf16 %v10471_v13 }
 0xbf5   : > { %v10489_v23 = vpack.i.bf16 %v3925_v15, %v3924_v32  ;;  %v10484_v11 = vpack.i.bf16 %v3923_v24, %v3922_v56 }
 0xbf6   : > { %v3909_v18 = vsel %vm16517_vm10, %v10482_v62, %v10483_v42  ;;  %v3921_v22 = vsel %vm16517_vm10, %v10483_v42, %v10472_v47  ;;  %v3907_v9 = vsel %vm16517_vm10, %v10472_v47, %v10473_v10  ;;  %v3908_v53 = vsel %vm16517_vm10, %v10473_v10, %v10482_v62 }
 0xbf7   : > { %10490 = vrot.lane.b32.xlu1 %v10489_v23, %s16740_s28  ;;  %10485 = vrot.lane.b32.xlu0 %v10484_v11, %s16740_s28  ;;  %v3928_v38 = vmax.f32 %v3878_v8, %v3909_v18  ;;  %v3929_v61 = vmax.f32 %v3879_v29, %v3921_v22  ;;  %v3926_v31 = vmax.f32 %v3876_v52, %v3907_v9 }
 0xbf8   : > { %v3927_v51 = vmax.f32 %v3877_v34, %v3908_v53 }
 0xbf9   : > { %v10499_v26 = vpack.i.bf16 %v3929_v61, %v3928_v38 }
 0xbfa   : > { %v10494_v5 = vpack.i.bf16 %v3927_v51, %v3926_v31 }
 0xbfb   : > { %10500 = vrot.lane.b32.xlu1 %v10499_v26, %s16740_s28 }
 0xbfc   : > { %10495 = vrot.lane.b32.xlu0 %v10494_v5, %s16740_s28 }
 0xc69   : > { %v10491_v28 = vpop.permute.xlu1 %10490  ;;  %v10486_v33 = vpop.permute.xlu0 %10485 }
 0xc6a   : > { %v10493_v20 = vunpack.i.h.bf16 %v10491_v28  ;;  %v10492_v63 = vunpack.i.l.bf16 %v10491_v28  ;;  %v10488_v13 = vunpack.i.h.bf16 %v10486_v33  ;;  %v10487_v10 = vunpack.i.l.bf16 %v10486_v33 }
 0xc6c   : > { %v3956_v23 = vsel %vm16516_vm11, %v10492_v63, %v10493_v20  ;;  %v3955_v42 = vsel %vm16516_vm11, %v10488_v13, %v10492_v63  ;;  %v3954_v18 = vsel %vm16516_vm11, %v10487_v10, %v10488_v13  ;;  %v3970_v52 = vsel %vm16516_vm11, %v10493_v20, %v10487_v10  ;;  %v4096_v20 = vld [vmem:[%s16319_s7 + $0x80] sm:$0xff]  ;;  %v4097_v63 = vld [vmem:[%s16319_s7 + $0x88] sm:$0xff] }
 0xc6d   : > { %v13255_v8 = vmax.f32 %v3924_v32, %v3956_v23  ;;  %v13257_v29 = vmax.f32 %v3923_v24, %v3955_v42  ;;  %v13259_v34 = vmax.f32 %v3922_v56, %v3954_v18  ;;  %v13261_v62 = vmax.f32 %v3925_v15, %v3970_v52  ;;  %v10501_v47 = vpop.permute.xlu1 %10500  ;;  %v4129_v18 = vld [vmem:[%s16319_s7 + $0x188] sm:$0xff]  ;;  %v4080_v52 = vld [vmem:[%s16319_s7] sm:$0xff] }
 0xc6e   : > { %v10503_v11 = vunpack.i.h.bf16 %v10501_v47  ;;  %v10502_v22 = vunpack.i.l.bf16 %v10501_v47  ;;  %v10496_v9 = vpop.permute.xlu0 %10495  ;;  %v9831_v42 = vpack.c.bf16 %v4097_v63, %v4096_v20  ;;  %v4083_v20 = vld [vmem:[%s16319_s7 + $0x18] sm:$0xff]  ;;  %v4114_v63 = vld [vmem:[%s16319_s7 + $0x110] sm:$0xff] }
 0xc6f   : > { %v10498_v53 = vunpack.i.h.bf16 %v10496_v9  ;;  %v10497_v26 = vunpack.i.l.bf16 %v10496_v9  ;;  %v10509_v5 = vpack.i.bf16 %v13261_v62, %v13255_v8  ;;  %v10504_v28 = vpack.i.bf16 %v13257_v29, %v13259_v34 }
 0xc70   : > { %v3959_v32 = vsel %vm16516_vm11, %v10502_v22, %v10503_v11  ;;  %9832 = vmatprep.subr.bf16.mxu0 %v9831_v42  ;;  %v4115_v42 = vld [vmem:[%s16319_s7 + $0x118] sm:$0xff] }
 0xc71   : > { %v13268_v24 = vmax.f32 %v3928_v38, %v3959_v32  ;;  %v3958_v56 = vsel %vm16516_vm11, %v10498_v53, %v10502_v22  ;;  %v3957_v15 = vsel %vm16516_vm11, %v10497_v26, %v10498_v53  ;;  %v3971_v33 = vsel %vm16516_vm11, %v10503_v11, %v10497_v26  ;;  %10510 = vrot.lane.b32.xlu1 %v10509_v5, %s16741_s20  ;;  %v4128_v38 = vld [vmem:[%s16319_s7 + $0x180] sm:$0xff]  ;;  %v4113_v11 = vld [vmem:[%s16319_s7 + $0x108] sm:$0xff]  ;;  %v4098_v22 = vld [vmem:[%s16319_s7 + $0x90] sm:$0xff] }
 0xc72   : > { %v13283_v13 = vmax.f32 %v3927_v51, %v3958_v56  ;;  %v13285_v10 = vmax.f32 %v3926_v31, %v3957_v15  ;;  %v13287_v23 = vmax.f32 %v3929_v61, %v3971_v33  ;;  %10505 = vrot.lane.b32.xlu0 %v10504_v28, %s16741_s20  ;;  %v4081_v51 = vld [vmem:[%s16319_s7 + $0x8] sm:$0xff]  ;;  %v9863_v47 = vpack.c.bf16 %v4129_v18, %v4128_v38  ;;  %v4112_v61 = vld [vmem:[%s16319_s7 + $0x100] sm:$0xff]  ;;  %v4099_v5 = vld [vmem:[%s16319_s7 + $0x98] sm:$0xff] }
 0xc73   : > { %v9833_v31 = vpack.c.bf16 %v4081_v51, %v4080_v52  ;;  %v9865_v26 = vpack.c.bf16 %v4113_v11, %v4112_v61  ;;  %v4130_v28 = vld [vmem:[%s16319_s7 + $0x190] sm:$0xff]  ;;  %v4131_v32 = vld [vmem:[%s16319_s7 + $0x198] sm:$0xff]  ;;  %v9835_v56 = vpack.c.bf16 %v4099_v5, %v4098_v22  ;;  %v4100_v18 = vld [vmem:[%s16319_s7 + $0xa0] sm:$0xff]  ;;  %v9869_v52 = vpack.c.bf16 %v4115_v42, %v4114_v63 }
 0xc74   : > { %v10519_v9 = vpack.i.bf16 %v13287_v23, %v13268_v24  ;;  %v10514_v53 = vpack.i.bf16 %v13283_v13, %v13285_v10  ;;  %9864 = vmatprep.subr.bf16.mxu1 %v9863_v47  ;;  %v9867_v15 = vpack.c.bf16 %v4131_v32, %v4130_v28  ;;  %v4082_v33 = vld [vmem:[%s16319_s7 + $0x10] sm:$0xff]  ;;  %v4101_v51 = vld [vmem:[%s16319_s7 + $0xa8] sm:$0xff]  ;;  %v4132_v47 = vld [vmem:[%s16319_s7 + $0x1a0] sm:$0xff] }
 0xc75   : > { %9834 = vmatpush3.bf16.msra.mxu0 %v9833_v31  ;;  %v9837_v38 = vpack.c.bf16 %v4083_v20, %v4082_v33  ;;  %9866 = vmatpush3.bf16.msra.mxu1 %v9865_v26  ;;  %v4133_v31 = vld [vmem:[%s16319_s7 + $0x1a8] sm:$0xff]  ;;  %v9839_v61 = vpack.c.bf16 %v4101_v51, %v4100_v18  ;;  %v4084_v22 = vld [vmem:[%s16319_s7 + $0x20] sm:$0xff]  ;;  %v4102_v28 = vld [vmem:[%s16319_s7 + $0xb0] sm:$0xff] }
 0xc76   : > { %10520 = vrot.lane.b32.xlu1 %v10519_v9, %s16741_s20  ;;  %10515 = vrot.lane.b32.xlu0 %v10514_v53, %s16741_s20  ;;  %v9871_v11 = vpack.c.bf16 %v4133_v31, %v4132_v47  ;;  %v4085_v9 = vld [vmem:[%s16319_s7 + $0x28] sm:$0xff]  ;;  %v4116_v53 = vld [vmem:[%s16319_s7 + $0x120] sm:$0xff] }
 0xc77   : > { %9836 = vmatprep.subr.bf16.mxu0 %v9835_v56  ;;  %9868 = vmatprep.subr.bf16.mxu1 %v9867_v15  ;;  %v9841_v26 = vpack.c.bf16 %v4085_v9, %v4084_v22  ;;  %v4117_v5 = vld [vmem:[%s16319_s7 + $0x128] sm:$0xff]  ;;  %v4103_v32 = vld [vmem:[%s16319_s7 + $0xb8] sm:$0xff]  ;;  %v4134_v15 = vld [vmem:[%s16319_s7 + $0x1b0] sm:$0xff] }
 0xc78   : > { %v9843_v56 = vpack.c.bf16 %v4103_v32, %v4102_v28  ;;  %v4135_v33 = vld [vmem:[%s16319_s7 + $0x1b8] sm:$0xff]  ;;  %v4086_v20 = vld [vmem:[%s16319_s7 + $0x30] sm:$0xff]  ;;  %v9873_v63 = vpack.c.bf16 %v4117_v5, %v4116_v53  ;;  %v4104_v47 = vld [vmem:[%s16319_s7 + $0xc0] sm:$0xff] }
 0xc79   : > { %9838 = vmatpush3.bf16.msra.mxu0 %v9837_v38  ;;  %9870 = vmatpush3.bf16.msra.mxu1 %v9869_v52  ;;  %v4087_v38 = vld [vmem:[%s16319_s7 + $0x38] sm:$0xff]  ;;  %v4118_v42 = vld [vmem:[%s16319_s7 + $0x130] sm:$0xff]  ;;  %v9875_v18 = vpack.c.bf16 %v4135_v33, %v4134_v15  ;;  %v4105_v52 = vld [vmem:[%s16319_s7 + $0xc8] sm:$0xff] }
 0xc7a   : > { %9840 = vmatprep.subr.bf16.mxu0 %v9839_v61  ;;  %9872 = vmatprep.subr.bf16.mxu1 %v9871_v11  ;;  %v4119_v51 = vld [vmem:[%s16319_s7 + $0x138] sm:$0xff]  ;;  %v9845_v31 = vpack.c.bf16 %v4087_v38, %v4086_v20  ;;  %v4136_v61 = vld [vmem:[%s16319_s7 + $0x1c0] sm:$0xff]  ;;  %v4137_v11 = vld [vmem:[%s16319_s7 + $0x1c8] sm:$0xff]  ;;  %v9847_v22 = vpack.c.bf16 %v4105_v52, %v4104_v47 }
 0xc7b   : > { %v4088_v9 = vld [vmem:[%s16319_s7 + $0x40] sm:$0xff]  ;;  %v4089_v53 = vld [vmem:[%s16319_s7 + $0x48] sm:$0xff]  ;;  %v4106_v5 = vld [vmem:[%s16319_s7 + $0xd0] sm:$0xff]  ;;  %v9879_v32 = vpack.c.bf16 %v4137_v11, %v4136_v61 }
 0xc7c   : > { %v4107_v28 = vld [vmem:[%s16319_s7 + $0xd8] sm:$0xff]  ;;  %v4121_v15 = vld [vmem:[%s16319_s7 + $0x148] sm:$0xff]  ;;  %v9849_v33 = vpack.c.bf16 %v4089_v53, %v4088_v9  ;;  %v4138_v20 = vld [vmem:[%s16319_s7 + $0x1d0] sm:$0xff] }
 0xc7d   : > { %9842 = vmatpush3.bf16.msra.mxu0 %v9841_v26  ;;  %9874 = vmatpush3.bf16.msra.mxu1 %v9873_v63  ;;  %v9877_v26 = vpack.c.bf16 %v4119_v51, %v4118_v42  ;;  %v4139_v63 = vld [vmem:[%s16319_s7 + $0x1d8] sm:$0xff]  ;;  %v9851_v38 = vpack.c.bf16 %v4107_v28, %v4106_v5  ;;  %v4090_v42 = vld [vmem:[%s16319_s7 + $0x50] sm:$0xff]  ;;  %v4108_v47 = vld [vmem:[%s16319_s7 + $0xe0] sm:$0xff] }
 0xc7e   : > { %9844 = vmatprep.subr.bf16.mxu0 %v9843_v56  ;;  %9876 = vmatprep.subr.bf16.mxu1 %v9875_v18  ;;  %v4120_v56 = vld [vmem:[%s16319_s7 + $0x140] sm:$0xff]  ;;  %v4091_v18 = vld [vmem:[%s16319_s7 + $0x58] sm:$0xff]  ;;  %v4109_v52 = vld [vmem:[%s16319_s7 + $0xe8] sm:$0xff] }
 0xc7f   : > { %v9881_v51 = vpack.c.bf16 %v4121_v15, %v4120_v56  ;;  %v4122_v61 = vld [vmem:[%s16319_s7 + $0x150] sm:$0xff]  ;;  %v4123_v11 = vld [vmem:[%s16319_s7 + $0x158] sm:$0xff]  ;;  %v4140_v9 = vld [vmem:[%s16319_s7 + $0x1e0] sm:$0xff] }
 0xc80   : > { %v4141_v53 = vld [vmem:[%s16319_s7 + $0x1e8] sm:$0xff]  ;;  %v4092_v5 = vld [vmem:[%s16319_s7 + $0x60] sm:$0xff] }
 0xc81   : > { %9846 = vmatpush3.bf16.msra.mxu0 %v9845_v31  ;;  %9878 = vmatpush3.bf16.msra.mxu1 %v9877_v26  ;;  %v9883_v31 = vpack.c.bf16 %v4139_v63, %v4138_v20  ;;  %v9855_v26 = vpack.c.bf16 %v4109_v52, %v4108_v47  ;;  %v4093_v28 = vld [vmem:[%s16319_s7 + $0x68] sm:$0xff]  ;;  %v9887_v56 = vpack.c.bf16 %v4141_v53, %v4140_v9  ;;  %v4143_v47 = vld [vmem:[%s16319_s7 + $0x1f8] sm:$0xff]  ;;  %v4094_v52 = vld [vmem:[%s16319_s7 + $0x70] sm:$0xff] }
 0xc82   : > { %9848 = vmatprep.subr.bf16.mxu0 %v9847_v22  ;;  %9880 = vmatprep.subr.bf16.mxu1 %v9879_v32  ;;  %v9853_v22 = vpack.c.bf16 %v4091_v18, %v4090_v42  ;;  %v9885_v32 = vpack.c.bf16 %v4123_v11, %v4122_v61  ;;  %v9857_v15 = vpack.c.bf16 %v4093_v28, %v4092_v5  ;;  %v4125_v20 = vld [vmem:[%s16319_s7 + $0x168] sm:$0xff]  ;;  %v4111_v42 = vld [vmem:[%s16319_s7 + $0xf8] sm:$0xff]  ;;  %v4142_v18 = vld [vmem:[%s16319_s7 + $0x1f0] sm:$0xff] }
 0xc83   : > { %v9891_v61 = vpack.c.bf16 %v4143_v47, %v4142_v18  ;;  %v4127_v9 = vld [vmem:[%s16319_s7 + $0x178] sm:$0xff] }
 0xc85   : > { %9850 = vmatpush3.bf16.msra.mxu0 %v9849_v33  ;;  %9882 = vmatpush3.bf16.msra.mxu1 %v9881_v51  ;;  %v4124_v33 = vld [vmem:[%s16319_s7 + $0x160] sm:$0xff] }
 0xc86   : > { %9852 = vmatprep.subr.bf16.mxu0 %v9851_v38  ;;  %9884 = vmatprep.subr.bf16.mxu1 %v9883_v31  ;;  %v9889_v63 = vpack.c.bf16 %v4125_v20, %v4124_v33  ;;  %v4110_v38 = vld [vmem:[%s16319_s7 + $0xf0] sm:$0xff]  ;;  %v4095_v31 = vld [vmem:[%s16319_s7 + $0x78] sm:$0xff] }
 0xc87   : > { %v9859_v51 = vpack.c.bf16 %v4111_v42, %v4110_v38  ;;  %v9861_v11 = vpack.c.bf16 %v4095_v31, %v4094_v52 }
 0xc89   : > { %9854 = vmatpush3.bf16.msra.mxu0 %v9853_v22  ;;  %9886 = vmatpush3.bf16.msra.mxu1 %v9885_v32  ;;  %v4126_v22 = vld [vmem:[%s16319_s7 + $0x170] sm:$0xff] }
 0xc8a   : > { %9856 = vmatprep.subr.bf16.mxu0 %v9855_v26  ;;  %9888 = vmatprep.subr.bf16.mxu1 %v9887_v56  ;;  %v9893_v53 = vpack.c.bf16 %v4127_v9, %v4126_v22 }
 0xc8d   : > { %9858 = vmatpush3.bf16.msra.mxu0 %v9857_v15  ;;  %9890 = vmatpush3.bf16.msra.mxu1 %v9889_v63 }
 0xc8e   : > { %9860 = vmatprep.subr.bf16.mxu0 %v9859_v51  ;;  %9892 = vmatprep.subr.bf16.mxu1 %v9891_v61 }
 0xc91   : > { %9862 = vmatpush3.bf16.msra.mxu0 %v9861_v11  ;;  %9894 = vmatpush3.bf16.msra.mxu1 %v9893_v53 }
 0xc92   : > { %9895 = vmatprep.subr.bf16.mxu0 %v16715_v55 }
 0xce3   : > { %v10511_v26 = vpop.permute.xlu1 %10510 }
 0xce4   : > { %v10513_v5 = vunpack.i.h.bf16 %v10511_v26  ;;  %v10512_v28 = vunpack.i.l.bf16 %v10511_v26  ;;  %v10506_v32 = vpop.permute.xlu0 %10505 }
 0xce5   : > { %v10508_v56 = vunpack.i.h.bf16 %v10506_v32  ;;  %v10507_v15 = vunpack.i.l.bf16 %v10506_v32 }
 0xce6   : > { %v4006_v33 = vsel %vm16464_vm12, %v10512_v28, %v10513_v5 }
 0xce7   : > { %v4024_v20 = vmax.f32 %v13255_v8, %v4006_v33  ;;  %v4005_v63 = vsel %vm16464_vm12, %v10508_v56, %v10512_v28  ;;  %v4004_v38 = vsel %vm16464_vm12, %v10507_v15, %v10508_v56  ;;  %v4020_v42 = vsel %vm16464_vm12, %v10513_v5, %v10507_v15 }
 0xce8   : > { %v4023_v18 = vmax.f32 %v13257_v29, %v4005_v63  ;;  %v4022_v51 = vmax.f32 %v13259_v34, %v4004_v38  ;;  %v4025_v47 = vmax.f32 %v13261_v62, %v4020_v42  ;;  %v10521_v52 = vpop.permute.xlu1 %10520  ;;  %v10516_v31 = vpop.permute.xlu0 %10515 }
 0xce9   : > { %v10523_v61 = vunpack.i.h.bf16 %v10521_v52  ;;  %v10522_v11 = vunpack.i.l.bf16 %v10521_v52  ;;  %v10518_v22 = vunpack.i.h.bf16 %v10516_v31  ;;  %v10517_v9 = vunpack.i.l.bf16 %v10516_v31 }
 0xcea   : > { %v10529_v53 = vpack.i.bf16 %v4025_v47, %v4024_v20  ;;  %v10524_v8 = vpack.i.bf16 %v4023_v18, %v4022_v51 }
 0xceb   : > { %v4009_v26 = vsel %vm16464_vm12, %v10522_v11, %v10523_v61  ;;  %v4008_v28 = vsel %vm16464_vm12, %v10518_v22, %v10522_v11  ;;  %v4007_v5 = vsel %vm16464_vm12, %v10517_v9, %v10518_v22  ;;  %v4021_v29 = vsel %vm16464_vm12, %v10523_v61, %v10517_v9 }
 0xcec   : > { %v4028_v34 = vmax.f32 %v13268_v24, %v4009_v26  ;;  %v4027_v62 = vmax.f32 %v13283_v13, %v4008_v28  ;;  %v4026_v32 = vmax.f32 %v13285_v10, %v4007_v5  ;;  %v4029_v56 = vmax.f32 %v13287_v23, %v4021_v29  ;;  %10530 = vrot.lane.b32.xlu1 %v10529_v53, %s16514_s14 }
 0xced   : > { %10525 = vrot.lane.b32.xlu0 %v10524_v8, %s16514_s14 }
 0xcee   : > { %v10539_v15 = vpack.i.bf16 %v4029_v56, %v4028_v34  ;;  %v10534_v33 = vpack.i.bf16 %v4027_v62, %v4026_v32 }
 0xcf0   : > { %10540 = vrot.lane.b32.xlu1 %v10539_v15, %s16514_s14 }
 0xcf1   : > { %10535 = vrot.lane.b32.xlu0 %v10534_v33, %s16514_s14 }
 0xd5e   : > { %v10531_v63 = vpop.permute.xlu1 %10530 }
 0xd5f   : > { %v10533_v38 = vunpack.i.h.bf16 %v10531_v63  ;;  %v10532_v42 = vunpack.i.l.bf16 %v10531_v63  ;;  %v10526_v24 = vpop.permute.xlu0 %10525 }
 0xd60   : > { %v10528_v52 = vunpack.i.h.bf16 %v10526_v24  ;;  %v10527_v13 = vunpack.i.l.bf16 %v10526_v24 }
 0xd61   : > { %v4056_v10 = vsel %vm16463_vm13, %v10532_v42, %v10533_v38 }
 0xd62   : > { %v4074_v31 = vmax.f32 %v4024_v20, %v4056_v10  ;;  %v4054_v23 = vsel %vm16463_vm13, %v10527_v13, %v10528_v52  ;;  %v10541_v61 = vpop.permute.xlu1 %10540  ;;  %v4055_v11 = vsel %vm16463_vm13, %v10528_v52, %v10532_v42  ;;  %v4070_v22 = vsel %vm16463_vm13, %v10533_v38, %v10527_v13 }
 0xd63   : > { %v4072_v9 = vmax.f32 %v4022_v51, %v4054_v23  ;;  %v10543_v53 = vunpack.i.h.bf16 %v10541_v61  ;;  %v10542_v8 = vunpack.i.l.bf16 %v10541_v61  ;;  %v10536_v26 = vpop.permute.xlu0 %10535  ;;  %v4073_v28 = vmax.f32 %v4023_v18, %v4055_v11 }
 0xd64   : > { %v10538_v5 = vunpack.i.h.bf16 %v10536_v26  ;;  %v10537_v29 = vunpack.i.l.bf16 %v10536_v26  ;;  %v4075_v15 = vmax.f32 %v4025_v47, %v4070_v22  ;;  %v4390_v26 = vld [vmem:[%s16320_s8 + $0x10] sm:$0xff] }
 0xd65   : > { %4208 = vmatprep.mubr.f32.mxu0 %v4073_v28  ;;  %v4059_v33 = vsel %vm16463_vm13, %v10542_v8, %v10543_v53 }
 0xd66   : > { %4283 = vmatprep.mubr.f32.mxu1 %v4075_v15  ;;  %4209 = vmatmul.mubr.f32.vlgmr.msra.gmra.mrb[26].mxu0 %v4072_v9  ;;  %v4058_v20 = vsel %vm16463_vm13, %v10538_v5, %v10542_v8  ;;  %v4071_v63 = vsel %vm16463_vm13, %v10543_v53, %v10537_v29  ;;  %v4057_v42 = vsel %vm16463_vm13, %v10537_v29, %v10538_v5  ;;  %v4388_v53 = vld [vmem:[%s16320_s8] sm:$0xff]  ;;  %v4389_v8 = vld [vmem:[%s16320_s8 + $0x8] sm:$0xff]  ;;  %v4391_v5 = vld [vmem:[%s16320_s8 + $0x18] sm:$0xff] }
 0xd67   : > { %4284 = vmatmul.mubr.f32.vlgmr.msra.gmra.mrb[22].mxu1 %v4074_v31  ;;  %v4077_v51 = vmax.f32 %v4027_v62, %v4058_v20  ;;  %v4079_v38 = vmax.f32 %v4029_v56, %v4071_v63  ;;  %v4076_v24 = vmax.f32 %v4026_v32, %v4057_v42  ;;  %v4078_v52 = vmax.f32 %v4028_v34, %v4059_v33  ;;  %v4392_v15 = vld [vmem:[%s16320_s8 + $0x20] sm:$0xff]  ;;  %v4393_v33 = vld [vmem:[%s16320_s8 + $0x28] sm:$0xff]  ;;  %v4394_v63 = vld [vmem:[%s16320_s8 + $0x30] sm:$0xff] }
 0xd68   : > { %v9896_v28 = vpack.c.bf16 %v4389_v8, %v4388_v53  ;;  %v9899_v29 = vpack.c.bf16 %v4391_v5, %v4390_v26  ;;  %v9902_v20 = vpack.c.bf16 %v4393_v33, %v4392_v15  ;;  %v4395_v42 = vld [vmem:[%s16320_s8 + $0x38] sm:$0xff]  ;;  %v4408_v8 = vld [vmem:[%s16320_s8 + $0xa0] sm:$0xff]  ;;  %v4409_v26 = vld [vmem:[%s16320_s8 + $0xa8] sm:$0xff] }
 0xd69   : > { %4213 = vmatprep.mubr.f32.mxu0 %v4077_v51  ;;  %4288 = vmatprep.mubr.f32.mxu1 %v4079_v38  ;;  %v9905_v51 = vpack.c.bf16 %v4395_v42, %v4394_v63  ;;  %v4396_v38 = vld [vmem:[%s16320_s8 + $0x40] sm:$0xff]  ;;  %v4410_v5 = vld [vmem:[%s16320_s8 + $0xb0] sm:$0xff]  ;;  %vm16743_vm13 = vmmov %vm16742_vm5 }
 0xd6a   : > { %4214 = vmatmul.mubr.f32.gmra.mrb[28].mxu0 %v4076_v24  ;;  %v4397_v24 = vld [vmem:[%s16320_s8 + $0x48] sm:$0xff]  ;;  %v4412_v42 = vld [vmem:[%s16320_s8 + $0xc0] sm:$0xff] }
 0xd6b   : > { %4289 = vmatmul.mubr.f32.gmra.mrb[24].mxu1 %v4078_v52  ;;  %9897 = vmatpush1.bf16.msra.mxu0 %v9896_v28  ;;  %v9908_v52 = vpack.c.bf16 %v4397_v24, %v4396_v38  ;;  %v9926_v28 = vpack.c.bf16 %v4409_v26, %v4408_v8 }
 0xd6c   : > { %4587 = vmatprep.mubr.f32.mxu1 %v16714_v44  ;;  %9898 = vmatprep.subr.bf16.mxu0 %v16715_v55 }
 0xd6f   : > { %9900 = vmatpush1.bf16.msra.mxu0 %v9899_v29  ;;  %v4411_v29 = vld [vmem:[%s16320_s8 + $0xb8] sm:$0xff] }
 0xd70   : > { %9901 = vmatprep.subr.bf16.mxu0 %v16715_v55  ;;  %v9929_v33 = vpack.c.bf16 %v4411_v29, %v4410_v5 }
 0xd73   : > { %9903 = vmatpush1.bf16.msra.mxu0 %v9902_v20 }
 0xd74   : > { %9904 = vmatprep.subr.bf16.mxu0 %v16715_v55 }
 0xd77   : > { %9906 = vmatpush1.bf16.msra.mxu0 %v9905_v51  ;;  %v4413_v51 = vld [vmem:[%s16320_s8 + $0xc8] sm:$0xff] }
 0xd78   : > { %9907 = vmatprep.subr.bf16.mxu0 %v16715_v55  ;;  %v9932_v24 = vpack.c.bf16 %v4413_v51, %v4412_v42  ;;  %v8844_v51 = vld [vmem:[%s10963_s19 + $0x88] sm:$0xff] }
 0xd7b   : > { %9909 = vmatpush1.bf16.msra.mxu0 %v9908_v52 }
 0xd7c   : > { %9910 = vmatprep.subr.bf16.mxu0 %v16715_v55 }
 0xe39   : > { %v9175_v18 = vpop.f32.mrb[26].mxu0 }
 0xe3a   : > { %v9213_v47 = vpop.f32.mrb[22].mxu1  ;;  %v9176_v13 = vpop.f32.mrb[27].mxu0 }
 0xe3b   : > { %v9177_v10 = vadd.f32 %v9176_v13, %v9175_v18  ;;  %v9214_v23 = vpop.f32.mrb[23].mxu1  ;;  %v4398_v18 = vld [vmem:[%s16320_s8 + $0x50] sm:$0xff] }
 0xe3c   : > { %v9215_v61 = vadd.f32 %v9214_v23, %v9213_v47  ;;  %v4399_v47 = vld [vmem:[%s16320_s8 + $0x58] sm:$0xff]  ;;  %v4401_v23 = vld [vmem:[%s16320_s8 + $0x68] sm:$0xff] }
 0xe3d   : > { %v9178_v11 = vpop.f32.mrb[28].mxu0  ;;  %v9911_v13 = vpack.c.bf16 %v4399_v47, %v4398_v18  ;;  %v4414_v47 = vld [vmem:[%s16320_s8 + $0xd0] sm:$0xff] }
 0xe3e   : > { %v4286_v22 = vadd.f32 %v9215_v61, %v9177_v10  ;;  %v9216_v9 = vpop.f32.mrb[24].mxu1  ;;  %v9179_v31 = vpop.f32.mrb[29].mxu0  ;;  %v4400_v10 = vld [vmem:[%s16320_s8 + $0x60] sm:$0xff] }
 0xe3f   : > { %v9180_v62 = vadd.f32 %v9179_v31, %v9178_v11  ;;  %v9217_v56 = vpop.f32.mrb[25].mxu1  ;;  %9912 = vmatpush1.bf16.msra.mxu0 %v9911_v13  ;;  %v9914_v61 = vpack.c.bf16 %v4401_v23, %v4400_v10  ;;  %v4402_v11 = vld [vmem:[%s16320_s8 + $0x70] sm:$0xff]  ;;  %v4404_v31 = vld [vmem:[%s16320_s8 + $0x80] sm:$0xff]  ;;  %v4415_v13 = vld [vmem:[%s16320_s8 + $0xd8] sm:$0xff] }
 0xe40   : > { %v9218_v32 = vadd.f32 %v9217_v56, %v9216_v9  ;;  %4296 = vrot.lane.b32.xlu0 %v4286_v22, %s16509_s18  ;;  %9913 = vmatprep.subr.bf16.mxu0 %v16715_v55  ;;  %v4403_v22 = vld [vmem:[%s16320_s8 + $0x78] sm:$0xff] }
 0xe41   : > { %v9917_v9 = vpack.c.bf16 %v4403_v22, %v4402_v11 }
 0xe42   : > { %v4291_v34 = vadd.f32 %v9218_v32, %v9180_v62  ;;  %v4405_v62 = vld [vmem:[%s16320_s8 + $0x88] sm:$0xff]  ;;  %v4406_v32 = vld [vmem:[%s16320_s8 + $0x90] sm:$0xff] }
 0xe43   : > { %9915 = vmatpush1.bf16.msra.mxu0 %v9914_v61  ;;  %v9920_v56 = vpack.c.bf16 %v4405_v62, %v4404_v31  ;;  %v9935_v61 = vpack.c.bf16 %v4415_v13, %v4414_v47 }
 0xe44   : > { %4298 = vrot.lane.b32.xlu1 %v4291_v34, %s16509_s18  ;;  %9916 = vmatprep.subr.bf16.mxu0 %v16715_v55  ;;  %v4407_v34 = vld [vmem:[%s16320_s8 + $0x98] sm:$0xff] }
 0xe45   : > { %v9923_v53 = vpack.c.bf16 %v4407_v34, %v4406_v32 }
 0xe47   : > { %9918 = vmatpush1.bf16.msra.mxu0 %v9917_v9 }
 0xe48   : > { %9919 = vmatprep.subr.bf16.mxu0 %v16715_v55 }
 0xe4b   : > { %9921 = vmatpush1.bf16.msra.mxu0 %v9920_v56 }
 0xe4c   : > { %9922 = vmatprep.subr.bf16.mxu0 %v16715_v55 }
 0xe4f   : > { %9924 = vmatpush1.bf16.msra.mxu0 %v9923_v53 }
 0xe50   : > { %9925 = vmatprep.subr.bf16.mxu0 %v16715_v55 }
 0xe53   : > { %9927 = vmatpush1.bf16.msra.mxu0 %v9926_v28 }
 0xe54   : > { %9928 = vmatprep.subr.bf16.mxu0 %v16715_v55 }
 0xe57   : > { %9930 = vmatpush1.bf16.msra.mxu0 %v9929_v33 }
 0xe58   : > { %9931 = vmatprep.subr.bf16.mxu0 %v16715_v55 }
 0xe5b   : > { %9933 = vmatpush1.bf16.msra.mxu0 %v9932_v24 }
 0xe5c   : > { %9934 = vmatprep.subr.bf16.mxu0 %v16715_v55  ;;  %v16758_v55 = vld [vmem:[#allocation8_spill] sm:$0xff] }
 0xe5f   : > { %9936 = vmatpush1.bf16.msra.mxu0 %v9935_v61  ;;  %v8846_v61 = vld [vmem:[%s10963_s19 + $0x98] sm:$0xff] }
 0xeb2   : > { %v4297_v15 = vpop.permute.xlu0 %4296 }
 0xeb3   : > { %v4302_v20 = vsel %vm2283_vm14, %v13235_v16, %v4297_v15 }
 0xeb4   : > { %v4306_v63 = vrot.slane %v4302_v20, 5 }
 0xeb6   : > { %v4299_v38 = vpop.permute.xlu1 %4298  ;;  %v13604_v52 = vsel %vm16742_vm5, 0.0, %v4306_v63 }
 0xeb7   : > { %v4303_v16 = vsel %vm2283_vm14, %v13237_v36, %v4299_v38  ;;  %v4356_v36 = vrot.slane %v13604_v52, 5  ;;  %v4316_v22 = vrot.slane %v13604_v52, 1  ;;  %v4327_v62 = vrot.slane %v13604_v52, 2 }
 0xeb8   : > { %v4307_v18 = vrot.slane %v4303_v16, 5  ;;  %v4367_v5 = vrot.slane %v13604_v52, 6  ;;  %v4338_v24 = vrot.slane %v13604_v52, 3 }
 0xeba   : > { %v13616_v10 = vsel %vm16743_vm13, %v4306_v63, %v4307_v18  ;;  %v13619_v23 = vsel %vm16742_vm5, %v4307_v18, 0.0  ;;  %vm16744_vm13 = vmmov %vm16742_vm5  ;;  %v8843_v18 = vld [vmem:[%s10963_s19 + $0x80] sm:$0xff] }
 0xebb   : > { %v4357_v11 = vrot.slane %v13616_v10, 5  ;;  %v4317_v9 = vrot.slane %v13616_v10, 1  ;;  %v4319_v31 = vrot.slane %v13619_v23, 1  ;;  %v4328_v56 = vrot.slane %v13616_v10, 2 }
 0xebc   : > { %v4330_v32 = vrot.slane %v13619_v23, 2  ;;  %v4368_v26 = vrot.slane %v13616_v10, 6  ;;  %v4359_v20 = vrot.slane %v13619_v23, 5  ;;  %v4339_v42 = vrot.slane %v13616_v10, 3 }
 0xebd   : > { %v4358_v34 = vsel %vm16744_vm13, %v4356_v36, %v4357_v11  ;;  %v4318_v53 = vsel %vm580_vm1, %v4316_v22, %v4317_v9  ;;  %v4320_v8 = vsel %vm580_vm1, %v4317_v9, %v4319_v31  ;;  %v4329_v29 = vsel %vm662_vm2, %v4327_v62, %v4328_v56  ;;  %v8845_v9 = vld [vmem:[%s10963_s19 + $0x90] sm:$0xff] }
 0xebe   : > { %4361 = vrot.lane.b32.xlu1 %v4358_v34, %s16507_s24  ;;  %v10544_v28 = vpack.i.bf16 %v4320_v8, %v4318_v53  ;;  %v4331_v15 = vsel %vm662_vm2, %v4328_v56, %v4330_v32  ;;  %v4369_v33 = vsel %vm1393_vm6, %v4367_v5, %v4368_v26  ;;  %v4360_v38 = vsel %vm16742_vm5, %v4357_v11, %v4359_v20  ;;  %v8848_v32 = vld [vmem:[%s10963_s19 + $0xa8] sm:$0xff]  ;;  %v8847_v8 = vld [vmem:[%s10963_s19 + $0xa0] sm:$0xff] }
 0xebf   : > { %v10549_v63 = vpack.i.bf16 %v4331_v15, %v4329_v29  ;;  %v4341_v16 = vrot.slane %v13619_v23, 3  ;;  %vm16746_vm13 = vcmask 1044480   ;;  %v4370_v13 = vrot.slane %v13619_v23, 6 }
 0xec0   : > { %10545 = vrot.lane.b32.xlu0 %v10544_v28, %s16507_s24  ;;  %v4340_v47 = vsel %vm16746_vm13, %v4338_v24, %v4339_v42  ;;  %v4712_v36 = vrot.slane %v8844_v51, 7  ;;  %vm16748_vm12 = vmmov %vm16746_vm13  ;;  %v4711_v11 = vrot.slane %v8843_v18, 7  ;;  %v4714_v56 = vrot.slane %v8846_v61, 7  ;;  %v16749_v61 = vld [vmem:[#allocation5_spill] sm:$0xff] }
 0xec1   : > { %v4342_v22 = vsel %vm16748_vm12, %v4339_v42, %v4341_v16  ;;  %v4371_v31 = vsel %vm1393_vm6, %v4368_v26, %v4370_v13  ;;  %v4713_v53 = vrot.slane %v8845_v9, 7  ;;  %v4717_v5 = vrot.slane %v8848_v32, 7  ;;  %v8850_v26 = vld [vmem:[%s10963_s19 + $0xb8] sm:$0xff]  ;;  %v16750_v9 = vld [vmem:[#allocation11_spill] sm:$0xff]  ;;  %v16751_v32 = vld [vmem:[#allocation6_spill] sm:$0xff] }
 0xec2   : > { %4372 = vrot.lane.b32.xlu1 %v4369_v33, %s16745_s12  ;;  %v4736_v62 = vsel %vm408_vm0, 0.0, %v4712_v36  ;;  %v4735_v34 = vsel %vm408_vm0, 0.0, %v4711_v11  ;;  %v13664_v28 = vsel %vm408_vm0, 0.0, %v4714_v56  ;;  %v4715_v15 = vrot.slane %v8847_v8, 7  ;;  %v8849_v33 = vld [vmem:[%s10963_s19 + $0xb0] sm:$0xff] }
 0xec3   : > { %v13669_v29 = vsel %vm408_vm0, 0.0, %v4713_v53  ;;  %v13675_v20 = vsel %vm408_vm0, %v4712_v36, %v4717_v5  ;;  %v4719_v51 = vrot.slane %v8849_v33, 7  ;;  %v13695_v16 = vsel %vm408_vm0, %v4717_v5, 0.0  ;;  %v16752_v5 = vld [vmem:[#allocation26_spill] sm:$0xff] }
 0xec4   : > { %10550 = vrot.lane.b32.xlu0 %v10549_v63, %s16745_s12  ;;  %v4721_v63 = vrot.slane %v8850_v26, 7  ;;  %v13680_v42 = vsel %vm408_vm0, %v4711_v11, %v4715_v15  ;;  %v13700_v18 = vsel %vm408_vm0, %v4715_v15, 0.0  ;;  %v4350_v36 = vrot.slane %v13616_v10, 4  ;;  %v16753_v15 = vld [vmem:[#allocation7_spill] sm:$0xff] }
 0xec5   : > { %v13690_v24 = vsel %vm408_vm0, %v4713_v53, %v4719_v51  ;;  %v13710_v13 = vsel %vm408_vm0, %v4719_v51, 0.0  ;;  %v13747_v53 = vmul.f32 %v4735_v34, %v16751_v32  ;;  %v13750_v26 = vmul.f32 %v4736_v62, %v16752_v5 }
 0xec6   : > { %4363 = vrot.lane.b32.xlu1 %v4360_v38, %s16507_s24  ;;  %v13685_v38 = vsel %vm408_vm0, %v4714_v56, %v4721_v63  ;;  %v4349_v56 = vrot.slane %v13604_v52, 4  ;;  %v13753_v33 = vmul.f32 %v4735_v34, %v16753_v15  ;;  %v13763_v2 = vmul.f32 %v13664_v28, %v16755_v50 }
 0xec7   : > { %v13768_v54 = vmul.f32 %v4735_v34, %v16756_v25  ;;  %v13772_v4 = vmul.f32 %v13669_v29, %v16757_v21  ;;  %v13778_v44 = vmul.f32 %v13669_v29, %v16758_v55  ;;  %v13798_v3 = vmul.f32 %v13669_v29, %v16760_v27 }
 0xec8   : > { %4343 = vrot.lane.b32.xlu0 %v4340_v47, %s16747_s21  ;;  %v13705_v47 = vsel %vm408_vm0, %v4721_v63, 0.0  ;;  %v16754_v63 = vld [vmem:[#allocation9_spill] sm:$0xff]  ;;  %v4351_v48 = vsel %vm2333_vm7, %v4349_v56, %v4350_v36  ;;  %v13802_v17 = vmul.f32 %v13680_v42, %v16751_v32  ;;  %v13809_v59 = vmul.f32 %v13675_v20, %v16752_v5 }
 0xec9   : > { %v13757_v51 = vmul.f32 %v13664_v28, %v16754_v63  ;;  %v4352_v12 = vrot.slane %v13619_v23, 4  ;;  %v5019_v57 = vmul.f32 %v13700_v18, %v16753_v15  ;;  %v4962_v5 = vmul.f32 %v13705_v47, %v16754_v63 }
 0xeca   : > { %4345 = vrot.lane.b32.xlu1 %v4342_v22, %s16747_s21  ;;  %v13740_v22 = vmul.f32 %v4736_v62, %v16749_v61  ;;  %16761 = vst [vmem:[#allocation54_spill] sm:$0xff] %v13809_v59  ;;  %vm16824_vm12 = vmmov 0   ;;  %vm16847_vm13 = vcmask 1031168  }
 0xecc   : > { %4374 = vrot.lane.b32.xlu0 %v4371_v31, %s16745_s12  ;;  %v13743_v31 = vmul.f32 %v4736_v62, %v16750_v9 }
 0xece   : > { %4753 = vrot.lane.b32.xlu1 %v4736_v62, %s16507_s24 }
 0xed0   : > { %4751 = vrot.lane.b32.xlu0 %v4735_v34, %s16507_s24 }
 0xed2   : > { %4757 = vrot.lane.b32.xlu1 %v13664_v28, %s16507_s24 }
 0xed4   : > { %4755 = vrot.lane.b32.xlu0 %v13669_v29, %s16507_s24 }
 0xed6   : > { %4761 = vrot.lane.b32.xlu1 %v13675_v20, %s16507_s24 }
 0xed8   : > { %4759 = vrot.lane.b32.xlu0 %v13680_v42, %s16507_s24 }
 0xeda   : > { %4765 = vrot.lane.b32.xlu1 %v13685_v38, %s16507_s24 }
 0xedc   : > { %4763 = vrot.lane.b32.xlu0 %v13690_v24, %s16507_s24 }
 0xede   : > { %4769 = vrot.lane.b32.xlu1 %v13695_v16, %s16507_s24 }
 0xee0   : > { %4767 = vrot.lane.b32.xlu0 %v13700_v18, %s16507_s24 }
 0xee2   : > { %4773 = vrot.lane.b32.xlu1 %v13705_v47, %s16507_s24 }
 0xee4   : > { %4771 = vrot.lane.b32.xlu0 %v13710_v13, %s16507_s24 }
 0xee6   : > { %5073 = vrot.lane.b32.xlu1 %v4736_v62, %s16747_s21 }
 0xee8   : > { %5071 = vrot.lane.b32.xlu0 %v4735_v34, %s16747_s21  ;;  %v13786_v34 = vmul.f32 %v13675_v20, %v16750_v9 }
 0xeea   : > { %5077 = vrot.lane.b32.xlu1 %v13664_v28, %s16747_s21 }
 0xeec   : > { %5075 = vrot.lane.b32.xlu0 %v13669_v29, %s16747_s21  ;;  %v5041_v29 = vrot.slane %v13778_v44, 2  ;;  %v4958_v44 = vmul.f32 %v13685_v38, %v16754_v63 }
 0xeee   : > { %5081 = vrot.lane.b32.xlu1 %v13675_v20, %s16747_s21 }
 0xef0   : > { %5079 = vrot.lane.b32.xlu0 %v13680_v42, %s16747_s21 }
 0xef2   : > { %5085 = vrot.lane.b32.xlu1 %v13685_v38, %s16747_s21 }
 0xef4   : > { %5083 = vrot.lane.b32.xlu0 %v13690_v24, %s16747_s21 }
 0xef6   : > { %5089 = vrot.lane.b32.xlu1 %v13695_v16, %s16747_s21 }
 0xef8   : > { %5087 = vrot.lane.b32.xlu0 %v13700_v18, %s16747_s21 }
 0xefa   : > { %5093 = vrot.lane.b32.xlu1 %v13705_v47, %s16747_s21 }
 0xefc   : > { %5091 = vrot.lane.b32.xlu0 %v13710_v13, %s16747_s21 }
 0xf30   : > { %v4362_v11 = vpop.permute.xlu1 %4361 }
 0xf31   : > { %v4384_v41 = vsel %vm473_vm3, %v4351_v48, %v4362_v11  ;;  %v13782_v48 = vmul.f32 %v13675_v20, %v16749_v61 }
 0xf32   : > { %v10546_v8 = vpop.permute.xlu0 %10545 }
 0xf33   : > { %v10547_v19 = vunpack.i.l.bf16 %v10546_v8  ;;  %v10548_v39 = vunpack.i.h.bf16 %v10546_v8  ;;  %v4957_v8 = vmul.f32 %v13690_v24, %v16757_v21 }
 0xf34   : > { %v4373_v62 = vpop.permute.xlu1 %4372 }
 0xf35   : > { %v4386_v56 = vsel %vm2365_vm15, %v4384_v41, %v4373_v62  ;;  %v16759_v41 = vld [vmem:[#allocation25_spill] sm:$0xff]  ;;  %v4378_v40 = vsel %vm473_vm3, %v13604_v52, %v10547_v19  ;;  %v13818_v19 = vmul.f32 %v13680_v42, %v16756_v25  ;;  %v5015_v52 = vmul.f32 %v13680_v42, %v16753_v15 }
 0xf36   : > { %8829 = vmatprep.mubr.msk.f32.mxu0 %vm922_vm4, %v4386_v56  ;;  %v10551_v11 = vpop.permute.xlu0 %10550  ;;  %v13792_v62 = vmul.f32 %v13664_v28, %v16759_v41  ;;  %v13834_v42 = vmul.f32 %v13690_v24, %v16758_v55  ;;  %v4379_v25 = vsel %vm473_vm3, %v13616_v10, %v10548_v39  ;;  %v13862_v10 = vmul.f32 %v13685_v38, %v16759_v41 }
 0xf37   : > { %v10552_v49 = vunpack.i.l.bf16 %v10551_v11  ;;  %v10553_v20 = vunpack.i.h.bf16 %v10551_v11  ;;  %v4959_v11 = vmul.f32 %v13700_v18, %v16751_v32  ;;  %v5036_v32 = vrot.slane %v5015_v52, 2 }
 0xf38   : > { %v4364_v56 = vpop.permute.xlu1 %4363  ;;  %v4961_v18 = vmul.f32 %v13710_v13, %v16757_v21  ;;  %16762 = vst [vmem:[#allocation56_spill] sm:$0xff] %v13862_v10  ;;  %v4982_v52 = vrot.slane %v4957_v8, 1 }
 0xf39   : > { %v4380_v45 = vsel %vm2365_vm15, %v4378_v40, %v10552_v49  ;;  %v4976_v49 = vrot.slane %v13802_v17, 1  ;;  %v13828_v40 = vmul.f32 %v13685_v38, %v16755_v50  ;;  %v4353_v17 = vsel %vm2333_vm7, %v4350_v36, %v4352_v12 }
 0xf3a   : > { %v4344_v43 = vpop.permute.xlu0 %4343  ;;  %v4381_v36 = vsel %vm2365_vm15, %v4379_v25, %v10553_v20  ;;  %v13867_v25 = vmul.f32 %v13690_v24, %v16760_v27  ;;  %v4991_v38 = vrot.slane %v4961_v18, 1  ;;  %v16765_v24 = vrot.slane %v13753_v33, 2 }
 0xf3b   : > { %v4382_v23 = vsel %vm922_vm4, %v4380_v45, %v4344_v43  ;;  %v4960_v43 = vmul.f32 %v13695_v16, %v16749_v61  ;;  %v5020_v45 = vmul.f32 %v13695_v16, %v16750_v9  ;;  %v5022_v16 = vmul.f32 %v13705_v47, %v16755_v50  ;;  %v16790_v61 = vld [vmem:[#allocation33_spill] sm:$0xff] }
 0xf3c   : > { %v4346_v28 = vpop.permute.xlu1 %4345  ;;  %4487 = vmatmul.mubr.f32.vlgmr.msra.gmra.mrb[30].mxu0 %v4382_v23  ;;  %v4385_v23 = vsel %vm473_vm3, %v4353_v17, %v4364_v56  ;;  %v5021_v56 = vmul.f32 %v13710_v13, %v16758_v55  ;;  %v4985_v47 = vrot.slane %v4958_v44, 1  ;;  %16763 = vst [vmem:[#allocation61_spill] sm:$0xff] %v13867_v25  ;;  %v5042_v13 = vrot.slane %v13834_v42, 2 }
 0xf3d   : > { %v4383_v39 = vsel %vm922_vm4, %v4381_v36, %v4346_v28  ;;  %v4989_v20 = vrot.slane %v4960_v43, 1  ;;  %v4987_v55 = vrot.slane %v4959_v11, 1  ;;  %v5047_v28 = vrot.slane %v5019_v57, 2 }
 0xf3e   : > { %v4375_v14 = vpop.permute.xlu0 %4374  ;;  %v4993_v36 = vrot.slane %v4962_v5, 1  ;;  %v5053_v21 = vrot.slane %v5022_v16, 2  ;;  %v5051_v41 = vrot.slane %v5021_v56, 2  ;;  %v13878_v8 = vsel %vm662_vm2, %v16765_v24, %v5036_v32 }
 0xf3f   : > { %v4387_v12 = vsel %vm2365_vm15, %v4385_v23, %v4375_v14  ;;  %v5045_v14 = vrot.slane %v13828_v40, 2  ;;  %v5049_v23 = vrot.slane %v5020_v45, 2  ;;  %v16764_v40 = vrot.slane %v13747_v53, 1 }
 0xf40   : > { %v4754_v17 = vpop.permute.xlu1 %4753  ;;  %8830 = vmatprep.mubr.msk.f32.mxu0 %vm922_vm4, %v4387_v12  ;;  %v16766_v42 = vrot.slane %v13757_v51, 1  ;;  %v16767_v57 = vrot.slane %v13763_v2, 2  ;;  %v16768_v53 = vrot.slane %v13782_v48, 1  ;;  %v16769_v45 = vrot.slane %v13740_v22, 1 }
 0xf41   : > { %4492 = vmatmul.mubr.f32.gmra.mrb[32].mxu0 %v4383_v39  ;;  %v13873_v50 = vsel %vm580_vm1, %v16764_v40, %v4976_v49  ;;  %v16770_v33 = vrot.slane %v13786_v34, 2  ;;  %v16771_v16 = vrot.slane %v13743_v31, 2  ;;  %v16773_v39 = vrot.slane %v13772_v4, 1 }
 0xf42   : > { %v4752_v12 = vpop.permute.xlu0 %4751  ;;  %v13883_v43 = vsel %vm580_vm1, %v16766_v42, %v4985_v47  ;;  %v13888_v5 = vsel %vm662_vm2, %v16767_v57, %v5045_v14  ;;  %v13895_v11 = vsel %vm580_vm1, %v16769_v45, %v16768_v53  ;;  %v13912_v22 = vsel %vm662_vm2, %v5041_v29, %v5042_v13 }
 0xf43   : > { %v13902_v51 = vsel %vm662_vm2, %v16771_v16, %v16770_v33  ;;  %v4775_v18 = vsel %vm473_vm3, %v4752_v12, %v4754_v17  ;;  %v4796_v2 = vsel %vm473_vm3, 0.0, %v4752_v12  ;;  %v13909_v40 = vsel %vm580_vm1, %v16773_v39, %v4982_v52  ;;  %16774 = vst [vmem:[#allocation62_spill] sm:$0xff] %v13912_v22 }
 0xf44   : > { %v4758_v44 = vpop.permute.xlu1 %4757  ;;  %16772 = vst [vmem:[#allocation63_spill] sm:$0xff] %v13902_v51  ;;  %v13915_v24 = vsel %vm580_vm1, %v4976_v49, %v4987_v55  ;;  %v13918_v31 = vsel %vm662_vm2, %v5036_v32, %v5047_v28  ;;  %v13921_v42 = vsel %vm580_vm1, %v4985_v47, %v4993_v36  ;;  %v16778_v12 = vmov %v16768_v53  ;;  %v16783_v49 = vld [vmem:[#allocation31_spill] sm:$0xff]  ;;  %v16784_v28 = vld [vmem:[#allocation34_spill] sm:$0xff] }
 0xf45   : > { %16775 = vst [vmem:[#allocation64_spill] sm:$0xff] %v13915_v24  ;;  %16776 = vst [vmem:[#allocation18_spill] sm:$0xff] %v13918_v31  ;;  %v13926_v57 = vsel %vm580_vm1, %v16778_v12, %v4989_v20  ;;  %v13931_v45 = vsel %vm580_vm1, %v4982_v52, %v4991_v38  ;;  %v16781_v55 = vmov %v16770_v33  ;;  %v4815_v47 = vmul.f32 %v4796_v2, %v16783_v49  ;;  %v16787_v33 = vld [vmem:[#allocation32_spill] sm:$0xff]  ;;  %v16788_v52 = vld [vmem:[#allocation35_spill] sm:$0xff] }
 0xf46   : > { %v4756_v56 = vpop.permute.xlu0 %4755  ;;  %16777 = vst [vmem:[#allocation13_spill] sm:$0xff] %v13921_v42  ;;  %16779 = vst [vmem:[#allocation14_spill] sm:$0xff] %v13926_v57  ;;  %v13936_v32 = vsel %vm662_vm2, %v16781_v55, %v5049_v23  ;;  %v4816_v48 = vmul.f32 %v4775_v18, %v16784_v28  ;;  %v4875_v20 = vmul.f32 %v4796_v2, %v11257_v30 }
 0xf47   : > { %v4776_v4 = vsel %vm473_vm3, %v4754_v17, %v4756_v56  ;;  %v4777_v53 = vsel %vm473_vm3, %v4756_v56, %v4758_v44  ;;  %16780 = vst [vmem:[#allocation12_spill] sm:$0xff] %v13931_v45  ;;  %16782 = vst [vmem:[#allocation19_spill] sm:$0xff] %v13936_v32  ;;  %v13942_v36 = vsel %vm662_vm2, %v5045_v14, %v5053_v21  ;;  %v16786_v17 = vld [vmem:[#allocation28_spill] sm:$0xff] }
 0xf48   : > { %v4762_v29 = vpop.permute.xlu1 %4761  ;;  %16785 = vst [vmem:[#allocation21_spill] sm:$0xff] %v13942_v36  ;;  %v4799_v44 = vmul.f32 %v4796_v2, %v16786_v17  ;;  %v4800_v16 = vmul.f32 %v4775_v18, %v16787_v33  ;;  %v4876_v38 = vmul.f32 %v4775_v18, %v16788_v52  ;;  %v13948_v34 = vsel %vm662_vm2, %v5042_v13, %v5051_v41 }
 0xf49   : > { %16789 = vst [vmem:[#allocation22_spill] sm:$0xff] %v13948_v34  ;;  %v4817_v23 = vmul.f32 %v4776_v4, %v11287_v60  ;;  %v4818_v39 = vmul.f32 %v4777_v53, %v11269_v46  ;;  %v13955_v21 = vmul.f32 %v4776_v4, %v11294_v0  ;;  %v13958_v14 = vmul.f32 %v4777_v53, %v11272_v37 }
 0xf4a   : > { %v4760_v56 = vpop.permute.xlu0 %4759  ;;  %v4839_v13 = vrot.slane %v4815_v47, 1  ;;  %v4842_v27 = vrot.slane %v4816_v48, 1  ;;  %v4899_v63 = vrot.slane %v4875_v20, 2  ;;  %v4902_v9 = vrot.slane %v4876_v38, 2 }
 0xf4b   : > { %v4778_v12 = vsel %vm473_vm3, %v4760_v56, %v4762_v29  ;;  %v4797_v55 = vsel %vm473_vm3, 0.0, %v4760_v56  ;;  %v4801_v56 = vmul.f32 %v4776_v4, %v16790_v61  ;;  %v4802_v45 = vmul.f32 %v4777_v53, %v11266_v35 }
 0xf4c   : > { %v4819_v18 = vmul.f32 %v4797_v55, %v16783_v49  ;;  %v4820_v2 = vmul.f32 %v4778_v12, %v16784_v28  ;;  %v4766_v41 = vpop.permute.xlu1 %4765  ;;  %v13963_v15 = vmul.f32 %v4797_v55, %v11257_v30  ;;  %v13968_v36 = vmul.f32 %v4778_v12, %v16788_v52 }
 0xf4d   : > { %v4845_v48 = vrot.slane %v4817_v23, 1  ;;  %v4848_v20 = vrot.slane %v4818_v39, 1  ;;  %v4905_v25 = vrot.slane %v13955_v21, 2  ;;  %v4908_v38 = vrot.slane %v13958_v14, 2 }
 0xf4e   : > { %v4840_v34 = vrot.slane %v4819_v18, 1  ;;  %v4843_v32 = vrot.slane %v4820_v2, 1  ;;  %v4764_v31 = vpop.permute.xlu0 %4763  ;;  %v4803_v18 = vmul.f32 %v4797_v55, %v16786_v17  ;;  %v4804_v2 = vmul.f32 %v4778_v12, %v16787_v33 }
 0xf4f   : > { %v4779_v57 = vsel %vm473_vm3, %v4762_v29, %v4764_v31  ;;  %v13972_v47 = vsel %vm473_vm3, %v4764_v31, %v4766_v41  ;;  %v4900_v42 = vrot.slane %v13963_v15, 2  ;;  %v4903_v55 = vrot.slane %v13968_v36, 2 }
 0xf50   : > { %v4770_v4 = vpop.permute.xlu1 %4769  ;;  %v4841_v53 = vsel %vm580_vm1, %v4839_v13, %v4840_v34  ;;  %v4844_v29 = vsel %vm580_vm1, %v4842_v27, %v4843_v32  ;;  %v4821_v31 = vmul.f32 %v4779_v57, %v11287_v60  ;;  %v13984_v23 = vmul.f32 %v13972_v47, %v11269_v46 }
 0xf51   : > { %v13987_v39 = vmul.f32 %v4779_v57, %v11294_v0  ;;  %v13991_v12 = vmul.f32 %v4779_v57, %v16790_v61  ;;  %v4867_v27 = vadd.f32 %v4841_v53, %v4799_v44  ;;  %v13998_v33 = vmul.f32 %v13972_v47, %v11272_v37 }
 0xf52   : > { %v4768_v21 = vpop.permute.xlu0 %4767  ;;  %v4846_v41 = vrot.slane %v4821_v31, 1  ;;  %v4849_v13 = vrot.slane %v13984_v23, 1  ;;  %v4868_v59 = vadd.f32 %v4844_v29, %v4800_v16  ;;  %v4901_v24 = vsel %vm662_vm2, %v4899_v63, %v4900_v42 }
 0xf53   : > { %v4781_v14 = vsel %vm473_vm3, %v4768_v21, %v4770_v4  ;;  %v4798_v15 = vsel %vm473_vm3, 0.0, %v4768_v21  ;;  %v4906_v21 = vrot.slane %v13987_v39, 2  ;;  %v4904_v23 = vsel %vm662_vm2, %v4902_v9, %v4903_v55 }
 0xf54   : > { %v4774_v17 = vpop.permute.xlu1 %4773  ;;  %v4823_v36 = vmul.f32 %v4798_v15, %v16783_v49  ;;  %v4824_v57 = vmul.f32 %v4781_v14, %v16784_v28  ;;  %v4850_v61 = vsel %vm580_vm1, %v4848_v20, %v4849_v13  ;;  %v4883_v44 = vmul.f32 %v4798_v15, %v11257_v30 }
 0xf55   : > { %v4884_v53 = vmul.f32 %v4781_v14, %v16788_v52  ;;  %v4847_v10 = vsel %vm580_vm1, %v4845_v48, %v4846_v41  ;;  %v4927_v63 = vadd.f32 %v4901_v24, %v4867_v27  ;;  %v4909_v49 = vrot.slane %v13998_v33, 2 }
 0xf56   : > { %v4772_v31 = vpop.permute.xlu0 %4771  ;;  %v4851_v16 = vrot.slane %v4823_v36, 1  ;;  %v4853_v29 = vrot.slane %v4824_v57, 1  ;;  %v4928_v39 = vadd.f32 %v4904_v23, %v4868_v59  ;;  %v4870_v51 = vadd.f32 %v4850_v61, %v4802_v45 }
 0xf57   : > { %v4782_v28 = vsel %vm473_vm3, %v4770_v4, %v4772_v31  ;;  %v4783_v20 = vsel %vm473_vm3, %v4772_v31, %v4774_v17  ;;  %v4869_v52 = vadd.f32 %v4847_v10, %v4801_v56  ;;  %v4907_v9 = vsel %vm662_vm2, %v4905_v25, %v4906_v21 }
 0xf58   : > { %v5074_v22 = vpop.permute.xlu1 %5073  ;;  %v4852_v15 = vsel %vm580_vm1, %v4840_v34, %v4851_v16  ;;  %v4854_v14 = vsel %vm580_vm1, %v4843_v32, %v4853_v29  ;;  %v4911_v48 = vrot.slane %v4883_v44, 2  ;;  %v4913_v36 = vrot.slane %v4884_v53, 2 }
 0xf59   : > { %v4825_v24 = vmul.f32 %v4782_v28, %v11287_v60  ;;  %v4826_v33 = vmul.f32 %v4783_v20, %v11269_v46  ;;  %v4885_v4 = vmul.f32 %v4782_v28, %v11294_v0  ;;  %v4886_v17 = vmul.f32 %v4783_v20, %v11272_v37 }
 0xf5a   : > { %v5072_v57 = vpop.permute.xlu0 %5071  ;;  %v4910_v59 = vsel %vm662_vm2, %v4908_v38, %v4909_v49  ;;  %v4871_v61 = vadd.f32 %v4852_v15, %v4803_v18  ;;  %v4872_v45 = vadd.f32 %v4854_v14, %v4804_v2  ;;  %v4943_v32 = vadd.f32 %v13768_v54, %v4927_v63 }
 0xf5b   : > { %v4930_v34 = vadd.f32 %v4910_v59, %v4870_v51  ;;  %v4855_v25 = vrot.slane %v4825_v24, 1  ;;  %v4857_v56 = vrot.slane %v4826_v33, 1  ;;  %v5095_v27 = vsel %vm922_vm4, %v5072_v57, %v5074_v22  ;;  %v16791_v57 = vld [vmem:[#allocation37_spill] sm:$0xff]  ;;  %v16792_v24 = vld [vmem:[#allocation36_spill] sm:$0xff] }
 0xf5c   : > { %v5078_v10 = vpop.permute.xlu1 %5077  ;;  %v4806_v44 = vmul.f32 %v13972_v47, %v11266_v35  ;;  %v4929_v53 = vadd.f32 %v4907_v9, %v4869_v52  ;;  %v4915_v31 = vrot.slane %v4885_v4, 2  ;;  %v4917_v28 = vrot.slane %v4886_v17, 2  ;;  %v16793_v17 = vld [vmem:[#allocation38_spill] sm:$0xff] }
 0xf5d   : > { %v4912_v16 = vsel %vm662_vm2, %v4900_v42, %v4911_v48  ;;  %v4914_v38 = vsel %vm662_vm2, %v4903_v55, %v4913_v36  ;;  %v4856_v18 = vsel %vm580_vm1, %v4846_v41, %v4855_v25  ;;  %v5003_v54 = vadd.f32 %v13873_v50, %v4943_v32 }
 0xf5e   : > { %v5076_v23 = vpop.permute.xlu0 %5075  ;;  %v4931_v51 = vadd.f32 %v4912_v16, %v4871_v61  ;;  %v4932_v2 = vadd.f32 %v4914_v38, %v4872_v45  ;;  %v4858_v29 = vsel %vm580_vm1, %v4849_v13, %v4857_v56  ;;  %v5119_v63 = vmul.f32 %v5095_v27, %v11297_v1  ;;  %v16794_v61 = vld [vmem:[#allocation40_spill] sm:$0xff] }
 0xf5f   : > { %v5135_v47 = vmul.f32 %v5095_v27, %v11300_v6  ;;  %v14032_v52 = vmul.f32 %v5095_v27, %v11303_v58  ;;  %v4946_v20 = vadd.f32 %v13792_v62, %v4930_v34  ;;  %v4944_v42 = vadd.f32 %v13750_v26, %v4928_v39 }
 0xf60   : > { %v5082_v55 = vpop.permute.xlu1 %5081  ;;  %v4873_v41 = vadd.f32 %v4856_v18, %v13991_v12  ;;  %v4916_v50 = vsel %vm662_vm2, %v4906_v21, %v4915_v31  ;;  %v4918_v15 = vsel %vm662_vm2, %v4909_v49, %v4917_v28  ;;  %v5116_v13 = vsel %vm922_vm4, %v5078_v10, 0.0  ;;  %v16797_v31 = vld [vmem:[#allocation62_spill] sm:$0xff] }
 0xf61   : > { %v4874_v14 = vadd.f32 %v4858_v29, %v4806_v44  ;;  %v5063_v9 = vadd.f32 %v13878_v8, %v5003_v54  ;;  %v5006_v48 = vadd.f32 %v13883_v43, %v4946_v20  ;;  %v4945_v36 = vadd.f32 %v13798_v3, %v4929_v53  ;;  %v16799_v54 = vld [vmem:[#allocation42_spill] sm:$0xff] }
 0xf62   : > { %v5138_v62 = vmul.f32 %v5116_v13, %v11309_v7  ;;  %v14045_v26 = vmul.f32 %v5116_v13, %v16791_v57  ;;  %v5004_v12 = vadd.f32 %v13895_v11, %v4944_v42  ;;  %v5096_v21 = vsel %vm922_vm4, %v5074_v22, %v5076_v23  ;;  %v5080_v39 = vpop.permute.xlu0 %5079  ;;  %v16801_v42 = vld [vmem:[#allocation56_spill] sm:$0xff] }
 0xf63   : > { %v5066_v49 = vadd.f32 %v13888_v5, %v5006_v48  ;;  %v5122_v33 = vmul.f32 %v5116_v13, %v16792_v24  ;;  %v5005_v8 = vadd.f32 %v13909_v40, %v4945_v36  ;;  %v5097_v43 = vsel %vm922_vm4, %v5076_v23, %v5078_v10  ;;  %v16795_v40 = vld [vmem:[#allocation63_spill] sm:$0xff]  ;;  %v16798_v23 = vld [vmem:[#allocation41_spill] sm:$0xff]  ;;  %v16803_v48 = vld [vmem:[#allocation54_spill] sm:$0xff] }
 0xf64   : > { %v5159_v4 = vrot.slane %v5135_v47, 1  ;;  %v5219_v3 = vrot.slane %v14032_v52, 2  ;;  %v5120_v59 = vmul.f32 %v5096_v21, %v16793_v17  ;;  %v14056_v45 = vmul.f32 %v5096_v21, %v16794_v61  ;;  %v5086_v5 = vpop.permute.xlu1 %5085  ;;  %v16796_v10 = vld [vmem:[#allocation39_spill] sm:$0xff] }
 0xf65   : > { %v4933_v11 = vadd.f32 %v4916_v50, %v4873_v41  ;;  %v4934_v32 = vadd.f32 %v4918_v15, %v4874_v14  ;;  %v5127_v22 = vadd.f32 %v5119_v63, %v5063_v9  ;;  %v4947_v34 = vadd.f32 %v13818_v19, %v4931_v51  ;;  %v16800_v47 = vld [vmem:[#allocation43_spill] sm:$0xff]  ;;  %v16802_v15 = vld [vmem:[#allocation64_spill] sm:$0xff] }
 0xf66   : > { %v5168_v25 = vrot.slane %v5138_v62, 1  ;;  %v5228_v56 = vrot.slane %v14045_v26, 2  ;;  %v5064_v27 = vadd.f32 %v16795_v40, %v5004_v12  ;;  %v5121_v44 = vmul.f32 %v5097_v43, %v16796_v10  ;;  %v5084_v63 = vpop.permute.xlu0 %5083  ;;  %v16804_v26 = vld [vmem:[#allocation13_spill] sm:$0xff] }
 0xf67   : > { %v5130_v53 = vadd.f32 %v5122_v33, %v5066_v49  ;;  %v5065_v28 = vadd.f32 %v16797_v31, %v5005_v8  ;;  %v14064_v16 = vmul.f32 %v5097_v43, %v16798_v23  ;;  %v5098_v38 = vsel %vm922_vm4, %v5080_v39, %v5082_v55  ;;  %v16805_v39 = vld [vmem:[#allocation61_spill] sm:$0xff] }
 0xf68   : > { %v14067_v18 = vadd.f32 %v5120_v59, %v5064_v27  ;;  %v5162_v19 = vrot.slane %v14056_v45, 1  ;;  %v14071_v51 = vmul.f32 %v5096_v21, %v16799_v54  ;;  %v14074_v29 = vmul.f32 %v5098_v38, %v11300_v6  ;;  %v5090_v33 = vpop.permute.xlu1 %5089 }
 0xf69   : > { %v14077_v52 = vmul.f32 %v5097_v43, %v16800_v47  ;;  %v14080_v20 = vmul.f32 %v5098_v38, %v11303_v58  ;;  %v4950_v41 = vadd.f32 %v16801_v42, %v4934_v32  ;;  %v5117_v50 = vsel %vm922_vm4, %v5086_v5, 0.0 }
 0xf6a   : > { %v5007_v13 = vadd.f32 %v16802_v15, %v4947_v34  ;;  %v5160_v14 = vrot.slane %v14074_v29, 1  ;;  %v14087_v9 = vmul.f32 %v5117_v50, %v11309_v7  ;;  %v4948_v36 = vadd.f32 %v16803_v48, %v4932_v2 }
 0xf6b   : > { %v5220_v62 = vrot.slane %v14080_v20, 2  ;;  %v5010_v12 = vadd.f32 %v16804_v26, %v4950_v41  ;;  %v14093_v21 = vmul.f32 %v5117_v50, %v16791_v57  ;;  %v4949_v49 = vadd.f32 %v16805_v39, %v4933_v11 }
 0xf6c   : > { %v5129_v8 = vadd.f32 %v5121_v44, %v5065_v28  ;;  %v5165_v43 = vrot.slane %v14064_v16, 1  ;;  %v5161_v59 = vsel %vm580_vm1, %v5159_v4, %v5160_v14  ;;  %v5169_v45 = vrot.slane %v14087_v9, 1  ;;  %v16806_v44 = vld [vmem:[#allocation14_spill] sm:$0xff]  ;;  %v5088_v4 = vpop.permute.xlu0 %5087  ;;  %v5094_v26 = vpop.permute.xlu1 %5093 }
 0xf6d   : > { %v5222_v2 = vrot.slane %v14071_v51, 2  ;;  %v5123_v32 = vmul.f32 %v5098_v38, %v11297_v1  ;;  %v5187_v34 = vadd.f32 %v5161_v59, %v5127_v22  ;;  %v5099_v40 = vsel %vm922_vm4, %v5082_v55, %v5084_v63  ;;  %v16807_v51 = vld [vmem:[#allocation21_spill] sm:$0xff]  ;;  %v16808_v55 = vld [vmem:[#allocation12_spill] sm:$0xff] }
 0xf6e   : > { %v5126_v27 = vmul.f32 %v5117_v50, %v16792_v24  ;;  %v5170_v11 = vsel %vm580_vm1, %v5168_v25, %v5169_v45  ;;  %v5008_v31 = vadd.f32 %v16806_v44, %v4948_v36  ;;  %v5100_v28 = vsel %vm922_vm4, %v5084_v63, %v5086_v5  ;;  %v16809_v50 = vld [vmem:[#allocation18_spill] sm:$0xff] }
 0xf6f   : > { %v5221_v16 = vsel %vm662_vm2, %v5219_v3, %v5220_v62  ;;  %v5070_v38 = vadd.f32 %v16807_v51, %v5010_v12  ;;  %v5229_v22 = vrot.slane %v14093_v21, 2  ;;  %v5009_v42 = vadd.f32 %v16808_v55, %v4949_v49  ;;  %v16810_v21 = vld [vmem:[#allocation19_spill] sm:$0xff] }
 0xf70   : > { %v5225_v41 = vrot.slane %v14077_v52, 2  ;;  %v5067_v15 = vadd.f32 %v16809_v50, %v5007_v13  ;;  %v5247_v25 = vadd.f32 %v5221_v16, %v5187_v34  ;;  %v5140_v48 = vmul.f32 %v5099_v40, %v16794_v61  ;;  %v16811_v34 = vld [vmem:[#allocation22_spill] sm:$0xff]  ;;  %v5092_v51 = vpop.permute.xlu0 %5091 }
 0xf71   : > { %v5190_v36 = vadd.f32 %v5170_v11, %v5130_v53  ;;  %v5124_v5 = vmul.f32 %v5099_v40, %v16793_v17  ;;  %v5141_v63 = vmul.f32 %v5100_v28, %v16798_v23  ;;  %v14122_v3 = vmul.f32 %v5099_v40, %v16799_v54 }
 0xf72   : > { %v5131_v12 = vadd.f32 %v5123_v32, %v5067_v15  ;;  %v5068_v39 = vadd.f32 %v16810_v21, %v5008_v31  ;;  %v5163_v49 = vrot.slane %v5140_v48, 1  ;;  %v14126_v52 = vmul.f32 %v5100_v28, %v16800_v47  ;;  %v16812_v31 = vld [vmem:[#allocation44_spill] sm:$0xff] }
 0xf73   : > { %v5134_v13 = vadd.f32 %v5126_v27, %v5070_v38  ;;  %v5230_v59 = vsel %vm662_vm2, %v5228_v56, %v5229_v22  ;;  %v5069_v53 = vadd.f32 %v16811_v34, %v5009_v42  ;;  %v5166_v11 = vrot.slane %v5141_v63, 1 }
 0xf74   : > { %v5125_v44 = vmul.f32 %v5100_v28, %v16796_v10  ;;  %v5164_v16 = vsel %vm580_vm1, %v5162_v19, %v5163_v49  ;;  %v5101_v40 = vsel %vm922_vm4, %v5088_v4, %v5090_v33  ;;  %v5118_v32 = vsel %vm922_vm4, %v5094_v26, 0.0 }
 0xf75   : > { %v5255_v55 = vmul.f32 %v5247_v25, %v16812_v31  ;;  %v5250_v50 = vadd.f32 %v5230_v59, %v5190_v36  ;;  %v5132_v15 = vadd.f32 %v5124_v5, %v5068_v39  ;;  %v5223_v27 = vrot.slane %v14122_v3, 2 }
 0xf76   : > { %v5167_v56 = vsel %vm580_vm1, %v5165_v43, %v5166_v11  ;;  %v5226_v38 = vrot.slane %v14126_v52, 2  ;;  %v5143_v42 = vmul.f32 %v5101_v40, %v11300_v6  ;;  %v5203_v28 = vmul.f32 %v5101_v40, %v11303_v58  ;;  %v16813_v43 = vld [vmem:[#allocation46_spill] sm:$0xff] }
 0xf77   : > { %v5188_v19 = vadd.f32 %v5164_v16, %v14067_v18  ;;  %v5146_v4 = vmul.f32 %v5118_v32, %v11309_v7  ;;  %v5206_v48 = vmul.f32 %v5118_v32, %v16791_v57  ;;  %v5102_v25 = vsel %vm922_vm4, %v5090_v33, %v5092_v51 }
 0xf78   : > { %v5133_v36 = vadd.f32 %v5125_v44, %v5069_v53  ;;  %v5171_v5 = vrot.slane %v5143_v42, 1  ;;  %v5231_v63 = vrot.slane %v5203_v28, 2  ;;  %v5103_v3 = vsel %vm922_vm4, %v5092_v51, %v5094_v26 }
 0xf79   : > { %v5258_v21 = vmul.f32 %v5250_v50, %v16813_v43  ;;  %v5177_v39 = vrot.slane %v5146_v4, 1  ;;  %v5237_v52 = vrot.slane %v5206_v48, 2  ;;  %v5144_v59 = vmul.f32 %v5102_v25, %v16794_v61  ;;  %v16814_v4 = vld [vmem:[#allocation45_spill] sm:$0xff]  ;;  %v16815_v48 = vld [vmem:[#allocation47_spill] sm:$0xff] }
 0xf7a   : > { %v5189_v34 = vadd.f32 %v5167_v56, %v5129_v8  ;;  %v5224_v18 = vsel %vm662_vm2, %v5222_v2, %v5223_v27  ;;  %v5172_v16 = vsel %vm580_vm1, %v5160_v14, %v5171_v5  ;;  %v5145_v33 = vmul.f32 %v5103_v3, %v16798_v23 }
 0xf7b   : > { %v5227_v53 = vsel %vm662_vm2, %v5225_v41, %v5226_v38  ;;  %v5248_v44 = vadd.f32 %v5224_v18, %v5188_v19  ;;  %v5191_v40 = vadd.f32 %v5172_v16, %v5131_v12  ;;  %v5178_v26 = vsel %vm580_vm1, %v5169_v45, %v5177_v39  ;;  %v16817_v39 = vld [vmem:[#allocation49_spill] sm:$0xff] }
 0xf7c   : > { %v5232_v8 = vsel %vm662_vm2, %v5220_v62, %v5231_v63  ;;  %v5194_v32 = vadd.f32 %v5178_v26, %v5134_v13  ;;  %v5173_v2 = vrot.slane %v5144_v59, 1  ;;  %v5175_v51 = vrot.slane %v5145_v33, 1 }
 0xf7d   : > { %v5251_v29 = vadd.f32 %v5232_v8, %v5191_v40  ;;  %v5238_v14 = vsel %vm662_vm2, %v5229_v22, %v5237_v52  ;;  %v5204_v50 = vmul.f32 %v5102_v25, %v16799_v54  ;;  %v5205_v41 = vmul.f32 %v5103_v3, %v16800_v47  ;;  %v16882_v47 = vld [vmem:[#allocation23_spill] sm:$0xff] }
 0xf7e   : > { %v5249_v56 = vadd.f32 %v5227_v53, %v5189_v34  ;;  %v5254_v12 = vadd.f32 %v5238_v14, %v5194_v32  ;;  %v5174_v9 = vsel %vm580_vm1, %v5163_v49, %v5173_v2  ;;  %v5176_v45 = vsel %vm580_vm1, %v5166_v11, %v5175_v51  ;;  %v16816_v11 = vld [vmem:[#allocation48_spill] sm:$0xff]  ;;  %v16818_v53 = vld [vmem:[#allocation50_spill] sm:$0xff]  ;;  %v16819_v32 = vld [vmem:[#allocation51_spill] sm:$0xff] }
 0xf7f   : > { %v5259_v20 = vmul.f32 %v5251_v29, %v16812_v31  ;;  %v5192_v42 = vadd.f32 %v5174_v9, %v5132_v15  ;;  %v5193_v62 = vadd.f32 %v5176_v45, %v5133_v36  ;;  %v5233_v13 = vrot.slane %v5204_v50, 2 }
 0xf80   : > { %v5262_v28 = vmul.f32 %v5254_v12, %v16813_v43  ;;  %v5235_v19 = vrot.slane %v5205_v41, 2  ;;  %v14167_v22 = vadd.f32 %v5255_v55, %v16814_v4  ;;  %v14170_v25 = vadd.f32 %v5258_v21, %v16815_v48 }
 0xf81   : > { %v14173_v5 = vadd.f32 %v5259_v20, %v16814_v4  ;;  %v5234_v49 = vsel %vm662_vm2, %v5223_v27, %v5233_v13  ;;  %v5256_v63 = vmul.f32 %v5248_v44, %v16816_v11  ;;  %v5257_v52 = vmul.f32 %v5249_v56, %v16817_v39 }
 0xf82   : > { %v14178_v15 = vadd.f32 %v5262_v28, %v16815_v48  ;;  %v5236_v36 = vsel %vm662_vm2, %v5226_v38, %v5235_v19  ;;  %v5252_v3 = vadd.f32 %v5234_v49, %v5192_v42 }
 0xf83   : > { %v5271_v55 = vadd.f32 %v14173_v5, %v14167_v22  ;;  %v5299_v21 = vmax.f32 %v14167_v22, %v14173_v5  ;;  %v5253_v59 = vadd.f32 %v5236_v36, %v5193_v62  ;;  %v14193_v44 = vadd.f32 %v5256_v63, %v16818_v53 }
 0xf84   : > { %v5292_v27 = vadd.f32 %v14178_v15, %v14170_v25  ;;  %v5320_v34 = vmax.f32 %v14170_v25, %v14178_v15  ;;  %v5260_v18 = vmul.f32 %v5252_v3, %v16816_v11  ;;  %v14199_v2 = vadd.f32 %v5257_v52, %v16819_v32 }
 0xf85   : > { %v5261_v38 = vmul.f32 %v5253_v59, %v16817_v39  ;;  %v5300_v16 = vrot.slane %v5299_v21, 4  ;;  %v5272_v33 = vrot.slane %v5271_v55, 4 }
 0xf86   : > { %v14196_v40 = vadd.f32 %v5260_v18, %v16818_v53  ;;  %v5321_v26 = vrot.slane %v5320_v34, 4  ;;  %v5293_v8 = vrot.slane %v5292_v27, 4 }
 0xf87   : > { %v14202_v51 = vadd.f32 %v5261_v38, %v16819_v32  ;;  %v5301_v29 = vmax.f32 %v5299_v21, %v5300_v16  ;;  %v5273_v14 = vadd.f32 %v5272_v33, %v5271_v55 }
 0xf88   : > { %v5278_v50 = vadd.f32 %v14196_v40, %v14193_v44  ;;  %v5306_v41 = vmax.f32 %v14193_v44, %v14196_v40  ;;  %v5322_v56 = vmax.f32 %v5320_v34, %v5321_v26  ;;  %v5294_v12 = vadd.f32 %v5293_v8, %v5292_v27 }
 0xf89   : > { %v5285_v9 = vadd.f32 %v14202_v51, %v14199_v2  ;;  %v5313_v45 = vmax.f32 %v14199_v2, %v14202_v51  ;;  %v5302_v20 = vrot.slane %v5301_v29, 2  ;;  %v5274_v42 = vrot.slane %v5273_v14, 2 }
 0xf8a   : > { %v5307_v62 = vrot.slane %v5306_v41, 4  ;;  %v5323_v13 = vrot.slane %v5322_v56, 2  ;;  %v5279_v28 = vrot.slane %v5278_v50, 4  ;;  %v5295_v19 = vrot.slane %v5294_v12, 2 }
 0xf8b   : > { %v5314_v49 = vrot.slane %v5313_v45, 4  ;;  %v5286_v63 = vrot.slane %v5285_v9, 4  ;;  %v5303_v21 = vmax.f32 %v5301_v29, %v5302_v20  ;;  %v5275_v27 = vadd.f32 %v5274_v42, %v5273_v14 }
 0xf8c   : > { %v5308_v36 = vmax.f32 %v5306_v41, %v5307_v62  ;;  %v5324_v3 = vmax.f32 %v5322_v56, %v5323_v13  ;;  %v5280_v52 = vadd.f32 %v5279_v28, %v5278_v50  ;;  %v5296_v55 = vadd.f32 %v5295_v19, %v5294_v12 }
 0xf8d   : > { %v5315_v59 = vmax.f32 %v5313_v45, %v5314_v49  ;;  %v5287_v34 = vadd.f32 %v5286_v63, %v5285_v9  ;;  %v5304_v39 = vrot.slane %v5303_v21, 1  ;;  %v5276_v48 = vrot.slane %v5275_v27, 1 }
 0xf8e   : > { %v5309_v18 = vrot.slane %v5308_v36, 2  ;;  %v5281_v38 = vrot.slane %v5280_v52, 2  ;;  %v5325_v8 = vrot.slane %v5324_v3, 1  ;;  %v5297_v53 = vrot.slane %v5296_v55, 1 }
 0xf8f   : > { %v5316_v16 = vrot.slane %v5315_v59, 2  ;;  %v5288_v33 = vrot.slane %v5287_v34, 2  ;;  %v5305_v20 = vmax.f32 %v5303_v21, %v5304_v39  ;;  %v5277_v62 = vadd.f32 %v5276_v48, %v5275_v27  ;;  %v4513_v39 = vld [vmem:[%s16321_s9 + $0x20] sm:$0xff] }
 0xf90   : > { %v5310_v26 = vmax.f32 %v5308_v36, %v5309_v18  ;;  %v5282_v32 = vadd.f32 %v5281_v38, %v5280_v52  ;;  %v5326_v45 = vmax.f32 %v5324_v3, %v5325_v8  ;;  %v5298_v9 = vadd.f32 %v5297_v53, %v5296_v55  ;;  %v4510_v3 = vld [vmem:[%s16321_s9 + $0x8] sm:$0xff]  ;;  %v4516_v55 = vld [vmem:[%s16321_s9 + $0x38] sm:$0xff] }
 0xf91   : > { %v5317_v11 = vmax.f32 %v5315_v59, %v5316_v16  ;;  %v5289_v4 = vadd.f32 %v5288_v33, %v5287_v34 }
 0xf92   : > { %v5311_v41 = vrot.slane %v5310_v26, 1  ;;  %v5283_v56 = vrot.slane %v5282_v32, 1 }
 0xf93   : > { %v5318_v50 = vrot.slane %v5317_v11, 1  ;;  %v5290_v12 = vrot.slane %v5289_v4, 1 }
 0xf94   : > { %v5312_v29 = vmax.f32 %v5310_v26, %v5311_v41  ;;  %v5284_v14 = vadd.f32 %v5283_v56, %v5282_v32  ;;  %v4512_v32 = vld [vmem:[%s16321_s9 + $0x18] sm:$0xff] }
 0xf95   : > { %v5319_v42 = vmax.f32 %v5317_v11, %v5318_v50  ;;  %v5291_v13 = vadd.f32 %v5290_v12, %v5289_v4  ;;  %v4514_v11 = vld [vmem:[%s16321_s9 + $0x28] sm:$0xff]  ;;  %v4509_v4 = vld [vmem:[%s16321_s9] sm:$0xff]  ;;  %v9941_v21 = vpack.c.bf16 %v4516_v55, %v4512_v32  ;;  %v16826_v32 = vld [vmem:[#allocation29_spill] sm:$0xff] }
 0xf96   : > { %v5341_v28 = vmax.f32 %v5312_v29, %v5326_v45  ;;  %v5328_v19 = vadd.f32 %v5298_v9, %v5284_v14  ;;  %v9937_v48 = vpack.c.bf16 %v4514_v11, %v4510_v3  ;;  %v9939_v53 = vpack.c.bf16 %v4513_v39, %v4509_v4  ;;  %v4511_v9 = vld [vmem:[%s16321_s9 + $0x10] sm:$0xff]  ;;  %v16827_v55 = vld [vmem:[#allocation27_spill] sm:$0xff] }
 0xf97   : > { %v5340_v49 = vmax.f32 %v5305_v20, %v5319_v42  ;;  %v5327_v63 = vadd.f32 %v5291_v13, %v5277_v62  ;;  %v4515_v20 = vld [vmem:[%s16321_s9 + $0x30] sm:$0xff]  ;;  %v16820_v13 = vmov 0.0  }
 0xf98   : > { %9938 = vmatprep.subr.bf16.mxu1 %v9937_v48  ;;  %v9943_v42 = vpack.c.bf16 %v4515_v20, %v4511_v9 }
 0xf99   : > { %v5342_v36 = vmax.f32 %v5340_v49, %v5341_v28  ;;  %v5329_v52 = vadd.f32 %v5328_v19, %v5327_v63  ;;  %9940 = vmatpush1.bf16.msra.mxu1 %v9939_v53  ;;  %v16821_v28 = vmov 0.0|0.0   ;;  %v16822_v49 = vld [vmem:[#allocation15_spill] sm:$0xff]  ;;  %v16823_v63 = vld [vmem:[#allocation16_spill] sm:$0xff] }
 0xf9a   : > { %9942 = vmatprep.subr.bf16.mxu1 %v9941_v21 }
 0xf9b   : > { %5344 = vrot.lane.b32.xlu1 %v5342_v36, %s16745_s12  ;;  %5331 = vrot.lane.b32.xlu0 %v5329_v52, %s16745_s12 }
0x100d   : > { %v5345_v59 = vpop.permute.xlu1 %5344  ;;  %v5332_v27 = vpop.permute.xlu0 %5331 }
0x100e   : > { %v5347_v34 = vmax.f32 %v5342_v36, %v5345_v59  ;;  %v5334_v18 = vadd.f32 %v5332_v27, %v5329_v52  ;;  %v16825_v36 = vld [vmem:[#allocation30_spill] sm:$0xff]  ;;  %v16828_v59 = vld [vmem:[#allocation57_spill] sm:$0xff] }
0x100f   : > { %v4488_v38 = vpop.f32.mrb[30].mxu0 }
0x1010   : > { %v4497_v16 = vsub.f32 0.0, %v4488_v38  ;;  %v4490_v33 = vpop.f32.mrb[31].mxu0  ;;  %5349 = vrot.lane.b32.xlu1 %v5347_v34, %s16747_s21  ;;  %5336 = vrot.lane.b32.xlu0 %v5334_v18, %s16747_s21 }
0x1011   : > { %v16830_v33 = vld [vmem:[#allocation58_spill] sm:$0xff] }
0x1012   : > { %v4499_v26 = vmul.f32 1.442695, %v4497_v16 }
0x1014   : > { %v4493_v8 = vpop.f32.mrb[32].mxu0  ;;  %10815 = vpow2.f32 %v4499_v26 }
0x1015   : > { %v4498_v41 = vsub.f32 0.0, %v4493_v8  ;;  %v4495_v56 = vpop.f32.mrb[33].mxu0 }
0x1017   : > { %v4501_v50 = vmul.f32 1.442695, %v4498_v41  ;;  %v16831_v41 = vld [vmem:[#allocation52_spill] sm:$0xff] }
0x1019   : > { %10817 = vpow2.f32 %v4501_v50 }
0x101e   : > { %v10816_v12 = vpop.eup %10815 }
0x101f   : > { %v4503_v29 = vadd.f32 1.0, %v10816_v12  ;;  %v16832_v12 = vld [vmem:[#allocation2_spill] sm:$0xff] }
0x1021   : > { %10819 = vrcp.f32 %v4503_v29 }
0x1023   : > { %v10818_v45 = vpop.eup %10817 }
0x1024   : > { %v4504_v14 = vadd.f32 1.0, %v10818_v45 }
0x1026   : > { %10821 = vrcp.f32 %v4504_v14  ;;  %v16833_v14 = vld [vmem:[#allocation59_spill] sm:$0xff] }
0x102b   : > { %v10820_v62 = vpop.eup %10819 }
0x102c   : > { %8831 = vmatmul.mubr.msk.f32.vlgmr.msra.gmra.mrb[26].mxu1 %vm2283_vm14, %v10820_v62 }
0x102d   : > { %4593 = vmatprep.mubr.f32.mxu1 %v16820_v13  ;;  %9944 = vmatpush1.bf16.msra.mxu1 %v9943_v42  ;;  %v16834_v42 = vld [vmem:[#allocation55_spill] sm:$0xff] }
0x102e   : > { %9945 = vmatprep.subr.bf16.mxu1 %v16821_v28 }
0x1030   : > { %v10822_v19 = vpop.eup %10821 }
0x1031   : > { %8832 = vmatmul.mubr.msk.f32.gmra.mrb[28].mxu1 %vm2283_vm14, %v10822_v19 }
0x1032   : > { %4664 = vmatprep.mubr.f32.mxu1 %v16820_v13 }
0x1035   : > { %8833 = vmatmul.mubr.msk.f32.vlgmr.msra.gmra.mrb[30].mxu1 %vm2283_vm14, %v10820_v62 }
0x1036   : > { %4670 = vmatprep.mubr.f32.mxu1 %v16820_v13  ;;  %9947 = vmatpush3.bf16.msra.mxu1 %v16822_v49 }
0x1037   : > { %9948 = vmatprep.subr.bf16.mxu1 %v16821_v28 }
0x1039   : > { %8834 = vmatmul.mubr.msk.f32.gmra.mrb[32].mxu1 %vm2283_vm14, %v10822_v19 }
0x103a   : > { %9950 = vmatpush3.bf16.msra.mxu1 %v16823_v63  ;;  %9563 = vmatprep.mubr.msk.f32.mxu1 %vm16824_vm12, %v16820_v13  ;;  %v16879_v63 = vld [vmem:[#allocation4_spill] sm:$0xff] }
0x103b   : > { %8852 = vmatprep.subr.msk.mxu1 %vm1393_vm6, %v16825_v36 }
0x1082   : > { %v5350_v52 = vpop.permute.xlu1 %5349  ;;  %v5337_v3 = vpop.permute.xlu0 %5336 }
0x1083   : > { %v5352_v11 = vmax.f32 %v5347_v34, %v5350_v52  ;;  %v5339_v4 = vadd.f32 %v5337_v3, %v5334_v18  ;;  %v16829_v18 = vld [vmem:[#allocation53_spill] sm:$0xff]  ;;  %v16835_v52 = vld [vmem:[#allocation60_spill] sm:$0xff] }
0x1085   : > { %v5355_v48 = vrot.slane %v5352_v11, 7  ;;  %v5353_v39 = vmul.f32 0.00390625, %v5339_v4 }
0x1087   : > { %v5357_v53 = vsel %vm408_vm0, %v5353_v39, %v5355_v48 }
0x1088   : > { %9564 = vmatmul.mubr.msk.f32.vlgmr.msra.gmra.mrb[34].mxu1 %vm473_vm3, %v5357_v53 }
0x1089   : > { %8853 = vmatpush1.msk.msra.mxu1 %vm1393_vm6, %v16826_v32  ;;  %5505 = vmatprep.mubr.f32.mxu1 %v16820_v13  ;;  %v16878_v32 = vld [vmem:[#allocation24_spill] sm:$0xff] }
0x108a   : > { %8855 = vmatprep.subr.msk.mxu1 %vm1393_vm6, %v16827_v55 }
0x10ff   : > { %v4589_v21 = vpop.f32.mrb[26].mxu1 }
0x1100   : > { %v4677_v27 = vmul.f32 %v4589_v21, %v16828_v59  ;;  %v4591_v34 = vpop.f32.mrb[27].mxu1  ;;  %v16836_v59 = vld [vmem:[#allocation17_spill] sm:$0xff] }
0x1101   : > { %v4678_v38 = vmul.f32 %v4591_v34, %v16829_v18  ;;  %v5648_v34 = vld [vmem:[%s16318_s6 + $0x88] sm:$0xff] }
0x1102   : > { %8835 = vst [vmem:[%s12952_s22 + $0x40] sm:$0xff] %v4677_v27  ;;  %v5647_v27 = vld [vmem:[%s16318_s6 + $0x80] sm:$0xff] }
0x1103   : > { %8836 = vst [vmem:[%s12952_s22 + $0x48] sm:$0xff] %v4678_v38  ;;  %v9951_v18 = vpack.c.bf16 %v5648_v34, %v5647_v27  ;;  %v5631_v38 = vld [vmem:[%s16318_s6] sm:$0xff]  ;;  %v5666_v27 = vld [vmem:[%s16318_s6 + $0x118] sm:$0xff] }
0x1104   : > { %v4595_v16 = vpop.f32.mrb[28].mxu1 }
0x1105   : > { %v4681_v26 = vmul.f32 %v4595_v16, %v16830_v33  ;;  %v4597_v8 = vpop.f32.mrb[29].mxu1  ;;  %v5632_v16 = vld [vmem:[%s16318_s6 + $0x8] sm:$0xff] }
0x1106   : > { %v4682_v56 = vmul.f32 %v4597_v8, %v16831_v41  ;;  %v9953_v33 = vpack.c.bf16 %v5632_v16, %v5631_v38  ;;  %v5650_v8 = vld [vmem:[%s16318_s6 + $0x98] sm:$0xff]  ;;  %v5679_v41 = vld [vmem:[%s16318_s6 + $0x180] sm:$0xff] }
0x1107   : > { %8839 = vst [vmem:[%s12952_s22 + $0x60] sm:$0xff] %v4681_v26  ;;  %v5649_v26 = vld [vmem:[%s16318_s6 + $0x90] sm:$0xff]  ;;  %v5654_v38 = vld [vmem:[%s16318_s6 + $0xb8] sm:$0xff]  ;;  %v5683_v16 = vld [vmem:[%s16318_s6 + $0x1a0] sm:$0xff] }
0x1108   : > { %8840 = vst [vmem:[%s12952_s22 + $0x68] sm:$0xff] %v4682_v56  ;;  %v4666_v50 = vpop.f32.mrb[30].mxu1  ;;  %v9955_v56 = vpack.c.bf16 %v5650_v8, %v5649_v26  ;;  %v5684_v26 = vld [vmem:[%s16318_s6 + $0x1a8] sm:$0xff]  ;;  %v5637_v8 = vld [vmem:[%s16318_s6 + $0x30] sm:$0xff] }
0x1109   : > { %v4679_v29 = vmul.f32 %v4666_v50, %v16832_v12  ;;  %v4668_v45 = vpop.f32.mrb[31].mxu1  ;;  %v5680_v50 = vld [vmem:[%s16318_s6 + $0x188] sm:$0xff]  ;;  %v5633_v12 = vld [vmem:[%s16318_s6 + $0x10] sm:$0xff] }
0x110a   : > { %v4680_v9 = vmul.f32 %v4668_v45, %v16833_v14  ;;  %v9983_v45 = vpack.c.bf16 %v5680_v50, %v5679_v41  ;;  %v5638_v41 = vld [vmem:[%s16318_s6 + $0x38] sm:$0xff] }
0x110b   : > { %8837 = vst [vmem:[%s12952_s22 + $0x50] sm:$0xff] %v4679_v29  ;;  %v5634_v29 = vld [vmem:[%s16318_s6 + $0x18] sm:$0xff]  ;;  %v9965_v50 = vpack.c.bf16 %v5638_v41, %v5637_v8  ;;  %v5671_v8 = vld [vmem:[%s16318_s6 + $0x140] sm:$0xff]  ;;  %v5672_v41 = vld [vmem:[%s16318_s6 + $0x148] sm:$0xff] }
0x110c   : > { %8838 = vst [vmem:[%s12952_s22 + $0x58] sm:$0xff] %v4680_v9  ;;  %v4672_v20 = vpop.f32.mrb[32].mxu1  ;;  %v9957_v14 = vpack.c.bf16 %v5634_v29, %v5633_v12  ;;  %v5663_v9 = vld [vmem:[%s16318_s6 + $0x100] sm:$0xff]  ;;  %9984 = vmatprep.subr.bf16.mxu0 %v9983_v45  ;;  %v5668_v29 = vld [vmem:[%s16318_s6 + $0x128] sm:$0xff] }
0x110d   : > { %v4683_v62 = vmul.f32 %v4672_v20, %v16834_v42  ;;  %v4674_v19 = vpop.f32.mrb[33].mxu1  ;;  %v5664_v20 = vld [vmem:[%s16318_s6 + $0x108] sm:$0xff]  ;;  %v5667_v12 = vld [vmem:[%s16318_s6 + $0x120] sm:$0xff] }
0x110e   : > { %v4684_v3 = vmul.f32 %v4674_v19, %v16835_v52  ;;  %v9985_v42 = vpack.c.bf16 %v5664_v20, %v5663_v9  ;;  %v5652_v19 = vld [vmem:[%s16318_s6 + $0xa8] sm:$0xff]  ;;  %v5681_v52 = vld [vmem:[%s16318_s6 + $0x190] sm:$0xff]  ;;  %v9993_v45 = vpack.c.bf16 %v5668_v29, %v5667_v12 }
0x110f   : > { %8841 = vst [vmem:[%s12952_s22 + $0x70] sm:$0xff] %v4683_v62  ;;  %v5651_v62 = vld [vmem:[%s16318_s6 + $0xa0] sm:$0xff]  ;;  %v5656_v9 = vld [vmem:[%s16318_s6 + $0xc8] sm:$0xff]  ;;  %v5685_v20 = vld [vmem:[%s16318_s6 + $0x1b0] sm:$0xff] }
0x1110   : > { %8842 = vst [vmem:[%s12952_s22 + $0x78] sm:$0xff] %v4684_v3  ;;  %9986 = vmatpush3.bf16.msra.mxu0 %v9985_v42  ;;  %v9959_v3 = vpack.c.bf16 %v5652_v19, %v5651_v62  ;;  %v5686_v62 = vld [vmem:[%s16318_s6 + $0x1b8] sm:$0xff]  ;;  %v5639_v19 = vld [vmem:[%s16318_s6 + $0x40] sm:$0xff]  ;;  %v5660_v12 = vld [vmem:[%s16318_s6 + $0xe8] sm:$0xff] }
0x1111   : > { %v5689_v29 = vld [vmem:[%s16318_s6 + $0x1d0] sm:$0xff] }
0x115b   : > { %v5427_v11 = vpop.f32.mrb[34].mxu1 }
0x115c   : > { %vm5431_vm5 = vcmp.ge.f32.partialorder %v5427_v11, 0.0  ;;  %v5432_v4 = vmul.f32 0.1, %v5427_v11  ;;  %v9565_v48 = vpop.f32.mrb[35].mxu1 }
0x115d   : > { %v5636_v48 = vld [vmem:[%s16318_s6 + $0x28] sm:$0xff] }
0x115e   : > { %v5433_v39 = vsel %vm5431_vm5, %v5427_v11, %v5432_v4  ;;  %v5682_v11 = vld [vmem:[%s16318_s6 + $0x198] sm:$0xff]  ;;  %v5635_v4 = vld [vmem:[%s16318_s6 + $0x20] sm:$0xff]  ;;  %vm16848_vm5 = vmmov %vm16847_vm13 }
0x115f   : > { %v5435_v53 = vrot.slane %v5433_v39, 1 }
0x1161   : > { %v5437_v21 = vadd.f32 %v5435_v53, %v5433_v39  ;;  %v9987_v39 = vpack.c.bf16 %v5682_v11, %v5681_v52  ;;  %v9961_v53 = vpack.c.bf16 %v5636_v48, %v5635_v4  ;;  %v5640_v52 = vld [vmem:[%s16318_s6 + $0x48] sm:$0xff]  ;;  %v5669_v4 = vld [vmem:[%s16318_s6 + $0x130] sm:$0xff]  ;;  %v5670_v48 = vld [vmem:[%s16318_s6 + $0x138] sm:$0xff] }
0x1162   : > { %v9969_v11 = vpack.c.bf16 %v5640_v52, %v5639_v19  ;;  %v5674_v52 = vld [vmem:[%s16318_s6 + $0x158] sm:$0xff] }
0x1163   : > { %8854 = vmatmul.mubr.msk.f32.vlgmr.msra.gmra.mrb[36].mxu1 %vm1389_vm8, %v5437_v21  ;;  %9988 = vmatprep.subr.bf16.mxu0 %v9987_v39  ;;  %v9997_v39 = vpack.c.bf16 %v5670_v48, %v5669_v4 }
0x1164   : > { %8856 = vmatpush1.msk.msra.mxu1 %vm1393_vm6, %v16836_v59  ;;  %5576 = vmatprep.mubr.f32.mxu1 %v16820_v13 }
0x1165   : > { %9952 = vmatprep.subr.bf16.mxu1 %v9951_v18  ;;  %v5653_v18 = vld [vmem:[%s16318_s6 + $0xb0] sm:$0xff] }
0x1167   : > { %8857 = vmatmul.mubr.msk.f32.vlgmr.msra.gmra.mrb[38].mxu1 %vm1389_vm8, %v5437_v21  ;;  %v5665_v21 = vld [vmem:[%s16318_s6 + $0x110] sm:$0xff] }
0x1168   : > { %9954 = vmatpush3.bf16.msra.mxu1 %v9953_v33  ;;  %v9989_v34 = vpack.c.bf16 %v5666_v27, %v5665_v21  ;;  %v9963_v33 = vpack.c.bf16 %v5654_v38, %v5653_v18  ;;  %v5658_v21 = vld [vmem:[%s16318_s6 + $0xd8] sm:$0xff]  ;;  %v5687_v27 = vld [vmem:[%s16318_s6 + $0x1c0] sm:$0xff]  ;;  %v5688_v18 = vld [vmem:[%s16318_s6 + $0x1c8] sm:$0xff] }
0x1169   : > { %9956 = vmatprep.subr.bf16.mxu1 %v9955_v56  ;;  %v9991_v56 = vpack.c.bf16 %v5684_v26, %v5683_v16  ;;  %v5641_v38 = vld [vmem:[%s16318_s6 + $0x50] sm:$0xff]  ;;  %v5642_v16 = vld [vmem:[%s16318_s6 + $0x58] sm:$0xff] }
0x116a   : > { %9990 = vmatpush3.bf16.msra.mxu0 %v9989_v34  ;;  %v9973_v26 = vpack.c.bf16 %v5642_v16, %v5641_v38  ;;  %v5676_v38 = vld [vmem:[%s16318_s6 + $0x168] sm:$0xff] }
0x116b   : > { %9992 = vmatprep.subr.bf16.mxu0 %v9991_v56  ;;  %v5659_v56 = vld [vmem:[%s16318_s6 + $0xe0] sm:$0xff] }
0x116c   : > { %9958 = vmatpush3.bf16.msra.mxu1 %v9957_v14  ;;  %v5655_v14 = vld [vmem:[%s16318_s6 + $0xc0] sm:$0xff] }
0x116d   : > { %9960 = vmatprep.subr.bf16.mxu1 %v9959_v3  ;;  %v9967_v42 = vpack.c.bf16 %v5656_v9, %v5655_v14  ;;  %v9995_v3 = vpack.c.bf16 %v5686_v62, %v5685_v20  ;;  %v9975_v14 = vpack.c.bf16 %v5660_v12, %v5659_v56  ;;  %v5643_v20 = vld [vmem:[%s16318_s6 + $0x60] sm:$0xff]  ;;  %v5673_v62 = vld [vmem:[%s16318_s6 + $0x150] sm:$0xff] }
0x116e   : > { %9994 = vmatpush3.bf16.msra.mxu0 %v9993_v45  ;;  %v5690_v45 = vld [vmem:[%s16318_s6 + $0x1d8] sm:$0xff]  ;;  %v10005_v4 = vpack.c.bf16 %v5674_v52, %v5673_v62  ;;  %v5677_v56 = vld [vmem:[%s16318_s6 + $0x170] sm:$0xff] }
0x116f   : > { %9996 = vmatprep.subr.bf16.mxu0 %v9995_v3  ;;  %v10003_v9 = vpack.c.bf16 %v5690_v45, %v5689_v29  ;;  %v5661_v3 = vld [vmem:[%s16318_s6 + $0xf0] sm:$0xff] }
0x1170   : > { %9962 = vmatpush3.bf16.msra.mxu1 %v9961_v53  ;;  %v5657_v53 = vld [vmem:[%s16318_s6 + $0xd0] sm:$0xff] }
0x1171   : > { %9964 = vmatprep.subr.bf16.mxu1 %v9963_v33  ;;  %v9971_v34 = vpack.c.bf16 %v5658_v21, %v5657_v53  ;;  %v9999_v33 = vpack.c.bf16 %v5688_v18, %v5687_v27  ;;  %v5692_v53 = vld [vmem:[%s16318_s6 + $0x1e8] sm:$0xff]  ;;  %v5645_v21 = vld [vmem:[%s16318_s6 + $0x70] sm:$0xff]  ;;  %v5675_v18 = vld [vmem:[%s16318_s6 + $0x160] sm:$0xff] }
0x1172   : > { %9998 = vmatpush3.bf16.msra.mxu0 %v9997_v39  ;;  %v5691_v39 = vld [vmem:[%s16318_s6 + $0x1e0] sm:$0xff] }
0x1173   : > { %10000 = vmatprep.subr.bf16.mxu0 %v9999_v33  ;;  %v10007_v27 = vpack.c.bf16 %v5692_v53, %v5691_v39  ;;  %v10009_v33 = vpack.c.bf16 %v5676_v38, %v5675_v18 }
0x1174   : > { %9966 = vmatpush3.bf16.msra.mxu1 %v9965_v50  ;;  %v10001_v50 = vpack.c.bf16 %v5672_v41, %v5671_v8  ;;  %v5694_v8 = vld [vmem:[%s16318_s6 + $0x1f8] sm:$0xff] }
0x1175   : > { %9968 = vmatprep.subr.bf16.mxu1 %v9967_v42  ;;  %v5644_v42 = vld [vmem:[%s16318_s6 + $0x68] sm:$0xff] }
0x1176   : > { %10002 = vmatpush3.bf16.msra.mxu0 %v10001_v50  ;;  %v9977_v19 = vpack.c.bf16 %v5644_v42, %v5643_v20  ;;  %v5678_v50 = vld [vmem:[%s16318_s6 + $0x178] sm:$0xff] }
0x1177   : > { %10004 = vmatprep.subr.bf16.mxu0 %v10003_v9  ;;  %v10013_v12 = vpack.c.bf16 %v5678_v50, %v5677_v56 }
0x1178   : > { %9970 = vmatpush3.bf16.msra.mxu1 %v9969_v11  ;;  %v5662_v11 = vld [vmem:[%s16318_s6 + $0xf8] sm:$0xff] }
0x1179   : > { %9972 = vmatprep.subr.bf16.mxu1 %v9971_v34  ;;  %v9979_v48 = vpack.c.bf16 %v5662_v11, %v5661_v3  ;;  %v5646_v34 = vld [vmem:[%s16318_s6 + $0x78] sm:$0xff] }
0x117a   : > { %v9981_v16 = vpack.c.bf16 %v5646_v34, %v5645_v21  ;;  %10006 = vmatpush3.bf16.msra.mxu0 %v10005_v4 }
0x117b   : > { %10008 = vmatprep.subr.bf16.mxu0 %v10007_v27 }
0x117c   : > { %9974 = vmatpush3.bf16.msra.mxu1 %v9973_v26  ;;  %v5693_v26 = vld [vmem:[%s16318_s6 + $0x1f0] sm:$0xff] }
0x117d   : > { %9976 = vmatprep.subr.bf16.mxu1 %v9975_v14  ;;  %v10011_v41 = vpack.c.bf16 %v5694_v8, %v5693_v26  ;;  %v16837_v26 = vld [vmem:[#allocation3_spill] sm:$0xff] }
0x117e   : > { %10010 = vmatpush3.bf16.msra.mxu0 %v10009_v33 }
0x117f   : > { %10012 = vmatprep.subr.bf16.mxu0 %v10011_v41 }
0x1180   : > { %9978 = vmatpush3.bf16.msra.mxu1 %v9977_v19 }
0x1181   : > { %9980 = vmatprep.subr.bf16.mxu1 %v9979_v48 }
0x1182   : > { %10014 = vmatpush3.bf16.msra.mxu0 %v10013_v12 }
0x1184   : > { %9982 = vmatpush3.bf16.msra.mxu1 %v9981_v16 }
0x1236   : > { %v5507_v29 = vpop.f32.mrb[36].mxu1 }
0x1237   : > { %v5583_v45 = vsub.f32 0.0, %v5507_v29  ;;  %v5509_v14 = vpop.f32.mrb[37].mxu1 }
0x1238   : > { %v5584_v9 = vsub.f32 0.0, %v5509_v14 }
0x1239   : > { %v5587_v20 = vmul.f32 1.442695, %v5583_v45 }
0x123a   : > { %v5589_v42 = vmul.f32 1.442695, %v5584_v9  ;;  %v5578_v62 = vpop.f32.mrb[38].mxu1 }
0x123b   : > { %10823 = vpow2.f32 %v5587_v20  ;;  %v5585_v19 = vsub.f32 0.0, %v5578_v62  ;;  %v5580_v52 = vpop.f32.mrb[39].mxu1 }
0x123c   : > { %10825 = vpow2.f32 %v5589_v42  ;;  %v5586_v3 = vsub.f32 0.0, %v5580_v52 }
0x123d   : > { %v5591_v11 = vmul.f32 1.442695, %v5585_v19 }
0x123e   : > { %v5593_v4 = vmul.f32 1.442695, %v5586_v3 }
0x123f   : > { %10827 = vpow2.f32 %v5591_v11 }
0x1240   : > { %10829 = vpow2.f32 %v5593_v4 }
0x1245   : > { %v10824_v48 = vpop.eup %10823 }
0x1246   : > { %v10826_v39 = vpop.eup %10825  ;;  %v5595_v53 = vadd.f32 1.0, %v10824_v48 }
0x1247   : > { %v5596_v21 = vadd.f32 1.0, %v10826_v39 }
0x1248   : > { %10831 = vrcp.f32 %v5595_v53 }
0x1249   : > { %v10828_v27 = vpop.eup %10827  ;;  %10833 = vrcp.f32 %v5596_v21 }
0x124a   : > { %v10830_v34 = vpop.eup %10829  ;;  %v5597_v18 = vadd.f32 1.0, %v10828_v27 }
0x124b   : > { %v5598_v38 = vadd.f32 1.0, %v10830_v34 }
0x124c   : > { %10835 = vrcp.f32 %v5597_v18 }
0x124d   : > { %10837 = vrcp.f32 %v5598_v38 }
0x1252   : > { %v10832_v16 = vpop.eup %10831 }
0x1253   : > { %v10834_v33 = vpop.eup %10833  ;;  %v5610_v8 = vrot.slane %v10832_v16, %v16837_v26 }
0x1254   : > { %v5614_v41 = vrot.slane %v10834_v33, %v16837_v26 }
0x1255   : > { %v14478_v56 = vmul.f32 %v5610_v8, %v14167_v22  ;;  %v14492_v22 = vmul.f32 %v5610_v8, %v14173_v5 }
0x1256   : > { %v10836_v50 = vpop.eup %10835  ;;  %v14481_v12 = vmul.f32 %v5614_v41, %v14193_v44  ;;  %v14488_v9 = vmul.f32 %v5614_v41, %v14196_v40 }
0x1257   : > { %16838 = vst [vmem:[#allocation20_spill] sm:$0xff] %v14478_v56  ;;  %v10838_v29 = vpop.eup %10837  ;;  %v5618_v45 = vrot.slane %v10836_v50, %v16837_v26  ;;  %16841 = vst [vmem:[#allocation56_spill] sm:$0xff] %v14492_v22 }
0x1258   : > { %16839 = vst [vmem:[#allocation63_spill] sm:$0xff] %v14481_v12  ;;  %5759 = vmatprep.mubr.f32.mxu1 %v14481_v12  ;;  %v10554_v14 = vpack.i.bf16 %v14481_v12, %v14478_v56  ;;  %16840 = vst [vmem:[#allocation62_spill] sm:$0xff] %v14488_v9  ;;  %v5622_v20 = vrot.slane %v10838_v29, %v16837_v26  ;;  %v10559_v40 = vpack.i.bf16 %v14488_v9, %v14492_v22 }
0x1259   : > { %5760 = vmatmul.mubr.f32.vlgmr.msra.gmra.mrb[40].mxu1 %v14478_v56  ;;  %v14496_v44 = vmul.f32 %v5618_v45, %v14199_v2  ;;  %v14512_v2 = vmul.f32 %v5618_v45, %v14202_v51 }
0x125a   : > { %10555 = vrot.lane.b32.xlu0 %v10554_v14, %s16843_s29  ;;  %5764 = vmatprep.mubr.f32.mxu1 %v14488_v9  ;;  %v14501_v42 = vmul.f32 %v5622_v20, %v14170_v25  ;;  %v14509_v62 = vmul.f32 %v5622_v20, %v14178_v15 }
0x125b   : > { %16842 = vst [vmem:[#allocation64_spill] sm:$0xff] %v14496_v44  ;;  %16846 = vst [vmem:[#allocation61_spill] sm:$0xff] %v14512_v2 }
0x125c   : > { %16844 = vst [vmem:[#allocation54_spill] sm:$0xff] %v14501_v42  ;;  %5834 = vmatprep.mubr.f32.mxu0 %v14501_v42  ;;  %v10564_v5 = vpack.i.bf16 %v14501_v42, %v14496_v44  ;;  %16845 = vst [vmem:[#allocation13_spill] sm:$0xff] %v14509_v62  ;;  %v10569_v25 = vpack.i.bf16 %v14509_v62, %v14512_v2 }
0x125d   : > { %5765 = vmatmul.mubr.f32.gmra.mrb[42].mxu1 %v14492_v22  ;;  %5835 = vmatmul.mubr.f32.vlgmr.msra.gmra.mrb[34].mxu0 %v14496_v44 }
0x125e   : > { %10560 = vrot.lane.b32.xlu0 %v10559_v40, %s16843_s29  ;;  %10565 = vrot.lane.b32.xlu1 %v10564_v5, %s16843_s29 }
0x125f   : > { %5839 = vmatprep.mubr.f32.mxu0 %v14509_v62 }
0x1261   : > { %5840 = vmatmul.mubr.f32.gmra.mrb[36].mxu0 %v14512_v2 }
0x1262   : > { %10570 = vrot.lane.b32.xlu1 %v10569_v25, %s16843_s29 }
0x12cc   : > { %v10556_v15 = vpop.permute.xlu0 %10555 }
0x12cd   : > { %v10558_v51 = vunpack.i.h.bf16 %v10556_v15  ;;  %v10557_v19 = vunpack.i.l.bf16 %v10556_v15 }
0x12cf   : > { %v5869_v52 = vsel %vm16518_vm9, %v10557_v19, %v10558_v51 }
0x12d0   : > { %v10561_v3 = vpop.permute.xlu0 %10560  ;;  %v10566_v11 = vpop.permute.xlu1 %10565  ;;  %v5887_v21 = vmax.f32 %v14478_v56, %v5869_v52 }
0x12d1   : > { %v10563_v4 = vunpack.i.h.bf16 %v10561_v3  ;;  %v10562_v48 = vunpack.i.l.bf16 %v10561_v3  ;;  %v10568_v39 = vunpack.i.h.bf16 %v10566_v11  ;;  %v10567_v53 = vunpack.i.l.bf16 %v10566_v11 }
0x12d3   : > { %v5885_v27 = vsel %vm16518_vm9, %v10568_v39, %v10557_v19  ;;  %v5870_v34 = vsel %vm16518_vm9, %v10558_v51, %v10567_v53  ;;  %v5871_v18 = vsel %vm16518_vm9, %v10567_v53, %v10568_v39  ;;  %v5872_v38 = vsel %vm16518_vm9, %v10562_v48, %v10563_v4 }
0x12d4   : > { %v5890_v16 = vmax.f32 %v14501_v42, %v5885_v27  ;;  %v5888_v33 = vmax.f32 %v14481_v12, %v5870_v34  ;;  %v5889_v8 = vmax.f32 %v14496_v44, %v5871_v18  ;;  %v10571_v41 = vpop.permute.xlu1 %10570  ;;  %v5891_v20 = vmax.f32 %v14492_v22, %v5872_v38 }
0x12d5   : > { %v10573_v50 = vunpack.i.h.bf16 %v10571_v41  ;;  %v10572_v29 = vunpack.i.l.bf16 %v10571_v41 }
0x12d6   : > { %v10584_v45 = vpack.i.bf16 %v5890_v16, %v5889_v8  ;;  %v10574_v14 = vpack.i.bf16 %v5888_v33, %v5887_v21 }
0x12d7   : > { %v5886_v40 = vsel %vm16518_vm9, %v10573_v50, %v10562_v48  ;;  %v5873_v5 = vsel %vm16518_vm9, %v10563_v4, %v10572_v29  ;;  %v5874_v25 = vsel %vm16518_vm9, %v10572_v29, %v10573_v50 }
0x12d8   : > { %v5894_v15 = vmax.f32 %v14509_v62, %v5886_v40  ;;  %v5892_v51 = vmax.f32 %v14488_v9, %v5873_v5  ;;  %v5893_v19 = vmax.f32 %v14512_v2, %v5874_v25  ;;  %10585 = vrot.lane.b32.xlu1 %v10584_v45, %s16739_s26  ;;  %10575 = vrot.lane.b32.xlu0 %v10574_v14, %s16739_s26  ;;  %v16877_v9 = vld [vmem:[#allocation10_spill] sm:$0xff] }
0x12da   : > { %v10589_v52 = vpack.i.bf16 %v5894_v15, %v5893_v19  ;;  %v10579_v3 = vpack.i.bf16 %v5892_v51, %v5891_v20 }
0x12dc   : > { %10590 = vrot.lane.b32.xlu1 %v10589_v52, %s16739_s26  ;;  %10580 = vrot.lane.b32.xlu0 %v10579_v3, %s16739_s26 }
0x132c   : > { %v9256_v11 = vpop.f32.mrb[40].mxu1 }
0x132d   : > { %v9257_v4 = vpop.f32.mrb[41].mxu1 }
0x132e   : > { %v9258_v48 = vadd.f32 %v9257_v4, %v9256_v11 }
0x1330   : > { %v9259_v39 = vpop.f32.mrb[42].mxu1  ;;  %v9294_v53 = vpop.f32.mrb[34].mxu0 }
0x1331   : > { %v9260_v27 = vpop.f32.mrb[43].mxu1  ;;  %v9295_v34 = vpop.f32.mrb[35].mxu0 }
0x1332   : > { %v9261_v18 = vadd.f32 %v9260_v27, %v9259_v39  ;;  %v9296_v38 = vadd.f32 %v9295_v34, %v9294_v53 }
0x1334   : > { %v14543_v41 = vadd.f32 %v9296_v38, %v9258_v48  ;;  %v9297_v50 = vpop.f32.mrb[36].mxu0 }
0x1335   : > { %v9298_v29 = vpop.f32.mrb[37].mxu0 }
0x1336   : > { %v9299_v45 = vadd.f32 %v9298_v29, %v9297_v50 }
0x1338   : > { %v14545_v14 = vadd.f32 %v9299_v45, %v9261_v18 }
0x134a   : > { %v10586_v40 = vpop.permute.xlu1 %10585  ;;  %v10576_v5 = vpop.permute.xlu0 %10575 }
0x134b   : > { %v10588_v25 = vunpack.i.h.bf16 %v10586_v40  ;;  %v10587_v52 = vunpack.i.l.bf16 %v10586_v40  ;;  %v10578_v3 = vunpack.i.h.bf16 %v10576_v5  ;;  %v10577_v26 = vunpack.i.l.bf16 %v10576_v5 }
0x134d   : > { %v5921_v11 = vsel %vm16517_vm10, %v10587_v52, %v10588_v25  ;;  %v5920_v4 = vsel %vm16517_vm10, %v10578_v3, %v10587_v52  ;;  %v5919_v39 = vsel %vm16517_vm10, %v10577_v26, %v10578_v3  ;;  %v5935_v48 = vsel %vm16517_vm10, %v10588_v25, %v10577_v26 }
0x134e   : > { %v5939_v53 = vmax.f32 %v5889_v8, %v5921_v11  ;;  %v5938_v27 = vmax.f32 %v5888_v33, %v5920_v4  ;;  %v5937_v34 = vmax.f32 %v5887_v21, %v5919_v39  ;;  %v5940_v38 = vmax.f32 %v5890_v16, %v5935_v48  ;;  %v10591_v18 = vpop.permute.xlu1 %10590  ;;  %v10581_v50 = vpop.permute.xlu0 %10580 }
0x134f   : > { %v10593_v29 = vunpack.i.h.bf16 %v10591_v18  ;;  %v10592_v45 = vunpack.i.l.bf16 %v10591_v18  ;;  %v10583_v59 = vunpack.i.h.bf16 %v10581_v50  ;;  %v10582_v40 = vunpack.i.l.bf16 %v10581_v50 }
0x1350   : > { %v10599_v62 = vpack.i.bf16 %v5940_v38, %v5939_v53  ;;  %v10594_v5 = vpack.i.bf16 %v5938_v27, %v5937_v34 }
0x1351   : > { %v5924_v2 = vsel %vm16517_vm10, %v10592_v45, %v10593_v29  ;;  %v5923_v52 = vsel %vm16517_vm10, %v10583_v59, %v10592_v45  ;;  %v5922_v3 = vsel %vm16517_vm10, %v10582_v40, %v10583_v59  ;;  %v5936_v26 = vsel %vm16517_vm10, %v10593_v29, %v10582_v40  ;;  %vm16850_vm10 = vmmov %vm16848_vm5 }
0x1352   : > { %v5943_v8 = vmax.f32 %v5893_v19, %v5924_v2  ;;  %v5942_v33 = vmax.f32 %v5892_v51, %v5923_v52  ;;  %v5941_v21 = vmax.f32 %v5891_v20, %v5922_v3  ;;  %v5944_v16 = vmax.f32 %v5894_v15, %v5936_v26  ;;  %10600 = vrot.lane.b32.xlu1 %v10599_v62, %s16740_s28 }
0x1353   : > { %10595 = vrot.lane.b32.xlu0 %v10594_v5, %s16740_s28 }
0x1354   : > { %v10609_v25 = vpack.i.bf16 %v5944_v16, %v5943_v8  ;;  %v10604_v11 = vpack.i.bf16 %v5942_v33, %v5941_v21 }
0x1356   : > { %10610 = vrot.lane.b32.xlu1 %v10609_v25, %s16740_s28 }
0x1357   : > { %10605 = vrot.lane.b32.xlu0 %v10604_v11, %s16740_s28 }
0x13c4   : > { %v10601_v4 = vpop.permute.xlu1 %10600 }
0x13c5   : > { %v10603_v39 = vunpack.i.h.bf16 %v10601_v4  ;;  %v10602_v48 = vunpack.i.l.bf16 %v10601_v4  ;;  %v10596_v59 = vpop.permute.xlu0 %10595 }
0x13c6   : > { %v10598_v18 = vunpack.i.h.bf16 %v10596_v59  ;;  %v10597_v50 = vunpack.i.l.bf16 %v10596_v59 }
0x13c7   : > { %v5971_v2 = vsel %vm16516_vm11, %v10602_v48, %v10603_v39 }
0x13c8   : > { %v14560_v20 = vmax.f32 %v5939_v53, %v5971_v2  ;;  %v5970_v62 = vsel %vm16516_vm11, %v10598_v18, %v10602_v48  ;;  %v5969_v15 = vsel %vm16516_vm11, %v10597_v50, %v10598_v18  ;;  %v5985_v51 = vsel %vm16516_vm11, %v10603_v39, %v10597_v50  ;;  %v10611_v19 = vpop.permute.xlu1 %10610  ;;  %v6111_v50 = vld [vmem:[%s16319_s7 + $0x80] sm:$0xff]  ;;  %v6112_v2 = vld [vmem:[%s16319_s7 + $0x88] sm:$0xff] }
0x13c9   : > { %v14565_v29 = vmax.f32 %v5938_v27, %v5970_v62  ;;  %v14567_v45 = vmax.f32 %v5937_v34, %v5969_v15  ;;  %v14569_v40 = vmax.f32 %v5940_v38, %v5985_v51  ;;  %v10613_v5 = vunpack.i.h.bf16 %v10611_v19  ;;  %v10606_v52 = vpop.permute.xlu0 %10605  ;;  %v6096_v62 = vld [vmem:[%s16319_s7 + $0x8] sm:$0xff] }
0x13ca   : > { %v10612_v3 = vunpack.i.l.bf16 %v10611_v19  ;;  %v10608_v26 = vunpack.i.h.bf16 %v10606_v52  ;;  %v10607_v25 = vunpack.i.l.bf16 %v10606_v52  ;;  %v6127_v52 = vld [vmem:[%s16319_s7 + $0x100] sm:$0xff] }
0x13cb   : > { %v10619_v53 = vpack.i.bf16 %v14569_v40, %v14560_v20  ;;  %v10614_v11 = vpack.i.bf16 %v14565_v29, %v14567_v45 }
0x13cc   : > { %v5974_v4 = vsel %vm16516_vm11, %v10612_v3, %v10613_v5  ;;  %v5973_v27 = vsel %vm16516_vm11, %v10608_v26, %v10612_v3  ;;  %v5972_v34 = vsel %vm16516_vm11, %v10607_v25, %v10608_v26  ;;  %v5986_v38 = vsel %vm16516_vm11, %v10613_v5, %v10607_v25  ;;  %v6128_v3 = vld [vmem:[%s16319_s7 + $0x108] sm:$0xff]  ;;  %v6113_v26 = vld [vmem:[%s16319_s7 + $0x90] sm:$0xff]  ;;  %vm16849_vm11 = vmmov %vm16848_vm5 }
0x13cd   : > { %v14579_v39 = vmax.f32 %v5943_v8, %v5974_v4  ;;  %v14581_v48 = vmax.f32 %v5942_v33, %v5973_v27  ;;  %v14583_v59 = vmax.f32 %v5941_v21, %v5972_v34  ;;  %v14585_v18 = vmax.f32 %v5944_v16, %v5986_v38  ;;  %10620 = vrot.lane.b32.xlu1 %v10619_v53, %s16741_s20  ;;  %v6143_v8 = vld [vmem:[%s16319_s7 + $0x180] sm:$0xff]  ;;  %v6144_v21 = vld [vmem:[%s16319_s7 + $0x188] sm:$0xff]  ;;  %v6114_v53 = vld [vmem:[%s16319_s7 + $0x98] sm:$0xff] }
0x13ce   : > { %10615 = vrot.lane.b32.xlu0 %v10614_v11, %s16741_s20  ;;  %v10015_v33 = vpack.c.bf16 %v6112_v2, %v6111_v50  ;;  %v6095_v16 = vld [vmem:[%s16319_s7] sm:$0xff]  ;;  %v10047_v19 = vpack.c.bf16 %v6144_v21, %v6143_v8  ;;  %v10049_v25 = vpack.c.bf16 %v6128_v3, %v6127_v52  ;;  %v6145_v11 = vld [vmem:[%s16319_s7 + $0x190] sm:$0xff]  ;;  %v6146_v4 = vld [vmem:[%s16319_s7 + $0x198] sm:$0xff]  ;;  %v10019_v27 = vpack.c.bf16 %v6114_v53, %v6113_v26 }
0x13cf   : > { %v10629_v15 = vpack.i.bf16 %v14585_v18, %v14579_v39  ;;  %v10624_v51 = vpack.i.bf16 %v14581_v48, %v14583_v59  ;;  %v10017_v5 = vpack.c.bf16 %v6096_v62, %v6095_v16  ;;  %v10051_v34 = vpack.c.bf16 %v6146_v4, %v6145_v11  ;;  %v6097_v38 = vld [vmem:[%s16319_s7 + $0x10] sm:$0xff]  ;;  %v6098_v50 = vld [vmem:[%s16319_s7 + $0x18] sm:$0xff]  ;;  %v6115_v21 = vld [vmem:[%s16319_s7 + $0xa0] sm:$0xff] }
0x13d0   : > { %10016 = vmatprep.subr.bf16.mxu1 %v10015_v33  ;;  %10048 = vmatprep.subr.bf16.mxu0 %v10047_v19  ;;  %v6129_v2 = vld [vmem:[%s16319_s7 + $0x110] sm:$0xff]  ;;  %v10021_v8 = vpack.c.bf16 %v6098_v50, %v6097_v38  ;;  %v6130_v33 = vld [vmem:[%s16319_s7 + $0x118] sm:$0xff]  ;;  %v6116_v16 = vld [vmem:[%s16319_s7 + $0xa8] sm:$0xff] }
0x13d1   : > { %10630 = vrot.lane.b32.xlu1 %v10629_v15, %s16741_s20  ;;  %10018 = vmatpush3.bf16.msra.mxu1 %v10017_v5  ;;  %v10053_v62 = vpack.c.bf16 %v6130_v33, %v6129_v2  ;;  %v10023_v15 = vpack.c.bf16 %v6116_v16, %v6115_v21  ;;  %v6148_v19 = vld [vmem:[%s16319_s7 + $0x1a8] sm:$0xff]  ;;  %v6099_v5 = vld [vmem:[%s16319_s7 + $0x20] sm:$0xff]  ;;  %v6117_v53 = vld [vmem:[%s16319_s7 + $0xb0] sm:$0xff] }
0x13d2   : > { %10625 = vrot.lane.b32.xlu0 %v10624_v51, %s16741_s20  ;;  %10050 = vmatpush3.bf16.msra.mxu0 %v10049_v25  ;;  %v6147_v51 = vld [vmem:[%s16319_s7 + $0x1a0] sm:$0xff]  ;;  %v6100_v3 = vld [vmem:[%s16319_s7 + $0x28] sm:$0xff]  ;;  %v6118_v11 = vld [vmem:[%s16319_s7 + $0xb8] sm:$0xff] }
0x13d3   : > { %10020 = vmatprep.subr.bf16.mxu1 %v10019_v27  ;;  %10052 = vmatprep.subr.bf16.mxu0 %v10051_v34  ;;  %v10055_v52 = vpack.c.bf16 %v6148_v19, %v6147_v51  ;;  %v6131_v26 = vld [vmem:[%s16319_s7 + $0x120] sm:$0xff]  ;;  %v6132_v25 = vld [vmem:[%s16319_s7 + $0x128] sm:$0xff]  ;;  %v6149_v4 = vld [vmem:[%s16319_s7 + $0x1b0] sm:$0xff]  ;;  %v10025_v27 = vpack.c.bf16 %v6100_v3, %v6099_v5  ;;  %v10027_v50 = vpack.c.bf16 %v6118_v11, %v6117_v53 }
0x13d4   : > { %v6150_v34 = vld [vmem:[%s16319_s7 + $0x1b8] sm:$0xff]  ;;  %v10057_v38 = vpack.c.bf16 %v6132_v25, %v6131_v26  ;;  %v6101_v2 = vld [vmem:[%s16319_s7 + $0x30] sm:$0xff]  ;;  %v6151_v51 = vld [vmem:[%s16319_s7 + $0x1c0] sm:$0xff] }
0x13d5   : > { %10022 = vmatpush3.bf16.msra.mxu1 %v10021_v8  ;;  %v6102_v33 = vld [vmem:[%s16319_s7 + $0x38] sm:$0xff]  ;;  %v6133_v8 = vld [vmem:[%s16319_s7 + $0x130] sm:$0xff]  ;;  %v10059_v21 = vpack.c.bf16 %v6150_v34, %v6149_v4  ;;  %v6152_v19 = vld [vmem:[%s16319_s7 + $0x1c8] sm:$0xff] }
0x13d6   : > { %10054 = vmatpush3.bf16.msra.mxu0 %v10053_v62  ;;  %10024 = vmatprep.subr.bf16.mxu1 %v10023_v15  ;;  %v6134_v16 = vld [vmem:[%s16319_s7 + $0x138] sm:$0xff]  ;;  %v6119_v62 = vld [vmem:[%s16319_s7 + $0xc0] sm:$0xff]  ;;  %v6120_v15 = vld [vmem:[%s16319_s7 + $0xc8] sm:$0xff]  ;;  %v10029_v5 = vpack.c.bf16 %v6102_v33, %v6101_v2  ;;  %v10063_v11 = vpack.c.bf16 %v6152_v19, %v6151_v51 }
0x13d7   : > { %10056 = vmatprep.subr.bf16.mxu0 %v10055_v52  ;;  %v10061_v52 = vpack.c.bf16 %v6134_v16, %v6133_v8  ;;  %v10031_v3 = vpack.c.bf16 %v6120_v15, %v6119_v62  ;;  %v6103_v26 = vld [vmem:[%s16319_s7 + $0x40] sm:$0xff]  ;;  %v6104_v25 = vld [vmem:[%s16319_s7 + $0x48] sm:$0xff]  ;;  %v6122_v34 = vld [vmem:[%s16319_s7 + $0xd8] sm:$0xff] }
0x13d8   : > { %v6135_v53 = vld [vmem:[%s16319_s7 + $0x140] sm:$0xff]  ;;  %v6136_v4 = vld [vmem:[%s16319_s7 + $0x148] sm:$0xff]  ;;  %v10033_v2 = vpack.c.bf16 %v6104_v25, %v6103_v26  ;;  %v6106_v16 = vld [vmem:[%s16319_s7 + $0x58] sm:$0xff] }
0x13d9   : > { %10026 = vmatpush3.bf16.msra.mxu1 %v10025_v27  ;;  %v6121_v27 = vld [vmem:[%s16319_s7 + $0xd0] sm:$0xff]  ;;  %v10065_v33 = vpack.c.bf16 %v6136_v4, %v6135_v53  ;;  %v6138_v51 = vld [vmem:[%s16319_s7 + $0x158] sm:$0xff]  ;;  %v6123_v19 = vld [vmem:[%s16319_s7 + $0xe0] sm:$0xff] }
0x13da   : > { %10058 = vmatpush3.bf16.msra.mxu0 %v10057_v38  ;;  %10028 = vmatprep.subr.bf16.mxu1 %v10027_v50  ;;  %v6153_v38 = vld [vmem:[%s16319_s7 + $0x1d0] sm:$0xff]  ;;  %v6154_v50 = vld [vmem:[%s16319_s7 + $0x1d8] sm:$0xff]  ;;  %v10035_v8 = vpack.c.bf16 %v6122_v34, %v6121_v27  ;;  %v6108_v4 = vld [vmem:[%s16319_s7 + $0x68] sm:$0xff] }
0x13db   : > { %10060 = vmatprep.subr.bf16.mxu0 %v10059_v21  ;;  %v6105_v21 = vld [vmem:[%s16319_s7 + $0x50] sm:$0xff]  ;;  %v10067_v15 = vpack.c.bf16 %v6154_v50, %v6153_v38  ;;  %v6139_v38 = vld [vmem:[%s16319_s7 + $0x160] sm:$0xff]  ;;  %v6140_v50 = vld [vmem:[%s16319_s7 + $0x168] sm:$0xff] }
0x13dc   : > { %v6137_v62 = vld [vmem:[%s16319_s7 + $0x150] sm:$0xff]  ;;  %v10037_v26 = vpack.c.bf16 %v6106_v16, %v6105_v21 }
0x13dd   : > { %10030 = vmatpush3.bf16.msra.mxu1 %v10029_v5  ;;  %v6124_v5 = vld [vmem:[%s16319_s7 + $0xe8] sm:$0xff]  ;;  %v10069_v25 = vpack.c.bf16 %v6138_v51, %v6137_v62  ;;  %v6157_v21 = vld [vmem:[%s16319_s7 + $0x1f0] sm:$0xff]  ;;  %v6158_v62 = vld [vmem:[%s16319_s7 + $0x1f8] sm:$0xff] }
0x13de   : > { %10062 = vmatpush3.bf16.msra.mxu0 %v10061_v52  ;;  %10032 = vmatprep.subr.bf16.mxu1 %v10031_v3  ;;  %v6155_v52 = vld [vmem:[%s16319_s7 + $0x1e0] sm:$0xff]  ;;  %v6156_v3 = vld [vmem:[%s16319_s7 + $0x1e8] sm:$0xff]  ;;  %v10039_v53 = vpack.c.bf16 %v6124_v5, %v6123_v19  ;;  %v6110_v51 = vld [vmem:[%s16319_s7 + $0x78] sm:$0xff]  ;;  %v10075_v19 = vpack.c.bf16 %v6158_v62, %v6157_v21 }
0x13df   : > { %10064 = vmatprep.subr.bf16.mxu0 %v10063_v11  ;;  %v6107_v11 = vld [vmem:[%s16319_s7 + $0x60] sm:$0xff]  ;;  %v10071_v27 = vpack.c.bf16 %v6156_v3, %v6155_v52  ;;  %v6141_v52 = vld [vmem:[%s16319_s7 + $0x170] sm:$0xff]  ;;  %v6142_v3 = vld [vmem:[%s16319_s7 + $0x178] sm:$0xff] }
0x13e0   : > { %v10041_v34 = vpack.c.bf16 %v6108_v4, %v6107_v11 }
0x13e1   : > { %10034 = vmatpush3.bf16.msra.mxu1 %v10033_v2  ;;  %v10073_v2 = vpack.c.bf16 %v6140_v50, %v6139_v38 }
0x13e2   : > { %10066 = vmatpush3.bf16.msra.mxu0 %v10065_v33  ;;  %10036 = vmatprep.subr.bf16.mxu1 %v10035_v8  ;;  %v6125_v33 = vld [vmem:[%s16319_s7 + $0xf0] sm:$0xff]  ;;  %v6126_v8 = vld [vmem:[%s16319_s7 + $0xf8] sm:$0xff] }
0x13e3   : > { %10068 = vmatprep.subr.bf16.mxu0 %v10067_v15  ;;  %v10043_v16 = vpack.c.bf16 %v6126_v8, %v6125_v33  ;;  %v6109_v15 = vld [vmem:[%s16319_s7 + $0x70] sm:$0xff] }
0x13e4   : > { %v10045_v5 = vpack.c.bf16 %v6110_v51, %v6109_v15 }
0x13e5   : > { %10038 = vmatpush3.bf16.msra.mxu1 %v10037_v26  ;;  %v10077_v26 = vpack.c.bf16 %v6142_v3, %v6141_v52 }
0x13e6   : > { %10070 = vmatpush3.bf16.msra.mxu0 %v10069_v25  ;;  %10040 = vmatprep.subr.bf16.mxu1 %v10039_v53 }
0x13e7   : > { %10072 = vmatprep.subr.bf16.mxu0 %v10071_v27 }
0x13e9   : > { %10042 = vmatpush3.bf16.msra.mxu1 %v10041_v34 }
0x13ea   : > { %10074 = vmatpush3.bf16.msra.mxu0 %v10073_v2  ;;  %10044 = vmatprep.subr.bf16.mxu1 %v10043_v16 }
0x13eb   : > { %10076 = vmatprep.subr.bf16.mxu0 %v10075_v19 }
0x13ed   : > { %10046 = vmatpush3.bf16.msra.mxu1 %v10045_v5 }
0x13ee   : > { %10078 = vmatpush3.bf16.msra.mxu0 %v10077_v26  ;;  %10079 = vmatprep.subr.bf16.mxu1 %v16821_v28 }
0x143f   : > { %v10621_v25 = vpop.permute.xlu1 %10620 }
0x1440   : > { %v10623_v53 = vunpack.i.h.bf16 %v10621_v25  ;;  %v10622_v11 = vunpack.i.l.bf16 %v10621_v25  ;;  %v10616_v4 = vpop.permute.xlu0 %10615 }
0x1441   : > { %v10618_v27 = vunpack.i.h.bf16 %v10616_v4  ;;  %v10617_v34 = vunpack.i.l.bf16 %v10616_v4 }
0x1442   : > { %v6021_v38 = vsel %vm16847_vm13, %v10622_v11, %v10623_v53  ;;  %vm16851_vm13 = vmmov %vm16848_vm5 }
0x1443   : > { %v6039_v50 = vmax.f32 %v14560_v20, %v6021_v38  ;;  %v6020_v2 = vsel %vm16848_vm5, %v10618_v27, %v10622_v11  ;;  %v6019_v33 = vsel %vm16849_vm11, %v10617_v34, %v10618_v27  ;;  %v6035_v8 = vsel %vm16850_vm10, %v10623_v53, %v10617_v34  ;;  %v10631_v21 = vpop.permute.xlu1 %10630  ;;  %vm16852_vm11 = vmmov %vm16848_vm5 }
0x1444   : > { %v6038_v16 = vmax.f32 %v14565_v29, %v6020_v2  ;;  %v6037_v62 = vmax.f32 %v14567_v45, %v6019_v33  ;;  %v6040_v15 = vmax.f32 %v14569_v40, %v6035_v8  ;;  %v10633_v51 = vunpack.i.h.bf16 %v10631_v21  ;;  %v10626_v19 = vpop.permute.xlu0 %10625  ;;  %vm16853_vm10 = vmmov %vm16848_vm5 }
0x1445   : > { %v10632_v5 = vunpack.i.l.bf16 %v10631_v21  ;;  %v10628_v52 = vunpack.i.h.bf16 %v10626_v19  ;;  %v10627_v3 = vunpack.i.l.bf16 %v10626_v19 }
0x1446   : > { %v10639_v26 = vpack.i.bf16 %v6040_v15, %v6039_v50  ;;  %v10634_v20 = vpack.i.bf16 %v6038_v16, %v6037_v62 }
0x1447   : > { %v6024_v25 = vsel %vm16851_vm13, %v10632_v5, %v10633_v51  ;;  %v6023_v11 = vsel %vm16848_vm5, %v10628_v52, %v10632_v5  ;;  %v6022_v53 = vsel %vm16852_vm11, %v10627_v3, %v10628_v52  ;;  %v6036_v4 = vsel %vm16853_vm10, %v10633_v51, %v10627_v3 }
0x1448   : > { %v6043_v29 = vmax.f32 %v14579_v39, %v6024_v25  ;;  %v6042_v45 = vmax.f32 %v14581_v48, %v6023_v11  ;;  %v6041_v40 = vmax.f32 %v14583_v59, %v6022_v53  ;;  %v6044_v27 = vmax.f32 %v14585_v18, %v6036_v4  ;;  %10640 = vrot.lane.b32.xlu1 %v10639_v26, %s16854_s11 }
0x1449   : > { %10635 = vrot.lane.b32.xlu0 %v10634_v20, %s16854_s11  ;;  %vm16855_vm13 = vcmask 1039360  }
0x144a   : > { %v10649_v34 = vpack.i.bf16 %v6044_v27, %v6043_v29  ;;  %v10644_v38 = vpack.i.bf16 %v6042_v45, %v6041_v40  ;;  %vm16856_vm5 = vmmov %vm16855_vm13 }
0x144b   : > { %vm16857_vm11 = vmmov %vm16856_vm5 }
0x144c   : > { %10650 = vrot.lane.b32.xlu1 %v10649_v34, %s16854_s11  ;;  %vm16858_vm10 = vmmov %vm16856_vm5 }
0x144d   : > { %10645 = vrot.lane.b32.xlu0 %v10644_v38, %s16854_s11  ;;  %vm16859_vm9 = vmmov %vm16856_vm5 }
0x14ba   : > { %v10641_v2 = vpop.permute.xlu1 %10640 }
0x14bb   : > { %v10643_v33 = vunpack.i.h.bf16 %v10641_v2  ;;  %v10642_v8 = vunpack.i.l.bf16 %v10641_v2  ;;  %v10636_v39 = vpop.permute.xlu0 %10635 }
0x14bc   : > { %v10638_v21 = vunpack.i.h.bf16 %v10636_v39  ;;  %v10637_v48 = vunpack.i.l.bf16 %v10636_v39 }
0x14bd   : > { %v6071_v59 = vsel %vm16855_vm13, %v10642_v8, %v10643_v33  ;;  %vm16860_vm13 = vmmov %vm16856_vm5 }
0x14be   : > { %v6089_v51 = vmax.f32 %v6039_v50, %v6071_v59  ;;  %v6069_v18 = vsel %vm16856_vm5, %v10637_v48, %v10638_v21  ;;  %v10651_v19 = vpop.permute.xlu1 %10650  ;;  %v6070_v5 = vsel %vm16857_vm11, %v10638_v21, %v10642_v8  ;;  %v6085_v52 = vsel %vm16858_vm10, %v10643_v33, %v10637_v48  ;;  %vm16861_vm11 = vmmov %vm16856_vm5 }
0x14bf   : > { %v6087_v3 = vmax.f32 %v6037_v62, %v6069_v18  ;;  %v10653_v26 = vunpack.i.h.bf16 %v10651_v19  ;;  %v10652_v20 = vunpack.i.l.bf16 %v10651_v19  ;;  %v10646_v25 = vpop.permute.xlu0 %10645  ;;  %v6088_v11 = vmax.f32 %v6038_v16, %v6070_v5 }
0x14c0   : > { %v10648_v53 = vunpack.i.h.bf16 %v10646_v25  ;;  %v10647_v4 = vunpack.i.l.bf16 %v10646_v25  ;;  %v6090_v34 = vmax.f32 %v6040_v15, %v6085_v52  ;;  %v6405_v25 = vld [vmem:[%s16320_s8 + $0x10] sm:$0xff] }
0x14c1   : > { %6223 = vmatprep.mubr.f32.mxu1 %v6088_v11  ;;  %v6074_v38 = vsel %vm16859_vm9, %v10652_v20, %v10653_v26  ;;  %vm16863_vm9 = vcmask 1042432  }
0x14c2   : > { %6298 = vmatprep.mubr.f32.mxu0 %v6090_v34  ;;  %6224 = vmatmul.mubr.f32.vlgmr.msra.gmra.mrb[44].mxu1 %v6087_v3  ;;  %v6073_v50 = vsel %vm16860_vm13, %v10648_v53, %v10652_v20  ;;  %v6086_v2 = vsel %vm16856_vm5, %v10653_v26, %v10647_v4  ;;  %v6072_v8 = vsel %vm16861_vm11, %v10647_v4, %v10648_v53  ;;  %v6403_v26 = vld [vmem:[%s16320_s8] sm:$0xff]  ;;  %v6404_v20 = vld [vmem:[%s16320_s8 + $0x8] sm:$0xff]  ;;  %v6406_v53 = vld [vmem:[%s16320_s8 + $0x18] sm:$0xff] }
0x14c3   : > { %6299 = vmatmul.mubr.f32.vlgmr.msra.gmra.mrb[38].mxu0 %v6089_v51  ;;  %v6092_v62 = vmax.f32 %v6042_v45, %v6073_v50  ;;  %v6094_v33 = vmax.f32 %v6044_v27, %v6086_v2  ;;  %v6091_v39 = vmax.f32 %v6041_v40, %v6072_v8  ;;  %v6093_v21 = vmax.f32 %v6043_v29, %v6074_v38  ;;  %v6407_v34 = vld [vmem:[%s16320_s8 + $0x20] sm:$0xff]  ;;  %v6408_v38 = vld [vmem:[%s16320_s8 + $0x28] sm:$0xff]  ;;  %v6409_v2 = vld [vmem:[%s16320_s8 + $0x30] sm:$0xff] }
0x14c4   : > { %v10080_v11 = vpack.c.bf16 %v6404_v20, %v6403_v26  ;;  %v10083_v4 = vpack.c.bf16 %v6406_v53, %v6405_v25  ;;  %v10086_v50 = vpack.c.bf16 %v6408_v38, %v6407_v34  ;;  %v6410_v8 = vld [vmem:[%s16320_s8 + $0x38] sm:$0xff]  ;;  %v6423_v20 = vld [vmem:[%s16320_s8 + $0xa0] sm:$0xff]  ;;  %v6424_v25 = vld [vmem:[%s16320_s8 + $0xa8] sm:$0xff] }
0x14c5   : > { %6228 = vmatprep.mubr.f32.mxu1 %v6092_v62  ;;  %6303 = vmatprep.mubr.f32.mxu0 %v6094_v33  ;;  %v10089_v62 = vpack.c.bf16 %v6410_v8, %v6409_v2  ;;  %v6411_v33 = vld [vmem:[%s16320_s8 + $0x40] sm:$0xff]  ;;  %v6425_v53 = vld [vmem:[%s16320_s8 + $0xb0] sm:$0xff]  ;;  %vm16864_vm10 = vmmov %vm16863_vm9 }
0x14c6   : > { %6229 = vmatmul.mubr.f32.gmra.mrb[46].mxu1 %v6091_v39  ;;  %v6412_v39 = vld [vmem:[%s16320_s8 + $0x48] sm:$0xff]  ;;  %v6427_v8 = vld [vmem:[%s16320_s8 + $0xc0] sm:$0xff]  ;;  %vm16865_vm13 = vmmov %vm16863_vm9 }
0x14c7   : > { %6304 = vmatmul.mubr.f32.gmra.mrb[40].mxu0 %v6093_v21  ;;  %10081 = vmatpush1.bf16.msra.mxu1 %v10080_v11  ;;  %v10092_v21 = vpack.c.bf16 %v6412_v39, %v6411_v33  ;;  %v10110_v11 = vpack.c.bf16 %v6424_v25, %v6423_v20  ;;  %vm16866_vm5 = vmmov %vm16863_vm9 }
0x14c8   : > { %6602 = vmatprep.mubr.f32.mxu0 %v16820_v13  ;;  %10082 = vmatprep.subr.bf16.mxu1 %v16821_v28  ;;  %vm16868_vm11 = vmmov %vm16866_vm5 }
0x14cb   : > { %10084 = vmatpush1.bf16.msra.mxu1 %v10083_v4  ;;  %v6426_v4 = vld [vmem:[%s16320_s8 + $0xb8] sm:$0xff] }
0x14cc   : > { %10085 = vmatprep.subr.bf16.mxu1 %v16821_v28  ;;  %v10113_v38 = vpack.c.bf16 %v6426_v4, %v6425_v53 }
0x14cf   : > { %10087 = vmatpush1.bf16.msra.mxu1 %v10086_v50 }
0x14d0   : > { %10088 = vmatprep.subr.bf16.mxu1 %v16821_v28 }
0x14d3   : > { %10090 = vmatpush1.bf16.msra.mxu1 %v10089_v62  ;;  %v6428_v62 = vld [vmem:[%s16320_s8 + $0xc8] sm:$0xff] }
0x14d4   : > { %10091 = vmatprep.subr.bf16.mxu1 %v16821_v28  ;;  %v10116_v39 = vpack.c.bf16 %v6428_v62, %v6427_v8  ;;  %v8873_v62 = vld [vmem:[%s10963_s19 + $0xc8] sm:$0xff] }
0x14d7   : > { %10093 = vmatpush1.bf16.msra.mxu1 %v10092_v21 }
0x14d8   : > { %10094 = vmatprep.subr.bf16.mxu1 %v16821_v28 }
0x1595   : > { %v9332_v16 = vpop.f32.mrb[44].mxu1 }
0x1596   : > { %v9370_v15 = vpop.f32.mrb[38].mxu0  ;;  %v9333_v48 = vpop.f32.mrb[45].mxu1 }
0x1597   : > { %v9334_v59 = vadd.f32 %v9333_v48, %v9332_v16  ;;  %v9371_v18 = vpop.f32.mrb[39].mxu0  ;;  %v6413_v16 = vld [vmem:[%s16320_s8 + $0x50] sm:$0xff] }
0x1598   : > { %v9372_v19 = vadd.f32 %v9371_v18, %v9370_v15  ;;  %v6414_v15 = vld [vmem:[%s16320_s8 + $0x58] sm:$0xff]  ;;  %v6416_v18 = vld [vmem:[%s16320_s8 + $0x68] sm:$0xff] }
0x1599   : > { %v9335_v5 = vpop.f32.mrb[46].mxu1  ;;  %v10095_v48 = vpack.c.bf16 %v6414_v15, %v6413_v16  ;;  %v6429_v15 = vld [vmem:[%s16320_s8 + $0xd0] sm:$0xff] }
0x159a   : > { %v6301_v52 = vadd.f32 %v9372_v19, %v9334_v59  ;;  %v9373_v3 = vpop.f32.mrb[40].mxu0  ;;  %v9336_v51 = vpop.f32.mrb[47].mxu1  ;;  %v6415_v59 = vld [vmem:[%s16320_s8 + $0x60] sm:$0xff] }
0x159b   : > { %v9337_v45 = vadd.f32 %v9336_v51, %v9335_v5  ;;  %v9374_v27 = vpop.f32.mrb[41].mxu0  ;;  %10096 = vmatpush1.bf16.msra.mxu1 %v10095_v48  ;;  %v10098_v19 = vpack.c.bf16 %v6416_v18, %v6415_v59  ;;  %v6417_v5 = vld [vmem:[%s16320_s8 + $0x70] sm:$0xff]  ;;  %v6419_v51 = vld [vmem:[%s16320_s8 + $0x80] sm:$0xff]  ;;  %v6430_v48 = vld [vmem:[%s16320_s8 + $0xd8] sm:$0xff] }
0x159c   : > { %v9375_v40 = vadd.f32 %v9374_v27, %v9373_v3  ;;  %6311 = vrot.lane.b32.xlu0 %v6301_v52, %s16862_s17  ;;  %10097 = vmatprep.subr.bf16.mxu1 %v16821_v28  ;;  %v6418_v52 = vld [vmem:[%s16320_s8 + $0x78] sm:$0xff] }
0x159d   : > { %v10101_v3 = vpack.c.bf16 %v6418_v52, %v6417_v5 }
0x159e   : > { %v6306_v29 = vadd.f32 %v9375_v40, %v9337_v45  ;;  %v6420_v45 = vld [vmem:[%s16320_s8 + $0x88] sm:$0xff]  ;;  %v6421_v40 = vld [vmem:[%s16320_s8 + $0x90] sm:$0xff] }
0x159f   : > { %10099 = vmatpush1.bf16.msra.mxu1 %v10098_v19  ;;  %v10104_v27 = vpack.c.bf16 %v6420_v45, %v6419_v51  ;;  %v10119_v19 = vpack.c.bf16 %v6430_v48, %v6429_v15 }
0x15a0   : > { %6313 = vrot.lane.b32.xlu1 %v6306_v29, %s16862_s17  ;;  %10100 = vmatprep.subr.bf16.mxu1 %v16821_v28  ;;  %v6422_v29 = vld [vmem:[%s16320_s8 + $0x98] sm:$0xff] }
0x15a1   : > { %v10107_v26 = vpack.c.bf16 %v6422_v29, %v6421_v40 }
0x15a3   : > { %10102 = vmatpush1.bf16.msra.mxu1 %v10101_v3 }
0x15a4   : > { %10103 = vmatprep.subr.bf16.mxu1 %v16821_v28 }
0x15a7   : > { %10105 = vmatpush1.bf16.msra.mxu1 %v10104_v27 }
0x15a8   : > { %10106 = vmatprep.subr.bf16.mxu1 %v16821_v28 }
0x15ab   : > { %10108 = vmatpush1.bf16.msra.mxu1 %v10107_v26 }
0x15ac   : > { %10109 = vmatprep.subr.bf16.mxu1 %v16821_v28 }
0x15af   : > { %10111 = vmatpush1.bf16.msra.mxu1 %v10110_v11 }
0x15b0   : > { %10112 = vmatprep.subr.bf16.mxu1 %v16821_v28 }
0x15b3   : > { %10114 = vmatpush1.bf16.msra.mxu1 %v10113_v38 }
0x15b4   : > { %10115 = vmatprep.subr.bf16.mxu1 %v16821_v28 }
0x15b7   : > { %10117 = vmatpush1.bf16.msra.mxu1 %v10116_v39 }
0x15b8   : > { %10118 = vmatprep.subr.bf16.mxu1 %v16821_v28  ;;  %v16880_v28 = vld [vmem:[#allocation8_spill] sm:$0xff] }
0x15bb   : > { %10120 = vmatpush1.bf16.msra.mxu1 %v10119_v19  ;;  %v8875_v19 = vld [vmem:[%s10963_s19 + $0xd8] sm:$0xff] }
0x160e   : > { %v6312_v34 = vpop.permute.xlu0 %6311 }
0x160f   : > { %v6317_v50 = vsel %vm2283_vm14, %v14543_v41, %v6312_v34 }
0x1610   : > { %v6321_v2 = vrot.slane %v6317_v50, 5 }
0x1612   : > { %v6314_v33 = vpop.permute.xlu1 %6313  ;;  %v14912_v21 = vsel %vm16863_vm9, 0.0, %v6321_v2  ;;  %vm16869_vm9 = vcmask 1044480  }
0x1613   : > { %v6318_v41 = vsel %vm2283_vm14, %v14545_v14, %v6314_v33  ;;  %v6371_v14 = vrot.slane %v14912_v21, 5  ;;  %v6331_v52 = vrot.slane %v14912_v21, 1  ;;  %v6342_v45 = vrot.slane %v14912_v21, 2 }
0x1614   : > { %v6322_v16 = vrot.slane %v6318_v41, 5  ;;  %v6382_v53 = vrot.slane %v14912_v21, 6  ;;  %v6353_v39 = vrot.slane %v14912_v21, 3 }
0x1616   : > { %v14924_v59 = vsel %vm16864_vm10, %v6321_v2, %v6322_v16  ;;  %v14927_v18 = vsel %vm16865_vm13, %v6322_v16, 0.0  ;;  %v8872_v16 = vld [vmem:[%s10963_s19 + $0xc0] sm:$0xff]  ;;  %vm16870_vm10 = vmmov %vm16869_vm9 }
0x1617   : > { %v6372_v5 = vrot.slane %v14924_v59, 5  ;;  %v6332_v3 = vrot.slane %v14924_v59, 1  ;;  %v6334_v51 = vrot.slane %v14927_v18, 1  ;;  %v6343_v27 = vrot.slane %v14924_v59, 2 }
0x1618   : > { %v6345_v40 = vrot.slane %v14927_v18, 2  ;;  %v6383_v25 = vrot.slane %v14924_v59, 6  ;;  %v6374_v50 = vrot.slane %v14927_v18, 5  ;;  %v6354_v8 = vrot.slane %v14924_v59, 3 }
0x1619   : > { %v6373_v29 = vsel %vm16866_vm5, %v6371_v14, %v6372_v5  ;;  %v6333_v26 = vsel %vm580_vm1, %v6331_v52, %v6332_v3  ;;  %v6335_v20 = vsel %vm580_vm1, %v6332_v3, %v6334_v51  ;;  %v6344_v4 = vsel %vm662_vm2, %v6342_v45, %v6343_v27  ;;  %v8874_v3 = vld [vmem:[%s10963_s19 + $0xd0] sm:$0xff] }
0x161a   : > { %6376 = vrot.lane.b32.xlu1 %v6373_v29, %s16867_s25  ;;  %v10654_v11 = vpack.i.bf16 %v6335_v20, %v6333_v26  ;;  %v6346_v34 = vsel %vm662_vm2, %v6343_v27, %v6345_v40  ;;  %v6384_v38 = vsel %vm1393_vm6, %v6382_v53, %v6383_v25  ;;  %v6375_v33 = vsel %vm16868_vm11, %v6372_v5, %v6374_v50  ;;  %v8877_v40 = vld [vmem:[%s10963_s19 + $0xe8] sm:$0xff]  ;;  %v8876_v20 = vld [vmem:[%s10963_s19 + $0xe0] sm:$0xff] }
0x161b   : > { %v10659_v2 = vpack.i.bf16 %v6346_v34, %v6344_v4  ;;  %v6356_v41 = vrot.slane %v14927_v18, 3  ;;  %v6355_v15 = vsel %vm16869_vm9, %v6353_v39, %v6354_v8  ;;  %v6385_v48 = vrot.slane %v14927_v18, 6 }
0x161c   : > { %10655 = vrot.lane.b32.xlu0 %v10654_v11, %s16867_s25  ;;  %v6727_v14 = vrot.slane %v8873_v62, 7  ;;  %v6726_v5 = vrot.slane %v8872_v16, 7  ;;  %v6729_v27 = vrot.slane %v8875_v19, 7  ;;  %v6728_v26 = vrot.slane %v8874_v3, 7  ;;  %v16871_v19 = vld [vmem:[#allocation5_spill] sm:$0xff]  ;;  %v16872_v3 = vld [vmem:[#allocation11_spill] sm:$0xff] }
0x161d   : > { %v6357_v52 = vsel %vm16870_vm10, %v6354_v8, %v6356_v41  ;;  %v6386_v51 = vsel %vm1393_vm6, %v6383_v25, %v6385_v48  ;;  %v6732_v53 = vrot.slane %v8877_v40, 7  ;;  %v8879_v25 = vld [vmem:[%s10963_s19 + $0xf8] sm:$0xff]  ;;  %v6730_v34 = vrot.slane %v8876_v20, 7  ;;  %v16873_v40 = vld [vmem:[#allocation6_spill] sm:$0xff] }
0x161e   : > { %6387 = vrot.lane.b32.xlu1 %v6384_v38, %s16745_s12  ;;  %v6751_v45 = vsel %vm408_vm0, 0.0, %v6727_v14  ;;  %v6750_v29 = vsel %vm408_vm0, 0.0, %v6726_v5  ;;  %v14972_v11 = vsel %vm408_vm0, 0.0, %v6729_v27  ;;  %v14977_v4 = vsel %vm408_vm0, 0.0, %v6728_v26  ;;  %v8878_v38 = vld [vmem:[%s10963_s19 + $0xf0] sm:$0xff] }
0x161f   : > { %v14983_v50 = vsel %vm408_vm0, %v6727_v14, %v6732_v53  ;;  %v14988_v8 = vsel %vm408_vm0, %v6726_v5, %v6730_v34  ;;  %v6734_v62 = vrot.slane %v8878_v38, 7  ;;  %v15003_v41 = vsel %vm408_vm0, %v6732_v53, 0.0  ;;  %v16874_v53 = vld [vmem:[#allocation26_spill] sm:$0xff] }
0x1620   : > { %10660 = vrot.lane.b32.xlu0 %v10659_v2, %s16745_s12  ;;  %v6736_v2 = vrot.slane %v8879_v25, 7  ;;  %v15008_v16 = vsel %vm408_vm0, %v6730_v34, 0.0  ;;  %v6365_v14 = vrot.slane %v14924_v59, 4  ;;  %v15058_v25 = vmul.f32 %v6751_v45, %v16874_v53  ;;  %v16875_v34 = vld [vmem:[#allocation7_spill] sm:$0xff] }
0x1621   : > { %v14998_v39 = vsel %vm408_vm0, %v6728_v26, %v6734_v62  ;;  %v15018_v48 = vsel %vm408_vm0, %v6734_v62, 0.0  ;;  %v15055_v26 = vmul.f32 %v6750_v29, %v16873_v40  ;;  %v15061_v38 = vmul.f32 %v6750_v29, %v16875_v34 }
0x1622   : > { %6378 = vrot.lane.b32.xlu1 %v6375_v33, %s16867_s25  ;;  %v14993_v33 = vsel %vm408_vm0, %v6729_v27, %v6736_v2  ;;  %v6364_v27 = vrot.slane %v14912_v21, 4  ;;  %v15071_v22 = vmul.f32 %v14972_v11, %v16877_v9  ;;  %v15076_v36 = vmul.f32 %v6750_v29, %v16878_v32 }
0x1623   : > { %v15080_v49 = vmul.f32 %v14977_v4, %v16879_v63  ;;  %v15086_v13 = vmul.f32 %v14977_v4, %v16880_v28  ;;  %v15106_v54 = vmul.f32 %v14977_v4, %v16882_v47  ;;  %v15110_v23 = vmul.f32 %v14988_v8, %v16873_v40 }
0x1624   : > { %6358 = vrot.lane.b32.xlu0 %v6355_v15, %s16747_s21  ;;  %v15013_v15 = vsel %vm408_vm0, %v6736_v2, 0.0  ;;  %v16876_v2 = vld [vmem:[#allocation9_spill] sm:$0xff]  ;;  %v6366_v42 = vsel %vm2333_vm7, %v6364_v27, %v6365_v14  ;;  %v15117_v44 = vmul.f32 %v14983_v50, %v16874_v53  ;;  %v6367_v31 = vrot.slane %v14927_v18, 4 }
0x1625   : > { %v15065_v62 = vmul.f32 %v14972_v11, %v16876_v2  ;;  %v15140_v53 = vmul.f32 %v14993_v33, %v16877_v9  ;;  %v7034_v17 = vmul.f32 %v15008_v16, %v16875_v34 }
0x1626   : > { %6360 = vrot.lane.b32.xlu1 %v6357_v52, %s16747_s21  ;;  %v15048_v52 = vmul.f32 %v6751_v45, %v16871_v19 }
0x1628   : > { %6389 = vrot.lane.b32.xlu0 %v6386_v51, %s16745_s12  ;;  %v15051_v51 = vmul.f32 %v6751_v45, %v16872_v3 }
0x162a   : > { %6768 = vrot.lane.b32.xlu1 %v6751_v45, %s16867_s25 }
0x162c   : > { %6766 = vrot.lane.b32.xlu0 %v6750_v29, %s16867_s25 }
0x162e   : > { %6772 = vrot.lane.b32.xlu1 %v14972_v11, %s16867_s25 }
0x1630   : > { %6770 = vrot.lane.b32.xlu0 %v14977_v4, %s16867_s25 }
0x1632   : > { %6776 = vrot.lane.b32.xlu1 %v14983_v50, %s16867_s25 }
0x1634   : > { %6774 = vrot.lane.b32.xlu0 %v14988_v8, %s16867_s25 }
0x1636   : > { %6780 = vrot.lane.b32.xlu1 %v14993_v33, %s16867_s25 }
0x1638   : > { %6778 = vrot.lane.b32.xlu0 %v14998_v39, %s16867_s25 }
0x163a   : > { %6784 = vrot.lane.b32.xlu1 %v15003_v41, %s16867_s25 }
0x163c   : > { %6782 = vrot.lane.b32.xlu0 %v15008_v16, %s16867_s25 }
0x163e   : > { %6788 = vrot.lane.b32.xlu1 %v15013_v15, %s16867_s25 }
0x1640   : > { %6786 = vrot.lane.b32.xlu0 %v15018_v48, %s16867_s25 }
0x1642   : > { %7088 = vrot.lane.b32.xlu1 %v6751_v45, %s16747_s21 }
0x1644   : > { %7086 = vrot.lane.b32.xlu0 %v6750_v29, %s16747_s21  ;;  %v15094_v29 = vmul.f32 %v14983_v50, %v16872_v3 }
0x1646   : > { %7092 = vrot.lane.b32.xlu1 %v14972_v11, %s16747_s21 }
0x1648   : > { %7090 = vrot.lane.b32.xlu0 %v14977_v4, %s16747_s21 }
0x164a   : > { %7096 = vrot.lane.b32.xlu1 %v14983_v50, %s16747_s21 }
0x164c   : > { %7094 = vrot.lane.b32.xlu0 %v14988_v8, %s16747_s21 }
0x164e   : > { %7100 = vrot.lane.b32.xlu1 %v14993_v33, %s16747_s21 }
0x1650   : > { %7098 = vrot.lane.b32.xlu0 %v14998_v39, %s16747_s21 }
0x1652   : > { %7104 = vrot.lane.b32.xlu1 %v15003_v41, %s16747_s21 }
0x1654   : > { %7102 = vrot.lane.b32.xlu0 %v15008_v16, %s16747_s21 }
0x1656   : > { %7108 = vrot.lane.b32.xlu1 %v15013_v15, %s16747_s21 }
0x1658   : > { %7106 = vrot.lane.b32.xlu0 %v15018_v48, %s16747_s21 }
0x168c   : > { %v6377_v5 = vpop.permute.xlu1 %6376 }
0x168d   : > { %v6399_v12 = vsel %vm473_vm3, %v6366_v42, %v6377_v5  ;;  %v15090_v42 = vmul.f32 %v14983_v50, %v16871_v19 }
0x168e   : > { %v10656_v20 = vpop.permute.xlu0 %10655 }
0x168f   : > { %v10657_v56 = vunpack.i.l.bf16 %v10656_v20  ;;  %v6994_v10 = vrot.slane %v15090_v42, 1  ;;  %v10658_v24 = vunpack.i.h.bf16 %v10656_v20  ;;  %v6973_v20 = vmul.f32 %v14993_v33, %v16876_v2 }
0x1690   : > { %v6388_v45 = vpop.permute.xlu1 %6387 }
0x1691   : > { %v6401_v27 = vsel %vm2365_vm15, %v6399_v12, %v6388_v45  ;;  %v16881_v12 = vld [vmem:[#allocation25_spill] sm:$0xff]  ;;  %v6393_v55 = vsel %vm473_vm3, %v14912_v21, %v10657_v56  ;;  %v15126_v56 = vmul.f32 %v14988_v8, %v16878_v32  ;;  %v7030_v21 = vmul.f32 %v14988_v8, %v16875_v34 }
0x1692   : > { %8858 = vmatprep.mubr.msk.f32.mxu1 %vm922_vm4, %v6401_v27  ;;  %v10661_v5 = vpop.permute.xlu0 %10660  ;;  %v15100_v45 = vmul.f32 %v14972_v11, %v16881_v12  ;;  %v6996_v11 = vrot.slane %v15080_v49, 1  ;;  %v6972_v8 = vmul.f32 %v14998_v39, %v16879_v63  ;;  %v6394_v4 = vsel %vm473_vm3, %v14924_v59, %v10658_v24 }
0x1693   : > { %v10662_v43 = vunpack.i.l.bf16 %v10661_v5  ;;  %v10663_v50 = vunpack.i.h.bf16 %v10661_v5  ;;  %v7035_v5 = vmul.f32 %v15003_v41, %v16872_v3  ;;  %v6976_v3 = vmul.f32 %v15018_v48, %v16879_v63 }
0x1694   : > { %v6379_v27 = vpop.permute.xlu1 %6378  ;;  %v7000_v34 = vrot.slane %v6973_v20, 1 }
0x1695   : > { %v6395_v61 = vsel %vm2365_vm15, %v6393_v55, %v10662_v43  ;;  %v6991_v43 = vrot.slane %v15110_v23, 1  ;;  %v15134_v55 = vmul.f32 %v14993_v33, %v16881_v12  ;;  %v6368_v23 = vsel %vm2333_vm7, %v6365_v14, %v6367_v31 }
0x1696   : > { %v6359_v57 = vpop.permute.xlu0 %6358  ;;  %v6974_v33 = vmul.f32 %v15008_v16, %v16873_v40  ;;  %v6400_v12 = vsel %vm473_vm3, %v6368_v23, %v6379_v27  ;;  %v6396_v14 = vsel %vm2365_vm15, %v6394_v4, %v10663_v50  ;;  %v15170_v40 = vmul.f32 %v15018_v48, %v16880_v28 }
0x1697   : > { %v6397_v18 = vsel %vm922_vm4, %v6395_v61, %v6359_v57  ;;  %16883 = vst [vmem:[#allocation14_spill] sm:$0xff] %v15134_v55  ;;  %v15146_v57 = vmul.f32 %v14998_v39, %v16880_v28  ;;  %v6975_v61 = vmul.f32 %v15003_v41, %v16871_v19  ;;  %v6977_v19 = vmul.f32 %v15013_v15, %v16876_v2 }
0x1698   : > { %v6361_v32 = vpop.permute.xlu1 %6360  ;;  %6502 = vmatmul.mubr.f32.vlgmr.msra.gmra.mrb[48].mxu1 %v6397_v18  ;;  %v7037_v41 = vmul.f32 %v15013_v15, %v16877_v9  ;;  %v7051_v16 = vrot.slane %v7030_v21, 2  ;;  %v7060_v2 = vrot.slane %v15140_v53, 2  ;;  %v15177_v27 = vmul.f32 %v14998_v39, %v16882_v47  ;;  %v16909_v53 = vld [vmem:[#allocation33_spill] sm:$0xff] }
0x1699   : > { %v6398_v59 = vsel %vm922_vm4, %v6396_v14, %v6361_v32  ;;  %v6997_v9 = vrot.slane %v6972_v8, 1  ;;  %v16537_v63 = vrot.slane %v15146_v57, 2  ;;  %v7004_v15 = vrot.slane %v6975_v61, 1 }
0x169a   : > { %v6390_v18 = vpop.permute.xlu0 %6389  ;;  %16884 = vst [vmem:[#allocation21_spill] sm:$0xff] %v15177_v27  ;;  %v7064_v28 = vrot.slane %v7035_v5, 2  ;;  %v7002_v4 = vrot.slane %v6974_v33, 1  ;;  %v7062_v50 = vrot.slane %v7034_v17, 2  ;;  %v7008_v23 = vrot.slane %v6977_v19, 1 }
0x169b   : > { %v6402_v31 = vsel %vm2365_vm15, %v6400_v12, %v6390_v18  ;;  %v7068_v21 = vrot.slane %v7037_v41, 2  ;;  %v7006_v20 = vrot.slane %v6976_v3, 1  ;;  %v16885_v47 = vrot.slane %v15055_v26, 1 }
0x169c   : > { %v6769_v24 = vpop.permute.xlu1 %6768  ;;  %8859 = vmatprep.mubr.msk.f32.mxu1 %vm922_vm4, %v6402_v31  ;;  %v16886_v8 = vrot.slane %v15061_v38, 2  ;;  %v16887_v17 = vrot.slane %v15065_v62, 1  ;;  %v16888_v33 = vrot.slane %v15071_v22, 2  ;;  %v16890_v26 = vrot.slane %v15048_v52, 1  ;;  %v16891_v31 = vld [vmem:[#allocation31_spill] sm:$0xff] }
0x169d   : > { %6507 = vmatmul.mubr.f32.gmra.mrb[50].mxu1 %v6398_v59  ;;  %v15185_v39 = vsel %vm580_vm1, %v16885_v47, %v6991_v43  ;;  %v15214_v41 = vsel %vm580_vm1, %v6996_v11, %v6997_v9  ;;  %v16892_v22 = vrot.slane %v15094_v29, 2  ;;  %v16893_v3 = vrot.slane %v15051_v51, 2 }
0x169e   : > { %v6767_v48 = vpop.permute.xlu0 %6766  ;;  %v15190_v61 = vsel %vm662_vm2, %v16886_v8, %v7051_v16  ;;  %v15195_v5 = vsel %vm580_vm1, %v16887_v17, %v7000_v34  ;;  %v15200_v18 = vsel %vm662_vm2, %v16888_v33, %v7060_v2  ;;  %v15207_v19 = vsel %vm580_vm1, %v16890_v26, %v6994_v10  ;;  %v16908_v26 = vld [vmem:[#allocation35_spill] sm:$0xff] }
0x169f   : > { %v6811_v32 = vsel %vm473_vm3, 0.0, %v6767_v48  ;;  %16889 = vst [vmem:[#allocation12_spill] sm:$0xff] %v15200_v18  ;;  %v6790_v38 = vsel %vm473_vm3, %v6767_v48, %v6769_v24  ;;  %v15221_v59 = vsel %vm662_vm2, %v16893_v3, %v16892_v22  ;;  %v16895_v52 = vrot.slane %v15086_v13, 2 }
0x16a0   : > { %v6773_v12 = vpop.permute.xlu1 %6772  ;;  %v6830_v14 = vmul.f32 %v6811_v32, %v16891_v31  ;;  %16894 = vst [vmem:[#allocation18_spill] sm:$0xff] %v15221_v59  ;;  %v15231_v47 = vsel %vm580_vm1, %v6991_v43, %v7002_v4  ;;  %v15234_v49 = vsel %vm662_vm2, %v7051_v16, %v7062_v50  ;;  %v15239_v51 = vsel %vm580_vm1, %v6994_v10, %v7004_v15  ;;  %v16903_v16 = vld [vmem:[#allocation34_spill] sm:$0xff]  ;;  %v16906_v15 = vld [vmem:[#allocation28_spill] sm:$0xff] }
0x16a1   : > { %v15228_v48 = vsel %vm662_vm2, %v16895_v52, %v16537_v63  ;;  %16897 = vst [vmem:[#allocation22_spill] sm:$0xff] %v15231_v47  ;;  %16898 = vst [vmem:[#allocation57_spill] sm:$0xff] %v15234_v49  ;;  %v15244_v13 = vsel %vm580_vm1, %v7000_v34, %v7008_v23  ;;  %v16901_v33 = vmov %v16892_v22  ;;  %v6831_v4 = vmul.f32 %v6790_v38, %v16903_v16 }
0x16a2   : > { %v6771_v62 = vpop.permute.xlu0 %6770  ;;  %16896 = vst [vmem:[#allocation19_spill] sm:$0xff] %v15228_v48  ;;  %16899 = vst [vmem:[#allocation53_spill] sm:$0xff] %v15239_v51  ;;  %v15249_v43 = vsel %vm662_vm2, %v16901_v33, %v7064_v28  ;;  %v6890_v42 = vmul.f32 %v6811_v32, %v11257_v30  ;;  %v15254_v10 = vsel %vm662_vm2, %v7060_v2, %v7068_v21  ;;  %v6854_v23 = vrot.slane %v6830_v14, 1 }
0x16a3   : > { %v6791_v11 = vsel %vm473_vm3, %v6769_v24, %v6771_v62  ;;  %v6792_v8 = vsel %vm473_vm3, %v6771_v62, %v6773_v12  ;;  %16900 = vst [vmem:[#allocation58_spill] sm:$0xff] %v15244_v13  ;;  %16902 = vst [vmem:[#allocation52_spill] sm:$0xff] %v15249_v43  ;;  %v15257_v24 = vsel %vm580_vm1, %v6997_v9, %v7006_v20  ;;  %v16907_v12 = vld [vmem:[#allocation32_spill] sm:$0xff]  ;;  %v6857_v14 = vrot.slane %v6831_v4, 1 }
0x16a4   : > { %v6777_v17 = vpop.permute.xlu1 %6776  ;;  %16904 = vst [vmem:[#allocation2_spill] sm:$0xff] %v15254_v10  ;;  %16905 = vst [vmem:[#allocation59_spill] sm:$0xff] %v15257_v24  ;;  %v6814_v50 = vmul.f32 %v6811_v32, %v16906_v15  ;;  %v6815_v34 = vmul.f32 %v6790_v38, %v16907_v12  ;;  %v6891_v29 = vmul.f32 %v6790_v38, %v16908_v26  ;;  %v6914_v52 = vrot.slane %v6890_v42, 2 }
0x16a5   : > { %v6832_v28 = vmul.f32 %v6791_v11, %v11287_v60  ;;  %v6833_v22 = vmul.f32 %v6792_v8, %v11269_v46  ;;  %v15267_v21 = vmul.f32 %v6791_v11, %v11294_v0  ;;  %v15270_v9 = vmul.f32 %v6792_v8, %v11272_v37 }
0x16a6   : > { %v6775_v62 = vpop.permute.xlu0 %6774  ;;  %v6816_v43 = vmul.f32 %v6791_v11, %v16909_v53  ;;  %v6817_v49 = vmul.f32 %v6792_v8, %v11266_v35 }
0x16a7   : > { %v6793_v3 = vsel %vm473_vm3, %v6775_v62, %v6777_v17  ;;  %v6812_v2 = vsel %vm473_vm3, 0.0, %v6775_v62  ;;  %v6917_v62 = vrot.slane %v6891_v29, 2  ;;  %v6860_v13 = vrot.slane %v6832_v28, 1 }
0x16a8   : > { %v6834_v32 = vmul.f32 %v6812_v2, %v16891_v31  ;;  %v6835_v20 = vmul.f32 %v6793_v3, %v16903_v16  ;;  %v6781_v38 = vpop.permute.xlu1 %6780  ;;  %v15275_v33 = vmul.f32 %v6812_v2, %v11257_v30  ;;  %v15278_v63 = vmul.f32 %v6793_v3, %v16908_v26 }
0x16a9   : > { %v6863_v42 = vrot.slane %v6833_v22, 1  ;;  %v6920_v48 = vrot.slane %v15267_v21, 2  ;;  %v6923_v59 = vrot.slane %v15270_v9, 2  ;;  %v6818_v11 = vmul.f32 %v6812_v2, %v16906_v15 }
0x16aa   : > { %v6855_v10 = vrot.slane %v6834_v32, 1  ;;  %v6858_v24 = vrot.slane %v6835_v20, 1  ;;  %v6779_v51 = vpop.permute.xlu0 %6778  ;;  %v6819_v32 = vmul.f32 %v6793_v3, %v16907_v12  ;;  %v6915_v20 = vrot.slane %v15275_v33, 2 }
0x16ab   : > { %v6794_v47 = vsel %vm473_vm3, %v6777_v17, %v6779_v51  ;;  %v6795_v4 = vsel %vm473_vm3, %v6779_v51, %v6781_v38  ;;  %v6918_v8 = vrot.slane %v15278_v63, 2 }
0x16ac   : > { %v6856_v55 = vsel %vm580_vm1, %v6854_v23, %v6855_v10  ;;  %v6785_v29 = vpop.permute.xlu1 %6784  ;;  %v6859_v17 = vsel %vm580_vm1, %v6857_v14, %v6858_v24  ;;  %v6836_v51 = vmul.f32 %v6794_v47, %v11287_v60  ;;  %v6837_v28 = vmul.f32 %v6795_v4, %v11269_v46 }
0x16ad   : > { %v15295_v22 = vmul.f32 %v6794_v47, %v11294_v0  ;;  %v6882_v23 = vadd.f32 %v6856_v55, %v6814_v50  ;;  %v6820_v9 = vmul.f32 %v6794_v47, %v16909_v53  ;;  %v6821_v3 = vmul.f32 %v6795_v4, %v11266_v35 }
0x16ae   : > { %v6783_v21 = vpop.permute.xlu0 %6782  ;;  %v6861_v63 = vrot.slane %v6836_v51, 1  ;;  %v6864_v2 = vrot.slane %v6837_v28, 1  ;;  %v15302_v38 = vmul.f32 %v6795_v4, %v11272_v37  ;;  %v6883_v33 = vadd.f32 %v6859_v17, %v6815_v34 }
0x16af   : > { %v6796_v15 = vsel %vm473_vm3, %v6783_v21, %v6785_v29  ;;  %v6813_v12 = vsel %vm473_vm3, 0.0, %v6783_v21  ;;  %v6916_v53 = vsel %vm662_vm2, %v6914_v52, %v6915_v20  ;;  %v6921_v50 = vrot.slane %v15295_v22, 2 }
0x16b0   : > { %v6789_v14 = vpop.permute.xlu1 %6788  ;;  %v6838_v18 = vmul.f32 %v6813_v12, %v16891_v31  ;;  %v6839_v27 = vmul.f32 %v6796_v15, %v16903_v16  ;;  %v6898_v55 = vmul.f32 %v6813_v12, %v11257_v30  ;;  %v6865_v47 = vsel %vm580_vm1, %v6863_v42, %v6864_v2 }
0x16b1   : > { %v6899_v35 = vmul.f32 %v6796_v15, %v16908_v26  ;;  %v6919_v4 = vsel %vm662_vm2, %v6917_v62, %v6918_v8  ;;  %v6942_v28 = vadd.f32 %v6916_v53, %v6882_v23  ;;  %v6862_v31 = vsel %vm580_vm1, %v6860_v13, %v6861_v63 }
0x16b2   : > { %v6787_v51 = vpop.permute.xlu0 %6786  ;;  %v6866_v21 = vrot.slane %v6838_v18, 1  ;;  %v6868_v34 = vrot.slane %v6839_v27, 1  ;;  %v6924_v16 = vrot.slane %v15302_v38, 2  ;;  %v6885_v42 = vadd.f32 %v6865_v47, %v6817_v49 }
0x16b3   : > { %v6797_v30 = vsel %vm473_vm3, %v6785_v29, %v6787_v51  ;;  %v6798_v52 = vsel %vm473_vm3, %v6787_v51, %v6789_v14  ;;  %v6926_v15 = vrot.slane %v6898_v55, 2  ;;  %v6943_v12 = vadd.f32 %v6919_v4, %v6883_v33 }
0x16b4   : > { %v7089_v17 = vpop.permute.xlu1 %7088  ;;  %v6867_v22 = vsel %vm580_vm1, %v6855_v10, %v6866_v21  ;;  %v6869_v26 = vsel %vm580_vm1, %v6858_v24, %v6868_v34  ;;  %v6922_v62 = vsel %vm662_vm2, %v6920_v48, %v6921_v50  ;;  %v6928_v27 = vrot.slane %v6899_v35, 2 }
0x16b5   : > { %v6886_v18 = vadd.f32 %v6867_v22, %v6818_v11  ;;  %v6840_v13 = vmul.f32 %v6797_v30, %v11287_v60  ;;  %v6841_v38 = vmul.f32 %v6798_v52, %v11269_v46  ;;  %v6900_v29 = vmul.f32 %v6797_v30, %v11294_v0 }
0x16b6   : > { %v7087_v23 = vpop.permute.xlu0 %7086  ;;  %v6901_v14 = vmul.f32 %v6798_v52, %v11272_v37  ;;  %v6884_v49 = vadd.f32 %v6862_v31, %v6816_v43  ;;  %v6925_v10 = vsel %vm662_vm2, %v6923_v59, %v6924_v16  ;;  %v6887_v53 = vadd.f32 %v6869_v26, %v6819_v32 }
0x16b7   : > { %v6958_v24 = vadd.f32 %v15076_v36, %v6942_v28  ;;  %v6945_v33 = vadd.f32 %v6925_v10, %v6885_v42  ;;  %v6927_v48 = vsel %vm662_vm2, %v6915_v20, %v6926_v15  ;;  %v6870_v11 = vrot.slane %v6840_v13, 1  ;;  %v16916_v10 = vld [vmem:[#allocation14_spill] sm:$0xff] }
0x16b8   : > { %v6872_v55 = vrot.slane %v6841_v38, 1  ;;  %v7093_v47 = vpop.permute.xlu1 %7092  ;;  %v6946_v35 = vadd.f32 %v6927_v48, %v6886_v18  ;;  %v6930_v60 = vrot.slane %v6900_v29, 2  ;;  %v6932_v51 = vrot.slane %v6901_v14, 2  ;;  %v16914_v38 = vld [vmem:[#allocation12_spill] sm:$0xff] }
0x16b9   : > { %v7110_v46 = vsel %vm922_vm4, %v7087_v23, %v7089_v17  ;;  %v6929_v0 = vsel %vm662_vm2, %v6918_v8, %v6928_v27  ;;  %v6871_v37 = vsel %vm580_vm1, %v6861_v63, %v6870_v11  ;;  %v7018_v43 = vadd.f32 %v15185_v39, %v6958_v24  ;;  %v16913_v23 = vld [vmem:[#allocation21_spill] sm:$0xff]  ;;  %v16915_v14 = vld [vmem:[#allocation36_spill] sm:$0xff] }
0x16ba   : > { %v6873_v59 = vsel %vm580_vm1, %v6864_v2, %v6872_v55  ;;  %v7091_v36 = vpop.permute.xlu0 %7090  ;;  %v6944_v32 = vadd.f32 %v6922_v62, %v6884_v49  ;;  %v6947_v4 = vadd.f32 %v6929_v0, %v6887_v53  ;;  %v6888_v20 = vadd.f32 %v6871_v37, %v6820_v9  ;;  %v16912_v62 = vld [vmem:[#allocation37_spill] sm:$0xff]  ;;  %v16917_v53 = vld [vmem:[#allocation38_spill] sm:$0xff]  ;;  %v16919_v11 = vld [vmem:[#allocation40_spill] sm:$0xff] }
0x16bb   : > { %v6889_v28 = vadd.f32 %v6873_v59, %v6821_v3  ;;  %v7134_v21 = vmul.f32 %v7110_v46, %v11297_v1  ;;  %v15333_v34 = vmul.f32 %v7110_v46, %v11300_v6  ;;  %v6961_v31 = vadd.f32 %v15100_v45, %v6945_v33  ;;  %v16918_v33 = vld [vmem:[#allocation39_spill] sm:$0xff]  ;;  %v16922_v37 = vld [vmem:[#allocation18_spill] sm:$0xff] }
0x16bc   : > { %v16910_v8 = vrot.slane %v15170_v40, 2  ;;  %v16911_v63 = vrot.slane %v15146_v57, 2  ;;  %v6962_v39 = vadd.f32 %v15126_v56, %v6946_v35  ;;  %v6931_v30 = vsel %vm662_vm2, %v6921_v50, %v6930_v60  ;;  %v7097_v57 = vpop.permute.xlu1 %7096 }
0x16bd   : > { %v6933_v9 = vsel %vm662_vm2, %v6924_v16, %v6932_v51  ;;  %v6959_v3 = vadd.f32 %v15058_v25, %v6943_v12  ;;  %v6948_v52 = vadd.f32 %v6931_v30, %v6888_v20  ;;  %v7078_v42 = vadd.f32 %v15190_v61, %v7018_v43  ;;  %v16923_v43 = vld [vmem:[#allocation19_spill] sm:$0xff] }
0x16be   : > { %v15341_v2 = vsel %vm662_vm2, %v16911_v63, %v16910_v8  ;;  %v15349_v45 = vmul.f32 %v7110_v46, %v11303_v58  ;;  %v7021_v40 = vadd.f32 %v15195_v5, %v6961_v31  ;;  %v6963_v22 = vadd.f32 %v15117_v44, %v6947_v4  ;;  %v7095_v12 = vpop.permute.xlu0 %7094 }
0x16bf   : > { %v6949_v26 = vadd.f32 %v6933_v9, %v6889_v28  ;;  %v7131_v56 = vsel %vm922_vm4, %v7093_v47, 0.0  ;;  %v6960_v50 = vadd.f32 %v15106_v54, %v6944_v32  ;;  %v7142_v15 = vadd.f32 %v7134_v21, %v7078_v42  ;;  %v16924_v32 = vld [vmem:[#allocation43_spill] sm:$0xff]  ;;  %v16925_v28 = vld [vmem:[#allocation22_spill] sm:$0xff] }
0x16c0   : > { %v7174_v16 = vrot.slane %v15333_v34, 1  ;;  %v7153_v25 = vmul.f32 %v7131_v56, %v11309_v7  ;;  %v7111_v61 = vsel %vm922_vm4, %v7089_v17, %v7091_v36  ;;  %v15359_v18 = vmul.f32 %v7131_v56, %v16912_v62  ;;  %v7101_v46 = vpop.permute.xlu1 %7100 }
0x16c1   : > { %v7019_v5 = vadd.f32 %v15207_v19, %v6959_v3  ;;  %v7020_v44 = vadd.f32 %v15214_v41, %v6960_v50  ;;  %v7112_v27 = vsel %vm922_vm4, %v7091_v36, %v7093_v47  ;;  %v6964_v13 = vadd.f32 %v16913_v23, %v6948_v52  ;;  %v16920_v41 = vld [vmem:[#allocation41_spill] sm:$0xff]  ;;  %v16921_v47 = vld [vmem:[#allocation42_spill] sm:$0xff] }
0x16c2   : > { %v7234_v54 = vrot.slane %v15349_v45, 2  ;;  %v7081_v29 = vadd.f32 %v16914_v38, %v7021_v40  ;;  %v7137_v49 = vmul.f32 %v7131_v56, %v16915_v14  ;;  %v6965_v17 = vadd.f32 %v16916_v10, %v6949_v26  ;;  %v7099_v8 = vpop.permute.xlu0 %7098  ;;  %v16929_v10 = vld [vmem:[#allocation59_spill] sm:$0xff] }
0x16c3   : > { %v7135_v24 = vmul.f32 %v7111_v61, %v16917_v53  ;;  %v7136_v48 = vmul.f32 %v7112_v27, %v16918_v33  ;;  %v7151_v19 = vmul.f32 %v7111_v61, %v16919_v11  ;;  %v7183_v55 = vrot.slane %v7153_v25, 1 }
0x16c4   : > { %v15373_v35 = vmul.f32 %v7112_v27, %v16920_v41  ;;  %v15376_v60 = vmul.f32 %v7111_v61, %v16921_v47  ;;  %v7113_v51 = vsel %vm922_vm4, %v7095_v12, %v7097_v57  ;;  %v7243_v0 = vrot.slane %v15359_v18, 2  ;;  %v16927_v61 = vld [vmem:[#allocation57_spill] sm:$0xff] }
0x16c5   : > { %v7079_v59 = vadd.f32 %v16922_v37, %v7019_v5  ;;  %v7080_v36 = vadd.f32 %v16923_v43, %v7020_v44  ;;  %v15383_v4 = vmul.f32 %v7112_v27, %v16924_v32  ;;  %v7145_v20 = vadd.f32 %v7137_v49, %v7081_v29  ;;  %v7105_v27 = vpop.permute.xlu1 %7104  ;;  %v16928_v29 = vld [vmem:[#allocation53_spill] sm:$0xff]  ;;  %v16931_v43 = vld [vmem:[#allocation52_spill] sm:$0xff] }
0x16c6   : > { %v7022_v21 = vadd.f32 %v16925_v28, %v6962_v39  ;;  %v15387_v34 = vmul.f32 %v7113_v51, %v11300_v6  ;;  %v15390_v31 = vmul.f32 %v7113_v51, %v11303_v58  ;;  %v7177_v9 = vrot.slane %v7151_v19, 1  ;;  %v16926_v39 = vld [vmem:[#allocation58_spill] sm:$0xff] }
0x16c7   : > { %v7143_v63 = vadd.f32 %v7135_v24, %v7079_v59  ;;  %v15392_v30 = vadd.f32 %v7136_v48, %v7080_v36  ;;  %v7132_v3 = vsel %vm922_vm4, %v7101_v46, 0.0  ;;  %v7180_v52 = vrot.slane %v15373_v35, 1  ;;  %v16930_v24 = vld [vmem:[#allocation2_spill] sm:$0xff] }
0x16c8   : > { %v7237_v42 = vrot.slane %v15376_v60, 2  ;;  %v7175_v45 = vrot.slane %v15387_v34, 1  ;;  %v7025_v40 = vadd.f32 %v16926_v39, %v6965_v17  ;;  %v7240_v26 = vrot.slane %v15383_v4, 2 }
0x16c9   : > { %v7235_v56 = vrot.slane %v15390_v31, 2  ;;  %v15402_v50 = vmul.f32 %v7132_v3, %v11309_v7  ;;  %v15405_v25 = vmul.f32 %v7132_v3, %v16912_v62  ;;  %v7082_v12 = vadd.f32 %v16927_v61, %v7022_v21 }
0x16ca   : > { %v7138_v18 = vmul.f32 %v7113_v51, %v11297_v1  ;;  %v7176_v5 = vsel %vm580_vm1, %v7174_v16, %v7175_v45  ;;  %v7114_v44 = vsel %vm922_vm4, %v7097_v57, %v7099_v8  ;;  %v7023_v49 = vadd.f32 %v16928_v29, %v6963_v22  ;;  %v7103_v16 = vpop.permute.xlu0 %7102 }
0x16cb   : > { %v7202_v23 = vadd.f32 %v7176_v5, %v7142_v15  ;;  %v7184_v38 = vrot.slane %v15402_v50, 1  ;;  %v7024_v17 = vadd.f32 %v16929_v10, %v6964_v13  ;;  %v7085_v48 = vadd.f32 %v16930_v24, %v7025_v40  ;;  %v16933_v10 = vld [vmem:[#allocation46_spill] sm:$0xff] }
0x16cc   : > { %v7141_v19 = vmul.f32 %v7132_v3, %v16915_v14  ;;  %v7115_v35 = vsel %vm922_vm4, %v7099_v8, %v7101_v46  ;;  %v15418_v1 = vmul.f32 %v7114_v44, %v16919_v11  ;;  %v7236_v57 = vsel %vm662_vm2, %v7234_v54, %v7235_v56 }
0x16cd   : > { %v7185_v15 = vsel %vm580_vm1, %v7183_v55, %v7184_v38  ;;  %v7244_v60 = vrot.slane %v15405_v25, 2  ;;  %v15424_v22 = vmul.f32 %v7114_v44, %v16921_v47  ;;  %v7139_v51 = vmul.f32 %v7114_v44, %v16917_v53  ;;  %v16932_v25 = vld [vmem:[#allocation44_spill] sm:$0xff] }
0x16ce   : > { %v7205_v13 = vadd.f32 %v7185_v15, %v7145_v20  ;;  %v7156_v14 = vmul.f32 %v7115_v35, %v16920_v41  ;;  %v7178_v46 = vrot.slane %v15418_v1, 1  ;;  %v7146_v37 = vadd.f32 %v7138_v18, %v7082_v12  ;;  %v7109_v20 = vpop.permute.xlu1 %7108 }
0x16cf   : > { %v7262_v59 = vadd.f32 %v7236_v57, %v7202_v23  ;;  %v7083_v36 = vadd.f32 %v16931_v43, %v7023_v49  ;;  %v7140_v54 = vmul.f32 %v7115_v35, %v16918_v33  ;;  %v7084_v55 = vadd.f32 %v15341_v2, %v7024_v17  ;;  %v7107_v2 = vpop.permute.xlu0 %7106 }
0x16d0   : > { %v7179_v28 = vsel %vm580_vm1, %v7177_v9, %v7178_v46  ;;  %v7181_v21 = vrot.slane %v7156_v14, 1  ;;  %v7116_v34 = vsel %vm922_vm4, %v7103_v16, %v7105_v27  ;;  %v7149_v31 = vadd.f32 %v7141_v19, %v7085_v48 }
0x16d1   : > { %v7245_v53 = vsel %vm662_vm2, %v7243_v0, %v7244_v60  ;;  %v7216_v8 = vmul.f32 %v7115_v35, %v16924_v32  ;;  %v7238_v3 = vrot.slane %v15424_v22, 2  ;;  %v7147_v40 = vadd.f32 %v7139_v51, %v7083_v36 }
0x16d2   : > { %v7265_v39 = vadd.f32 %v7245_v53, %v7205_v13  ;;  %v7158_v50 = vmul.f32 %v7116_v34, %v11300_v6  ;;  %v7218_v33 = vmul.f32 %v7116_v34, %v11303_v58  ;;  %v7270_v9 = vmul.f32 %v7262_v59, %v16932_v25 }
0x16d3   : > { %v7148_v61 = vadd.f32 %v7140_v54, %v7084_v55  ;;  %v7203_v12 = vadd.f32 %v7179_v28, %v7143_v63  ;;  %v7133_v18 = vsel %vm922_vm4, %v7109_v20, 0.0  ;;  %v7182_v5 = vsel %vm580_vm1, %v7180_v52, %v7181_v21  ;;  %v16935_v55 = vld [vmem:[#allocation47_spill] sm:$0xff] }
0x16d4   : > { %v7186_v0 = vrot.slane %v7158_v50, 1  ;;  %v7246_v44 = vrot.slane %v7218_v33, 2  ;;  %v7161_v23 = vmul.f32 %v7133_v18, %v11309_v7  ;;  %v7239_v29 = vsel %vm662_vm2, %v7237_v42, %v7238_v3 }
0x16d5   : > { %v7241_v49 = vrot.slane %v7216_v8, 2  ;;  %v7221_v6 = vmul.f32 %v7133_v18, %v16912_v62  ;;  %v7117_v58 = vsel %vm922_vm4, %v7105_v27, %v7107_v2  ;;  %v7273_v17 = vmul.f32 %v7265_v39, %v16933_v10  ;;  %v16937_v8 = vld [vmem:[#allocation49_spill] sm:$0xff] }
0x16d6   : > { %v7187_v24 = vsel %vm580_vm1, %v7175_v45, %v7186_v0  ;;  %v7192_v63 = vrot.slane %v7161_v23, 1  ;;  %v7118_v48 = vsel %vm922_vm4, %v7107_v2, %v7109_v20  ;;  %v7204_v52 = vadd.f32 %v7182_v5, %v15392_v30  ;;  %v16939_v23 = vld [vmem:[#allocation51_spill] sm:$0xff] }
0x16d7   : > { %v7206_v19 = vadd.f32 %v7187_v24, %v7146_v37  ;;  %v7247_v35 = vsel %vm662_vm2, %v7235_v56, %v7246_v44  ;;  %v7252_v7 = vrot.slane %v7221_v6, 2  ;;  %v7159_v1 = vmul.f32 %v7117_v58, %v16919_v11  ;;  %v16934_v56 = vld [vmem:[#allocation45_spill] sm:$0xff] }
0x16d8   : > { %v7193_v42 = vsel %vm580_vm1, %v7184_v38, %v7192_v63  ;;  %v7160_v62 = vmul.f32 %v7118_v48, %v16920_v41  ;;  %v7219_v27 = vmul.f32 %v7117_v58, %v16921_v47  ;;  %v7263_v16 = vadd.f32 %v7239_v29, %v7203_v12 }
0x16d9   : > { %v7266_v57 = vadd.f32 %v7247_v35, %v7206_v19  ;;  %v7209_v45 = vadd.f32 %v7193_v42, %v7149_v31  ;;  %v7253_v15 = vsel %vm662_vm2, %v7244_v60, %v7252_v7  ;;  %v7188_v22 = vrot.slane %v7159_v1, 1 }
0x16da   : > { %v7190_v13 = vrot.slane %v7160_v62, 1  ;;  %v7220_v30 = vmul.f32 %v7118_v48, %v16924_v32  ;;  %v7248_v51 = vrot.slane %v7219_v27, 2  ;;  %v15458_v14 = vadd.f32 %v7270_v9, %v16934_v56 }
0x16db   : > { %v7242_v11 = vsel %vm662_vm2, %v7240_v26, %v7241_v49  ;;  %v7274_v41 = vmul.f32 %v7266_v57, %v16932_v25  ;;  %v7269_v47 = vadd.f32 %v7253_v15, %v7209_v45  ;;  %v7189_v37 = vsel %vm580_vm1, %v7178_v46, %v7188_v22  ;;  %v16936_v26 = vld [vmem:[#allocation48_spill] sm:$0xff]  ;;  %v16938_v25 = vld [vmem:[#allocation50_spill] sm:$0xff] }
0x16dc   : > { %v7264_v38 = vadd.f32 %v7242_v11, %v7204_v52  ;;  %v7191_v60 = vsel %vm580_vm1, %v7181_v21, %v7190_v13  ;;  %v7250_v59 = vrot.slane %v7220_v30, 2  ;;  %v7207_v36 = vadd.f32 %v7189_v37, %v7147_v40 }
0x16dd   : > { %v15467_v43 = vadd.f32 %v7274_v41, %v16934_v56  ;;  %v7277_v32 = vmul.f32 %v7269_v47, %v16933_v10  ;;  %v7208_v54 = vadd.f32 %v7191_v60, %v7148_v61  ;;  %v15471_v4 = vadd.f32 %v7273_v17, %v16935_v55 }
0x16de   : > { %v7271_v28 = vmul.f32 %v7263_v16, %v16936_v26  ;;  %v7249_v34 = vsel %vm662_vm2, %v7238_v3, %v7248_v51  ;;  %v7251_v20 = vsel %vm662_vm2, %v7241_v49, %v7250_v59  ;;  %v7272_v39 = vmul.f32 %v7264_v38, %v16937_v8 }
0x16df   : > { %v7286_v46 = vadd.f32 %v15467_v43, %v15458_v14  ;;  %v7314_v21 = vmax.f32 %v15458_v14, %v15467_v43  ;;  %v15481_v31 = vadd.f32 %v7277_v32, %v16935_v55  ;;  %v7267_v53 = vadd.f32 %v7249_v34, %v7207_v36 }
0x16e0   : > { %v7268_v40 = vadd.f32 %v7251_v20, %v7208_v54  ;;  %v15490_v9 = vadd.f32 %v7271_v28, %v16938_v25  ;;  %v15497_v29 = vadd.f32 %v7272_v39, %v16939_v23 }
0x16e1   : > { %v7307_v50 = vadd.f32 %v15481_v31, %v15471_v4  ;;  %v7335_v3 = vmax.f32 %v15471_v4, %v15481_v31  ;;  %v7275_v33 = vmul.f32 %v7267_v53, %v16936_v26  ;;  %v7315_v2 = vrot.slane %v7314_v21, 4 }
0x16e2   : > { %v7276_v61 = vmul.f32 %v7268_v40, %v16937_v8  ;;  %v7287_v12 = vrot.slane %v7286_v46, 4 }
0x16e3   : > { %v15494_v18 = vadd.f32 %v7275_v33, %v16938_v25  ;;  %v7316_v5 = vmax.f32 %v7314_v21, %v7315_v2  ;;  %v7336_v0 = vrot.slane %v7335_v3, 4  ;;  %v7308_v44 = vrot.slane %v7307_v50, 4 }
0x16e4   : > { %v15500_v49 = vadd.f32 %v7276_v61, %v16939_v23  ;;  %v7288_v6 = vadd.f32 %v7287_v12, %v7286_v46  ;;  %v6524_v23 = vld [vmem:[%s16321_s9] sm:$0xff] }
0x16e5   : > { %v7293_v58 = vadd.f32 %v15494_v18, %v15490_v9  ;;  %v7321_v10 = vmax.f32 %v15490_v9, %v15494_v18  ;;  %v7317_v17 = vrot.slane %v7316_v5, 2  ;;  %v7337_v24 = vmax.f32 %v7335_v3, %v7336_v0  ;;  %v6525_v0 = vld [vmem:[%s16321_s9 + $0x8] sm:$0xff] }
0x16e6   : > { %v7300_v63 = vadd.f32 %v15500_v49, %v15497_v29  ;;  %v7328_v48 = vmax.f32 %v15497_v29, %v15500_v49  ;;  %v7289_v52 = vrot.slane %v7288_v6, 2  ;;  %v7309_v19 = vadd.f32 %v7308_v44, %v7307_v50  ;;  %v6529_v44 = vld [vmem:[%s16321_s9 + $0x28] sm:$0xff] }
0x16e7   : > { %v7322_v35 = vrot.slane %v7321_v10, 4  ;;  %v7338_v7 = vrot.slane %v7337_v24, 2  ;;  %v7294_v42 = vrot.slane %v7293_v58, 4  ;;  %v7318_v16 = vmax.f32 %v7316_v5, %v7317_v17  ;;  %v6527_v17 = vld [vmem:[%s16321_s9 + $0x18] sm:$0xff] }
0x16e8   : > { %v7329_v1 = vrot.slane %v7328_v48, 4  ;;  %v7301_v62 = vrot.slane %v7300_v63, 4  ;;  %v7310_v27 = vrot.slane %v7309_v19, 2  ;;  %v7290_v13 = vadd.f32 %v7289_v52, %v7288_v6 }
0x16e9   : > { %v7323_v57 = vmax.f32 %v7321_v10, %v7322_v35  ;;  %v7339_v45 = vmax.f32 %v7337_v24, %v7338_v7  ;;  %v7295_v15 = vadd.f32 %v7294_v42, %v7293_v58  ;;  %v7319_v32 = vrot.slane %v7318_v16, 1  ;;  %v6528_v58 = vld [vmem:[%s16321_s9 + $0x20] sm:$0xff]  ;;  %v6531_v24 = vld [vmem:[%s16321_s9 + $0x38] sm:$0xff] }
0x16ea   : > { %v7330_v22 = vmax.f32 %v7328_v48, %v7329_v1  ;;  %v7302_v30 = vadd.f32 %v7301_v62, %v7300_v63  ;;  %v7311_v51 = vadd.f32 %v7310_v27, %v7309_v19  ;;  %v7291_v54 = vrot.slane %v7290_v13, 1 }
0x16eb   : > { %v7324_v56 = vrot.slane %v7323_v57, 2  ;;  %v7296_v11 = vrot.slane %v7295_v15, 2  ;;  %v7340_v37 = vrot.slane %v7339_v45, 1  ;;  %v7320_v39 = vmax.f32 %v7318_v16, %v7319_v32  ;;  %v16944_v32 = vld [vmem:[#allocation30_spill] sm:$0xff] }
0x16ec   : > { %v7331_v41 = vrot.slane %v7330_v22, 2  ;;  %v7303_v47 = vrot.slane %v7302_v30, 2  ;;  %v7312_v59 = vrot.slane %v7311_v51, 1  ;;  %v7292_v50 = vadd.f32 %v7291_v54, %v7290_v13 }
0x16ed   : > { %v7325_v38 = vmax.f32 %v7323_v57, %v7324_v56  ;;  %v7297_v60 = vadd.f32 %v7296_v11, %v7295_v15  ;;  %v7341_v21 = vmax.f32 %v7339_v45, %v7340_v37  ;;  %v10121_v6 = vpack.c.bf16 %v6529_v44, %v6525_v0  ;;  %v6530_v56 = vld [vmem:[%s16321_s9 + $0x30] sm:$0xff] }
0x16ee   : > { %v7332_v36 = vmax.f32 %v7330_v22, %v7331_v41  ;;  %v7304_v55 = vadd.f32 %v7303_v47, %v7302_v30  ;;  %v7313_v8 = vadd.f32 %v7312_v59, %v7311_v51  ;;  %v10123_v10 = vpack.c.bf16 %v6528_v58, %v6524_v23  ;;  %v6526_v51 = vld [vmem:[%s16321_s9 + $0x10] sm:$0xff]  ;;  %v16952_v58 = vld [vmem:[#allocation54_spill] sm:$0xff] }
0x16ef   : > { %v7326_v26 = vrot.slane %v7325_v38, 1  ;;  %v7298_v28 = vrot.slane %v7297_v60, 1  ;;  %10122 = vmatprep.subr.bf16.mxu0 %v10121_v6  ;;  %v10125_v63 = vpack.c.bf16 %v6531_v24, %v6527_v17  ;;  %v10127_v11 = vpack.c.bf16 %v6530_v56, %v6526_v51  ;;  %v16943_v59 = vld [vmem:[#allocation16_spill] sm:$0xff]  ;;  %v16953_v24 = vld [vmem:[#allocation61_spill] sm:$0xff] }
0x16f0   : > { %v7333_v34 = vrot.slane %v7332_v36, 1  ;;  %v7305_v20 = vrot.slane %v7304_v55, 1  ;;  %10124 = vmatpush1.bf16.msra.mxu0 %v10123_v10  ;;  %v16940_v47 = vmov 0.0   ;;  %v16951_v44 = vld [vmem:[#allocation64_spill] sm:$0xff]  ;;  %v7665_v56 = vld [vmem:[%s16318_s6 + $0x98] sm:$0xff] }
0x16f1   : > { %v7327_v46 = vmax.f32 %v7325_v38, %v7326_v26  ;;  %v7299_v53 = vadd.f32 %v7298_v28, %v7297_v60  ;;  %10126 = vmatprep.subr.bf16.mxu0 %v10125_v63  ;;  %v16941_v38 = vmov 0.0|0.0   ;;  %v16942_v60 = vld [vmem:[#allocation15_spill] sm:$0xff]  ;;  %v7664_v51 = vld [vmem:[%s16318_s6 + $0x90] sm:$0xff] }
0x16f2   : > { %v7334_v40 = vmax.f32 %v7332_v36, %v7333_v34  ;;  %v7306_v3 = vadd.f32 %v7305_v20, %v7304_v55 }
0x16f3   : > { %v7356_v33 = vmax.f32 %v7327_v46, %v7341_v21  ;;  %v7343_v2 = vadd.f32 %v7313_v8, %v7299_v53  ;;  %v16945_v46 = vld [vmem:[#allocation29_spill] sm:$0xff]  ;;  %v16946_v21 = vld [vmem:[#allocation27_spill] sm:$0xff]  ;;  %v16947_v8 = vld [vmem:[#allocation20_spill] sm:$0xff] }
0x16f4   : > { %v7355_v25 = vmax.f32 %v7320_v39, %v7334_v40  ;;  %v7342_v61 = vadd.f32 %v7306_v3, %v7292_v50  ;;  %v16948_v50 = vld [vmem:[#allocation63_spill] sm:$0xff] }
0x16f6   : > { %v7357_v12 = vmax.f32 %v7355_v25, %v7356_v33  ;;  %v7344_v5 = vadd.f32 %v7343_v2, %v7342_v61  ;;  %v16949_v2 = vld [vmem:[#allocation56_spill] sm:$0xff] }
0x16f8   : > { %7359 = vrot.lane.b32.xlu1 %v7357_v12, %s16745_s12  ;;  %7346 = vrot.lane.b32.xlu0 %v7344_v5, %s16745_s12 }
0x176a   : > { %v7360_v48 = vpop.permute.xlu1 %7359  ;;  %v7347_v52 = vpop.permute.xlu0 %7346 }
0x176b   : > { %v7362_v19 = vmax.f32 %v7357_v12, %v7360_v48  ;;  %v7349_v35 = vadd.f32 %v7347_v52, %v7344_v5  ;;  %v6503_v7 = vpop.f32.mrb[48].mxu1  ;;  %v16950_v12 = vld [vmem:[#allocation62_spill] sm:$0xff]  ;;  %v16954_v52 = vld [vmem:[#allocation13_spill] sm:$0xff] }
0x176c   : > { %v6512_v42 = vsub.f32 0.0, %v6503_v7  ;;  %v6505_v1 = vpop.f32.mrb[49].mxu1 }
0x176d   : > { %7364 = vrot.lane.b32.xlu1 %v7362_v19, %s16747_s21  ;;  %7351 = vrot.lane.b32.xlu0 %v7349_v35, %s16747_s21 }
0x176e   : > { %v6514_v62 = vmul.f32 1.442695, %v6512_v42 }
0x1770   : > { %v6508_v27 = vpop.f32.mrb[50].mxu1  ;;  %10839 = vpow2.f32 %v6514_v62 }
0x1771   : > { %v6513_v16 = vsub.f32 0.0, %v6508_v27  ;;  %v6510_v57 = vpop.f32.mrb[51].mxu1 }
0x1772   : > { %v7662_v57 = vld [vmem:[%s16318_s6 + $0x80] sm:$0xff] }
0x1773   : > { %v6516_v45 = vmul.f32 1.442695, %v6513_v16  ;;  %v16955_v16 = vld [vmem:[#allocation17_spill] sm:$0xff] }
0x1775   : > { %10841 = vpow2.f32 %v6516_v45  ;;  %v7663_v45 = vld [vmem:[%s16318_s6 + $0x88] sm:$0xff] }
0x177a   : > { %v10840_v15 = vpop.eup %10839 }
0x177b   : > { %v6518_v22 = vadd.f32 1.0, %v10840_v15  ;;  %v10135_v15 = vpack.c.bf16 %v7663_v45, %v7662_v57  ;;  %v7672_v57 = vld [vmem:[%s16318_s6 + $0xd0] sm:$0xff]  ;;  %v7673_v45 = vld [vmem:[%s16318_s6 + $0xd8] sm:$0xff] }
0x177d   : > { %10843 = vrcp.f32 %v6518_v22  ;;  %v7646_v22 = vld [vmem:[%s16318_s6] sm:$0xff] }
0x177f   : > { %v10842_v13 = vpop.eup %10841 }
0x1780   : > { %v6519_v30 = vadd.f32 1.0, %v10842_v13  ;;  %v7647_v13 = vld [vmem:[%s16318_s6 + $0x8] sm:$0xff] }
0x1782   : > { %10845 = vrcp.f32 %v6519_v30  ;;  %v10137_v30 = vpack.c.bf16 %v7647_v13, %v7646_v22  ;;  %v10155_v22 = vpack.c.bf16 %v7673_v45, %v7672_v57  ;;  %v7703_v13 = vld [vmem:[%s16318_s6 + $0x1c8] sm:$0xff] }
0x1787   : > { %v10844_v41 = vpop.eup %10843 }
0x1788   : > { %8860 = vmatmul.mubr.msk.f32.vlgmr.msra.gmra.mrb[42].mxu0 %vm2283_vm14, %v10844_v41 }
0x1789   : > { %6608 = vmatprep.mubr.f32.mxu0 %v16940_v47  ;;  %10128 = vmatpush1.bf16.msra.mxu0 %v10127_v11  ;;  %v7694_v11 = vld [vmem:[%s16318_s6 + $0x180] sm:$0xff] }
0x178a   : > { %10129 = vmatprep.subr.bf16.mxu0 %v16941_v38 }
0x178c   : > { %v10846_v37 = vpop.eup %10845 }
0x178d   : > { %8861 = vmatmul.mubr.msk.f32.gmra.mrb[44].mxu0 %vm2283_vm14, %v10846_v37 }
0x178e   : > { %6679 = vmatprep.mubr.f32.mxu0 %v16940_v47 }
0x1791   : > { %8862 = vmatmul.mubr.msk.f32.vlgmr.msra.gmra.mrb[46].mxu0 %vm2283_vm14, %v10844_v41  ;;  %v10139_v41 = vpack.c.bf16 %v7665_v56, %v7664_v51  ;;  %v7657_v51 = vld [vmem:[%s16318_s6 + $0x58] sm:$0xff] }
0x1792   : > { %6685 = vmatprep.mubr.f32.mxu0 %v16940_v47  ;;  %10131 = vmatpush3.bf16.msra.mxu0 %v16942_v60  ;;  %v7648_v60 = vld [vmem:[%s16318_s6 + $0x10] sm:$0xff] }
0x1793   : > { %10132 = vmatprep.subr.bf16.mxu0 %v16941_v38 }
0x1795   : > { %8863 = vmatmul.mubr.msk.f32.gmra.mrb[48].mxu0 %vm2283_vm14, %v10846_v37  ;;  %v7695_v37 = vld [vmem:[%s16318_s6 + $0x188] sm:$0xff] }
0x1796   : > { %10134 = vmatpush3.bf16.msra.mxu0 %v16943_v59  ;;  %9574 = vmatprep.mubr.msk.f32.mxu0 %vm16824_vm12, %v16940_v47  ;;  %v7649_v59 = vld [vmem:[%s16318_s6 + $0x18] sm:$0xff] }
0x1797   : > { %8881 = vmatprep.subr.msk.mxu0 %vm1393_vm6, %v16944_v32  ;;  %v10167_v32 = vpack.c.bf16 %v7695_v37, %v7694_v11  ;;  %v7687_v37 = vld [vmem:[%s16318_s6 + $0x148] sm:$0xff] }
0x1799   : > { %10168 = vmatprep.subr.bf16.mxu1 %v10167_v32  ;;  %v7675_v32 = vld [vmem:[%s16318_s6 + $0xe8] sm:$0xff] }
0x17df   : > { %v7365_v36 = vpop.permute.xlu1 %7364  ;;  %v7352_v54 = vpop.permute.xlu0 %7351 }
0x17e0   : > { %v7367_v55 = vmax.f32 %v7362_v19, %v7365_v36  ;;  %v7354_v26 = vadd.f32 %v7352_v54, %v7349_v35  ;;  %v10141_v36 = vpack.c.bf16 %v7649_v59, %v7648_v60  ;;  %v7678_v54 = vld [vmem:[%s16318_s6 + $0x100] sm:$0xff] }
0x17e1   : > { %v7674_v60 = vld [vmem:[%s16318_s6 + $0xe0] sm:$0xff] }
0x17e2   : > { %v7370_v28 = vrot.slane %v7367_v55, 7  ;;  %v7368_v34 = vmul.f32 0.00390625, %v7354_v26  ;;  %v7679_v55 = vld [vmem:[%s16318_s6 + $0x108] sm:$0xff] }
0x17e3   : > { %v10169_v26 = vpack.c.bf16 %v7679_v55, %v7678_v54  ;;  %v7705_v54 = vld [vmem:[%s16318_s6 + $0x1d8] sm:$0xff]  ;;  %v10159_v55 = vpack.c.bf16 %v7675_v32, %v7674_v60 }
0x17e4   : > { %v7372_v20 = vsel %vm408_vm0, %v7368_v34, %v7370_v28  ;;  %v7666_v28 = vld [vmem:[%s16318_s6 + $0xa0] sm:$0xff]  ;;  %v7667_v34 = vld [vmem:[%s16318_s6 + $0xa8] sm:$0xff] }
0x17e5   : > { %9575 = vmatmul.mubr.msk.f32.vlgmr.msra.gmra.mrb[50].mxu0 %vm473_vm3, %v7372_v20  ;;  %v7696_v20 = vld [vmem:[%s16318_s6 + $0x190] sm:$0xff]  ;;  %10170 = vmatpush3.bf16.msra.mxu1 %v10169_v26 }
0x17e6   : > { %8882 = vmatpush1.msk.msra.mxu0 %vm1393_vm6, %v16945_v46  ;;  %7520 = vmatprep.mubr.f32.mxu0 %v16940_v47  ;;  %v10143_v46 = vpack.c.bf16 %v7667_v34, %v7666_v28  ;;  %v7658_v28 = vld [vmem:[%s16318_s6 + $0x60] sm:$0xff]  ;;  %v7659_v34 = vld [vmem:[%s16318_s6 + $0x68] sm:$0xff] }
0x17e7   : > { %8884 = vmatprep.subr.msk.mxu0 %vm1393_vm6, %v16946_v21  ;;  %v7697_v21 = vld [vmem:[%s16318_s6 + $0x198] sm:$0xff] }
0x185b   : > { %v6604_v53 = vpop.f32.mrb[42].mxu0 }
0x185c   : > { %v6692_v39 = vmul.f32 %v6604_v53, %v16947_v8  ;;  %v6606_v40 = vpop.f32.mrb[43].mxu0  ;;  %v7650_v53 = vld [vmem:[%s16318_s6 + $0x20] sm:$0xff]  ;;  %v7651_v8 = vld [vmem:[%s16318_s6 + $0x28] sm:$0xff] }
0x185d   : > { %v6693_v3 = vmul.f32 %v6606_v40, %v16948_v50  ;;  %v10145_v40 = vpack.c.bf16 %v7651_v8, %v7650_v53  ;;  %v7680_v50 = vld [vmem:[%s16318_s6 + $0x110] sm:$0xff]  ;;  %v7677_v8 = vld [vmem:[%s16318_s6 + $0xf8] sm:$0xff] }
0x185e   : > { %8864 = vst [vmem:[%s12952_s22 + $0x80] sm:$0xff] %v6692_v39  ;;  %v10171_v39 = vpack.c.bf16 %v7697_v21, %v7696_v20  ;;  %v7688_v20 = vld [vmem:[%s16318_s6 + $0x150] sm:$0xff]  ;;  %v7689_v21 = vld [vmem:[%s16318_s6 + $0x158] sm:$0xff] }
0x185f   : > { %8865 = vst [vmem:[%s12952_s22 + $0x88] sm:$0xff] %v6693_v3  ;;  %v7681_v3 = vld [vmem:[%s16318_s6 + $0x118] sm:$0xff]  ;;  %v7676_v53 = vld [vmem:[%s16318_s6 + $0xf0] sm:$0xff] }
0x1860   : > { %v6610_v33 = vpop.f32.mrb[44].mxu0  ;;  %10172 = vmatprep.subr.bf16.mxu1 %v10171_v39  ;;  %v10189_v39 = vpack.c.bf16 %v7689_v21, %v7688_v20 }
0x1861   : > { %v6696_v25 = vmul.f32 %v6610_v33, %v16949_v2  ;;  %v6612_v61 = vpop.f32.mrb[45].mxu0  ;;  %v10173_v33 = vpack.c.bf16 %v7681_v3, %v7680_v50  ;;  %v7668_v2 = vld [vmem:[%s16318_s6 + $0xb0] sm:$0xff]  ;;  %v7706_v50 = vld [vmem:[%s16318_s6 + $0x1e0] sm:$0xff]  ;;  %v7707_v3 = vld [vmem:[%s16318_s6 + $0x1e8] sm:$0xff] }
0x1862   : > { %v6697_v5 = vmul.f32 %v6612_v61, %v16950_v12  ;;  %v7698_v61 = vld [vmem:[%s16318_s6 + $0x1a0] sm:$0xff] }
0x1863   : > { %8868 = vst [vmem:[%s12952_s22 + $0xa0] sm:$0xff] %v6696_v25  ;;  %v7669_v25 = vld [vmem:[%s16318_s6 + $0xb8] sm:$0xff]  ;;  %10174 = vmatpush3.bf16.msra.mxu1 %v10173_v33  ;;  %v7660_v33 = vld [vmem:[%s16318_s6 + $0x70] sm:$0xff] }
0x1864   : > { %8869 = vst [vmem:[%s12952_s22 + $0xa8] sm:$0xff] %v6697_v5  ;;  %v6681_v0 = vpop.f32.mrb[46].mxu0  ;;  %v10147_v12 = vpack.c.bf16 %v7669_v25, %v7668_v2  ;;  %v7699_v5 = vld [vmem:[%s16318_s6 + $0x1a8] sm:$0xff]  ;;  %v10191_v2 = vpack.c.bf16 %v7707_v3, %v7706_v50  ;;  %v7661_v25 = vld [vmem:[%s16318_s6 + $0x78] sm:$0xff] }
0x1865   : > { %v6694_v23 = vmul.f32 %v6681_v0, %v16951_v44  ;;  %v6683_v6 = vpop.f32.mrb[47].mxu0  ;;  %v7652_v0 = vld [vmem:[%s16318_s6 + $0x30] sm:$0xff]  ;;  %v7653_v44 = vld [vmem:[%s16318_s6 + $0x38] sm:$0xff] }
0x1866   : > { %v6695_v10 = vmul.f32 %v6683_v6, %v16952_v58  ;;  %v10149_v6 = vpack.c.bf16 %v7653_v44, %v7652_v0  ;;  %v7682_v58 = vld [vmem:[%s16318_s6 + $0x120] sm:$0xff]  ;;  %v7708_v44 = vld [vmem:[%s16318_s6 + $0x1f0] sm:$0xff] }
0x1867   : > { %8866 = vst [vmem:[%s12952_s22 + $0x90] sm:$0xff] %v6694_v23  ;;  %v10175_v23 = vpack.c.bf16 %v7699_v5, %v7698_v61  ;;  %v7690_v61 = vld [vmem:[%s16318_s6 + $0x160] sm:$0xff]  ;;  %v10165_v5 = vpack.c.bf16 %v7661_v25, %v7660_v33 }
0x1868   : > { %8867 = vst [vmem:[%s12952_s22 + $0x98] sm:$0xff] %v6695_v10  ;;  %v6687_v17 = vpop.f32.mrb[48].mxu0  ;;  %v7683_v10 = vld [vmem:[%s16318_s6 + $0x128] sm:$0xff] }
0x1869   : > { %v6698_v63 = vmul.f32 %v6687_v17, %v16953_v24  ;;  %v6689_v48 = vpop.f32.mrb[49].mxu0  ;;  %v10177_v17 = vpack.c.bf16 %v7683_v10, %v7682_v58  ;;  %10176 = vmatprep.subr.bf16.mxu1 %v10175_v23  ;;  %v7670_v24 = vld [vmem:[%s16318_s6 + $0xc0] sm:$0xff]  ;;  %v7709_v23 = vld [vmem:[%s16318_s6 + $0x1f8] sm:$0xff]  ;;  %v7692_v58 = vld [vmem:[%s16318_s6 + $0x170] sm:$0xff] }
0x186a   : > { %v6699_v19 = vmul.f32 %v6689_v48, %v16954_v52  ;;  %v7700_v48 = vld [vmem:[%s16318_s6 + $0x1b0] sm:$0xff]  ;;  %v7693_v10 = vld [vmem:[%s16318_s6 + $0x178] sm:$0xff] }
0x186b   : > { %8870 = vst [vmem:[%s12952_s22 + $0xb0] sm:$0xff] %v6698_v63  ;;  %v7671_v63 = vld [vmem:[%s16318_s6 + $0xc8] sm:$0xff]  ;;  %10178 = vmatpush3.bf16.msra.mxu1 %v10177_v17  ;;  %v10197_v17 = vpack.c.bf16 %v7693_v10, %v7692_v58 }
0x186c   : > { %8871 = vst [vmem:[%s12952_s22 + $0xb8] sm:$0xff] %v6699_v19  ;;  %v10151_v52 = vpack.c.bf16 %v7671_v63, %v7670_v24  ;;  %v7701_v19 = vld [vmem:[%s16318_s6 + $0x1b8] sm:$0xff] }
0x18b8   : > { %v7442_v35 = vpop.f32.mrb[50].mxu0 }
0x18b9   : > { %vm7446_vm0 = vcmp.ge.f32.partialorder %v7442_v35, 0.0  ;;  %v7447_v7 = vmul.f32 0.1, %v7442_v35  ;;  %v9576_v42 = vpop.f32.mrb[51].mxu0 }
0x18ba   : > { %v10179_v42 = vpack.c.bf16 %v7701_v19, %v7700_v48 }
0x18bb   : > { %v7448_v1 = vsel %vm7446_vm0, %v7442_v35, %v7447_v7  ;;  %v7654_v35 = vld [vmem:[%s16318_s6 + $0x40] sm:$0xff]  ;;  %v7655_v7 = vld [vmem:[%s16318_s6 + $0x48] sm:$0xff] }
0x18bc   : > { %v7450_v62 = vrot.slane %v7448_v1, 1  ;;  %10180 = vmatprep.subr.bf16.mxu1 %v10179_v42 }
0x18be   : > { %v7452_v27 = vadd.f32 %v7450_v62, %v7448_v1  ;;  %v10153_v1 = vpack.c.bf16 %v7655_v7, %v7654_v35  ;;  %v7684_v62 = vld [vmem:[%s16318_s6 + $0x130] sm:$0xff] }
0x18c0   : > { %8883 = vmatmul.mubr.msk.f32.vlgmr.msra.gmra.mrb[52].mxu0 %vm1389_vm8, %v7452_v27 }
0x18c1   : > { %8885 = vmatpush1.msk.msra.mxu0 %vm1393_vm6, %v16955_v16  ;;  %7591 = vmatprep.mubr.f32.mxu0 %v16940_v47 }
0x18c2   : > { %10136 = vmatprep.subr.bf16.mxu0 %v10135_v15  ;;  %v7702_v15 = vld [vmem:[%s16318_s6 + $0x1c0] sm:$0xff] }
0x18c3   : > { %v10183_v56 = vpack.c.bf16 %v7703_v13, %v7702_v15 }
0x18c4   : > { %8886 = vmatmul.mubr.msk.f32.vlgmr.msra.gmra.mrb[54].mxu0 %vm1389_vm8, %v7452_v27  ;;  %v7685_v27 = vld [vmem:[%s16318_s6 + $0x138] sm:$0xff]  ;;  %vm16957_vm8 = vcmask 916480  }
0x18c5   : > { %10138 = vmatpush3.bf16.msra.mxu0 %v10137_v30  ;;  %v10181_v16 = vpack.c.bf16 %v7685_v27, %v7684_v62  ;;  %v7656_v30 = vld [vmem:[%s16318_s6 + $0x50] sm:$0xff]  ;;  %vm16958_vm12 = vmmov %vm16957_vm8 }
0x18c6   : > { %10140 = vmatprep.subr.bf16.mxu0 %v10139_v41  ;;  %v10157_v11 = vpack.c.bf16 %v7657_v51, %v7656_v30  ;;  %v7686_v41 = vld [vmem:[%s16318_s6 + $0x140] sm:$0xff]  ;;  %vm16959_vm13 = vmmov %vm16957_vm8 }
0x18c7   : > { %10182 = vmatpush3.bf16.msra.mxu1 %v10181_v16  ;;  %v10185_v59 = vpack.c.bf16 %v7687_v37, %v7686_v41  ;;  %v16956_v37 = vld [vmem:[#allocation3_spill] sm:$0xff]  ;;  %vm16960_vm5 = vmmov %vm16957_vm8 }
0x18c8   : > { %10184 = vmatprep.subr.bf16.mxu1 %v10183_v56  ;;  %vm16961_vm11 = vmmov %vm16960_vm5 }
0x18c9   : > { %10142 = vmatpush3.bf16.msra.mxu0 %v10141_v36  ;;  %v7704_v36 = vld [vmem:[%s16318_s6 + $0x1d0] sm:$0xff]  ;;  %vm16962_vm9 = vmmov %vm16960_vm5 }
0x18ca   : > { %10144 = vmatprep.subr.bf16.mxu0 %v10143_v46  ;;  %v10187_v26 = vpack.c.bf16 %v7705_v54, %v7704_v36  ;;  %v10161_v46 = vpack.c.bf16 %v7659_v34, %v7658_v28  ;;  %vm16963_vm10 = vmmov %vm16960_vm5 }
0x18cb   : > { %10186 = vmatpush3.bf16.msra.mxu1 %v10185_v59  ;;  %vm16964_vm0 = vmmov %vm16960_vm5 }
0x18cc   : > { %10188 = vmatprep.subr.bf16.mxu1 %v10187_v26 }
0x18cd   : > { %10146 = vmatpush3.bf16.msra.mxu0 %v10145_v40  ;;  %v10163_v40 = vpack.c.bf16 %v7677_v8, %v7676_v53 }
0x18ce   : > { %10148 = vmatprep.subr.bf16.mxu0 %v10147_v12  ;;  %v7691_v12 = vld [vmem:[%s16318_s6 + $0x168] sm:$0xff] }
0x18cf   : > { %10190 = vmatpush3.bf16.msra.mxu1 %v10189_v39  ;;  %v10193_v0 = vpack.c.bf16 %v7691_v12, %v7690_v61 }
0x18d0   : > { %10192 = vmatprep.subr.bf16.mxu1 %v10191_v2 }
0x18d1   : > { %10150 = vmatpush3.bf16.msra.mxu0 %v10149_v6  ;;  %v10195_v6 = vpack.c.bf16 %v7709_v23, %v7708_v44 }
0x18d2   : > { %10152 = vmatprep.subr.bf16.mxu0 %v10151_v52 }
0x18d3   : > { %10194 = vmatpush3.bf16.msra.mxu1 %v10193_v0 }
0x18d4   : > { %10196 = vmatprep.subr.bf16.mxu1 %v10195_v6 }
0x18d5   : > { %10154 = vmatpush3.bf16.msra.mxu0 %v10153_v1 }
0x18d6   : > { %10156 = vmatprep.subr.bf16.mxu0 %v10155_v22 }
0x18d7   : > { %10198 = vmatpush3.bf16.msra.mxu1 %v10197_v17 }
0x18d9   : > { %10158 = vmatpush3.bf16.msra.mxu0 %v10157_v11 }
0x18da   : > { %10160 = vmatprep.subr.bf16.mxu0 %v10159_v55 }
0x18dd   : > { %10162 = vmatpush3.bf16.msra.mxu0 %v10161_v46 }
0x18de   : > { %10164 = vmatprep.subr.bf16.mxu0 %v10163_v40 }
0x18e1   : > { %10166 = vmatpush3.bf16.msra.mxu0 %v10165_v5 }
0x1993   : > { %v7522_v24 = vpop.f32.mrb[52].mxu0 }
0x1994   : > { %v7598_v63 = vsub.f32 0.0, %v7522_v24  ;;  %v7524_v48 = vpop.f32.mrb[53].mxu0 }
0x1995   : > { %v7599_v52 = vsub.f32 0.0, %v7524_v48 }
0x1996   : > { %v7602_v19 = vmul.f32 1.442695, %v7598_v63 }
0x1997   : > { %v7604_v35 = vmul.f32 1.442695, %v7599_v52  ;;  %v7593_v7 = vpop.f32.mrb[54].mxu0 }
0x1998   : > { %10847 = vpow2.f32 %v7602_v19  ;;  %v7600_v42 = vsub.f32 0.0, %v7593_v7  ;;  %v7595_v1 = vpop.f32.mrb[55].mxu0 }
0x1999   : > { %10849 = vpow2.f32 %v7604_v35  ;;  %v7601_v62 = vsub.f32 0.0, %v7595_v1 }
0x199a   : > { %v7606_v27 = vmul.f32 1.442695, %v7600_v42 }
0x199b   : > { %v7608_v16 = vmul.f32 1.442695, %v7601_v62 }
0x199c   : > { %10851 = vpow2.f32 %v7606_v27 }
0x199d   : > { %10853 = vpow2.f32 %v7608_v16 }
0x19a2   : > { %v10848_v57 = vpop.eup %10847 }
0x19a3   : > { %v10850_v45 = vpop.eup %10849  ;;  %v7610_v15 = vadd.f32 1.0, %v10848_v57 }
0x19a4   : > { %v7611_v22 = vadd.f32 1.0, %v10850_v45 }
0x19a5   : > { %10855 = vrcp.f32 %v7610_v15 }
0x19a6   : > { %v10852_v13 = vpop.eup %10851  ;;  %10857 = vrcp.f32 %v7611_v22 }
0x19a7   : > { %v10854_v30 = vpop.eup %10853  ;;  %v7612_v51 = vadd.f32 1.0, %v10852_v13 }
0x19a8   : > { %v7613_v56 = vadd.f32 1.0, %v10854_v30 }
0x19a9   : > { %10859 = vrcp.f32 %v7612_v51 }
0x19aa   : > { %10861 = vrcp.f32 %v7613_v56 }
0x19af   : > { %v10856_v11 = vpop.eup %10855 }
0x19b0   : > { %v10858_v41 = vpop.eup %10857  ;;  %v7625_v60 = vrot.slane %v10856_v11, %v16956_v37 }
0x19b1   : > { %v7629_v59 = vrot.slane %v10858_v41, %v16956_v37 }
0x19b2   : > { %v15776_v32 = vmul.f32 %v7625_v60, %v15458_v14  ;;  %v15790_v14 = vmul.f32 %v7625_v60, %v15467_v43 }
0x19b3   : > { %v10860_v36 = vpop.eup %10859  ;;  %v15779_v54 = vmul.f32 %v7629_v59, %v15490_v9  ;;  %v15786_v34 = vmul.f32 %v7629_v59, %v15494_v18 }
0x19b4   : > { %v10862_v55 = vpop.eup %10861  ;;  %v7633_v26 = vrot.slane %v10860_v36, %v16956_v37 }
0x19b5   : > { %7774 = vmatprep.mubr.f32.mxu0 %v15779_v54  ;;  %v10664_v28 = vpack.i.bf16 %v15779_v54, %v15776_v32  ;;  %v7637_v20 = vrot.slane %v10862_v55, %v16956_v37  ;;  %v10669_v18 = vpack.i.bf16 %v15786_v34, %v15790_v14 }
0x19b6   : > { %7775 = vmatmul.mubr.f32.vlgmr.msra.gmra.mrb[56].mxu0 %v15776_v32  ;;  %v15794_v9 = vmul.f32 %v7633_v26, %v15497_v29  ;;  %v15810_v29 = vmul.f32 %v7633_v26, %v15500_v49 }
0x19b7   : > { %10665 = vrot.lane.b32.xlu0 %v10664_v28, %s16843_s29  ;;  %7779 = vmatprep.mubr.f32.mxu0 %v15786_v34  ;;  %v15799_v46 = vmul.f32 %v7637_v20, %v15471_v4  ;;  %v15807_v21 = vmul.f32 %v7637_v20, %v15481_v31 }
0x19b9   : > { %7849 = vmatprep.mubr.f32.mxu1 %v15799_v46  ;;  %v10674_v43 = vpack.i.bf16 %v15799_v46, %v15794_v9  ;;  %v10679_v4 = vpack.i.bf16 %v15807_v21, %v15810_v29 }
0x19ba   : > { %7780 = vmatmul.mubr.f32.gmra.mrb[58].mxu0 %v15790_v14  ;;  %7850 = vmatmul.mubr.f32.vlgmr.msra.gmra.mrb[52].mxu1 %v15794_v9 }
0x19bb   : > { %10670 = vrot.lane.b32.xlu0 %v10669_v18, %s16843_s29  ;;  %10675 = vrot.lane.b32.xlu1 %v10674_v43, %s16843_s29 }
0x19bc   : > { %7854 = vmatprep.mubr.f32.mxu1 %v15807_v21 }
0x19be   : > { %7855 = vmatmul.mubr.f32.gmra.mrb[54].mxu1 %v15810_v29 }
0x19bf   : > { %10680 = vrot.lane.b32.xlu1 %v10679_v4, %s16843_s29 }
0x1a29   : > { %v10666_v31 = vpop.permute.xlu0 %10665 }
0x1a2a   : > { %v10668_v49 = vunpack.i.h.bf16 %v10666_v31  ;;  %v10667_v53 = vunpack.i.l.bf16 %v10666_v31 }
0x1a2c   : > { %v7884_v8 = vsel %vm16957_vm8, %v10667_v53, %v10668_v49  ;;  %vm16965_vm8 = vcmask 982016  }
0x1a2d   : > { %v10671_v39 = vpop.permute.xlu0 %10670  ;;  %v10676_v40 = vpop.permute.xlu1 %10675  ;;  %v7902_v25 = vmax.f32 %v15776_v32, %v7884_v8 }
0x1a2e   : > { %v10673_v50 = vunpack.i.h.bf16 %v10671_v39  ;;  %v10672_v3 = vunpack.i.l.bf16 %v10671_v39  ;;  %v10678_v33 = vunpack.i.h.bf16 %v10676_v40  ;;  %v10677_v2 = vunpack.i.l.bf16 %v10676_v40 }
0x1a30   : > { %v7900_v61 = vsel %vm16958_vm12, %v10678_v33, %v10667_v53  ;;  %v7885_v12 = vsel %vm16959_vm13, %v10668_v49, %v10677_v2  ;;  %v7886_v5 = vsel %vm16960_vm5, %v10677_v2, %v10678_v33  ;;  %v7887_v0 = vsel %vm16961_vm11, %v10672_v3, %v10673_v50  ;;  %vm16966_vm12 = vmmov %vm16965_vm8 }
0x1a31   : > { %v7905_v44 = vmax.f32 %v15799_v46, %v7900_v61  ;;  %v7903_v23 = vmax.f32 %v15779_v54, %v7885_v12  ;;  %v7904_v6 = vmax.f32 %v15794_v9, %v7886_v5  ;;  %v10681_v58 = vpop.permute.xlu1 %10680  ;;  %v7906_v48 = vmax.f32 %v15790_v14, %v7887_v0  ;;  %vm16967_vm13 = vmmov %vm16965_vm8 }
0x1a32   : > { %v10683_v10 = vunpack.i.h.bf16 %v10681_v58  ;;  %v10682_v17 = vunpack.i.l.bf16 %v10681_v58  ;;  %vm16968_vm5 = vmmov %vm16965_vm8 }
0x1a33   : > { %v10694_v24 = vpack.i.bf16 %v7905_v44, %v7904_v6  ;;  %v10684_v63 = vpack.i.bf16 %v7903_v23, %v7902_v25  ;;  %vm16969_vm11 = vmmov %vm16968_vm5 }
0x1a34   : > { %v7901_v52 = vsel %vm16962_vm9, %v10683_v10, %v10672_v3  ;;  %v7888_v19 = vsel %vm16963_vm10, %v10673_v50, %v10682_v17  ;;  %v7889_v35 = vsel %vm16964_vm0, %v10682_v17, %v10683_v10  ;;  %vm16970_vm9 = vmmov %vm16968_vm5 }
0x1a35   : > { %v7909_v7 = vmax.f32 %v15807_v21, %v7901_v52  ;;  %v7907_v42 = vmax.f32 %v15786_v34, %v7888_v19  ;;  %v7908_v1 = vmax.f32 %v15810_v29, %v7889_v35  ;;  %10695 = vrot.lane.b32.xlu1 %v10694_v24, %s16739_s26  ;;  %10685 = vrot.lane.b32.xlu0 %v10684_v63, %s16739_s26  ;;  %vm16971_vm10 = vmmov %vm16968_vm5 }
0x1a36   : > { %vm16972_vm0 = vmmov %vm16968_vm5 }
0x1a37   : > { %v10699_v62 = vpack.i.bf16 %v7909_v7, %v7908_v1  ;;  %v10689_v27 = vpack.i.bf16 %v7907_v42, %v7906_v48 }
0x1a39   : > { %10700 = vrot.lane.b32.xlu1 %v10699_v62, %s16739_s26  ;;  %10690 = vrot.lane.b32.xlu0 %v10689_v27, %s16739_s26 }
0x1a89   : > { %v9413_v16 = vpop.f32.mrb[56].mxu0 }
0x1a8a   : > { %v9414_v57 = vpop.f32.mrb[57].mxu0 }
0x1a8b   : > { %v9415_v45 = vadd.f32 %v9414_v57, %v9413_v16 }
0x1a8d   : > { %v9416_v15 = vpop.f32.mrb[58].mxu0  ;;  %v9451_v22 = vpop.f32.mrb[52].mxu1 }
0x1a8e   : > { %v9417_v13 = vpop.f32.mrb[59].mxu0  ;;  %v9452_v30 = vpop.f32.mrb[53].mxu1 }
0x1a8f   : > { %v9418_v51 = vadd.f32 %v9417_v13, %v9416_v15  ;;  %v9453_v56 = vadd.f32 %v9452_v30, %v9451_v22 }
0x1a91   : > { %v15841_v11 = vadd.f32 %v9453_v56, %v9415_v45  ;;  %v9454_v41 = vpop.f32.mrb[54].mxu1 }
0x1a92   : > { %v9455_v37 = vpop.f32.mrb[55].mxu1 }
0x1a93   : > { %v9456_v60 = vadd.f32 %v9455_v37, %v9454_v41 }
0x1a95   : > { %v15843_v59 = vadd.f32 %v9456_v60, %v9418_v51 }
0x1aa7   : > { %v10696_v36 = vpop.permute.xlu1 %10695  ;;  %v10686_v55 = vpop.permute.xlu0 %10685 }
0x1aa8   : > { %v10698_v26 = vunpack.i.h.bf16 %v10696_v36  ;;  %v10697_v28 = vunpack.i.l.bf16 %v10696_v36  ;;  %v10688_v20 = vunpack.i.h.bf16 %v10686_v55  ;;  %v10687_v18 = vunpack.i.l.bf16 %v10686_v55 }
0x1aaa   : > { %v7936_v43 = vsel %vm16965_vm8, %v10697_v28, %v10698_v26  ;;  %v7935_v4 = vsel %vm16966_vm12, %v10688_v20, %v10697_v28  ;;  %v7934_v31 = vsel %vm16967_vm13, %v10687_v18, %v10688_v20  ;;  %v7950_v49 = vsel %vm16968_vm5, %v10698_v26, %v10687_v18 }
0x1aab   : > { %v7954_v53 = vmax.f32 %v7904_v6, %v7936_v43  ;;  %v7953_v8 = vmax.f32 %v7903_v23, %v7935_v4  ;;  %v7952_v39 = vmax.f32 %v7902_v25, %v7934_v31  ;;  %v7955_v40 = vmax.f32 %v7905_v44, %v7950_v49  ;;  %v10701_v50 = vpop.permute.xlu1 %10700  ;;  %v10691_v3 = vpop.permute.xlu0 %10690 }
0x1aac   : > { %v10703_v33 = vunpack.i.h.bf16 %v10701_v50  ;;  %v10702_v2 = vunpack.i.l.bf16 %v10701_v50  ;;  %v10693_v61 = vunpack.i.h.bf16 %v10691_v3  ;;  %v10692_v12 = vunpack.i.l.bf16 %v10691_v3  ;;  %v8159_v50 = vld [vmem:[%s16319_s7 + $0x188] sm:$0xff]  ;;  %v8110_v3 = vld [vmem:[%s16319_s7] sm:$0xff] }
0x1aad   : > { %v10709_v5 = vpack.i.bf16 %v7955_v40, %v7954_v53  ;;  %v10704_v0 = vpack.i.bf16 %v7953_v8, %v7952_v39  ;;  %vm16973_vm8 = vcmask 1014784  }
0x1aae   : > { %v7939_v58 = vsel %vm16969_vm11, %v10702_v2, %v10703_v33  ;;  %v7938_v10 = vsel %vm16970_vm9, %v10693_v61, %v10702_v2  ;;  %v7937_v17 = vsel %vm16971_vm10, %v10692_v12, %v10693_v61  ;;  %v7951_v24 = vsel %vm16972_vm0, %v10703_v33, %v10692_v12  ;;  %vm16974_vm12 = vmmov %vm16973_vm8  ;;  %v8111_v33 = vld [vmem:[%s16319_s7 + $0x8] sm:$0xff] }
0x1aaf   : > { %v7958_v6 = vmax.f32 %v7908_v1, %v7939_v58  ;;  %v7957_v23 = vmax.f32 %v7907_v42, %v7938_v10  ;;  %v7956_v25 = vmax.f32 %v7906_v48, %v7937_v17  ;;  %v7959_v44 = vmax.f32 %v7909_v7, %v7951_v24  ;;  %10710 = vrot.lane.b32.xlu1 %v10709_v5, %s16740_s28  ;;  %vm16975_vm13 = vmmov %vm16973_vm8  ;;  %v8143_v58 = vld [vmem:[%s16319_s7 + $0x108] sm:$0xff]  ;;  %v8128_v10 = vld [vmem:[%s16319_s7 + $0x90] sm:$0xff] }
0x1ab0   : > { %10705 = vrot.lane.b32.xlu0 %v10704_v0, %s16740_s28  ;;  %vm16976_vm5 = vmmov %vm16973_vm8  ;;  %v10201_v5 = vpack.c.bf16 %v8111_v33, %v8110_v3  ;;  %v8142_v0 = vld [vmem:[%s16319_s7 + $0x100] sm:$0xff]  ;;  %v8129_v24 = vld [vmem:[%s16319_s7 + $0x98] sm:$0xff] }
0x1ab1   : > { %v10719_v63 = vpack.i.bf16 %v7959_v44, %v7958_v6  ;;  %v10714_v52 = vpack.i.bf16 %v7957_v23, %v7956_v25  ;;  %vm16977_vm11 = vmmov %vm16976_vm5  ;;  %v10233_v17 = vpack.c.bf16 %v8143_v58, %v8142_v0  ;;  %v8135_v3 = vld [vmem:[%s16319_s7 + $0xc8] sm:$0xff]  ;;  %v8166_v33 = vld [vmem:[%s16319_s7 + $0x1c0] sm:$0xff] }
0x1ab2   : > { %vm16978_vm9 = vmmov %vm16976_vm5  ;;  %v8118_v0 = vld [vmem:[%s16319_s7 + $0x40] sm:$0xff]  ;;  %v8119_v58 = vld [vmem:[%s16319_s7 + $0x48] sm:$0xff] }
0x1ab3   : > { %10720 = vrot.lane.b32.xlu1 %v10719_v63, %s16740_s28  ;;  %vm16979_vm10 = vmmov %vm16976_vm5  ;;  %v8112_v63 = vld [vmem:[%s16319_s7 + $0x10] sm:$0xff] }
0x1ab4   : > { %10715 = vrot.lane.b32.xlu0 %v10714_v52, %s16740_s28  ;;  %vm16980_vm0 = vmmov %vm16976_vm5  ;;  %v8113_v52 = vld [vmem:[%s16319_s7 + $0x18] sm:$0xff] }
0x1b21   : > { %v10711_v19 = vpop.permute.xlu1 %10710 }
0x1b22   : > { %v10713_v35 = vunpack.i.h.bf16 %v10711_v19  ;;  %v10712_v62 = vunpack.i.l.bf16 %v10711_v19  ;;  %v10706_v27 = vpop.permute.xlu0 %10705  ;;  %v8144_v19 = vld [vmem:[%s16319_s7 + $0x110] sm:$0xff] }
0x1b23   : > { %v10708_v16 = vunpack.i.h.bf16 %v10706_v27  ;;  %v10707_v57 = vunpack.i.l.bf16 %v10706_v27  ;;  %v8130_v27 = vld [vmem:[%s16319_s7 + $0xa0] sm:$0xff] }
0x1b24   : > { %v7986_v42 = vsel %vm16973_vm8, %v10712_v62, %v10713_v35  ;;  %vm16981_vm8 = vcmask 1031168  }
0x1b25   : > { %v15858_v48 = vmax.f32 %v7954_v53, %v7986_v42  ;;  %v7985_v7 = vsel %vm16974_vm12, %v10708_v16, %v10712_v62  ;;  %v7984_v1 = vsel %vm16975_vm13, %v10707_v57, %v10708_v16  ;;  %v8000_v45 = vsel %vm16976_vm5, %v10713_v35, %v10707_v57  ;;  %v10721_v15 = vpop.permute.xlu1 %10720  ;;  %v8126_v53 = vld [vmem:[%s16319_s7 + $0x80] sm:$0xff]  ;;  %v8145_v62 = vld [vmem:[%s16319_s7 + $0x118] sm:$0xff]  ;;  %v8131_v16 = vld [vmem:[%s16319_s7 + $0xa8] sm:$0xff] }
0x1b26   : > { %v15863_v22 = vmax.f32 %v7953_v8, %v7985_v7  ;;  %v15865_v13 = vmax.f32 %v7952_v39, %v7984_v1  ;;  %v15867_v30 = vmax.f32 %v7955_v40, %v8000_v45  ;;  %v10723_v51 = vunpack.i.h.bf16 %v10721_v15  ;;  %v10716_v56 = vpop.permute.xlu0 %10715  ;;  %v8127_v8 = vld [vmem:[%s16319_s7 + $0x88] sm:$0xff]  ;;  %v8158_v39 = vld [vmem:[%s16319_s7 + $0x180] sm:$0xff]  ;;  %vm16982_vm12 = vmmov %vm16981_vm8 }
0x1b27   : > { %v10722_v41 = vunpack.i.l.bf16 %v10721_v15  ;;  %v10718_v37 = vunpack.i.h.bf16 %v10716_v56  ;;  %v10717_v60 = vunpack.i.l.bf16 %v10716_v56  ;;  %v10199_v40 = vpack.c.bf16 %v8127_v8, %v8126_v53  ;;  %v8162_v7 = vld [vmem:[%s16319_s7 + $0x1a0] sm:$0xff]  ;;  %v8163_v1 = vld [vmem:[%s16319_s7 + $0x1a8] sm:$0xff]  ;;  %v8117_v53 = vld [vmem:[%s16319_s7 + $0x38] sm:$0xff] }
0x1b28   : > { %v10729_v36 = vpack.i.bf16 %v15867_v30, %v15858_v48  ;;  %v10724_v55 = vpack.i.bf16 %v15863_v22, %v15865_v13  ;;  %v10231_v12 = vpack.c.bf16 %v8159_v50, %v8158_v39  ;;  %v10205_v35 = vpack.c.bf16 %v8113_v52, %v8112_v63  ;;  %v8114_v45 = vld [vmem:[%s16319_s7 + $0x20] sm:$0xff]  ;;  %v8148_v8 = vld [vmem:[%s16319_s7 + $0x130] sm:$0xff]  ;;  %vm16983_vm13 = vmmov %vm16981_vm8 }
0x1b29   : > { %v7989_v26 = vsel %vm16977_vm11, %v10722_v41, %v10723_v51  ;;  %v7988_v28 = vsel %vm16978_vm9, %v10718_v37, %v10722_v41  ;;  %v7987_v20 = vsel %vm16979_vm10, %v10717_v60, %v10718_v37  ;;  %v8001_v18 = vsel %vm16980_vm0, %v10723_v51, %v10717_v60  ;;  %10200 = vmatprep.subr.bf16.mxu0 %v10199_v40  ;;  %v8115_v51 = vld [vmem:[%s16319_s7 + $0x28] sm:$0xff]  ;;  %v8146_v56 = vld [vmem:[%s16319_s7 + $0x120] sm:$0xff]  ;;  %v8132_v37 = vld [vmem:[%s16319_s7 + $0xb0] sm:$0xff] }
0x1b2a   : > { %v15877_v43 = vmax.f32 %v7958_v6, %v7989_v26  ;;  %v15879_v4 = vmax.f32 %v7957_v23, %v7988_v28  ;;  %v15881_v31 = vmax.f32 %v7956_v25, %v7987_v20  ;;  %v15883_v49 = vmax.f32 %v7959_v44, %v8001_v18  ;;  %10730 = vrot.lane.b32.xlu1 %v10729_v36, %s16741_s20  ;;  %v8160_v6 = vld [vmem:[%s16319_s7 + $0x190] sm:$0xff]  ;;  %v8161_v23 = vld [vmem:[%s16319_s7 + $0x198] sm:$0xff]  ;;  %v8147_v41 = vld [vmem:[%s16319_s7 + $0x128] sm:$0xff] }
0x1b2b   : > { %10725 = vrot.lane.b32.xlu0 %v10724_v55, %s16741_s20  ;;  %10232 = vmatprep.subr.bf16.mxu1 %v10231_v12  ;;  %v10203_v25 = vpack.c.bf16 %v8129_v24, %v8128_v10  ;;  %v10235_v44 = vpack.c.bf16 %v8161_v23, %v8160_v6  ;;  %v10237_v57 = vpack.c.bf16 %v8145_v62, %v8144_v19  ;;  %v8133_v60 = vld [vmem:[%s16319_s7 + $0xb8] sm:$0xff]  ;;  %v8164_v36 = vld [vmem:[%s16319_s7 + $0x1b0] sm:$0xff]  ;;  %v8134_v50 = vld [vmem:[%s16319_s7 + $0xc0] sm:$0xff] }
0x1b2c   : > { %v10739_v2 = vpack.i.bf16 %v15883_v49, %v15877_v43  ;;  %v10734_v61 = vpack.i.bf16 %v15879_v4, %v15881_v31  ;;  %10202 = vmatpush3.bf16.msra.mxu0 %v10201_v5  ;;  %10234 = vmatpush3.bf16.msra.mxu1 %v10233_v17  ;;  %v10207_v42 = vpack.c.bf16 %v8131_v16, %v8130_v27  ;;  %v8165_v26 = vld [vmem:[%s16319_s7 + $0x1b8] sm:$0xff]  ;;  %v8116_v18 = vld [vmem:[%s16319_s7 + $0x30] sm:$0xff]  ;;  %v8150_v10 = vld [vmem:[%s16319_s7 + $0x140] sm:$0xff] }
0x1b2d   : > { %10204 = vmatprep.subr.bf16.mxu0 %v10203_v25  ;;  %10236 = vmatprep.subr.bf16.mxu1 %v10235_v44  ;;  %v10239_v15 = vpack.c.bf16 %v8163_v1, %v8162_v7  ;;  %v10209_v55 = vpack.c.bf16 %v8115_v51, %v8114_v45  ;;  %v10241_v28 = vpack.c.bf16 %v8147_v41, %v8146_v56  ;;  %v8149_v40 = vld [vmem:[%s16319_s7 + $0x138] sm:$0xff]  ;;  %v8151_v24 = vld [vmem:[%s16319_s7 + $0x148] sm:$0xff]  ;;  %v8136_v6 = vld [vmem:[%s16319_s7 + $0xd0] sm:$0xff] }
0x1b2e   : > { %10740 = vrot.lane.b32.xlu1 %v10739_v2, %s16741_s20  ;;  %v10211_v20 = vpack.c.bf16 %v8133_v60, %v8132_v37  ;;  %v10243_v39 = vpack.c.bf16 %v8165_v26, %v8164_v36  ;;  %v8167_v2 = vld [vmem:[%s16319_s7 + $0x1c8] sm:$0xff]  ;;  %v10245_v12 = vpack.c.bf16 %v8149_v40, %v8148_v8  ;;  %v10215_v5 = vpack.c.bf16 %v8135_v3, %v8134_v50  ;;  %v8137_v23 = vld [vmem:[%s16319_s7 + $0xd8] sm:$0xff]  ;;  %v8168_v25 = vld [vmem:[%s16319_s7 + $0x1d0] sm:$0xff] }
0x1b2f   : > { %10735 = vrot.lane.b32.xlu0 %v10734_v61, %s16741_s20  ;;  %v10213_v61 = vpack.c.bf16 %v8117_v53, %v8116_v18  ;;  %v10247_v17 = vpack.c.bf16 %v8167_v2, %v8166_v33  ;;  %v8169_v44 = vld [vmem:[%s16319_s7 + $0x1d8] sm:$0xff]  ;;  %v10217_v63 = vpack.c.bf16 %v8119_v58, %v8118_v0  ;;  %v10249_v52 = vpack.c.bf16 %v8151_v24, %v8150_v10  ;;  %v8152_v27 = vld [vmem:[%s16319_s7 + $0x150] sm:$0xff]  ;;  %v8139_v7 = vld [vmem:[%s16319_s7 + $0xe8] sm:$0xff] }
0x1b30   : > { %10206 = vmatpush3.bf16.msra.mxu0 %v10205_v35  ;;  %10238 = vmatpush3.bf16.msra.mxu1 %v10237_v57  ;;  %v10219_v19 = vpack.c.bf16 %v8137_v23, %v8136_v6  ;;  %v8120_v35 = vld [vmem:[%s16319_s7 + $0x50] sm:$0xff]  ;;  %v8121_v62 = vld [vmem:[%s16319_s7 + $0x58] sm:$0xff]  ;;  %v10251_v16 = vpack.c.bf16 %v8169_v44, %v8168_v25  ;;  %v8170_v1 = vld [vmem:[%s16319_s7 + $0x1e0] sm:$0xff] }
0x1b31   : > { %10208 = vmatprep.subr.bf16.mxu0 %v10207_v42  ;;  %10240 = vmatprep.subr.bf16.mxu1 %v10239_v15  ;;  %v8153_v57 = vld [vmem:[%s16319_s7 + $0x158] sm:$0xff]  ;;  %v8138_v42 = vld [vmem:[%s16319_s7 + $0xe0] sm:$0xff]  ;;  %v8171_v45 = vld [vmem:[%s16319_s7 + $0x1e8] sm:$0xff]  ;;  %v10221_v15 = vpack.c.bf16 %v8121_v62, %v8120_v35 }
0x1b32   : > { %v10253_v51 = vpack.c.bf16 %v8153_v57, %v8152_v27  ;;  %v10223_v56 = vpack.c.bf16 %v8139_v7, %v8138_v42  ;;  %v8122_v41 = vld [vmem:[%s16319_s7 + $0x60] sm:$0xff]  ;;  %v8123_v37 = vld [vmem:[%s16319_s7 + $0x68] sm:$0xff]  ;;  %v10255_v60 = vpack.c.bf16 %v8171_v45, %v8170_v1  ;;  %v8141_v18 = vld [vmem:[%s16319_s7 + $0xf8] sm:$0xff] }
0x1b33   : > { %v10225_v36 = vpack.c.bf16 %v8123_v37, %v8122_v41  ;;  %v8155_v26 = vld [vmem:[%s16319_s7 + $0x168] sm:$0xff]  ;;  %v8172_v53 = vld [vmem:[%s16319_s7 + $0x1f0] sm:$0xff]  ;;  %v8125_v50 = vld [vmem:[%s16319_s7 + $0x78] sm:$0xff] }
0x1b34   : > { %10210 = vmatpush3.bf16.msra.mxu0 %v10209_v55  ;;  %10242 = vmatpush3.bf16.msra.mxu1 %v10241_v28  ;;  %v8154_v55 = vld [vmem:[%s16319_s7 + $0x160] sm:$0xff]  ;;  %v8124_v40 = vld [vmem:[%s16319_s7 + $0x70] sm:$0xff]  ;;  %vm16984_vm5 = vmmov %vm16981_vm8 }
0x1b35   : > { %10212 = vmatprep.subr.bf16.mxu0 %v10211_v20  ;;  %10244 = vmatprep.subr.bf16.mxu1 %v10243_v39  ;;  %v10257_v28 = vpack.c.bf16 %v8155_v26, %v8154_v55  ;;  %v8140_v20 = vld [vmem:[%s16319_s7 + $0xf0] sm:$0xff]  ;;  %v8173_v39 = vld [vmem:[%s16319_s7 + $0x1f8] sm:$0xff]  ;;  %v10229_v33 = vpack.c.bf16 %v8125_v50, %v8124_v40  ;;  %vm16985_vm11 = vmmov %vm16984_vm5 }
0x1b36   : > { %v10227_v8 = vpack.c.bf16 %v8141_v18, %v8140_v20  ;;  %v10259_v3 = vpack.c.bf16 %v8173_v39, %v8172_v53  ;;  %v8156_v2 = vld [vmem:[%s16319_s7 + $0x170] sm:$0xff]  ;;  %vm16986_vm9 = vmmov %vm16984_vm5 }
0x1b37   : > { %vm16987_vm10 = vmmov %vm16984_vm5 }
0x1b38   : > { %10214 = vmatpush3.bf16.msra.mxu0 %v10213_v61  ;;  %10246 = vmatpush3.bf16.msra.mxu1 %v10245_v12  ;;  %v8157_v61 = vld [vmem:[%s16319_s7 + $0x178] sm:$0xff]  ;;  %vm16988_vm0 = vmmov %vm16984_vm5 }
0x1b39   : > { %10216 = vmatprep.subr.bf16.mxu0 %v10215_v5  ;;  %10248 = vmatprep.subr.bf16.mxu1 %v10247_v17  ;;  %v10261_v12 = vpack.c.bf16 %v8157_v61, %v8156_v2 }
0x1b3c   : > { %10218 = vmatpush3.bf16.msra.mxu0 %v10217_v63  ;;  %10250 = vmatpush3.bf16.msra.mxu1 %v10249_v52 }
0x1b3d   : > { %10220 = vmatprep.subr.bf16.mxu0 %v10219_v19  ;;  %10252 = vmatprep.subr.bf16.mxu1 %v10251_v16 }
0x1b40   : > { %10222 = vmatpush3.bf16.msra.mxu0 %v10221_v15  ;;  %10254 = vmatpush3.bf16.msra.mxu1 %v10253_v51 }
0x1b41   : > { %10224 = vmatprep.subr.bf16.mxu0 %v10223_v56  ;;  %10256 = vmatprep.subr.bf16.mxu1 %v10255_v60 }
0x1b44   : > { %10226 = vmatpush3.bf16.msra.mxu0 %v10225_v36  ;;  %10258 = vmatpush3.bf16.msra.mxu1 %v10257_v28 }
0x1b45   : > { %10228 = vmatprep.subr.bf16.mxu0 %v10227_v8  ;;  %10260 = vmatprep.subr.bf16.mxu1 %v10259_v3 }
0x1b48   : > { %10230 = vmatpush3.bf16.msra.mxu0 %v10229_v33  ;;  %10262 = vmatpush3.bf16.msra.mxu1 %v10261_v12 }
0x1b49   : > { %10263 = vmatprep.subr.bf16.mxu0 %v16941_v38 }
0x1b9c   : > { %v10731_v5 = vpop.permute.xlu1 %10730 }
0x1b9d   : > { %v10733_v0 = vunpack.i.h.bf16 %v10731_v5  ;;  %v10732_v58 = vunpack.i.l.bf16 %v10731_v5  ;;  %v10726_v10 = vpop.permute.xlu0 %10725 }
0x1b9e   : > { %v10728_v17 = vunpack.i.h.bf16 %v10726_v10  ;;  %v10727_v24 = vunpack.i.l.bf16 %v10726_v10 }
0x1b9f   : > { %v8036_v6 = vsel %vm16981_vm8, %v10732_v58, %v10733_v0  ;;  %vm16989_vm8 = vcmask 1039360  }
0x1ba0   : > { %v8054_v23 = vmax.f32 %v15858_v48, %v8036_v6  ;;  %v8035_v25 = vsel %vm16982_vm12, %v10728_v17, %v10732_v58  ;;  %v8034_v44 = vsel %vm16983_vm13, %v10727_v24, %v10728_v17  ;;  %v8050_v63 = vsel %vm16984_vm5, %v10733_v0, %v10727_v24  ;;  %v10741_v52 = vpop.permute.xlu1 %10740  ;;  %vm16990_vm12 = vmmov %vm16989_vm8 }
0x1ba1   : > { %v8053_v19 = vmax.f32 %v15863_v22, %v8035_v25  ;;  %v8052_v35 = vmax.f32 %v15865_v13, %v8034_v44  ;;  %v8055_v62 = vmax.f32 %v15867_v30, %v8050_v63  ;;  %v10743_v27 = vunpack.i.h.bf16 %v10741_v52  ;;  %v10736_v16 = vpop.permute.xlu0 %10735  ;;  %vm16991_vm13 = vmmov %vm16989_vm8 }
0x1ba2   : > { %v10742_v57 = vunpack.i.l.bf16 %v10741_v52  ;;  %v10738_v42 = vunpack.i.h.bf16 %v10736_v16  ;;  %v10737_v7 = vunpack.i.l.bf16 %v10736_v16  ;;  %vm16992_vm5 = vmmov %vm16989_vm8 }
0x1ba3   : > { %v10749_v1 = vpack.i.bf16 %v8055_v62, %v8054_v23  ;;  %v10744_v48 = vpack.i.bf16 %v8053_v19, %v8052_v35 }
0x1ba4   : > { %v8039_v45 = vsel %vm16985_vm11, %v10742_v57, %v10743_v27  ;;  %v8038_v15 = vsel %vm16986_vm9, %v10738_v42, %v10742_v57  ;;  %v8037_v51 = vsel %vm16987_vm10, %v10737_v7, %v10738_v42  ;;  %v8051_v56 = vsel %vm16988_vm0, %v10743_v27, %v10737_v7  ;;  %vm16993_vm11 = vmmov %vm16992_vm5 }
0x1ba5   : > { %v8058_v22 = vmax.f32 %v15877_v43, %v8039_v45  ;;  %v8057_v13 = vmax.f32 %v15879_v4, %v8038_v15  ;;  %v8056_v30 = vmax.f32 %v15881_v31, %v8037_v51  ;;  %v8059_v41 = vmax.f32 %v15883_v49, %v8051_v56  ;;  %10750 = vrot.lane.b32.xlu1 %v10749_v1, %s16854_s11  ;;  %vm16994_vm9 = vmmov %vm16992_vm5  ;;  %v8418_v45 = vld [vmem:[%s16320_s8] sm:$0xff]  ;;  %v8419_v15 = vld [vmem:[%s16320_s8 + $0x8] sm:$0xff] }
0x1ba6   : > { %10745 = vrot.lane.b32.xlu0 %v10744_v48, %s16854_s11  ;;  %vm16995_vm10 = vmmov %vm16992_vm5  ;;  %v8420_v51 = vld [vmem:[%s16320_s8 + $0x10] sm:$0xff]  ;;  %v10264_v56 = vpack.c.bf16 %v8419_v15, %v8418_v45 }
0x1ba7   : > { %v10759_v37 = vpack.i.bf16 %v8059_v41, %v8058_v22  ;;  %v10754_v60 = vpack.i.bf16 %v8057_v13, %v8056_v30  ;;  %vm16996_vm0 = vmmov %vm16992_vm5 }
0x1ba9   : > { %10760 = vrot.lane.b32.xlu1 %v10759_v37, %s16854_s11 }
0x1baa   : > { %10755 = vrot.lane.b32.xlu0 %v10754_v60, %s16854_s11  ;;  %v8424_v60 = vld [vmem:[%s16320_s8 + $0x30] sm:$0xff] }
0x1c17   : > { %v10751_v36 = vpop.permute.xlu1 %10750 }
0x1c18   : > { %v10753_v55 = vunpack.i.h.bf16 %v10751_v36  ;;  %v10752_v26 = vunpack.i.l.bf16 %v10751_v36  ;;  %v10746_v43 = vpop.permute.xlu0 %10745  ;;  %v8425_v36 = vld [vmem:[%s16320_s8 + $0x38] sm:$0xff] }
0x1c19   : > { %v10748_v28 = vunpack.i.h.bf16 %v10746_v43  ;;  %v10747_v4 = vunpack.i.l.bf16 %v10746_v43  ;;  %v8427_v43 = vld [vmem:[%s16320_s8 + $0x48] sm:$0xff] }
0x1c1a   : > { %v8086_v31 = vsel %vm16989_vm8, %v10752_v26, %v10753_v55  ;;  %vm16997_vm8 = vcmask 1042432  }
0x1c1b   : > { %v8104_v20 = vmax.f32 %v8054_v23, %v8086_v31  ;;  %v8084_v49 = vsel %vm16990_vm12, %v10747_v4, %v10748_v28  ;;  %v10761_v18 = vpop.permute.xlu1 %10760  ;;  %v8085_v53 = vsel %vm16991_vm13, %v10748_v28, %v10752_v26  ;;  %v8100_v8 = vsel %vm16992_vm5, %v10753_v55, %v10747_v4  ;;  %v8426_v26 = vld [vmem:[%s16320_s8 + $0x40] sm:$0xff]  ;;  %v8428_v4 = vld [vmem:[%s16320_s8 + $0x50] sm:$0xff]  ;;  %v8429_v31 = vld [vmem:[%s16320_s8 + $0x58] sm:$0xff] }
0x1c1c   : > { %v8102_v39 = vmax.f32 %v8052_v35, %v8084_v49  ;;  %v10763_v40 = vunpack.i.h.bf16 %v10761_v18  ;;  %v10762_v50 = vunpack.i.l.bf16 %v10761_v18  ;;  %v10756_v3 = vpop.permute.xlu0 %10755  ;;  %v8103_v33 = vmax.f32 %v8053_v19, %v8085_v53  ;;  %v8430_v49 = vld [vmem:[%s16320_s8 + $0x60] sm:$0xff]  ;;  %v8431_v18 = vld [vmem:[%s16320_s8 + $0x68] sm:$0xff]  ;;  %vm16998_vm12 = vmmov %vm16997_vm8 }
0x1c1d   : > { %v10758_v2 = vunpack.i.h.bf16 %v10756_v3  ;;  %v10757_v61 = vunpack.i.l.bf16 %v10756_v3  ;;  %v8105_v12 = vmax.f32 %v8055_v62, %v8100_v8  ;;  %v10273_v55 = vpack.c.bf16 %v8425_v36, %v8424_v60  ;;  %v8432_v8 = vld [vmem:[%s16320_s8 + $0x70] sm:$0xff]  ;;  %v8435_v3 = vld [vmem:[%s16320_s8 + $0x88] sm:$0xff]  ;;  %vm16999_vm13 = vmmov %vm16997_vm8 }
0x1c1e   : > { %8238 = vmatprep.mubr.f32.mxu0 %v8103_v33  ;;  %v8089_v5 = vsel %vm16993_vm11, %v10762_v50, %v10763_v40  ;;  %v10276_v28 = vpack.c.bf16 %v8427_v43, %v8426_v26  ;;  %v10282_v53 = vpack.c.bf16 %v8431_v18, %v8430_v49  ;;  %vm17000_vm5 = vmmov %vm16997_vm8  ;;  %vm17002_vm11 = vcmask 1044480  }
0x1c1f   : > { %8313 = vmatprep.mubr.f32.mxu1 %v8105_v12  ;;  %8239 = vmatmul.mubr.f32.vlgmr.msra.gmra.mrb[60].mxu0 %v8102_v39  ;;  %v8088_v0 = vsel %vm16994_vm9, %v10758_v2, %v10762_v50  ;;  %v8101_v58 = vsel %vm16995_vm10, %v10763_v40, %v10757_v61  ;;  %v8087_v10 = vsel %vm16996_vm0, %v10757_v61, %v10758_v2  ;;  %v8433_v39 = vld [vmem:[%s16320_s8 + $0x78] sm:$0xff]  ;;  %v8434_v50 = vld [vmem:[%s16320_s8 + $0x80] sm:$0xff]  ;;  %v8436_v2 = vld [vmem:[%s16320_s8 + $0x90] sm:$0xff] }
0x1c20   : > { %8314 = vmatmul.mubr.f32.vlgmr.msra.gmra.mrb[56].mxu1 %v8104_v20  ;;  %v8107_v17 = vmax.f32 %v8057_v13, %v8088_v0  ;;  %v8109_v24 = vmax.f32 %v8059_v41, %v8101_v58  ;;  %v8106_v6 = vmax.f32 %v8056_v30, %v8087_v10  ;;  %v8108_v23 = vmax.f32 %v8058_v22, %v8089_v5  ;;  %v8421_v22 = vld [vmem:[%s16320_s8 + $0x18] sm:$0xff]  ;;  %v8422_v30 = vld [vmem:[%s16320_s8 + $0x20] sm:$0xff]  ;;  %v8423_v41 = vld [vmem:[%s16320_s8 + $0x28] sm:$0xff] }
0x1c21   : > { %10265 = vmatpush1.bf16.msra.mxu0 %v10264_v56  ;;  %v10267_v13 = vpack.c.bf16 %v8421_v22, %v8420_v51  ;;  %v10270_v37 = vpack.c.bf16 %v8423_v41, %v8422_v30  ;;  %v10279_v20 = vpack.c.bf16 %v8429_v31, %v8428_v4  ;;  %v10285_v40 = vpack.c.bf16 %v8433_v39, %v8432_v8  ;;  %v8437_v61 = vld [vmem:[%s16320_s8 + $0x98] sm:$0xff]  ;;  %v8438_v5 = vld [vmem:[%s16320_s8 + $0xa0] sm:$0xff]  ;;  %v8439_v0 = vld [vmem:[%s16320_s8 + $0xa8] sm:$0xff] }
0x1c22   : > { %8243 = vmatprep.mubr.f32.mxu0 %v8107_v17  ;;  %8318 = vmatprep.mubr.f32.mxu1 %v8109_v24  ;;  %v10288_v33 = vpack.c.bf16 %v8435_v3, %v8434_v50  ;;  %v10291_v12 = vpack.c.bf16 %v8437_v61, %v8436_v2  ;;  %v10294_v58 = vpack.c.bf16 %v8439_v0, %v8438_v5  ;;  %v8440_v10 = vld [vmem:[%s16320_s8 + $0xb0] sm:$0xff]  ;;  %v8441_v17 = vld [vmem:[%s16320_s8 + $0xb8] sm:$0xff] }
0x1c23   : > { %8244 = vmatmul.mubr.f32.gmra.mrb[62].mxu0 %v8106_v6  ;;  %10266 = vmatprep.subr.bf16.mxu0 %v16941_v38  ;;  %v10297_v6 = vpack.c.bf16 %v8441_v17, %v8440_v10 }
0x1c24   : > { %8319 = vmatmul.mubr.f32.gmra.mrb[58].mxu1 %v8108_v23 }
0x1c25   : > { %8617 = vmatprep.mubr.f32.mxu1 %v16940_v47  ;;  %10268 = vmatpush1.bf16.msra.mxu0 %v10267_v13 }
0x1c26   : > { %10269 = vmatprep.subr.bf16.mxu0 %v16941_v38 }
0x1c29   : > { %10271 = vmatpush1.bf16.msra.mxu0 %v10270_v37 }
0x1c2a   : > { %10272 = vmatprep.subr.bf16.mxu0 %v16941_v38 }
0x1c2d   : > { %10274 = vmatpush1.bf16.msra.mxu0 %v10273_v55 }
0x1c2e   : > { %10275 = vmatprep.subr.bf16.mxu0 %v16941_v38 }
0x1c31   : > { %10277 = vmatpush1.bf16.msra.mxu0 %v10276_v28 }
0x1c32   : > { %10278 = vmatprep.subr.bf16.mxu0 %v16941_v38 }
0x1c35   : > { %10280 = vmatpush1.bf16.msra.mxu0 %v10279_v20 }
0x1c36   : > { %10281 = vmatprep.subr.bf16.mxu0 %v16941_v38 }
0x1c39   : > { %10283 = vmatpush1.bf16.msra.mxu0 %v10282_v53 }
0x1c3a   : > { %10284 = vmatprep.subr.bf16.mxu0 %v16941_v38 }
0x1c3d   : > { %10286 = vmatpush1.bf16.msra.mxu0 %v10285_v40 }
0x1c3e   : > { %10287 = vmatprep.subr.bf16.mxu0 %v16941_v38 }
0x1c41   : > { %10289 = vmatpush1.bf16.msra.mxu0 %v10288_v33 }
0x1c42   : > { %10290 = vmatprep.subr.bf16.mxu0 %v16941_v38 }
0x1c45   : > { %10292 = vmatpush1.bf16.msra.mxu0 %v10291_v12 }
0x1c46   : > { %10293 = vmatprep.subr.bf16.mxu0 %v16941_v38 }
0x1c49   : > { %10295 = vmatpush1.bf16.msra.mxu0 %v10294_v58 }
0x1c4a   : > { %10296 = vmatprep.subr.bf16.mxu0 %v16941_v38 }
0x1c4d   : > { %10298 = vmatpush1.bf16.msra.mxu0 %v10297_v6 }
0x1c4e   : > { %10299 = vmatprep.subr.bf16.mxu0 %v16941_v38 }
0x1cf2   : > { %v9489_v25 = vpop.f32.mrb[60].mxu0 }
0x1cf3   : > { %v9527_v44 = vpop.f32.mrb[56].mxu1  ;;  %v9490_v63 = vpop.f32.mrb[61].mxu0 }
0x1cf4   : > { %v9491_v52 = vadd.f32 %v9490_v63, %v9489_v25  ;;  %v9528_v19 = vpop.f32.mrb[57].mxu1  ;;  %v8443_v63 = vld [vmem:[%s16320_s8 + $0xc8] sm:$0xff] }
0x1cf5   : > { %v9529_v35 = vadd.f32 %v9528_v19, %v9527_v44  ;;  %v8442_v44 = vld [vmem:[%s16320_s8 + $0xc0] sm:$0xff] }
0x1cf6   : > { %v9492_v62 = vpop.f32.mrb[62].mxu0  ;;  %v10300_v19 = vpack.c.bf16 %v8443_v63, %v8442_v44 }
0x1cf7   : > { %v8316_v27 = vadd.f32 %v9529_v35, %v9491_v52  ;;  %v9530_v16 = vpop.f32.mrb[58].mxu1  ;;  %v9493_v57 = vpop.f32.mrb[63].mxu0 }
0x1cf8   : > { %v9494_v42 = vadd.f32 %v9493_v57, %v9492_v62  ;;  %v9531_v7 = vpop.f32.mrb[59].mxu1  ;;  %10301 = vmatpush1.bf16.msra.mxu0 %v10300_v19 }
0x1cf9   : > { %v9532_v1 = vadd.f32 %v9531_v7, %v9530_v16  ;;  %8326 = vrot.lane.b32.xlu0 %v8316_v27, %s16862_s17  ;;  %10302 = vmatprep.subr.bf16.mxu0 %v16941_v38  ;;  %v8444_v27 = vld [vmem:[%s16320_s8 + $0xd0] sm:$0xff]  ;;  %v8445_v16 = vld [vmem:[%s16320_s8 + $0xd8] sm:$0xff] }
0x1cfb   : > { %v8321_v48 = vadd.f32 %v9532_v1, %v9494_v42  ;;  %v10303_v1 = vpack.c.bf16 %v8445_v16, %v8444_v27 }
0x1cfd   : > { %8328 = vrot.lane.b32.xlu1 %v8321_v48, %s16862_s17  ;;  %10304 = vmatpush1.bf16.msra.mxu0 %v10303_v1  ;;  %v8540_v1 = vld [vmem:[%s16321_s9 + $0x8] sm:$0xff] }
0x1d6b   : > { %v8327_v24 = vpop.permute.xlu0 %8326 }
0x1d6c   : > { %v8332_v23 = vsel %vm2283_vm14, %v15841_v11, %v8327_v24 }
0x1d6d   : > { %v8336_v25 = vrot.slane %v8332_v23, 5 }
0x1d6f   : > { %v8329_v52 = vpop.permute.xlu1 %8328  ;;  %v8342_v35 = vsel %vm16997_vm8, 0.0, %v8336_v25 }
0x1d70   : > { %v8333_v62 = vsel %vm2283_vm14, %v15843_v59, %v8329_v52  ;;  %v8386_v7 = vrot.slane %v8342_v35, 5  ;;  %v8346_v48 = vrot.slane %v8342_v35, 1  ;;  %v8357_v15 = vrot.slane %v8342_v35, 2 }
0x1d71   : > { %v8337_v11 = vrot.slane %v8333_v62, 5  ;;  %v8397_v60 = vrot.slane %v8342_v35, 6  ;;  %v8368_v20 = vrot.slane %v8342_v35, 3  ;;  %v8379_v3 = vrot.slane %v8342_v35, 4 }
0x1d73   : > { %v16220_v57 = vsel %vm16998_vm12, %v8336_v25, %v8337_v11  ;;  %v8343_v42 = vsel %vm16999_vm13, %v8337_v11, 0.0 }
0x1d74   : > { %v8387_v59 = vrot.slane %v16220_v57, 5  ;;  %v8347_v38 = vrot.slane %v16220_v57, 1  ;;  %v8349_v45 = vrot.slane %v8343_v42, 1  ;;  %v8358_v51 = vrot.slane %v16220_v57, 2 }
0x1d75   : > { %v8360_v56 = vrot.slane %v8343_v42, 2  ;;  %v8398_v41 = vrot.slane %v16220_v57, 6  ;;  %v8389_v43 = vrot.slane %v8343_v42, 5  ;;  %v8369_v4 = vrot.slane %v16220_v57, 3 }
0x1d76   : > { %v8388_v22 = vsel %vm17000_vm5, %v8386_v7, %v8387_v59  ;;  %v8348_v13 = vsel %vm580_vm1, %v8346_v48, %v8347_v38  ;;  %v8350_v30 = vsel %vm580_vm1, %v8347_v38, %v8349_v45  ;;  %v8359_v36 = vsel %vm662_vm2, %v8357_v15, %v8358_v51  ;;  %vm17001_vm1 = vmmov %vm17000_vm5  ;;  %v8543_v38 = vld [vmem:[%s16321_s9 + $0x20] sm:$0xff]  ;;  %v8542_v15 = vld [vmem:[%s16321_s9 + $0x18] sm:$0xff] }
0x1d77   : > { %8391 = vrot.lane.b32.xlu1 %v8388_v22, %s16867_s25  ;;  %v10764_v37 = vpack.i.bf16 %v8350_v30, %v8348_v13  ;;  %v8361_v55 = vsel %vm662_vm2, %v8358_v51, %v8360_v56  ;;  %v8399_v26 = vsel %vm1393_vm6, %v8397_v60, %v8398_v41  ;;  %v8390_v31 = vsel %vm17001_vm1, %v8387_v59, %v8389_v43  ;;  %vm17003_vm2 = vmmov %vm17002_vm11  ;;  %v8544_v59 = vld [vmem:[%s16321_s9 + $0x28] sm:$0xff]  ;;  %v8546_v51 = vld [vmem:[%s16321_s9 + $0x38] sm:$0xff] }
0x1d78   : > { %v10769_v28 = vpack.i.bf16 %v8361_v55, %v8359_v36  ;;  %v8371_v49 = vrot.slane %v8343_v42, 3  ;;  %v8370_v18 = vsel %vm17002_vm11, %v8368_v20, %v8369_v4  ;;  %v8400_v53 = vrot.slane %v8343_v42, 6  ;;  %v8545_v20 = vld [vmem:[%s16321_s9 + $0x30] sm:$0xff] }
0x1d79   : > { %10765 = vrot.lane.b32.xlu0 %v10764_v37, %s16867_s25  ;;  %v8380_v40 = vrot.slane %v16220_v57, 4  ;;  %v8382_v6 = vrot.slane %v8343_v42, 4  ;;  %v10305_v48 = vpack.c.bf16 %v8544_v59, %v8540_v1  ;;  %v10309_v56 = vpack.c.bf16 %v8546_v51, %v8542_v15 }
0x1d7a   : > { %v8372_v8 = vsel %vm17003_vm2, %v8369_v4, %v8371_v49  ;;  %v8401_v39 = vsel %vm1393_vm6, %v8398_v41, %v8400_v53 }
0x1d7b   : > { %8402 = vrot.lane.b32.xlu1 %v8399_v26, %s16745_s12  ;;  %v8381_v2 = vsel %vm2333_vm7, %v8379_v3, %v8380_v40  ;;  %v8383_v19 = vsel %vm2333_vm7, %v8380_v40, %v8382_v6  ;;  %10306 = vmatprep.subr.bf16.mxu1 %v10305_v48 }
0x1d7d   : > { %10770 = vrot.lane.b32.xlu0 %v10769_v28, %s16745_s12 }
0x1d7f   : > { %8393 = vrot.lane.b32.xlu1 %v8390_v31, %s16867_s25  ;;  %v8541_v31 = vld [vmem:[%s16321_s9 + $0x10] sm:$0xff] }
0x1d80   : > { %v10311_v49 = vpack.c.bf16 %v8545_v20, %v8541_v31 }
0x1d81   : > { %8373 = vrot.lane.b32.xlu0 %v8370_v18, %s16747_s21 }
0x1d83   : > { %8375 = vrot.lane.b32.xlu1 %v8372_v8, %s16747_s21 }
0x1d85   : > { %8404 = vrot.lane.b32.xlu0 %v8401_v39, %s16745_s12 }
0x1de9   : > { %v8392_v50 = vpop.permute.xlu1 %8391 }
0x1dea   : > { %v8414_v61 = vsel %vm473_vm3, %v8381_v2, %v8392_v50 }
0x1deb   : > { %v10766_v33 = vpop.permute.xlu0 %10765 }
0x1dec   : > { %v10767_v12 = vunpack.i.l.bf16 %v10766_v33  ;;  %v10768_v25 = vunpack.i.h.bf16 %v10766_v33 }
0x1ded   : > { %v8403_v5 = vpop.permute.xlu1 %8402 }
0x1dee   : > { %v8416_v0 = vsel %vm2365_vm15, %v8414_v61, %v8403_v5  ;;  %v8408_v24 = vsel %vm473_vm3, %v8342_v35, %v10767_v12  ;;  %v8409_v16 = vsel %vm473_vm3, %v16220_v57, %v10768_v25  ;;  %v8539_v57 = vld [vmem:[%s16321_s9] sm:$0xff] }
0x1def   : > { %8887 = vmatprep.mubr.msk.f32.mxu0 %vm922_vm4, %v8416_v0  ;;  %v10771_v58 = vpop.permute.xlu0 %10770  ;;  %v10307_v45 = vpack.c.bf16 %v8543_v38, %v8539_v57 }
0x1df0   : > { %v10772_v10 = vunpack.i.l.bf16 %v10771_v58  ;;  %v10773_v63 = vunpack.i.h.bf16 %v10771_v58 }
0x1df1   : > { %v8394_v17 = vpop.permute.xlu1 %8393  ;;  %10308 = vmatpush1.bf16.msra.mxu1 %v10307_v45 }
0x1df2   : > { %v8410_v23 = vsel %vm2365_vm15, %v8408_v24, %v10772_v10  ;;  %v8415_v11 = vsel %vm473_vm3, %v8383_v19, %v8394_v17  ;;  %v8411_v42 = vsel %vm2365_vm15, %v8409_v16, %v10773_v63  ;;  %10310 = vmatprep.subr.bf16.mxu1 %v10309_v56 }
0x1df3   : > { %v8374_v44 = vpop.permute.xlu0 %8373 }
0x1df4   : > { %v8412_v52 = vsel %vm922_vm4, %v8410_v23, %v8374_v44 }
0x1df5   : > { %8517 = vmatmul.mubr.f32.vlgmr.msra.gmra.mrb[64].mxu0 %v8412_v52  ;;  %v8376_v62 = vpop.permute.xlu1 %8375 }
0x1df6   : > { %v8413_v7 = vsel %vm922_vm4, %v8411_v42, %v8376_v62 }
0x1df7   : > { %v8405_v27 = vpop.permute.xlu0 %8404 }
0x1df8   : > { %v8417_v35 = vsel %vm2365_vm15, %v8415_v11, %v8405_v27 }
0x1df9   : > { %8888 = vmatprep.mubr.msk.f32.mxu0 %vm922_vm4, %v8417_v35 }
0x1dfa   : > { %8522 = vmatmul.mubr.f32.gmra.mrb[66].mxu0 %v8413_v7 }
0x1ec8   : > { %v8518_v22 = vpop.f32.mrb[64].mxu0 }
0x1ec9   : > { %v8527_v13 = vsub.f32 0.0, %v8518_v22  ;;  %v8520_v30 = vpop.f32.mrb[65].mxu0 }
0x1ecb   : > { %v8529_v41 = vmul.f32 1.442695, %v8527_v13 }
0x1ecd   : > { %10863 = vpow2.f32 %v8529_v41  ;;  %v8523_v37 = vpop.f32.mrb[66].mxu0 }
0x1ece   : > { %v8528_v60 = vsub.f32 0.0, %v8523_v37  ;;  %v8525_v36 = vpop.f32.mrb[67].mxu0 }
0x1ed0   : > { %v8531_v55 = vmul.f32 1.442695, %v8528_v60 }
0x1ed2   : > { %10865 = vpow2.f32 %v8531_v55 }
0x1ed7   : > { %v10864_v26 = vpop.eup %10863 }
0x1ed8   : > { %v8533_v43 = vadd.f32 1.0, %v10864_v26 }
0x1eda   : > { %10867 = vrcp.f32 %v8533_v43 }
0x1edc   : > { %v10866_v28 = vpop.eup %10865 }
0x1edd   : > { %v8534_v4 = vadd.f32 1.0, %v10866_v28 }
0x1edf   : > { %10869 = vrcp.f32 %v8534_v4 }
0x1ee4   : > { %v10868_v18 = vpop.eup %10867 }
0x1ee5   : > { %8889 = vmatmul.mubr.msk.f32.vlgmr.msra.gmra.mrb[60].mxu1 %vm2283_vm14, %v10868_v18 }
0x1ee6   : > { %10312 = vmatpush1.bf16.msra.mxu1 %v10311_v49  ;;  %8623 = vmatprep.mubr.f32.mxu1 %v16940_v47 }
0x1ee9   : > { %v10870_v53 = vpop.eup %10869 }
0x1eea   : > { %8890 = vmatmul.mubr.msk.f32.gmra.mrb[62].mxu1 %vm2283_vm14, %v10870_v53 }
0x1eeb   : > { %8694 = vmatprep.mubr.f32.mxu1 %v16940_v47 }
0x1eee   : > { %8891 = vmatmul.mubr.msk.f32.vlgmr.msra.gmra.mrb[64].mxu1 %vm2283_vm14, %v10868_v18 }
0x1eef   : > { %8700 = vmatprep.mubr.f32.mxu1 %v16940_v47 }
0x1ef2   : > { %8892 = vmatmul.mubr.msk.f32.gmra.mrb[66].mxu1 %vm2283_vm14, %v10870_v53 }
0x1fb8   : > { %v8619_v8 = vpop.f32.mrb[60].mxu1 }
0x1fb9   : > { %v8707_v39 = vmul.f32 %v8619_v8, %v15776_v32  ;;  %v8621_v40 = vpop.f32.mrb[61].mxu1 }
0x1fba   : > { %v8708_v50 = vmul.f32 %v8621_v40, %v15779_v54 }
0x1fbb   : > { %8893 = vst [vmem:[%s12952_s22 + $0xc0] sm:$0xff] %v8707_v39 }
0x1fbc   : > { %8894 = vst [vmem:[%s12952_s22 + $0xc8] sm:$0xff] %v8708_v50 }
0x1fbd   : > { %v8625_v3 = vpop.f32.mrb[62].mxu1 }
0x1fbe   : > { %v8711_v33 = vmul.f32 %v8625_v3, %v15790_v14  ;;  %v8627_v2 = vpop.f32.mrb[63].mxu1 }
0x1fbf   : > { %v8712_v47 = vmul.f32 %v8627_v2, %v15786_v34 }
0x1fc0   : > { %8897 = vst [vmem:[%s12952_s22 + $0xe0] sm:$0xff] %v8711_v33 }
0x1fc1   : > { %8898 = vst [vmem:[%s12952_s22 + $0xe8] sm:$0xff] %v8712_v47  ;;  %v8696_v61 = vpop.f32.mrb[64].mxu1 }
0x1fc2   : > { %v8709_v12 = vmul.f32 %v8696_v61, %v15794_v9  ;;  %v8698_v32 = vpop.f32.mrb[65].mxu1 }
0x1fc3   : > { %v8710_v5 = vmul.f32 %v8698_v32, %v15799_v46 }
0x1fc4   : > { %8895 = vst [vmem:[%s12952_s22 + $0xd0] sm:$0xff] %v8709_v12 }
0x1fc5   : > { %8896 = vst [vmem:[%s12952_s22 + $0xd8] sm:$0xff] %v8710_v5  ;;  %v8702_v54 = vpop.f32.mrb[66].mxu1 }
0x1fc6   : > { %v8713_v0 = vmul.f32 %v8702_v54, %v15810_v29  ;;  %v8704_v58 = vpop.f32.mrb[67].mxu1 }
0x1fc7   : > { %v8714_v14 = vmul.f32 %v8704_v58, %v15807_v21 }
0x1fc8   : > { %8899 = vst [vmem:[%s12952_s22 + $0xf0] sm:$0xff] %v8713_v0 }
0x1fc9   : > { %8900 = vst [vmem:[%s12952_s22 + $0xf8] sm:$0xff] %v8714_v14 }
0x1fca PF: > { %s20_s13 = sadd.s32 1, %s10877_s13  }
0x1fcb   : > { %p17_p4 = scmp.ge.s32.totalorder %s20_s13, 4  }
0x1fcd   :  { %19 = sbr.rel (!%p17_p4) target bundleno = 3 (0x3), region = 104 }

</bundles_post_ra>
